<compile_context>
chip_gen: v7x
topology: tpu7x:2x2x1
jax: 0.10.0
libtpu: 0.0.40
codegen_flags: <defaults>
</compile_context>

<pallas_src>
import functools

import jax
import jax.numpy as jnp
import numpy as np
from jax.experimental import pallas as pl
from jax.experimental.pallas import tpu as pltpu


# ----------------------------------------------------------------------------
# Host-side: per-tap boundary masks (pixel index = lane % (H*W), so a batch
# folded into lanes can never leak across image boundaries via roll wrap).
# ----------------------------------------------------------------------------
def _build_boundary_masks(k_sizes, H, W, n_lanes):
    hw = H * W
    pix = np.arange(n_lanes) % hw
    h = pix // W
    w = pix % W
    rows = []
    offs_by_k = {}
    layer_offs = []
    for K in k_sizes:
        if K not in offs_by_k:
            offs_by_k[K] = len(rows)
            p = (K - 1) // 2
            for dy in range(-p, p + 1):
                for dx in range(-p, p + 1):
                    valid = ((h + dy >= 0) & (h + dy < H) &
                             (w + dx >= 0) & (w + dx < W))
                    rows.append(valid.astype(np.float32))
        layer_offs.append(offs_by_k[K])
    return np.stack(rows, axis=0), layer_offs


# ----------------------------------------------------------------------------
# Fused kernel: conv(d_size)+ReLU -> conv3+ReLU -> conv3+ReLU -> conv3
# Activations stay in VMEM/vregs throughout; one grid block = one lane slab.
# ----------------------------------------------------------------------------
def _headnet_kernel(x_ref, m_ref, w1_ref, w2_ref, w3_ref, w4_ref, o_ref,
                    *, W, ks, mask_offs):
    n_lanes = x_ref.shape[-1]

    def conv(act, w_ref, K, m_off):
        # act: (Cin, N); w_ref: (K*K, Cout, Cin); returns (Cout, N) f32.
        p = (K - 1) // 2
        cout = w_ref.shape[1]
        acc = jnp.zeros((cout, n_lanes), jnp.float32)
        t = 0
        for dy in range(-p, p + 1):
            for dx in range(-p, p + 1):
                s = dy * W + dx
                shifted = act if s == 0 else pltpu.roll(act, (-s) % n_lanes, axis=1)
                tap = shifted * m_ref[pl.ds(m_off + t, 1), :]      # zero-pad mask
                acc = acc + jnp.dot(w_ref[t], tap,                  # per-tap MXU
                                    preferred_element_type=jnp.float32)
                t += 1
        return acc

    act = x_ref[...].astype(jnp.float32)                            # (Cin_pad, N)
    w_refs = (w1_ref, w2_ref, w3_ref, w4_ref)
    for i, (w_ref, k, off) in enumerate(zip(w_refs, ks, mask_offs)):
        act = conv(act, w_ref, k, off)
        if i < len(w_refs) - 1:                                      # ReLU 1..3
            act = jnp.maximum(act, 0.0)
    o_ref[...] = act.astype(o_ref.dtype)                            # lane-dense


def headnet_forward_pallas(x_folded, masks, w_taps, k_sizes, mask_offs, W,
                           batch_blocks):
    """x_folded: (Cin_pad, B*HW); masks: (n_taps, Nb); w_taps[i]: (K*K, Cout, Cin_pad)."""
    cin_pad, n_total = x_folded.shape
    cout = w_taps[0].shape[1]
    g = batch_blocks
    assert n_total % g == 0
    nb = n_total // g
    assert g == 1 or nb % 128 == 0

    kernel = functools.partial(_headnet_kernel, W=W, ks=tuple(k_sizes),
                               mask_offs=tuple(mask_offs))

    flops = 0
    for w in w_taps:
        kk, co, ci = w.shape
        flops += 2 * kk * co * ci * n_total
    bytes_accessed = 4 * (x_folded.size + masks.size
                          + sum(int(w.size) for w in w_taps) + cout * n_total)

    return pl.pallas_call(
        kernel,
        out_shape=jax.ShapeDtypeStruct((cout, n_total), x_folded.dtype),
        grid=(g,),
        in_specs=[
            pl.BlockSpec((cin_pad, nb), lambda i: (0, i)),
            pl.BlockSpec(masks.shape, lambda i: (0, 0)),
            pl.BlockSpec(w_taps[0].shape, lambda i: (0, 0, 0)),
            pl.BlockSpec(w_taps[1].shape, lambda i: (0, 0, 0)),
            pl.BlockSpec(w_taps[2].shape, lambda i: (0, 0, 0)),
            pl.BlockSpec(w_taps[3].shape, lambda i: (0, 0, 0)),
        ],
        out_specs=pl.BlockSpec((cout, nb), lambda i: (0, i)),
        compiler_params=pltpu.CompilerParams(
            dimension_semantics=("parallel",)),
        cost_estimate=pl.CostEstimate(flops=flops, transcendentals=0,
                                      bytes_accessed=bytes_accessed),
    )(x_folded, masks, *w_taps)


# ----------------------------------------------------------------------------
# HeadNet wrapper
# ----------------------------------------------------------------------------
class HeadNetPallas:
    def __init__(self, in_nc, nc_x, out_nc, d_size, key):
        assert d_size % 2 == 1, "padding=(d_size-1)//2 is 'same' only for odd d_size"
        self.in_nc = in_nc
        self.nc0 = nc_x[0]
        self.out_nc = out_nc
        self.d_size = d_size
        self.k_sizes = [d_size, 3, 3, 3]
        self.cin_pad0 = ((in_nc + 7) // 8) * 8          # sublane-align conv1 Cin

        def init_w(k, cout, cin, ksz):
            bound = 1.0 / np.sqrt(cin * ksz * ksz)
            return jax.random.uniform(k, (cout, cin, ksz, ksz),
                                      dtype=jnp.float32,
                                      minval=-bound, maxval=bound)

        k1, k2, k3, k4 = jax.random.split(key, 4)
        # OIHW weights (kept for the lax.conv reference check).
        self.weights = [
            init_w(k1, self.nc0, in_nc, d_size),   # conv1 (d_size x d_size)
            init_w(k2, self.nc0, self.nc0, 3),     # conv2 (3x3)
            init_w(k3, self.nc0, self.nc0, 3),     # conv3 (3x3)
            init_w(k4, self.nc0, self.nc0, 3),     # conv4 (3x3)
        ]

        # Tap-major matmul weights (K*K, Cout, Cin_pad), precomputed ONCE.
        # Tap order (ky, kx) matches the (dy, dx) loop inside the kernel.
        def to_taps(w, cin_pad):
            cout, cin, ksz, _ = w.shape
            wt = jnp.transpose(w, (2, 3, 0, 1)).reshape(ksz * ksz, cout, cin)
            if cin_pad > cin:
                wt = jnp.pad(wt, ((0, 0), (0, 0), (0, cin_pad - cin)))
            return wt

        pads = [self.cin_pad0, self.nc0, self.nc0, self.nc0]
        self.w_taps = [to_taps(w, p) for w, p in zip(self.weights, pads)]
        self._mask_cache = {}

    @staticmethod
    def _pick_batch_blocks(batch, hw):
        """One grid block per TensorCore: 1 on v5e/v6e (single TC), 2 on v7x-class."""
        kind = ""
        try:
            kind = jax.devices()[0].device_kind.lower()
        except Exception:
            pass
        want = 2 if ("v7" in kind or "7x" in kind) else 1
        g = min(want, batch)
        while g > 1 and (batch % g != 0 or ((batch // g) * hw) % 128 != 0):
            g -= 1
        return max(g, 1)

    def __call__(self, y_nchw):
        B, cin, H, W = y_nchw.shape
        hw = H * W
        g = self._pick_batch_blocks(B, hw)
        nb = (B // g) * hw

        # Fold the batch into lanes: (Cin_pad, B*HW), channels on sublanes.
        x = jnp.transpose(y_nchw.reshape(B, cin, hw), (1, 0, 2)).reshape(cin, B * hw)
        x = x.astype(jnp.float32)
        if self.cin_pad0 > cin:
            x = jnp.pad(x, ((0, self.cin_pad0 - cin), (0, 0)))

        mkey = (H, W, nb)
        if mkey not in self._mask_cache:
            m_np, offs = _build_boundary_masks(self.k_sizes, H, W, nb)
            self._mask_cache[mkey] = (jnp.asarray(m_np), offs)
        masks, mask_offs = self._mask_cache[mkey]

        out = headnet_forward_pallas(x, masks, self.w_taps, self.k_sizes,
                                     mask_offs, W, g)
        x_out = out.reshape(self.nc0, B, hw).transpose(1, 0, 2)
        x_out = x_out.reshape(B, self.nc0, H, W).astype(y_nchw.dtype)

        # head_d: plain zeros buffer repeated over the batch (pure data, no kernel).
        d = jnp.zeros((B, self.out_nc, self.nc0, self.d_size, self.d_size),
                      dtype=y_nchw.dtype)
        return x_out, d


# ----------------------------------------------------------------------------
# Pure-JAX reference (lax.conv) for a correctness sanity check.
# ----------------------------------------------------------------------------
def _ref_forward(net, y_nchw):
    x = y_nchw
    relu_flags = [True, True, True, False]
    for w, relu in zip(net.weights, relu_flags):
        p = (w.shape[-1] - 1) // 2
        x = jax.lax.conv_general_dilated(
            x, w, window_strides=(1, 1), padding=[(p, p), (p, p)],
            dimension_numbers=("NCHW", "OIHW", "NCHW"))
        if relu:
            x = jnp.maximum(x, 0.0)
    B = y_nchw.shape[0]
    d = jnp.zeros((B, net.out_nc, net.nc0, net.d_size, net.d_size),
                  dtype=y_nchw.dtype)
    return x, d


if __name__ == "__main__":
    # HeadNet(in_nc=4, nc_x=[32], out_nc=3, d_size=5), input y (B=2, 4, 16, 16).
    key = jax.random.PRNGKey(0)
    k_param, k_data = jax.random.split(key)

    in_nc, nc_x, out_nc, d_size = 4, [32], 3, 5
    B, H, W = 2, 16, 16

    net = HeadNetPallas(in_nc, nc_x, out_nc, d_size, k_param)
    y = jax.random.normal(k_data, (B, in_nc, H, W), dtype=jnp.float32)

    x_out, d_out = net(y)
    x_out = jax.block_until_ready(x_out)
    d_out = jax.block_until_ready(d_out)

    # Sanity check against a pure-JAX reference.
    x_ref, d_ref = _ref_forward(net, y)
    assert x_out.shape == (B, nc_x[0], H, W)
    assert d_out.shape == (B, out_nc, nc_x[0], d_size, d_size)
    np.testing.assert_allclose(np.asarray(x_out), np.asarray(x_ref),
                               rtol=1e-4, atol=1e-4)
    np.testing.assert_allclose(np.asarray(d_out), np.asarray(d_ref),
                               rtol=0, atol=0)

    print("KERNEL_OK")
</pallas_src>

<mosaic_0001>
module attributes {stable_mosaic.version = 11 : i64} {
  func.func @_headnet_kernel(%arg0: i32, %arg1: memref<8x512xf32, #tpu.memory_space<vmem>>, %arg2: memref<34x512xf32, #tpu.memory_space<vmem>>, %arg3: memref<25x32x8xf32, #tpu.memory_space<vmem>>, %arg4: memref<9x32x32xf32, #tpu.memory_space<vmem>>, %arg5: memref<9x32x32xf32, #tpu.memory_space<vmem>>, %arg6: memref<9x32x32xf32, #tpu.memory_space<vmem>>, %arg7: memref<32x512xf32, #tpu.memory_space<vmem>>) attributes {dimension_semantics = [#tpu.dimension_semantics<parallel>], iteration_bounds = array<i64: 1>, scalar_prefetch = 0 : i64, scratch_operands = 0 : i64, tpu.core_type = #tpu.core_type<tc>, window_params = [{transform_indices = @transform_0, window_bounds = array<i64: 8, 512>}, {pipeline_mode = #tpu.pipeline_mode<synchronous>, transform_indices = @transform_1, window_bounds = array<i64: 34, 512>}, {pipeline_mode = #tpu.pipeline_mode<synchronous>, transform_indices = @transform_2, window_bounds = array<i64: 25, 32, 8>}, {pipeline_mode = #tpu.pipeline_mode<synchronous>, transform_indices = @transform_3, window_bounds = array<i64: 9, 32, 32>}, {pipeline_mode = #tpu.pipeline_mode<synchronous>, transform_indices = @transform_4, window_bounds = array<i64: 9, 32, 32>}, {pipeline_mode = #tpu.pipeline_mode<synchronous>, transform_indices = @transform_5, window_bounds = array<i64: 9, 32, 32>}, {transform_indices = @transform_6, window_bounds = array<i64: 32, 512>}]} {
    %c0 = arith.constant 0 : index
    %c0_0 = arith.constant 0 : index
    %0 = vector.load %arg1[%c0, %c0_0] : memref<8x512xf32, #tpu.memory_space<vmem>>, vector<8x512xf32>
    %cst = arith.constant 0.000000e+00 : f32
    %1 = vector.broadcast %cst : f32 to vector<32x512xf32>
    %c34_i32 = arith.constant 34 : i32
    %2 = tpu.dynamic_rotate %0 by %c34_i32 dim 1 : vector<8x512xf32>, i32 -> vector<8x512xf32>
    %c0_1 = arith.constant 0 : index
    %c0_2 = arith.constant 0 : index
    %3 = vector.load %arg2[%c0_1, %c0_2] : memref<34x512xf32, #tpu.memory_space<vmem>>, vector<1x512xf32>
    %4 = vector.broadcast %3 : vector<1x512xf32> to vector<8x512xf32>
    %5 = arith.mulf %2, %4 : vector<8x512xf32>
    %c0_3 = arith.constant 0 : index
    %c0_4 = arith.constant 0 : index
    %c0_5 = arith.constant 0 : index
    %6 = vector.load %arg3[%c0_3, %c0_4, %c0_5] : memref<25x32x8xf32, #tpu.memory_space<vmem>>, vector<1x32x8xf32>
    %7 = vector.shape_cast %6 : vector<1x32x8xf32> to vector<32x8xf32>
    %cst_6 = arith.constant dense<0.000000e+00> : vector<32x512xf32>
    %8 = tpu.matmul %7, %5, %cst_6 {dimension_numbers = #tpu.dot_dimension_numbers<[1], [0], [0], [1], [0, 0, 1, 1], [], []>} : vector<32x8xf32>, vector<8x512xf32>, vector<32x512xf32> -> vector<32x512xf32>
    %9 = arith.addf %1, %8 : vector<32x512xf32>
    %c33_i32 = arith.constant 33 : i32
    %10 = tpu.dynamic_rotate %0 by %c33_i32 dim 1 : vector<8x512xf32>, i32 -> vector<8x512xf32>
    %c1 = arith.constant 1 : index
    %c0_7 = arith.constant 0 : index
    %11 = vector.load %arg2[%c1, %c0_7] : memref<34x512xf32, #tpu.memory_space<vmem>>, vector<1x512xf32>
    %12 = vector.broadcast %11 : vector<1x512xf32> to vector<8x512xf32>
    %13 = arith.mulf %10, %12 : vector<8x512xf32>
    %c1_8 = arith.constant 1 : index
    %c0_9 = arith.constant 0 : index
    %c0_10 = arith.constant 0 : index
    %14 = vector.load %arg3[%c1_8, %c0_9, %c0_10] : memref<25x32x8xf32, #tpu.memory_space<vmem>>, vector<1x32x8xf32>
    %15 = vector.shape_cast %14 : vector<1x32x8xf32> to vector<32x8xf32>
    %cst_11 = arith.constant dense<0.000000e+00> : vector<32x512xf32>
    %16 = tpu.matmul %15, %13, %cst_11 {dimension_numbers = #tpu.dot_dimension_numbers<[1], [0], [0], [1], [0, 0, 1, 1], [], []>} : vector<32x8xf32>, vector<8x512xf32>, vector<32x512xf32> -> vector<32x512xf32>
    %17 = arith.addf %9, %16 : vector<32x512xf32>
    %c32_i32 = arith.constant 32 : i32
    %18 = tpu.dynamic_rotate %0 by %c32_i32 dim 1 : vector<8x512xf32>, i32 -> vector<8x512xf32>
    %c2 = arith.constant 2 : index
    %c0_12 = arith.constant 0 : index
    %19 = vector.load %arg2[%c2, %c0_12] : memref<34x512xf32, #tpu.memory_space<vmem>>, vector<1x512xf32>
    %20 = vector.broadcast %19 : vector<1x512xf32> to vector<8x512xf32>
    %21 = arith.mulf %18, %20 : vector<8x512xf32>
    %c2_13 = arith.constant 2 : index
    %c0_14 = arith.constant 0 : index
    %c0_15 = arith.constant 0 : index
    %22 = vector.load %arg3[%c2_13, %c0_14, %c0_15] : memref<25x32x8xf32, #tpu.memory_space<vmem>>, vector<1x32x8xf32>
    %23 = vector.shape_cast %22 : vector<1x32x8xf32> to vector<32x8xf32>
    %cst_16 = arith.constant dense<0.000000e+00> : vector<32x512xf32>
    %24 = tpu.matmul %23, %21, %cst_16 {dimension_numbers = #tpu.dot_dimension_numbers<[1], [0], [0], [1], [0, 0, 1, 1], [], []>} : vector<32x8xf32>, vector<8x512xf32>, vector<32x512xf32> -> vector<32x512xf32>
    %25 = arith.addf %17, %24 : vector<32x512xf32>
    %c31_i32 = arith.constant 31 : i32
    %26 = tpu.dynamic_rotate %0 by %c31_i32 dim 1 : vector<8x512xf32>, i32 -> vector<8x512xf32>
    %c3 = arith.constant 3 : index
    %c0_17 = arith.constant 0 : index
    %27 = vector.load %arg2[%c3, %c0_17] : memref<34x512xf32, #tpu.memory_space<vmem>>, vector<1x512xf32>
    %28 = vector.broadcast %27 : vector<1x512xf32> to vector<8x512xf32>
    %29 = arith.mulf %26, %28 : vector<8x512xf32>
    %c3_18 = arith.constant 3 : index
    %c0_19 = arith.constant 0 : index
    %c0_20 = arith.constant 0 : index
    %30 = vector.load %arg3[%c3_18, %c0_19, %c0_20] : memref<25x32x8xf32, #tpu.memory_space<vmem>>, vector<1x32x8xf32>
    %31 = vector.shape_cast %30 : vector<1x32x8xf32> to vector<32x8xf32>
    %cst_21 = arith.constant dense<0.000000e+00> : vector<32x512xf32>
    %32 = tpu.matmul %31, %29, %cst_21 {dimension_numbers = #tpu.dot_dimension_numbers<[1], [0], [0], [1], [0, 0, 1, 1], [], []>} : vector<32x8xf32>, vector<8x512xf32>, vector<32x512xf32> -> vector<32x512xf32>
    %33 = arith.addf %25, %32 : vector<32x512xf32>
    %c30_i32 = arith.constant 30 : i32
    %34 = tpu.dynamic_rotate %0 by %c30_i32 dim 1 : vector<8x512xf32>, i32 -> vector<8x512xf32>
    %c4 = arith.constant 4 : index
    %c0_22 = arith.constant 0 : index
    %35 = vector.load %arg2[%c4, %c0_22] : memref<34x512xf32, #tpu.memory_space<vmem>>, vector<1x512xf32>
    %36 = vector.broadcast %35 : vector<1x512xf32> to vector<8x512xf32>
    %37 = arith.mulf %34, %36 : vector<8x512xf32>
    %c4_23 = arith.constant 4 : index
    %c0_24 = arith.constant 0 : index
    %c0_25 = arith.constant 0 : index
    %38 = vector.load %arg3[%c4_23, %c0_24, %c0_25] : memref<25x32x8xf32, #tpu.memory_space<vmem>>, vector<1x32x8xf32>
    %39 = vector.shape_cast %38 : vector<1x32x8xf32> to vector<32x8xf32>
    %cst_26 = arith.constant dense<0.000000e+00> : vector<32x512xf32>
    %40 = tpu.matmul %39, %37, %cst_26 {dimension_numbers = #tpu.dot_dimension_numbers<[1], [0], [0], [1], [0, 0, 1, 1], [], []>} : vector<32x8xf32>, vector<8x512xf32>, vector<32x512xf32> -> vector<32x512xf32>
    %41 = arith.addf %33, %40 : vector<32x512xf32>
    %c18_i32 = arith.constant 18 : i32
    %42 = tpu.dynamic_rotate %0 by %c18_i32 dim 1 : vector<8x512xf32>, i32 -> vector<8x512xf32>
    %c5 = arith.constant 5 : index
    %c0_27 = arith.constant 0 : index
    %43 = vector.load %arg2[%c5, %c0_27] : memref<34x512xf32, #tpu.memory_space<vmem>>, vector<1x512xf32>
    %44 = vector.broadcast %43 : vector<1x512xf32> to vector<8x512xf32>
    %45 = arith.mulf %42, %44 : vector<8x512xf32>
    %c5_28 = arith.constant 5 : index
    %c0_29 = arith.constant 0 : index
    %c0_30 = arith.constant 0 : index
    %46 = vector.load %arg3[%c5_28, %c0_29, %c0_30] : memref<25x32x8xf32, #tpu.memory_space<vmem>>, vector<1x32x8xf32>
    %47 = vector.shape_cast %46 : vector<1x32x8xf32> to vector<32x8xf32>
    %cst_31 = arith.constant dense<0.000000e+00> : vector<32x512xf32>
    %48 = tpu.matmul %47, %45, %cst_31 {dimension_numbers = #tpu.dot_dimension_numbers<[1], [0], [0], [1], [0, 0, 1, 1], [], []>} : vector<32x8xf32>, vector<8x512xf32>, vector<32x512xf32> -> vector<32x512xf32>
    %49 = arith.addf %41, %48 : vector<32x512xf32>
    %c17_i32 = arith.constant 17 : i32
    %50 = tpu.dynamic_rotate %0 by %c17_i32 dim 1 : vector<8x512xf32>, i32 -> vector<8x512xf32>
    %c6 = arith.constant 6 : index
    %c0_32 = arith.constant 0 : index
    %51 = vector.load %arg2[%c6, %c0_32] : memref<34x512xf32, #tpu.memory_space<vmem>>, vector<1x512xf32>
    %52 = vector.broadcast %51 : vector<1x512xf32> to vector<8x512xf32>
    %53 = arith.mulf %50, %52 : vector<8x512xf32>
    %c6_33 = arith.constant 6 : index
    %c0_34 = arith.constant 0 : index
    %c0_35 = arith.constant 0 : index
    %54 = vector.load %arg3[%c6_33, %c0_34, %c0_35] : memref<25x32x8xf32, #tpu.memory_space<vmem>>, vector<1x32x8xf32>
    %55 = vector.shape_cast %54 : vector<1x32x8xf32> to vector<32x8xf32>
    %cst_36 = arith.constant dense<0.000000e+00> : vector<32x512xf32>
    %56 = tpu.matmul %55, %53, %cst_36 {dimension_numbers = #tpu.dot_dimension_numbers<[1], [0], [0], [1], [0, 0, 1, 1], [], []>} : vector<32x8xf32>, vector<8x512xf32>, vector<32x512xf32> -> vector<32x512xf32>
    %57 = arith.addf %49, %56 : vector<32x512xf32>
    %c16_i32 = arith.constant 16 : i32
    %58 = tpu.dynamic_rotate %0 by %c16_i32 dim 1 : vector<8x512xf32>, i32 -> vector<8x512xf32>
    %c7 = arith.constant 7 : index
    %c0_37 = arith.constant 0 : index
    %59 = vector.load %arg2[%c7, %c0_37] : memref<34x512xf32, #tpu.memory_space<vmem>>, vector<1x512xf32>
    %60 = vector.broadcast %59 : vector<1x512xf32> to vector<8x512xf32>
    %61 = arith.mulf %58, %60 : vector<8x512xf32>
    %c7_38 = arith.constant 7 : index
    %c0_39 = arith.constant 0 : index
    %c0_40 = arith.constant 0 : index
    %62 = vector.load %arg3[%c7_38, %c0_39, %c0_40] : memref<25x32x8xf32, #tpu.memory_space<vmem>>, vector<1x32x8xf32>
    %63 = vector.shape_cast %62 : vector<1x32x8xf32> to vector<32x8xf32>
    %cst_41 = arith.constant dense<0.000000e+00> : vector<32x512xf32>
    %64 = tpu.matmul %63, %61, %cst_41 {dimension_numbers = #tpu.dot_dimension_numbers<[1], [0], [0], [1], [0, 0, 1, 1], [], []>} : vector<32x8xf32>, vector<8x512xf32>, vector<32x512xf32> -> vector<32x512xf32>
    %65 = arith.addf %57, %64 : vector<32x512xf32>
    %c15_i32 = arith.constant 15 : i32
    %66 = tpu.dynamic_rotate %0 by %c15_i32 dim 1 : vector<8x512xf32>, i32 -> vector<8x512xf32>
    %c8 = arith.constant 8 : index
    %c0_42 = arith.constant 0 : index
    %67 = vector.load %arg2[%c8, %c0_42] : memref<34x512xf32, #tpu.memory_space<vmem>>, vector<1x512xf32>
    %68 = vector.broadcast %67 : vector<1x512xf32> to vector<8x512xf32>
    %69 = arith.mulf %66, %68 : vector<8x512xf32>
    %c8_43 = arith.constant 8 : index
    %c0_44 = arith.constant 0 : index
    %c0_45 = arith.constant 0 : index
    %70 = vector.load %arg3[%c8_43, %c0_44, %c0_45] : memref<25x32x8xf32, #tpu.memory_space<vmem>>, vector<1x32x8xf32>
    %71 = vector.shape_cast %70 : vector<1x32x8xf32> to vector<32x8xf32>
    %cst_46 = arith.constant dense<0.000000e+00> : vector<32x512xf32>
    %72 = tpu.matmul %71, %69, %cst_46 {dimension_numbers = #tpu.dot_dimension_numbers<[1], [0], [0], [1], [0, 0, 1, 1], [], []>} : vector<32x8xf32>, vector<8x512xf32>, vector<32x512xf32> -> vector<32x512xf32>
    %73 = arith.addf %65, %72 : vector<32x512xf32>
    %c14_i32 = arith.constant 14 : i32
    %74 = tpu.dynamic_rotate %0 by %c14_i32 dim 1 : vector<8x512xf32>, i32 -> vector<8x512xf32>
    %c9 = arith.constant 9 : index
    %c0_47 = arith.constant 0 : index
    %75 = vector.load %arg2[%c9, %c0_47] : memref<34x512xf32, #tpu.memory_space<vmem>>, vector<1x512xf32>
    %76 = vector.broadcast %75 : vector<1x512xf32> to vector<8x512xf32>
    %77 = arith.mulf %74, %76 : vector<8x512xf32>
    %c9_48 = arith.constant 9 : index
    %c0_49 = arith.constant 0 : index
    %c0_50 = arith.constant 0 : index
    %78 = vector.load %arg3[%c9_48, %c0_49, %c0_50] : memref<25x32x8xf32, #tpu.memory_space<vmem>>, vector<1x32x8xf32>
    %79 = vector.shape_cast %78 : vector<1x32x8xf32> to vector<32x8xf32>
    %cst_51 = arith.constant dense<0.000000e+00> : vector<32x512xf32>
    %80 = tpu.matmul %79, %77, %cst_51 {dimension_numbers = #tpu.dot_dimension_numbers<[1], [0], [0], [1], [0, 0, 1, 1], [], []>} : vector<32x8xf32>, vector<8x512xf32>, vector<32x512xf32> -> vector<32x512xf32>
    %81 = arith.addf %73, %80 : vector<32x512xf32>
    %c2_i32 = arith.constant 2 : i32
    %82 = tpu.dynamic_rotate %0 by %c2_i32 dim 1 : vector<8x512xf32>, i32 -> vector<8x512xf32>
    %c10 = arith.constant 10 : index
    %c0_52 = arith.constant 0 : index
    %83 = vector.load %arg2[%c10, %c0_52] : memref<34x512xf32, #tpu.memory_space<vmem>>, vector<1x512xf32>
    %84 = vector.broadcast %83 : vector<1x512xf32> to vector<8x512xf32>
    %85 = arith.mulf %82, %84 : vector<8x512xf32>
    %c10_53 = arith.constant 10 : index
    %c0_54 = arith.constant 0 : index
    %c0_55 = arith.constant 0 : index
    %86 = vector.load %arg3[%c10_53, %c0_54, %c0_55] : memref<25x32x8xf32, #tpu.memory_space<vmem>>, vector<1x32x8xf32>
    %87 = vector.shape_cast %86 : vector<1x32x8xf32> to vector<32x8xf32>
    %cst_56 = arith.constant dense<0.000000e+00> : vector<32x512xf32>
    %88 = tpu.matmul %87, %85, %cst_56 {dimension_numbers = #tpu.dot_dimension_numbers<[1], [0], [0], [1], [0, 0, 1, 1], [], []>} : vector<32x8xf32>, vector<8x512xf32>, vector<32x512xf32> -> vector<32x512xf32>
    %89 = arith.addf %81, %88 : vector<32x512xf32>
    %c1_i32 = arith.constant 1 : i32
    %90 = tpu.dynamic_rotate %0 by %c1_i32 dim 1 : vector<8x512xf32>, i32 -> vector<8x512xf32>
    %c11 = arith.constant 11 : index
    %c0_57 = arith.constant 0 : index
    %91 = vector.load %arg2[%c11, %c0_57] : memref<34x512xf32, #tpu.memory_space<vmem>>, vector<1x512xf32>
    %92 = vector.broadcast %91 : vector<1x512xf32> to vector<8x512xf32>
    %93 = arith.mulf %90, %92 : vector<8x512xf32>
    %c11_58 = arith.constant 11 : index
    %c0_59 = arith.constant 0 : index
    %c0_60 = arith.constant 0 : index
    %94 = vector.load %arg3[%c11_58, %c0_59, %c0_60] : memref<25x32x8xf32, #tpu.memory_space<vmem>>, vector<1x32x8xf32>
    %95 = vector.shape_cast %94 : vector<1x32x8xf32> to vector<32x8xf32>
    %cst_61 = arith.constant dense<0.000000e+00> : vector<32x512xf32>
    %96 = tpu.matmul %95, %93, %cst_61 {dimension_numbers = #tpu.dot_dimension_numbers<[1], [0], [0], [1], [0, 0, 1, 1], [], []>} : vector<32x8xf32>, vector<8x512xf32>, vector<32x512xf32> -> vector<32x512xf32>
    %97 = arith.addf %89, %96 : vector<32x512xf32>
    %c12 = arith.constant 12 : index
    %c0_62 = arith.constant 0 : index
    %98 = vector.load %arg2[%c12, %c0_62] : memref<34x512xf32, #tpu.memory_space<vmem>>, vector<1x512xf32>
    %99 = vector.broadcast %98 : vector<1x512xf32> to vector<8x512xf32>
    %100 = arith.mulf %0, %99 : vector<8x512xf32>
    %c12_63 = arith.constant 12 : index
    %c0_64 = arith.constant 0 : index
    %c0_65 = arith.constant 0 : index
    %101 = vector.load %arg3[%c12_63, %c0_64, %c0_65] : memref<25x32x8xf32, #tpu.memory_space<vmem>>, vector<1x32x8xf32>
    %102 = vector.shape_cast %101 : vector<1x32x8xf32> to vector<32x8xf32>
    %cst_66 = arith.constant dense<0.000000e+00> : vector<32x512xf32>
    %103 = tpu.matmul %102, %100, %cst_66 {dimension_numbers = #tpu.dot_dimension_numbers<[1], [0], [0], [1], [0, 0, 1, 1], [], []>} : vector<32x8xf32>, vector<8x512xf32>, vector<32x512xf32> -> vector<32x512xf32>
    %104 = arith.addf %97, %103 : vector<32x512xf32>
    %c511_i32 = arith.constant 511 : i32
    %105 = tpu.dynamic_rotate %0 by %c511_i32 dim 1 : vector<8x512xf32>, i32 -> vector<8x512xf32>
    %c13 = arith.constant 13 : index
    %c0_67 = arith.constant 0 : index
    %106 = vector.load %arg2[%c13, %c0_67] : memref<34x512xf32, #tpu.memory_space<vmem>>, vector<1x512xf32>
    %107 = vector.broadcast %106 : vector<1x512xf32> to vector<8x512xf32>
    %108 = arith.mulf %105, %107 : vector<8x512xf32>
    %c13_68 = arith.constant 13 : index
    %c0_69 = arith.constant 0 : index
    %c0_70 = arith.constant 0 : index
    %109 = vector.load %arg3[%c13_68, %c0_69, %c0_70] : memref<25x32x8xf32, #tpu.memory_space<vmem>>, vector<1x32x8xf32>
    %110 = vector.shape_cast %109 : vector<1x32x8xf32> to vector<32x8xf32>
    %cst_71 = arith.constant dense<0.000000e+00> : vector<32x512xf32>
    %111 = tpu.matmul %110, %108, %cst_71 {dimension_numbers = #tpu.dot_dimension_numbers<[1], [0], [0], [1], [0, 0, 1, 1], [], []>} : vector<32x8xf32>, vector<8x512xf32>, vector<32x512xf32> -> vector<32x512xf32>
    %112 = arith.addf %104, %111 : vector<32x512xf32>
    %c510_i32 = arith.constant 510 : i32
    %113 = tpu.dynamic_rotate %0 by %c510_i32 dim 1 : vector<8x512xf32>, i32 -> vector<8x512xf32>
    %c14 = arith.constant 14 : index
    %c0_72 = arith.constant 0 : index
    %114 = vector.load %arg2[%c14, %c0_72] : memref<34x512xf32, #tpu.memory_space<vmem>>, vector<1x512xf32>
    %115 = vector.broadcast %114 : vector<1x512xf32> to vector<8x512xf32>
    %116 = arith.mulf %113, %115 : vector<8x512xf32>
    %c14_73 = arith.constant 14 : index
    %c0_74 = arith.constant 0 : index
    %c0_75 = arith.constant 0 : index
    %117 = vector.load %arg3[%c14_73, %c0_74, %c0_75] : memref<25x32x8xf32, #tpu.memory_space<vmem>>, vector<1x32x8xf32>
    %118 = vector.shape_cast %117 : vector<1x32x8xf32> to vector<32x8xf32>
    %cst_76 = arith.constant dense<0.000000e+00> : vector<32x512xf32>
    %119 = tpu.matmul %118, %116, %cst_76 {dimension_numbers = #tpu.dot_dimension_numbers<[1], [0], [0], [1], [0, 0, 1, 1], [], []>} : vector<32x8xf32>, vector<8x512xf32>, vector<32x512xf32> -> vector<32x512xf32>
    %120 = arith.addf %112, %119 : vector<32x512xf32>
    %c498_i32 = arith.constant 498 : i32
    %121 = tpu.dynamic_rotate %0 by %c498_i32 dim 1 : vector<8x512xf32>, i32 -> vector<8x512xf32>
    %c15 = arith.constant 15 : index
    %c0_77 = arith.constant 0 : index
    %122 = vector.load %arg2[%c15, %c0_77] : memref<34x512xf32, #tpu.memory_space<vmem>>, vector<1x512xf32>
    %123 = vector.broadcast %122 : vector<1x512xf32> to vector<8x512xf32>
    %124 = arith.mulf %121, %123 : vector<8x512xf32>
    %c15_78 = arith.constant 15 : index
    %c0_79 = arith.constant 0 : index
    %c0_80 = arith.constant 0 : index
    %125 = vector.load %arg3[%c15_78, %c0_79, %c0_80] : memref<25x32x8xf32, #tpu.memory_space<vmem>>, vector<1x32x8xf32>
    %126 = vector.shape_cast %125 : vector<1x32x8xf32> to vector<32x8xf32>
    %cst_81 = arith.constant dense<0.000000e+00> : vector<32x512xf32>
    %127 = tpu.matmul %126, %124, %cst_81 {dimension_numbers = #tpu.dot_dimension_numbers<[1], [0], [0], [1], [0, 0, 1, 1], [], []>} : vector<32x8xf32>, vector<8x512xf32>, vector<32x512xf32> -> vector<32x512xf32>
    %128 = arith.addf %120, %127 : vector<32x512xf32>
    %c497_i32 = arith.constant 497 : i32
    %129 = tpu.dynamic_rotate %0 by %c497_i32 dim 1 : vector<8x512xf32>, i32 -> vector<8x512xf32>
    %c16 = arith.constant 16 : index
    %c0_82 = arith.constant 0 : index
    %130 = vector.load %arg2[%c16, %c0_82] : memref<34x512xf32, #tpu.memory_space<vmem>>, vector<1x512xf32>
    %131 = vector.broadcast %130 : vector<1x512xf32> to vector<8x512xf32>
    %132 = arith.mulf %129, %131 : vector<8x512xf32>
    %c16_83 = arith.constant 16 : index
    %c0_84 = arith.constant 0 : index
    %c0_85 = arith.constant 0 : index
    %133 = vector.load %arg3[%c16_83, %c0_84, %c0_85] : memref<25x32x8xf32, #tpu.memory_space<vmem>>, vector<1x32x8xf32>
    %134 = vector.shape_cast %133 : vector<1x32x8xf32> to vector<32x8xf32>
    %cst_86 = arith.constant dense<0.000000e+00> : vector<32x512xf32>
    %135 = tpu.matmul %134, %132, %cst_86 {dimension_numbers = #tpu.dot_dimension_numbers<[1], [0], [0], [1], [0, 0, 1, 1], [], []>} : vector<32x8xf32>, vector<8x512xf32>, vector<32x512xf32> -> vector<32x512xf32>
    %136 = arith.addf %128, %135 : vector<32x512xf32>
    %c496_i32 = arith.constant 496 : i32
    %137 = tpu.dynamic_rotate %0 by %c496_i32 dim 1 : vector<8x512xf32>, i32 -> vector<8x512xf32>
    %c17 = arith.constant 17 : index
    %c0_87 = arith.constant 0 : index
    %138 = vector.load %arg2[%c17, %c0_87] : memref<34x512xf32, #tpu.memory_space<vmem>>, vector<1x512xf32>
    %139 = vector.broadcast %138 : vector<1x512xf32> to vector<8x512xf32>
    %140 = arith.mulf %137, %139 : vector<8x512xf32>
    %c17_88 = arith.constant 17 : index
    %c0_89 = arith.constant 0 : index
    %c0_90 = arith.constant 0 : index
    %141 = vector.load %arg3[%c17_88, %c0_89, %c0_90] : memref<25x32x8xf32, #tpu.memory_space<vmem>>, vector<1x32x8xf32>
    %142 = vector.shape_cast %141 : vector<1x32x8xf32> to vector<32x8xf32>
    %cst_91 = arith.constant dense<0.000000e+00> : vector<32x512xf32>
    %143 = tpu.matmul %142, %140, %cst_91 {dimension_numbers = #tpu.dot_dimension_numbers<[1], [0], [0], [1], [0, 0, 1, 1], [], []>} : vector<32x8xf32>, vector<8x512xf32>, vector<32x512xf32> -> vector<32x512xf32>
    %144 = arith.addf %136, %143 : vector<32x512xf32>
    %c495_i32 = arith.constant 495 : i32
    %145 = tpu.dynamic_rotate %0 by %c495_i32 dim 1 : vector<8x512xf32>, i32 -> vector<8x512xf32>
    %c18 = arith.constant 18 : index
    %c0_92 = arith.constant 0 : index
    %146 = vector.load %arg2[%c18, %c0_92] : memref<34x512xf32, #tpu.memory_space<vmem>>, vector<1x512xf32>
    %147 = vector.broadcast %146 : vector<1x512xf32> to vector<8x512xf32>
    %148 = arith.mulf %145, %147 : vector<8x512xf32>
    %c18_93 = arith.constant 18 : index
    %c0_94 = arith.constant 0 : index
    %c0_95 = arith.constant 0 : index
    %149 = vector.load %arg3[%c18_93, %c0_94, %c0_95] : memref<25x32x8xf32, #tpu.memory_space<vmem>>, vector<1x32x8xf32>
    %150 = vector.shape_cast %149 : vector<1x32x8xf32> to vector<32x8xf32>
    %cst_96 = arith.constant dense<0.000000e+00> : vector<32x512xf32>
    %151 = tpu.matmul %150, %148, %cst_96 {dimension_numbers = #tpu.dot_dimension_numbers<[1], [0], [0], [1], [0, 0, 1, 1], [], []>} : vector<32x8xf32>, vector<8x512xf32>, vector<32x512xf32> -> vector<32x512xf32>
    %152 = arith.addf %144, %151 : vector<32x512xf32>
    %c494_i32 = arith.constant 494 : i32
    %153 = tpu.dynamic_rotate %0 by %c494_i32 dim 1 : vector<8x512xf32>, i32 -> vector<8x512xf32>
    %c19 = arith.constant 19 : index
    %c0_97 = arith.constant 0 : index
    %154 = vector.load %arg2[%c19, %c0_97] : memref<34x512xf32, #tpu.memory_space<vmem>>, vector<1x512xf32>
    %155 = vector.broadcast %154 : vector<1x512xf32> to vector<8x512xf32>
    %156 = arith.mulf %153, %155 : vector<8x512xf32>
    %c19_98 = arith.constant 19 : index
    %c0_99 = arith.constant 0 : index
    %c0_100 = arith.constant 0 : index
    %157 = vector.load %arg3[%c19_98, %c0_99, %c0_100] : memref<25x32x8xf32, #tpu.memory_space<vmem>>, vector<1x32x8xf32>
    %158 = vector.shape_cast %157 : vector<1x32x8xf32> to vector<32x8xf32>
    %cst_101 = arith.constant dense<0.000000e+00> : vector<32x512xf32>
    %159 = tpu.matmul %158, %156, %cst_101 {dimension_numbers = #tpu.dot_dimension_numbers<[1], [0], [0], [1], [0, 0, 1, 1], [], []>} : vector<32x8xf32>, vector<8x512xf32>, vector<32x512xf32> -> vector<32x512xf32>
    %160 = arith.addf %152, %159 : vector<32x512xf32>
    %c482_i32 = arith.constant 482 : i32
    %161 = tpu.dynamic_rotate %0 by %c482_i32 dim 1 : vector<8x512xf32>, i32 -> vector<8x512xf32>
    %c20 = arith.constant 20 : index
    %c0_102 = arith.constant 0 : index
    %162 = vector.load %arg2[%c20, %c0_102] : memref<34x512xf32, #tpu.memory_space<vmem>>, vector<1x512xf32>
    %163 = vector.broadcast %162 : vector<1x512xf32> to vector<8x512xf32>
    %164 = arith.mulf %161, %163 : vector<8x512xf32>
    %c20_103 = arith.constant 20 : index
    %c0_104 = arith.constant 0 : index
    %c0_105 = arith.constant 0 : index
    %165 = vector.load %arg3[%c20_103, %c0_104, %c0_105] : memref<25x32x8xf32, #tpu.memory_space<vmem>>, vector<1x32x8xf32>
    %166 = vector.shape_cast %165 : vector<1x32x8xf32> to vector<32x8xf32>
    %cst_106 = arith.constant dense<0.000000e+00> : vector<32x512xf32>
    %167 = tpu.matmul %166, %164, %cst_106 {dimension_numbers = #tpu.dot_dimension_numbers<[1], [0], [0], [1], [0, 0, 1, 1], [], []>} : vector<32x8xf32>, vector<8x512xf32>, vector<32x512xf32> -> vector<32x512xf32>
    %168 = arith.addf %160, %167 : vector<32x512xf32>
    %c481_i32 = arith.constant 481 : i32
    %169 = tpu.dynamic_rotate %0 by %c481_i32 dim 1 : vector<8x512xf32>, i32 -> vector<8x512xf32>
    %c21 = arith.constant 21 : index
    %c0_107 = arith.constant 0 : index
    %170 = vector.load %arg2[%c21, %c0_107] : memref<34x512xf32, #tpu.memory_space<vmem>>, vector<1x512xf32>
    %171 = vector.broadcast %170 : vector<1x512xf32> to vector<8x512xf32>
    %172 = arith.mulf %169, %171 : vector<8x512xf32>
    %c21_108 = arith.constant 21 : index
    %c0_109 = arith.constant 0 : index
    %c0_110 = arith.constant 0 : index
    %173 = vector.load %arg3[%c21_108, %c0_109, %c0_110] : memref<25x32x8xf32, #tpu.memory_space<vmem>>, vector<1x32x8xf32>
    %174 = vector.shape_cast %173 : vector<1x32x8xf32> to vector<32x8xf32>
    %cst_111 = arith.constant dense<0.000000e+00> : vector<32x512xf32>
    %175 = tpu.matmul %174, %172, %cst_111 {dimension_numbers = #tpu.dot_dimension_numbers<[1], [0], [0], [1], [0, 0, 1, 1], [], []>} : vector<32x8xf32>, vector<8x512xf32>, vector<32x512xf32> -> vector<32x512xf32>
    %176 = arith.addf %168, %175 : vector<32x512xf32>
    %c480_i32 = arith.constant 480 : i32
    %177 = tpu.dynamic_rotate %0 by %c480_i32 dim 1 : vector<8x512xf32>, i32 -> vector<8x512xf32>
    %c22 = arith.constant 22 : index
    %c0_112 = arith.constant 0 : index
    %178 = vector.load %arg2[%c22, %c0_112] : memref<34x512xf32, #tpu.memory_space<vmem>>, vector<1x512xf32>
    %179 = vector.broadcast %178 : vector<1x512xf32> to vector<8x512xf32>
    %180 = arith.mulf %177, %179 : vector<8x512xf32>
    %c22_113 = arith.constant 22 : index
    %c0_114 = arith.constant 0 : index
    %c0_115 = arith.constant 0 : index
    %181 = vector.load %arg3[%c22_113, %c0_114, %c0_115] : memref<25x32x8xf32, #tpu.memory_space<vmem>>, vector<1x32x8xf32>
    %182 = vector.shape_cast %181 : vector<1x32x8xf32> to vector<32x8xf32>
    %cst_116 = arith.constant dense<0.000000e+00> : vector<32x512xf32>
    %183 = tpu.matmul %182, %180, %cst_116 {dimension_numbers = #tpu.dot_dimension_numbers<[1], [0], [0], [1], [0, 0, 1, 1], [], []>} : vector<32x8xf32>, vector<8x512xf32>, vector<32x512xf32> -> vector<32x512xf32>
    %184 = arith.addf %176, %183 : vector<32x512xf32>
    %c479_i32 = arith.constant 479 : i32
    %185 = tpu.dynamic_rotate %0 by %c479_i32 dim 1 : vector<8x512xf32>, i32 -> vector<8x512xf32>
    %c23 = arith.constant 23 : index
    %c0_117 = arith.constant 0 : index
    %186 = vector.load %arg2[%c23, %c0_117] : memref<34x512xf32, #tpu.memory_space<vmem>>, vector<1x512xf32>
    %187 = vector.broadcast %186 : vector<1x512xf32> to vector<8x512xf32>
    %188 = arith.mulf %185, %187 : vector<8x512xf32>
    %c23_118 = arith.constant 23 : index
    %c0_119 = arith.constant 0 : index
    %c0_120 = arith.constant 0 : index
    %189 = vector.load %arg3[%c23_118, %c0_119, %c0_120] : memref<25x32x8xf32, #tpu.memory_space<vmem>>, vector<1x32x8xf32>
    %190 = vector.shape_cast %189 : vector<1x32x8xf32> to vector<32x8xf32>
    %cst_121 = arith.constant dense<0.000000e+00> : vector<32x512xf32>
    %191 = tpu.matmul %190, %188, %cst_121 {dimension_numbers = #tpu.dot_dimension_numbers<[1], [0], [0], [1], [0, 0, 1, 1], [], []>} : vector<32x8xf32>, vector<8x512xf32>, vector<32x512xf32> -> vector<32x512xf32>
    %192 = arith.addf %184, %191 : vector<32x512xf32>
    %c478_i32 = arith.constant 478 : i32
    %193 = tpu.dynamic_rotate %0 by %c478_i32 dim 1 : vector<8x512xf32>, i32 -> vector<8x512xf32>
    %c24 = arith.constant 24 : index
    %c0_122 = arith.constant 0 : index
    %194 = vector.load %arg2[%c24, %c0_122] : memref<34x512xf32, #tpu.memory_space<vmem>>, vector<1x512xf32>
    %195 = vector.broadcast %194 : vector<1x512xf32> to vector<8x512xf32>
    %196 = arith.mulf %193, %195 : vector<8x512xf32>
    %c24_123 = arith.constant 24 : index
    %c0_124 = arith.constant 0 : index
    %c0_125 = arith.constant 0 : index
    %197 = vector.load %arg3[%c24_123, %c0_124, %c0_125] : memref<25x32x8xf32, #tpu.memory_space<vmem>>, vector<1x32x8xf32>
    %198 = vector.shape_cast %197 : vector<1x32x8xf32> to vector<32x8xf32>
    %cst_126 = arith.constant dense<0.000000e+00> : vector<32x512xf32>
    %199 = tpu.matmul %198, %196, %cst_126 {dimension_numbers = #tpu.dot_dimension_numbers<[1], [0], [0], [1], [0, 0, 1, 1], [], []>} : vector<32x8xf32>, vector<8x512xf32>, vector<32x512xf32> -> vector<32x512xf32>
    %200 = arith.addf %192, %199 : vector<32x512xf32>
    %cst_127 = arith.constant 0.000000e+00 : f32
    %201 = vector.broadcast %cst_127 : f32 to vector<32x512xf32>
    %202 = arith.maximumf %200, %201 : vector<32x512xf32>
    %cst_128 = arith.constant 0.000000e+00 : f32
    %203 = vector.broadcast %cst_128 : f32 to vector<32x512xf32>
    %c17_i32_129 = arith.constant 17 : i32
    %204 = tpu.dynamic_rotate %202 by %c17_i32_129 dim 1 : vector<32x512xf32>, i32 -> vector<32x512xf32>
    %c25 = arith.constant 25 : index
    %c0_130 = arith.constant 0 : index
    %205 = vector.load %arg2[%c25, %c0_130] : memref<34x512xf32, #tpu.memory_space<vmem>>, vector<1x512xf32>
    %206 = vector.broadcast %205 : vector<1x512xf32> to vector<32x512xf32>
    %207 = arith.mulf %204, %206 : vector<32x512xf32>
    %c0_131 = arith.constant 0 : index
    %c0_132 = arith.constant 0 : index
    %c0_133 = arith.constant 0 : index
    %208 = vector.load %arg4[%c0_131, %c0_132, %c0_133] : memref<9x32x32xf32, #tpu.memory_space<vmem>>, vector<1x32x32xf32>
    %209 = vector.shape_cast %208 : vector<1x32x32xf32> to vector<32x32xf32>
    %cst_134 = arith.constant dense<0.000000e+00> : vector<32x512xf32>
    %210 = tpu.matmul %209, %207, %cst_134 {dimension_numbers = #tpu.dot_dimension_numbers<[1], [0], [0], [1], [0, 0, 1, 1], [], []>} : vector<32x32xf32>, vector<32x512xf32>, vector<32x512xf32> -> vector<32x512xf32>
    %211 = arith.addf %203, %210 : vector<32x512xf32>
    %c16_i32_135 = arith.constant 16 : i32
    %212 = tpu.dynamic_rotate %202 by %c16_i32_135 dim 1 : vector<32x512xf32>, i32 -> vector<32x512xf32>
    %c26 = arith.constant 26 : index
    %c0_136 = arith.constant 0 : index
    %213 = vector.load %arg2[%c26, %c0_136] : memref<34x512xf32, #tpu.memory_space<vmem>>, vector<1x512xf32>
    %214 = vector.broadcast %213 : vector<1x512xf32> to vector<32x512xf32>
    %215 = arith.mulf %212, %214 : vector<32x512xf32>
    %c1_137 = arith.constant 1 : index
    %c0_138 = arith.constant 0 : index
    %c0_139 = arith.constant 0 : index
    %216 = vector.load %arg4[%c1_137, %c0_138, %c0_139] : memref<9x32x32xf32, #tpu.memory_space<vmem>>, vector<1x32x32xf32>
    %217 = vector.shape_cast %216 : vector<1x32x32xf32> to vector<32x32xf32>
    %cst_140 = arith.constant dense<0.000000e+00> : vector<32x512xf32>
    %218 = tpu.matmul %217, %215, %cst_140 {dimension_numbers = #tpu.dot_dimension_numbers<[1], [0], [0], [1], [0, 0, 1, 1], [], []>} : vector<32x32xf32>, vector<32x512xf32>, vector<32x512xf32> -> vector<32x512xf32>
    %219 = arith.addf %211, %218 : vector<32x512xf32>
    %c15_i32_141 = arith.constant 15 : i32
    %220 = tpu.dynamic_rotate %202 by %c15_i32_141 dim 1 : vector<32x512xf32>, i32 -> vector<32x512xf32>
    %c27 = arith.constant 27 : index
    %c0_142 = arith.constant 0 : index
    %221 = vector.load %arg2[%c27, %c0_142] : memref<34x512xf32, #tpu.memory_space<vmem>>, vector<1x512xf32>
    %222 = vector.broadcast %221 : vector<1x512xf32> to vector<32x512xf32>
    %223 = arith.mulf %220, %222 : vector<32x512xf32>
    %c2_143 = arith.constant 2 : index
    %c0_144 = arith.constant 0 : index
    %c0_145 = arith.constant 0 : index
    %224 = vector.load %arg4[%c2_143, %c0_144, %c0_145] : memref<9x32x32xf32, #tpu.memory_space<vmem>>, vector<1x32x32xf32>
    %225 = vector.shape_cast %224 : vector<1x32x32xf32> to vector<32x32xf32>
    %cst_146 = arith.constant dense<0.000000e+00> : vector<32x512xf32>
    %226 = tpu.matmul %225, %223, %cst_146 {dimension_numbers = #tpu.dot_dimension_numbers<[1], [0], [0], [1], [0, 0, 1, 1], [], []>} : vector<32x32xf32>, vector<32x512xf32>, vector<32x512xf32> -> vector<32x512xf32>
    %227 = arith.addf %219, %226 : vector<32x512xf32>
    %c1_i32_147 = arith.constant 1 : i32
    %228 = tpu.dynamic_rotate %202 by %c1_i32_147 dim 1 : vector<32x512xf32>, i32 -> vector<32x512xf32>
    %c28 = arith.constant 28 : index
    %c0_148 = arith.constant 0 : index
    %229 = vector.load %arg2[%c28, %c0_148] : memref<34x512xf32, #tpu.memory_space<vmem>>, vector<1x512xf32>
    %230 = vector.broadcast %229 : vector<1x512xf32> to vector<32x512xf32>
    %231 = arith.mulf %228, %230 : vector<32x512xf32>
    %c3_149 = arith.constant 3 : index
    %c0_150 = arith.constant 0 : index
    %c0_151 = arith.constant 0 : index
    %232 = vector.load %arg4[%c3_149, %c0_150, %c0_151] : memref<9x32x32xf32, #tpu.memory_space<vmem>>, vector<1x32x32xf32>
    %233 = vector.shape_cast %232 : vector<1x32x32xf32> to vector<32x32xf32>
    %cst_152 = arith.constant dense<0.000000e+00> : vector<32x512xf32>
    %234 = tpu.matmul %233, %231, %cst_152 {dimension_numbers = #tpu.dot_dimension_numbers<[1], [0], [0], [1], [0, 0, 1, 1], [], []>} : vector<32x32xf32>, vector<32x512xf32>, vector<32x512xf32> -> vector<32x512xf32>
    %235 = arith.addf %227, %234 : vector<32x512xf32>
    %c29 = arith.constant 29 : index
    %c0_153 = arith.constant 0 : index
    %236 = vector.load %arg2[%c29, %c0_153] : memref<34x512xf32, #tpu.memory_space<vmem>>, vector<1x512xf32>
    %237 = vector.broadcast %236 : vector<1x512xf32> to vector<32x512xf32>
    %238 = arith.mulf %202, %237 : vector<32x512xf32>
    %c4_154 = arith.constant 4 : index
    %c0_155 = arith.constant 0 : index
    %c0_156 = arith.constant 0 : index
    %239 = vector.load %arg4[%c4_154, %c0_155, %c0_156] : memref<9x32x32xf32, #tpu.memory_space<vmem>>, vector<1x32x32xf32>
    %240 = vector.shape_cast %239 : vector<1x32x32xf32> to vector<32x32xf32>
    %cst_157 = arith.constant dense<0.000000e+00> : vector<32x512xf32>
    %241 = tpu.matmul %240, %238, %cst_157 {dimension_numbers = #tpu.dot_dimension_numbers<[1], [0], [0], [1], [0, 0, 1, 1], [], []>} : vector<32x32xf32>, vector<32x512xf32>, vector<32x512xf32> -> vector<32x512xf32>
    %242 = arith.addf %235, %241 : vector<32x512xf32>
    %c511_i32_158 = arith.constant 511 : i32
    %243 = tpu.dynamic_rotate %202 by %c511_i32_158 dim 1 : vector<32x512xf32>, i32 -> vector<32x512xf32>
    %c30 = arith.constant 30 : index
    %c0_159 = arith.constant 0 : index
    %244 = vector.load %arg2[%c30, %c0_159] : memref<34x512xf32, #tpu.memory_space<vmem>>, vector<1x512xf32>
    %245 = vector.broadcast %244 : vector<1x512xf32> to vector<32x512xf32>
    %246 = arith.mulf %243, %245 : vector<32x512xf32>
    %c5_160 = arith.constant 5 : index
    %c0_161 = arith.constant 0 : index
    %c0_162 = arith.constant 0 : index
    %247 = vector.load %arg4[%c5_160, %c0_161, %c0_162] : memref<9x32x32xf32, #tpu.memory_space<vmem>>, vector<1x32x32xf32>
    %248 = vector.shape_cast %247 : vector<1x32x32xf32> to vector<32x32xf32>
    %cst_163 = arith.constant dense<0.000000e+00> : vector<32x512xf32>
    %249 = tpu.matmul %248, %246, %cst_163 {dimension_numbers = #tpu.dot_dimension_numbers<[1], [0], [0], [1], [0, 0, 1, 1], [], []>} : vector<32x32xf32>, vector<32x512xf32>, vector<32x512xf32> -> vector<32x512xf32>
    %250 = arith.addf %242, %249 : vector<32x512xf32>
    %c497_i32_164 = arith.constant 497 : i32
    %251 = tpu.dynamic_rotate %202 by %c497_i32_164 dim 1 : vector<32x512xf32>, i32 -> vector<32x512xf32>
    %c31 = arith.constant 31 : index
    %c0_165 = arith.constant 0 : index
    %252 = vector.load %arg2[%c31, %c0_165] : memref<34x512xf32, #tpu.memory_space<vmem>>, vector<1x512xf32>
    %253 = vector.broadcast %252 : vector<1x512xf32> to vector<32x512xf32>
    %254 = arith.mulf %251, %253 : vector<32x512xf32>
    %c6_166 = arith.constant 6 : index
    %c0_167 = arith.constant 0 : index
    %c0_168 = arith.constant 0 : index
    %255 = vector.load %arg4[%c6_166, %c0_167, %c0_168] : memref<9x32x32xf32, #tpu.memory_space<vmem>>, vector<1x32x32xf32>
    %256 = vector.shape_cast %255 : vector<1x32x32xf32> to vector<32x32xf32>
    %cst_169 = arith.constant dense<0.000000e+00> : vector<32x512xf32>
    %257 = tpu.matmul %256, %254, %cst_169 {dimension_numbers = #tpu.dot_dimension_numbers<[1], [0], [0], [1], [0, 0, 1, 1], [], []>} : vector<32x32xf32>, vector<32x512xf32>, vector<32x512xf32> -> vector<32x512xf32>
    %258 = arith.addf %250, %257 : vector<32x512xf32>
    %c496_i32_170 = arith.constant 496 : i32
    %259 = tpu.dynamic_rotate %202 by %c496_i32_170 dim 1 : vector<32x512xf32>, i32 -> vector<32x512xf32>
    %c32 = arith.constant 32 : index
    %c0_171 = arith.constant 0 : index
    %260 = vector.load %arg2[%c32, %c0_171] : memref<34x512xf32, #tpu.memory_space<vmem>>, vector<1x512xf32>
    %261 = vector.broadcast %260 : vector<1x512xf32> to vector<32x512xf32>
    %262 = arith.mulf %259, %261 : vector<32x512xf32>
    %c7_172 = arith.constant 7 : index
    %c0_173 = arith.constant 0 : index
    %c0_174 = arith.constant 0 : index
    %263 = vector.load %arg4[%c7_172, %c0_173, %c0_174] : memref<9x32x32xf32, #tpu.memory_space<vmem>>, vector<1x32x32xf32>
    %264 = vector.shape_cast %263 : vector<1x32x32xf32> to vector<32x32xf32>
    %cst_175 = arith.constant dense<0.000000e+00> : vector<32x512xf32>
    %265 = tpu.matmul %264, %262, %cst_175 {dimension_numbers = #tpu.dot_dimension_numbers<[1], [0], [0], [1], [0, 0, 1, 1], [], []>} : vector<32x32xf32>, vector<32x512xf32>, vector<32x512xf32> -> vector<32x512xf32>
    %266 = arith.addf %258, %265 : vector<32x512xf32>
    %c495_i32_176 = arith.constant 495 : i32
    %267 = tpu.dynamic_rotate %202 by %c495_i32_176 dim 1 : vector<32x512xf32>, i32 -> vector<32x512xf32>
    %c33 = arith.constant 33 : index
    %c0_177 = arith.constant 0 : index
    %268 = vector.load %arg2[%c33, %c0_177] : memref<34x512xf32, #tpu.memory_space<vmem>>, vector<1x512xf32>
    %269 = vector.broadcast %268 : vector<1x512xf32> to vector<32x512xf32>
    %270 = arith.mulf %267, %269 : vector<32x512xf32>
    %c8_178 = arith.constant 8 : index
    %c0_179 = arith.constant 0 : index
    %c0_180 = arith.constant 0 : index
    %271 = vector.load %arg4[%c8_178, %c0_179, %c0_180] : memref<9x32x32xf32, #tpu.memory_space<vmem>>, vector<1x32x32xf32>
    %272 = vector.shape_cast %271 : vector<1x32x32xf32> to vector<32x32xf32>
    %cst_181 = arith.constant dense<0.000000e+00> : vector<32x512xf32>
    %273 = tpu.matmul %272, %270, %cst_181 {dimension_numbers = #tpu.dot_dimension_numbers<[1], [0], [0], [1], [0, 0, 1, 1], [], []>} : vector<32x32xf32>, vector<32x512xf32>, vector<32x512xf32> -> vector<32x512xf32>
    %274 = arith.addf %266, %273 : vector<32x512xf32>
    %cst_182 = arith.constant 0.000000e+00 : f32
    %275 = vector.broadcast %cst_182 : f32 to vector<32x512xf32>
    %276 = arith.maximumf %274, %275 : vector<32x512xf32>
    %cst_183 = arith.constant 0.000000e+00 : f32
    %277 = vector.broadcast %cst_183 : f32 to vector<32x512xf32>
    %c17_i32_184 = arith.constant 17 : i32
    %278 = tpu.dynamic_rotate %276 by %c17_i32_184 dim 1 : vector<32x512xf32>, i32 -> vector<32x512xf32>
    %c25_185 = arith.constant 25 : index
    %c0_186 = arith.constant 0 : index
    %279 = vector.load %arg2[%c25_185, %c0_186] : memref<34x512xf32, #tpu.memory_space<vmem>>, vector<1x512xf32>
    %280 = vector.broadcast %279 : vector<1x512xf32> to vector<32x512xf32>
    %281 = arith.mulf %278, %280 : vector<32x512xf32>
    %c0_187 = arith.constant 0 : index
    %c0_188 = arith.constant 0 : index
    %c0_189 = arith.constant 0 : index
    %282 = vector.load %arg5[%c0_187, %c0_188, %c0_189] : memref<9x32x32xf32, #tpu.memory_space<vmem>>, vector<1x32x32xf32>
    %283 = vector.shape_cast %282 : vector<1x32x32xf32> to vector<32x32xf32>
    %cst_190 = arith.constant dense<0.000000e+00> : vector<32x512xf32>
    %284 = tpu.matmul %283, %281, %cst_190 {dimension_numbers = #tpu.dot_dimension_numbers<[1], [0], [0], [1], [0, 0, 1, 1], [], []>} : vector<32x32xf32>, vector<32x512xf32>, vector<32x512xf32> -> vector<32x512xf32>
    %285 = arith.addf %277, %284 : vector<32x512xf32>
    %c16_i32_191 = arith.constant 16 : i32
    %286 = tpu.dynamic_rotate %276 by %c16_i32_191 dim 1 : vector<32x512xf32>, i32 -> vector<32x512xf32>
    %c26_192 = arith.constant 26 : index
    %c0_193 = arith.constant 0 : index
    %287 = vector.load %arg2[%c26_192, %c0_193] : memref<34x512xf32, #tpu.memory_space<vmem>>, vector<1x512xf32>
    %288 = vector.broadcast %287 : vector<1x512xf32> to vector<32x512xf32>
    %289 = arith.mulf %286, %288 : vector<32x512xf32>
    %c1_194 = arith.constant 1 : index
    %c0_195 = arith.constant 0 : index
    %c0_196 = arith.constant 0 : index
    %290 = vector.load %arg5[%c1_194, %c0_195, %c0_196] : memref<9x32x32xf32, #tpu.memory_space<vmem>>, vector<1x32x32xf32>
    %291 = vector.shape_cast %290 : vector<1x32x32xf32> to vector<32x32xf32>
    %cst_197 = arith.constant dense<0.000000e+00> : vector<32x512xf32>
    %292 = tpu.matmul %291, %289, %cst_197 {dimension_numbers = #tpu.dot_dimension_numbers<[1], [0], [0], [1], [0, 0, 1, 1], [], []>} : vector<32x32xf32>, vector<32x512xf32>, vector<32x512xf32> -> vector<32x512xf32>
    %293 = arith.addf %285, %292 : vector<32x512xf32>
    %c15_i32_198 = arith.constant 15 : i32
    %294 = tpu.dynamic_rotate %276 by %c15_i32_198 dim 1 : vector<32x512xf32>, i32 -> vector<32x512xf32>
    %c27_199 = arith.constant 27 : index
    %c0_200 = arith.constant 0 : index
    %295 = vector.load %arg2[%c27_199, %c0_200] : memref<34x512xf32, #tpu.memory_space<vmem>>, vector<1x512xf32>
    %296 = vector.broadcast %295 : vector<1x512xf32> to vector<32x512xf32>
    %297 = arith.mulf %294, %296 : vector<32x512xf32>
    %c2_201 = arith.constant 2 : index
    %c0_202 = arith.constant 0 : index
    %c0_203 = arith.constant 0 : index
    %298 = vector.load %arg5[%c2_201, %c0_202, %c0_203] : memref<9x32x32xf32, #tpu.memory_space<vmem>>, vector<1x32x32xf32>
    %299 = vector.shape_cast %298 : vector<1x32x32xf32> to vector<32x32xf32>
    %cst_204 = arith.constant dense<0.000000e+00> : vector<32x512xf32>
    %300 = tpu.matmul %299, %297, %cst_204 {dimension_numbers = #tpu.dot_dimension_numbers<[1], [0], [0], [1], [0, 0, 1, 1], [], []>} : vector<32x32xf32>, vector<32x512xf32>, vector<32x512xf32> -> vector<32x512xf32>
    %301 = arith.addf %293, %300 : vector<32x512xf32>
    %c1_i32_205 = arith.constant 1 : i32
    %302 = tpu.dynamic_rotate %276 by %c1_i32_205 dim 1 : vector<32x512xf32>, i32 -> vector<32x512xf32>
    %c28_206 = arith.constant 28 : index
    %c0_207 = arith.constant 0 : index
    %303 = vector.load %arg2[%c28_206, %c0_207] : memref<34x512xf32, #tpu.memory_space<vmem>>, vector<1x512xf32>
    %304 = vector.broadcast %303 : vector<1x512xf32> to vector<32x512xf32>
    %305 = arith.mulf %302, %304 : vector<32x512xf32>
    %c3_208 = arith.constant 3 : index
    %c0_209 = arith.constant 0 : index
    %c0_210 = arith.constant 0 : index
    %306 = vector.load %arg5[%c3_208, %c0_209, %c0_210] : memref<9x32x32xf32, #tpu.memory_space<vmem>>, vector<1x32x32xf32>
    %307 = vector.shape_cast %306 : vector<1x32x32xf32> to vector<32x32xf32>
    %cst_211 = arith.constant dense<0.000000e+00> : vector<32x512xf32>
    %308 = tpu.matmul %307, %305, %cst_211 {dimension_numbers = #tpu.dot_dimension_numbers<[1], [0], [0], [1], [0, 0, 1, 1], [], []>} : vector<32x32xf32>, vector<32x512xf32>, vector<32x512xf32> -> vector<32x512xf32>
    %309 = arith.addf %301, %308 : vector<32x512xf32>
    %c29_212 = arith.constant 29 : index
    %c0_213 = arith.constant 0 : index
    %310 = vector.load %arg2[%c29_212, %c0_213] : memref<34x512xf32, #tpu.memory_space<vmem>>, vector<1x512xf32>
    %311 = vector.broadcast %310 : vector<1x512xf32> to vector<32x512xf32>
    %312 = arith.mulf %276, %311 : vector<32x512xf32>
    %c4_214 = arith.constant 4 : index
    %c0_215 = arith.constant 0 : index
    %c0_216 = arith.constant 0 : index
    %313 = vector.load %arg5[%c4_214, %c0_215, %c0_216] : memref<9x32x32xf32, #tpu.memory_space<vmem>>, vector<1x32x32xf32>
    %314 = vector.shape_cast %313 : vector<1x32x32xf32> to vector<32x32xf32>
    %cst_217 = arith.constant dense<0.000000e+00> : vector<32x512xf32>
    %315 = tpu.matmul %314, %312, %cst_217 {dimension_numbers = #tpu.dot_dimension_numbers<[1], [0], [0], [1], [0, 0, 1, 1], [], []>} : vector<32x32xf32>, vector<32x512xf32>, vector<32x512xf32> -> vector<32x512xf32>
    %316 = arith.addf %309, %315 : vector<32x512xf32>
    %c511_i32_218 = arith.constant 511 : i32
    %317 = tpu.dynamic_rotate %276 by %c511_i32_218 dim 1 : vector<32x512xf32>, i32 -> vector<32x512xf32>
    %c30_219 = arith.constant 30 : index
    %c0_220 = arith.constant 0 : index
    %318 = vector.load %arg2[%c30_219, %c0_220] : memref<34x512xf32, #tpu.memory_space<vmem>>, vector<1x512xf32>
    %319 = vector.broadcast %318 : vector<1x512xf32> to vector<32x512xf32>
    %320 = arith.mulf %317, %319 : vector<32x512xf32>
    %c5_221 = arith.constant 5 : index
    %c0_222 = arith.constant 0 : index
    %c0_223 = arith.constant 0 : index
    %321 = vector.load %arg5[%c5_221, %c0_222, %c0_223] : memref<9x32x32xf32, #tpu.memory_space<vmem>>, vector<1x32x32xf32>
    %322 = vector.shape_cast %321 : vector<1x32x32xf32> to vector<32x32xf32>
    %cst_224 = arith.constant dense<0.000000e+00> : vector<32x512xf32>
    %323 = tpu.matmul %322, %320, %cst_224 {dimension_numbers = #tpu.dot_dimension_numbers<[1], [0], [0], [1], [0, 0, 1, 1], [], []>} : vector<32x32xf32>, vector<32x512xf32>, vector<32x512xf32> -> vector<32x512xf32>
    %324 = arith.addf %316, %323 : vector<32x512xf32>
    %c497_i32_225 = arith.constant 497 : i32
    %325 = tpu.dynamic_rotate %276 by %c497_i32_225 dim 1 : vector<32x512xf32>, i32 -> vector<32x512xf32>
    %c31_226 = arith.constant 31 : index
    %c0_227 = arith.constant 0 : index
    %326 = vector.load %arg2[%c31_226, %c0_227] : memref<34x512xf32, #tpu.memory_space<vmem>>, vector<1x512xf32>
    %327 = vector.broadcast %326 : vector<1x512xf32> to vector<32x512xf32>
    %328 = arith.mulf %325, %327 : vector<32x512xf32>
    %c6_228 = arith.constant 6 : index
    %c0_229 = arith.constant 0 : index
    %c0_230 = arith.constant 0 : index
    %329 = vector.load %arg5[%c6_228, %c0_229, %c0_230] : memref<9x32x32xf32, #tpu.memory_space<vmem>>, vector<1x32x32xf32>
    %330 = vector.shape_cast %329 : vector<1x32x32xf32> to vector<32x32xf32>
    %cst_231 = arith.constant dense<0.000000e+00> : vector<32x512xf32>
    %331 = tpu.matmul %330, %328, %cst_231 {dimension_numbers = #tpu.dot_dimension_numbers<[1], [0], [0], [1], [0, 0, 1, 1], [], []>} : vector<32x32xf32>, vector<32x512xf32>, vector<32x512xf32> -> vector<32x512xf32>
    %332 = arith.addf %324, %331 : vector<32x512xf32>
    %c496_i32_232 = arith.constant 496 : i32
    %333 = tpu.dynamic_rotate %276 by %c496_i32_232 dim 1 : vector<32x512xf32>, i32 -> vector<32x512xf32>
    %c32_233 = arith.constant 32 : index
    %c0_234 = arith.constant 0 : index
    %334 = vector.load %arg2[%c32_233, %c0_234] : memref<34x512xf32, #tpu.memory_space<vmem>>, vector<1x512xf32>
    %335 = vector.broadcast %334 : vector<1x512xf32> to vector<32x512xf32>
    %336 = arith.mulf %333, %335 : vector<32x512xf32>
    %c7_235 = arith.constant 7 : index
    %c0_236 = arith.constant 0 : index
    %c0_237 = arith.constant 0 : index
    %337 = vector.load %arg5[%c7_235, %c0_236, %c0_237] : memref<9x32x32xf32, #tpu.memory_space<vmem>>, vector<1x32x32xf32>
    %338 = vector.shape_cast %337 : vector<1x32x32xf32> to vector<32x32xf32>
    %cst_238 = arith.constant dense<0.000000e+00> : vector<32x512xf32>
    %339 = tpu.matmul %338, %336, %cst_238 {dimension_numbers = #tpu.dot_dimension_numbers<[1], [0], [0], [1], [0, 0, 1, 1], [], []>} : vector<32x32xf32>, vector<32x512xf32>, vector<32x512xf32> -> vector<32x512xf32>
    %340 = arith.addf %332, %339 : vector<32x512xf32>
    %c495_i32_239 = arith.constant 495 : i32
    %341 = tpu.dynamic_rotate %276 by %c495_i32_239 dim 1 : vector<32x512xf32>, i32 -> vector<32x512xf32>
    %c33_240 = arith.constant 33 : index
    %c0_241 = arith.constant 0 : index
    %342 = vector.load %arg2[%c33_240, %c0_241] : memref<34x512xf32, #tpu.memory_space<vmem>>, vector<1x512xf32>
    %343 = vector.broadcast %342 : vector<1x512xf32> to vector<32x512xf32>
    %344 = arith.mulf %341, %343 : vector<32x512xf32>
    %c8_242 = arith.constant 8 : index
    %c0_243 = arith.constant 0 : index
    %c0_244 = arith.constant 0 : index
    %345 = vector.load %arg5[%c8_242, %c0_243, %c0_244] : memref<9x32x32xf32, #tpu.memory_space<vmem>>, vector<1x32x32xf32>
    %346 = vector.shape_cast %345 : vector<1x32x32xf32> to vector<32x32xf32>
    %cst_245 = arith.constant dense<0.000000e+00> : vector<32x512xf32>
    %347 = tpu.matmul %346, %344, %cst_245 {dimension_numbers = #tpu.dot_dimension_numbers<[1], [0], [0], [1], [0, 0, 1, 1], [], []>} : vector<32x32xf32>, vector<32x512xf32>, vector<32x512xf32> -> vector<32x512xf32>
    %348 = arith.addf %340, %347 : vector<32x512xf32>
    %cst_246 = arith.constant 0.000000e+00 : f32
    %349 = vector.broadcast %cst_246 : f32 to vector<32x512xf32>
    %350 = arith.maximumf %348, %349 : vector<32x512xf32>
    %cst_247 = arith.constant 0.000000e+00 : f32
    %351 = vector.broadcast %cst_247 : f32 to vector<32x512xf32>
    %c17_i32_248 = arith.constant 17 : i32
    %352 = tpu.dynamic_rotate %350 by %c17_i32_248 dim 1 : vector<32x512xf32>, i32 -> vector<32x512xf32>
    %c25_249 = arith.constant 25 : index
    %c0_250 = arith.constant 0 : index
    %353 = vector.load %arg2[%c25_249, %c0_250] : memref<34x512xf32, #tpu.memory_space<vmem>>, vector<1x512xf32>
    %354 = vector.broadcast %353 : vector<1x512xf32> to vector<32x512xf32>
    %355 = arith.mulf %352, %354 : vector<32x512xf32>
    %c0_251 = arith.constant 0 : index
    %c0_252 = arith.constant 0 : index
    %c0_253 = arith.constant 0 : index
    %356 = vector.load %arg6[%c0_251, %c0_252, %c0_253] : memref<9x32x32xf32, #tpu.memory_space<vmem>>, vector<1x32x32xf32>
    %357 = vector.shape_cast %356 : vector<1x32x32xf32> to vector<32x32xf32>
    %cst_254 = arith.constant dense<0.000000e+00> : vector<32x512xf32>
    %358 = tpu.matmul %357, %355, %cst_254 {dimension_numbers = #tpu.dot_dimension_numbers<[1], [0], [0], [1], [0, 0, 1, 1], [], []>} : vector<32x32xf32>, vector<32x512xf32>, vector<32x512xf32> -> vector<32x512xf32>
    %359 = arith.addf %351, %358 : vector<32x512xf32>
    %c16_i32_255 = arith.constant 16 : i32
    %360 = tpu.dynamic_rotate %350 by %c16_i32_255 dim 1 : vector<32x512xf32>, i32 -> vector<32x512xf32>
    %c26_256 = arith.constant 26 : index
    %c0_257 = arith.constant 0 : index
    %361 = vector.load %arg2[%c26_256, %c0_257] : memref<34x512xf32, #tpu.memory_space<vmem>>, vector<1x512xf32>
    %362 = vector.broadcast %361 : vector<1x512xf32> to vector<32x512xf32>
    %363 = arith.mulf %360, %362 : vector<32x512xf32>
    %c1_258 = arith.constant 1 : index
    %c0_259 = arith.constant 0 : index
    %c0_260 = arith.constant 0 : index
    %364 = vector.load %arg6[%c1_258, %c0_259, %c0_260] : memref<9x32x32xf32, #tpu.memory_space<vmem>>, vector<1x32x32xf32>
    %365 = vector.shape_cast %364 : vector<1x32x32xf32> to vector<32x32xf32>
    %cst_261 = arith.constant dense<0.000000e+00> : vector<32x512xf32>
    %366 = tpu.matmul %365, %363, %cst_261 {dimension_numbers = #tpu.dot_dimension_numbers<[1], [0], [0], [1], [0, 0, 1, 1], [], []>} : vector<32x32xf32>, vector<32x512xf32>, vector<32x512xf32> -> vector<32x512xf32>
    %367 = arith.addf %359, %366 : vector<32x512xf32>
    %c15_i32_262 = arith.constant 15 : i32
    %368 = tpu.dynamic_rotate %350 by %c15_i32_262 dim 1 : vector<32x512xf32>, i32 -> vector<32x512xf32>
    %c27_263 = arith.constant 27 : index
    %c0_264 = arith.constant 0 : index
    %369 = vector.load %arg2[%c27_263, %c0_264] : memref<34x512xf32, #tpu.memory_space<vmem>>, vector<1x512xf32>
    %370 = vector.broadcast %369 : vector<1x512xf32> to vector<32x512xf32>
    %371 = arith.mulf %368, %370 : vector<32x512xf32>
    %c2_265 = arith.constant 2 : index
    %c0_266 = arith.constant 0 : index
    %c0_267 = arith.constant 0 : index
    %372 = vector.load %arg6[%c2_265, %c0_266, %c0_267] : memref<9x32x32xf32, #tpu.memory_space<vmem>>, vector<1x32x32xf32>
    %373 = vector.shape_cast %372 : vector<1x32x32xf32> to vector<32x32xf32>
    %cst_268 = arith.constant dense<0.000000e+00> : vector<32x512xf32>
    %374 = tpu.matmul %373, %371, %cst_268 {dimension_numbers = #tpu.dot_dimension_numbers<[1], [0], [0], [1], [0, 0, 1, 1], [], []>} : vector<32x32xf32>, vector<32x512xf32>, vector<32x512xf32> -> vector<32x512xf32>
    %375 = arith.addf %367, %374 : vector<32x512xf32>
    %c1_i32_269 = arith.constant 1 : i32
    %376 = tpu.dynamic_rotate %350 by %c1_i32_269 dim 1 : vector<32x512xf32>, i32 -> vector<32x512xf32>
    %c28_270 = arith.constant 28 : index
    %c0_271 = arith.constant 0 : index
    %377 = vector.load %arg2[%c28_270, %c0_271] : memref<34x512xf32, #tpu.memory_space<vmem>>, vector<1x512xf32>
    %378 = vector.broadcast %377 : vector<1x512xf32> to vector<32x512xf32>
    %379 = arith.mulf %376, %378 : vector<32x512xf32>
    %c3_272 = arith.constant 3 : index
    %c0_273 = arith.constant 0 : index
    %c0_274 = arith.constant 0 : index
    %380 = vector.load %arg6[%c3_272, %c0_273, %c0_274] : memref<9x32x32xf32, #tpu.memory_space<vmem>>, vector<1x32x32xf32>
    %381 = vector.shape_cast %380 : vector<1x32x32xf32> to vector<32x32xf32>
    %cst_275 = arith.constant dense<0.000000e+00> : vector<32x512xf32>
    %382 = tpu.matmul %381, %379, %cst_275 {dimension_numbers = #tpu.dot_dimension_numbers<[1], [0], [0], [1], [0, 0, 1, 1], [], []>} : vector<32x32xf32>, vector<32x512xf32>, vector<32x512xf32> -> vector<32x512xf32>
    %383 = arith.addf %375, %382 : vector<32x512xf32>
    %c29_276 = arith.constant 29 : index
    %c0_277 = arith.constant 0 : index
    %384 = vector.load %arg2[%c29_276, %c0_277] : memref<34x512xf32, #tpu.memory_space<vmem>>, vector<1x512xf32>
    %385 = vector.broadcast %384 : vector<1x512xf32> to vector<32x512xf32>
    %386 = arith.mulf %350, %385 : vector<32x512xf32>
    %c4_278 = arith.constant 4 : index
    %c0_279 = arith.constant 0 : index
    %c0_280 = arith.constant 0 : index
    %387 = vector.load %arg6[%c4_278, %c0_279, %c0_280] : memref<9x32x32xf32, #tpu.memory_space<vmem>>, vector<1x32x32xf32>
    %388 = vector.shape_cast %387 : vector<1x32x32xf32> to vector<32x32xf32>
    %cst_281 = arith.constant dense<0.000000e+00> : vector<32x512xf32>
    %389 = tpu.matmul %388, %386, %cst_281 {dimension_numbers = #tpu.dot_dimension_numbers<[1], [0], [0], [1], [0, 0, 1, 1], [], []>} : vector<32x32xf32>, vector<32x512xf32>, vector<32x512xf32> -> vector<32x512xf32>
    %390 = arith.addf %383, %389 : vector<32x512xf32>
    %c511_i32_282 = arith.constant 511 : i32
    %391 = tpu.dynamic_rotate %350 by %c511_i32_282 dim 1 : vector<32x512xf32>, i32 -> vector<32x512xf32>
    %c30_283 = arith.constant 30 : index
    %c0_284 = arith.constant 0 : index
    %392 = vector.load %arg2[%c30_283, %c0_284] : memref<34x512xf32, #tpu.memory_space<vmem>>, vector<1x512xf32>
    %393 = vector.broadcast %392 : vector<1x512xf32> to vector<32x512xf32>
    %394 = arith.mulf %391, %393 : vector<32x512xf32>
    %c5_285 = arith.constant 5 : index
    %c0_286 = arith.constant 0 : index
    %c0_287 = arith.constant 0 : index
    %395 = vector.load %arg6[%c5_285, %c0_286, %c0_287] : memref<9x32x32xf32, #tpu.memory_space<vmem>>, vector<1x32x32xf32>
    %396 = vector.shape_cast %395 : vector<1x32x32xf32> to vector<32x32xf32>
    %cst_288 = arith.constant dense<0.000000e+00> : vector<32x512xf32>
    %397 = tpu.matmul %396, %394, %cst_288 {dimension_numbers = #tpu.dot_dimension_numbers<[1], [0], [0], [1], [0, 0, 1, 1], [], []>} : vector<32x32xf32>, vector<32x512xf32>, vector<32x512xf32> -> vector<32x512xf32>
    %398 = arith.addf %390, %397 : vector<32x512xf32>
    %c497_i32_289 = arith.constant 497 : i32
    %399 = tpu.dynamic_rotate %350 by %c497_i32_289 dim 1 : vector<32x512xf32>, i32 -> vector<32x512xf32>
    %c31_290 = arith.constant 31 : index
    %c0_291 = arith.constant 0 : index
    %400 = vector.load %arg2[%c31_290, %c0_291] : memref<34x512xf32, #tpu.memory_space<vmem>>, vector<1x512xf32>
    %401 = vector.broadcast %400 : vector<1x512xf32> to vector<32x512xf32>
    %402 = arith.mulf %399, %401 : vector<32x512xf32>
    %c6_292 = arith.constant 6 : index
    %c0_293 = arith.constant 0 : index
    %c0_294 = arith.constant 0 : index
    %403 = vector.load %arg6[%c6_292, %c0_293, %c0_294] : memref<9x32x32xf32, #tpu.memory_space<vmem>>, vector<1x32x32xf32>
    %404 = vector.shape_cast %403 : vector<1x32x32xf32> to vector<32x32xf32>
    %cst_295 = arith.constant dense<0.000000e+00> : vector<32x512xf32>
    %405 = tpu.matmul %404, %402, %cst_295 {dimension_numbers = #tpu.dot_dimension_numbers<[1], [0], [0], [1], [0, 0, 1, 1], [], []>} : vector<32x32xf32>, vector<32x512xf32>, vector<32x512xf32> -> vector<32x512xf32>
    %406 = arith.addf %398, %405 : vector<32x512xf32>
    %c496_i32_296 = arith.constant 496 : i32
    %407 = tpu.dynamic_rotate %350 by %c496_i32_296 dim 1 : vector<32x512xf32>, i32 -> vector<32x512xf32>
    %c32_297 = arith.constant 32 : index
    %c0_298 = arith.constant 0 : index
    %408 = vector.load %arg2[%c32_297, %c0_298] : memref<34x512xf32, #tpu.memory_space<vmem>>, vector<1x512xf32>
    %409 = vector.broadcast %408 : vector<1x512xf32> to vector<32x512xf32>
    %410 = arith.mulf %407, %409 : vector<32x512xf32>
    %c7_299 = arith.constant 7 : index
    %c0_300 = arith.constant 0 : index
    %c0_301 = arith.constant 0 : index
    %411 = vector.load %arg6[%c7_299, %c0_300, %c0_301] : memref<9x32x32xf32, #tpu.memory_space<vmem>>, vector<1x32x32xf32>
    %412 = vector.shape_cast %411 : vector<1x32x32xf32> to vector<32x32xf32>
    %cst_302 = arith.constant dense<0.000000e+00> : vector<32x512xf32>
    %413 = tpu.matmul %412, %410, %cst_302 {dimension_numbers = #tpu.dot_dimension_numbers<[1], [0], [0], [1], [0, 0, 1, 1], [], []>} : vector<32x32xf32>, vector<32x512xf32>, vector<32x512xf32> -> vector<32x512xf32>
    %414 = arith.addf %406, %413 : vector<32x512xf32>
    %c495_i32_303 = arith.constant 495 : i32
    %415 = tpu.dynamic_rotate %350 by %c495_i32_303 dim 1 : vector<32x512xf32>, i32 -> vector<32x512xf32>
    %c33_304 = arith.constant 33 : index
    %c0_305 = arith.constant 0 : index
    %416 = vector.load %arg2[%c33_304, %c0_305] : memref<34x512xf32, #tpu.memory_space<vmem>>, vector<1x512xf32>
    %417 = vector.broadcast %416 : vector<1x512xf32> to vector<32x512xf32>
    %418 = arith.mulf %415, %417 : vector<32x512xf32>
    %c8_306 = arith.constant 8 : index
    %c0_307 = arith.constant 0 : index
    %c0_308 = arith.constant 0 : index
    %419 = vector.load %arg6[%c8_306, %c0_307, %c0_308] : memref<9x32x32xf32, #tpu.memory_space<vmem>>, vector<1x32x32xf32>
    %420 = vector.shape_cast %419 : vector<1x32x32xf32> to vector<32x32xf32>
    %cst_309 = arith.constant dense<0.000000e+00> : vector<32x512xf32>
    %421 = tpu.matmul %420, %418, %cst_309 {dimension_numbers = #tpu.dot_dimension_numbers<[1], [0], [0], [1], [0, 0, 1, 1], [], []>} : vector<32x32xf32>, vector<32x512xf32>, vector<32x512xf32> -> vector<32x512xf32>
    %422 = arith.addf %414, %421 : vector<32x512xf32>
    %c0_310 = arith.constant 0 : index
    %c0_311 = arith.constant 0 : index
    %423 = vector.load %arg7[%c0_310, %c0_311] : memref<32x512xf32, #tpu.memory_space<vmem>>, vector<32x512xf32>
    tpu.vector_store %arg7[%c0_310, %c0_311], %422 {strides = array<i32>} : memref<32x512xf32, #tpu.memory_space<vmem>>, vector<32x512xf32>,
    return
  }
  func.func @transform_0(%arg0: i32) -> (i32, i32) {
    %c0_i32 = arith.constant 0 : i32
    %c0_i32_0 = arith.constant 0 : i32
    return %c0_i32, %arg0 : i32, i32
  }
  func.func @transform_1(%arg0: i32) -> (i32, i32) {
    %c0_i32 = arith.constant 0 : i32
    %c0_i32_0 = arith.constant 0 : i32
    %c0_i32_1 = arith.constant 0 : i32
    return %c0_i32, %c0_i32_0 : i32, i32
  }
  func.func @transform_2(%arg0: i32) -> (i32, i32, i32) {
    %c0_i32 = arith.constant 0 : i32
    %c0_i32_0 = arith.constant 0 : i32
    %c0_i32_1 = arith.constant 0 : i32
    %c0_i32_2 = arith.constant 0 : i32
    return %c0_i32, %c0_i32_0, %c0_i32_1 : i32, i32, i32
  }
  func.func @transform_3(%arg0: i32) -> (i32, i32, i32) {
    %c0_i32 = arith.constant 0 : i32
    %c0_i32_0 = arith.constant 0 : i32
    %c0_i32_1 = arith.constant 0 : i32
    %c0_i32_2 = arith.constant 0 : i32
    return %c0_i32, %c0_i32_0, %c0_i32_1 : i32, i32, i32
  }
  func.func @transform_4(%arg0: i32) -> (i32, i32, i32) {
    %c0_i32 = arith.constant 0 : i32
    %c0_i32_0 = arith.constant 0 : i32
    %c0_i32_1 = arith.constant 0 : i32
    %c0_i32_2 = arith.constant 0 : i32
    return %c0_i32, %c0_i32_0, %c0_i32_1 : i32, i32, i32
  }
  func.func @transform_5(%arg0: i32) -> (i32, i32, i32) {
    %c0_i32 = arith.constant 0 : i32
    %c0_i32_0 = arith.constant 0 : i32
    %c0_i32_1 = arith.constant 0 : i32
    %c0_i32_2 = arith.constant 0 : i32
    return %c0_i32, %c0_i32_0, %c0_i32_1 : i32, i32, i32
  }
  func.func @transform_6(%arg0: i32) -> (i32, i32) {
    %c0_i32 = arith.constant 0 : i32
    %c0_i32_0 = arith.constant 0 : i32
    return %c0_i32, %arg0 : i32, i32
  }
}

</mosaic_0001>

<bundles_post_ra>
// kernel: tpu_custom_call.1
= control target key start
LH: loop header
LB: loop body
LE: loop exit
PB: predicated region body
PF: predicated region fallthrough
CT: control target
= control target key end

     0   :  { %11 = vsyncpa [#allocation3], 0  ;;  %s21256_s0 = inlined_call_operand.vmem [shape: f32[8,512], index: 0, kind: input, shape index: {}]   ;;  %s21257_s1 = inlined_call_operand.hbm [shape: f32[34,512], index: 1, kind: input, shape index: {}]   ;;  %s21258_s2 = inlined_call_operand.vmem [shape: f32[25,32,8], index: 2, kind: input, shape index: {}]   ;;  %s21259_s3 = inlined_call_operand.vmem [shape: f32[9,32,32], index: 3, kind: input, shape index: {}]   ;;  %s21260_s4 = inlined_call_operand.vmem [shape: f32[9,32,32], index: 4, kind: input, shape index: {}]   ;;  %s21261_s5 = inlined_call_operand.vmem [shape: f32[9,32,32], index: 5, kind: input, shape index: {}]   ;;  %s21262_s6 = inlined_call_operand.hbm [shape: f32[32,512], index: 6, kind: output, shape index: {}]  }
   0x1   :  { %12 = vsyncpa [#allocation4], 0  ;;  %s15632_s21 = smov [#allocation2]   ;;  %s15584_s25 = scalar_lea.hbm %s21257_s1, 2560 }
   0x2   :  { %s20_s22 = sshll.u32 %s15632_s21, 4  ;;  %p15585_p0 = scmp.ne.s32.totalorder %s21257_s1, %s15584_s25  ;;  %s21_s22 = int_to_ptr.vmem [resolvable:$true] %s20_s22 }
   0x3   :  { %p15588_p1 = scmp.lt.u32.totalorder %s15584_s25, %s21257_s1 }
   0x5   :  { %p15590_p2 = pnand %p15588_p1, %p15585_p0 }
   0x7   :  { %15593 = shalt.err (!%p15590_p2)
}
   0x8   :  { %s15594_s30 = scalar_lea.vmem %s21_s22, 2560  ;;  %p15599_p4 = scmp.lt.s32.totalorder %s21_s22, %s21_s22 }
   0x9   :  { %p15595_p3 = scmp.ne.s32.totalorder %s21_s22, %s15594_s30  ;;  %p15600_p5 = scmp.lt.s32.totalorder %s15594_s30, %s15594_s30 }
   0xb   :  { %p15601_p6 = por %p15600_p5, %p15599_p4 }
   0xd   :  { %p15602_p7 = pnand %p15601_p6, %p15595_p3 }
   0xf   :  { %15605 = shalt.err (!%p15602_p7)
}
  0x10   :  { %s15633_s7 = smov 512   ;;  %s15634_s8 = smov 32  }
  0x11   :  { %26 = dma.hbm_to_vmem [thread:$0]  %s21257_s1, 2560, %s21_s22, [#allocation3], %s15633_s7, %s15633_s7, %s15634_s8  }
  0x12   :  { %15628 = dma.done.wait [#allocation3], 2560  }
  0x13   :  { %15629 = vsyncadd [#allocation3], 4294964736  ;;  %v21263_v0 = vmov 0.0   ;;  %v15715_v1 = vld [vmem:[%s21256_s0 + $0x10] sm:$0xff]  ;;  %v15720_v2 = vld [vmem:[%s21256_s0] sm:$0xff]  ;;  %s15636_s15 = smov 33   ;;  %v50_v5 = vlaneseq }
  0x14   :  { %209 = vmatprep.mubr.f32.mxu0 %v21263_v0  ;;  %298 = vmatprep.mubr.f32.mxu1 %v21263_v0  ;;  %v15727_v3 = vld [vmem:[%s21256_s0 + $0x18] sm:$0xff]  ;;  %v15732_v4 = vld [vmem:[%s21256_s0 + $0x8] sm:$0xff]  ;;  %s15637_s19 = smov 34   ;;  %s15638_s20 = smov 31   ;;  %v13744_v31 = vld [vmem:[%s21258_s2 + $0x20] sm:$0xff]  ;;  %vm132_vm2 = vcmask 64512  }
  0x15   :  { %91 = vrot.lane.b32.xlu1 %v15715_v1, %s15636_s15  ;;  %87 = vrot.lane.b32.xlu0 %v15720_v2, %s15636_s15  ;;  %s15639_s21 = smov 30   ;;  %s15640_s22 = smov 18   ;;  %v60_v6 = vshrl.u32 %v50_v5, 7  ;;  %v15812_v7 = vand.u32 127, %v50_v5  ;;  %v13745_v40 = vld [vmem:[%s21258_s2 + $0x28] sm:$0xff]  ;;  %v13746_v50 = vld [vmem:[%s21258_s2 + $0x30] sm:$0xff] }
  0x16   :  { %s15641_s23 = smov 17   ;;  %s15642_s24 = smov 16   ;;  %v101_v12 = vld [vmem:[#allocation2 + $0x1] ss:$8 sm:$0xf] }
  0x17   :  { %s15643_s25 = smov 15   ;;  %s15644_s26 = smov 14   ;;  %v15814_v8 = vsub.s32 3, %v60_v6  ;;  %v15816_v9 = vsub.s32 0, %v60_v6  ;;  %v15818_v10 = vsub.s32 1, %v60_v6  ;;  %v15820_v11 = vsub.s32 2, %v60_v6 }
  0x18   :  { %s15645_s27 = smov 2   ;;  %s15646_s28 = smov 1   ;;  %v57_v16 = vld [vmem:[#allocation2] ss:$8 sm:$0xf]  ;;  %vm95_vm0 = vcmp.lt.s32.totalorder %v15812_v7, 33 }
  0x19   :  { %93 = vrot.lane.b32.xlu1 %v15727_v3, %s15636_s15  ;;  %89 = vrot.lane.b32.xlu0 %v15732_v4, %s15636_s15  ;;  %s15647_s29 = smov 127   ;;  %s15648_s30 = smov 126   ;;  %v118_v15 = vrot.slane %v101_v12, %v15814_v8  ;;  %v110_v17 = vrot.slane %v101_v12, %v15818_v10  ;;  %v106_v18 = vrot.slane %v101_v12, %v15816_v9  ;;  %vm52_vm1 = vcmp.lt.s32.totalorder %v15812_v7, 34  ;;  %v527_v39 = vld [vmem:[#allocation2 + $0x2] ss:$8 sm:$0xf] }
  0x1a   :  { %s15649_s9 = smov 114   ;;  %v114_v19 = vrot.slane %v101_v12, %v15820_v11  ;;  %v66_v22 = vrot.slane %v57_v16, %v15818_v10  ;;  %s15650_s10 = smov 113   ;;  %v62_v35 = vrot.slane %v57_v16, %v15816_v9  ;;  %v70_v37 = vrot.slane %v57_v16, %v15820_v11  ;;  %v13747_v56 = vld [vmem:[%s21258_s2 + $0x38] sm:$0xff] }
  0x1b   :  { %v74_v38 = vrot.slane %v57_v16, %v15814_v8  ;;  %v536_v46 = vrot.slane %v527_v39, %v15818_v10  ;;  %vm521_vm3 = vcmp.lt.s32.totalorder %v15812_v7, 32  ;;  %s15651_s16 = smov 112   ;;  %v544_v54 = vrot.slane %v527_v39, %v15814_v8  ;;  %v15884_v58 = vld [vmem:[#allocation2 + $0x3] ss:$8 sm:$0xf]  ;;  %s15653_s18 = smov 110  }
  0x1c   :  { %v540_v57 = vrot.slane %v527_v39, %v15820_v11  ;;  %v532_v59 = vrot.slane %v527_v39, %v15816_v9  ;;  %vm772_vm4 = vcmp.lt.s32.totalorder %v15812_v7, 31  ;;  %v787_v12 = vrot.slane %v15884_v58, %v15818_v10  ;;  %s15654_s12 = smov 98   ;;  %s15656_s15 = smov 96  }
  0x1d   :  { %44 = vrot.lane.b32.xlu1 %v15732_v4, %s15637_s19  ;;  %42 = vrot.lane.b32.xlu0 %v15720_v2, %s15637_s19  ;;  %vm1023_vm5 = vcmp.lt.s32.totalorder %v15812_v7, 30  ;;  %vm1274_vm6 = vcmp.lt.s32.totalorder %v15812_v7, 18  ;;  %vm1525_vm7 = vcmp.lt.s32.totalorder %v15812_v7, 17  ;;  %vm1776_vm8 = vcmp.lt.s32.totalorder %v15812_v7, 16 }
  0x1e   :  { %vm2027_vm9 = vcmp.lt.s32.totalorder %v15812_v7, 15  ;;  %vm2278_vm10 = vcmp.lt.s32.totalorder %v15812_v7, 14  ;;  %vm2529_vm11 = vcmp.lt.s32.totalorder %v15812_v7, 2  ;;  %vm2780_vm12 = vcmp.lt.s32.totalorder %v15812_v7, 1 }
  0x1f   :  { %vm3269_vm13 = vcmp.lt.s32.totalorder %v15812_v7, 127  ;;  %vm3520_vm14 = vcmp.lt.s32.totalorder %v15812_v7, 126  ;;  %vm3771_vm15 = vcmp.lt.s32.totalorder %v15812_v7, 114 }
  0x21   :  { %48 = vrot.lane.b32.xlu1 %v15727_v3, %s15637_s19  ;;  %46 = vrot.lane.b32.xlu0 %v15715_v1, %s15637_s19 }
  0x25   :  { %515 = vrot.lane.b32.xlu1 %v15732_v4, %s15634_s8  ;;  %513 = vrot.lane.b32.xlu0 %v15720_v2, %s15634_s8 }
  0x29   :  { %519 = vrot.lane.b32.xlu1 %v15727_v3, %s15634_s8  ;;  %517 = vrot.lane.b32.xlu0 %v15715_v1, %s15634_s8 }
  0x2d   :  { %766 = vrot.lane.b32.xlu1 %v15732_v4, %s15638_s20  ;;  %764 = vrot.lane.b32.xlu0 %v15720_v2, %s15638_s20 }
  0x31   :  { %770 = vrot.lane.b32.xlu1 %v15727_v3, %s15638_s20  ;;  %768 = vrot.lane.b32.xlu0 %v15715_v1, %s15638_s20 }
  0x35   :  { %1017 = vrot.lane.b32.xlu1 %v15732_v4, %s15639_s21  ;;  %1015 = vrot.lane.b32.xlu0 %v15720_v2, %s15639_s21 }
  0x39   :  { %1021 = vrot.lane.b32.xlu1 %v15727_v3, %s15639_s21  ;;  %1019 = vrot.lane.b32.xlu0 %v15715_v1, %s15639_s21  ;;  %s15655_s21 = smov 97  }
  0x3d   :  { %1268 = vrot.lane.b32.xlu1 %v15732_v4, %s15640_s22  ;;  %1266 = vrot.lane.b32.xlu0 %v15720_v2, %s15640_s22 }
  0x41   :  { %1272 = vrot.lane.b32.xlu1 %v15727_v3, %s15640_s22  ;;  %1270 = vrot.lane.b32.xlu0 %v15715_v1, %s15640_s22 }
  0x45   :  { %1519 = vrot.lane.b32.xlu1 %v15732_v4, %s15641_s23  ;;  %1517 = vrot.lane.b32.xlu0 %v15720_v2, %s15641_s23 }
  0x49   :  { %1523 = vrot.lane.b32.xlu1 %v15727_v3, %s15641_s23  ;;  %1521 = vrot.lane.b32.xlu0 %v15715_v1, %s15641_s23 }
  0x4d   :  { %1770 = vrot.lane.b32.xlu1 %v15732_v4, %s15642_s24  ;;  %1768 = vrot.lane.b32.xlu0 %v15720_v2, %s15642_s24 }
  0x51   :  { %1774 = vrot.lane.b32.xlu1 %v15727_v3, %s15642_s24  ;;  %1772 = vrot.lane.b32.xlu0 %v15715_v1, %s15642_s24 }
  0x55   :  { %2021 = vrot.lane.b32.xlu1 %v15732_v4, %s15643_s25  ;;  %2019 = vrot.lane.b32.xlu0 %v15720_v2, %s15643_s25 }
  0x59   :  { %2025 = vrot.lane.b32.xlu1 %v15727_v3, %s15643_s25  ;;  %2023 = vrot.lane.b32.xlu0 %v15715_v1, %s15643_s25 }
  0x5d   :  { %2272 = vrot.lane.b32.xlu1 %v15732_v4, %s15644_s26  ;;  %2270 = vrot.lane.b32.xlu0 %v15720_v2, %s15644_s26 }
  0x61   :  { %2276 = vrot.lane.b32.xlu1 %v15727_v3, %s15644_s26  ;;  %2274 = vrot.lane.b32.xlu0 %v15715_v1, %s15644_s26 }
  0x65   :  { %2523 = vrot.lane.b32.xlu1 %v15732_v4, %s15645_s27  ;;  %2521 = vrot.lane.b32.xlu0 %v15720_v2, %s15645_s27 }
  0x69   :  { %2527 = vrot.lane.b32.xlu1 %v15727_v3, %s15645_s27  ;;  %2525 = vrot.lane.b32.xlu0 %v15715_v1, %s15645_s27  ;;  %s15657_s27 = smov 95  }
  0x6d   :  { %2774 = vrot.lane.b32.xlu1 %v15732_v4, %s15646_s28  ;;  %2772 = vrot.lane.b32.xlu0 %v15720_v2, %s15646_s28 }
  0x71   :  { %2778 = vrot.lane.b32.xlu1 %v15727_v3, %s15646_s28  ;;  %2776 = vrot.lane.b32.xlu0 %v15715_v1, %s15646_s28 }
  0x75   :  { %3261 = vrot.lane.b32.xlu0 %v15720_v2, %s15647_s29  ;;  %3263 = vrot.lane.b32.xlu1 %v15732_v4, %s15647_s29 }
  0x79   :  { %3265 = vrot.lane.b32.xlu0 %v15715_v1, %s15647_s29  ;;  %3267 = vrot.lane.b32.xlu1 %v15727_v3, %s15647_s29 }
  0x7d   :  { %3512 = vrot.lane.b32.xlu0 %v15720_v2, %s15648_s30  ;;  %3514 = vrot.lane.b32.xlu1 %v15732_v4, %s15648_s30 }
  0x81   :  { %3516 = vrot.lane.b32.xlu0 %v15715_v1, %s15648_s30  ;;  %3518 = vrot.lane.b32.xlu1 %v15727_v3, %s15648_s30  ;;  %s15652_s30 = smov 111  }
  0x85   :  { %3763 = vrot.lane.b32.xlu0 %v15720_v2, %s15649_s9  ;;  %3765 = vrot.lane.b32.xlu1 %v15732_v4, %s15649_s9 }
  0x87   :  { %v92_v13 = vpop.permute.xlu1 %91  ;;  %v88_v14 = vpop.permute.xlu0 %87 }
  0x89   :  { %3767 = vrot.lane.b32.xlu0 %v15715_v1, %s15649_s9  ;;  %3769 = vrot.lane.b32.xlu1 %v15727_v3, %s15649_s9 }
  0x8b   :  { %v94_v20 = vpop.permute.xlu1 %93  ;;  %v90_v21 = vpop.permute.xlu0 %89 }
  0x8c   :  { %v96_v23 = vsel %vm95_vm0, %v92_v13, %v94_v20  ;;  %v98_v24 = vsel %vm95_vm0, %v88_v14, %v90_v21  ;;  %v99_v25 = vsel %vm95_vm0, %v94_v20, %v88_v14  ;;  %v97_v26 = vsel %vm95_vm0, %v90_v21, %v92_v13  ;;  %v83_v14 = vld [vmem:[%s21258_s2] sm:$0xff]  ;;  %v84_v21 = vld [vmem:[%s21258_s2 + $0x8] sm:$0xff] }
  0x8d   :  { %v126_v27 = vmul.f32 %v118_v15, %v96_v23  ;;  %v124_v28 = vmul.f32 %v110_v17, %v98_v24  ;;  %v123_v29 = vmul.f32 %v106_v18, %v99_v25  ;;  %v125_v30 = vmul.f32 %v114_v19, %v97_v26  ;;  %4014 = vrot.lane.b32.xlu0 %v15720_v2, %s15650_s10  ;;  %v85_v26 = vld [vmem:[%s21258_s2 + $0x10] sm:$0xff] }
  0x8e   :  { %4016 = vrot.lane.b32.xlu1 %v15732_v4, %s15650_s10  ;;  %v795_v19 = vrot.slane %v15884_v58, %v15814_v8  ;;  %vm4022_vm0 = vcmp.lt.s32.totalorder %v15812_v7, 113 }
  0x8f   :  { %234 = vmatprep.subr.mxu1 %v126_v27  ;;  %v45_v32 = vpop.permute.xlu1 %44  ;;  %145 = vmatprep.subr.mxu0 %v124_v28  ;;  %v43_v33 = vpop.permute.xlu0 %42 }
  0x90   :  { %v55_v34 = vsel %vm52_vm1, %v43_v33, %v45_v32  ;;  %146 = vmatpush1.msra.mxu0 %v123_v29  ;;  %235 = vmatpush1.msra.mxu1 %v125_v30  ;;  %v15939_v29 = vld [vmem:[#allocation2 + $0x4] ss:$8 sm:$0xf] }
  0x91   :  { %13748 = vmatmul.mubr.msk.f32.vlgmr.msra.gmra.mrb[0].mxu0 %vm132_vm2, %v13744_v31  ;;  %13752 = vmatmul.mubr.msk.f32.vlgmr.msra.gmra.mrb[0].mxu1 %vm132_vm2, %v13744_v31  ;;  %v80_v36 = vmul.f32 %v66_v22, %v55_v34  ;;  %v86_v30 = vld [vmem:[%s21258_s2 + $0x18] sm:$0xff]  ;;  %v791_v31 = vrot.slane %v15884_v58, %v15820_v11 }
  0x92   :  { %215 = vmatprep.mubr.f32.mxu0 %v21263_v0  ;;  %304 = vmatprep.mubr.f32.mxu1 %v21263_v0 }
  0x93   :  { %v49_v41 = vpop.permute.xlu1 %48  ;;  %335 = vmatprep.subr.mxu0 %v80_v36  ;;  %v47_v42 = vpop.permute.xlu0 %46  ;;  %4018 = vrot.lane.b32.xlu0 %v15715_v1, %s15650_s10 }
  0x94   :  { %v56_v43 = vsel %vm52_vm1, %v49_v41, %v43_v33  ;;  %v53_v44 = vsel %vm52_vm1, %v47_v42, %v49_v41  ;;  %v54_v45 = vsel %vm52_vm1, %v45_v32, %v47_v42  ;;  %4020 = vrot.lane.b32.xlu1 %v15727_v3, %s15650_s10  ;;  %v783_v32 = vrot.slane %v15884_v58, %v15816_v9  ;;  %v13764_v42 = vld [vmem:[%s21258_s2 + $0x40] sm:$0xff] }
  0x95   :  { %v79_v47 = vmul.f32 %v62_v35, %v56_v43  ;;  %v81_v48 = vmul.f32 %v70_v37, %v54_v45  ;;  %13749 = vmatmul.mubr.msk.f32.gmra.mrb[2].mxu0 %vm132_vm2, %v13745_v40  ;;  %13753 = vmatmul.mubr.msk.f32.gmra.mrb[2].mxu1 %vm132_vm2, %v13745_v40  ;;  %v82_v49 = vmul.f32 %v74_v38, %v53_v44  ;;  %vm4273_vm1 = vcmp.lt.s32.totalorder %v15812_v7, 112 }
  0x96   :  { %221 = vmatprep.mubr.f32.mxu0 %v21263_v0  ;;  %310 = vmatprep.mubr.f32.mxu1 %v21263_v0  ;;  %v1046_v37 = vrot.slane %v15939_v29, %v15814_v8  ;;  %v1038_v38 = vrot.slane %v15939_v29, %v15818_v10 }
  0x97   :  { %336 = vmatpush1.msra.mxu0 %v79_v47  ;;  %424 = vmatprep.subr.mxu1 %v82_v49  ;;  %v516_v51 = vpop.permute.xlu1 %515  ;;  %v514_v52 = vpop.permute.xlu0 %513  ;;  %v13766_v49 = vld [vmem:[%s21258_s2 + $0x50] sm:$0xff] }
  0x98   :  { %425 = vmatpush1.msra.mxu1 %v81_v48  ;;  %v524_v53 = vsel %vm521_vm3, %v514_v52, %v516_v51  ;;  %4265 = vrot.lane.b32.xlu0 %v15720_v2, %s15651_s16 }
  0x99   :  { %13750 = vmatmul.mubr.msk.f32.gmra.mrb[4].mxu0 %vm132_vm2, %v13746_v50  ;;  %13754 = vmatmul.mubr.msk.f32.gmra.mrb[4].mxu1 %vm132_vm2, %v13746_v50  ;;  %v550_v55 = vmul.f32 %v536_v46, %v524_v53  ;;  %v13765_v46 = vld [vmem:[%s21258_s2 + $0x48] sm:$0xff] }
  0x9a   :  { %227 = vmatprep.mubr.f32.mxu0 %v21263_v0  ;;  %316 = vmatprep.mubr.f32.mxu1 %v21263_v0  ;;  %v15998_v50 = vld [vmem:[#allocation2 + $0x5] ss:$8 sm:$0xf] }
  0x9b   :  { %v520_v60 = vpop.permute.xlu1 %519  ;;  %v518_v61 = vpop.permute.xlu0 %517  ;;  %570 = vmatprep.subr.mxu0 %v550_v55  ;;  %4267 = vrot.lane.b32.xlu1 %v15732_v4, %s15651_s16  ;;  %v1034_v55 = vrot.slane %v15939_v29, %v15816_v9  ;;  %v1297_v58 = vrot.slane %v15998_v50, %v15814_v8 }
  0x9c   :  { %v525_v62 = vsel %vm521_vm3, %v520_v60, %v514_v52  ;;  %v522_v63 = vsel %vm521_vm3, %v518_v61, %v520_v60  ;;  %v523_v5 = vsel %vm521_vm3, %v516_v51, %v518_v61  ;;  %4269 = vrot.lane.b32.xlu0 %v15715_v1, %s15651_s16  ;;  %v13767_v51 = vld [vmem:[%s21258_s2 + $0x58] sm:$0xff]  ;;  %v1042_v52 = vrot.slane %v15939_v29, %v15820_v11 }
  0x9d   :  { %13751 = vmatmul.mubr.msk.f32.gmra.mrb[6].mxu0 %vm132_vm2, %v13747_v56  ;;  %13755 = vmatmul.mubr.msk.f32.gmra.mrb[6].mxu1 %vm132_vm2, %v13747_v56  ;;  %v552_v6 = vmul.f32 %v544_v54, %v522_v63  ;;  %v551_v13 = vmul.f32 %v540_v57, %v523_v5  ;;  %v549_v15 = vmul.f32 %v532_v59, %v525_v62  ;;  %v13776_v63 = vld [vmem:[%s21258_s2 + $0x60] sm:$0xff]  ;;  %vm4524_vm3 = vcmp.lt.s32.totalorder %v15812_v7, 111 }
  0x9e   :  { %399 = vmatprep.mubr.f32.mxu0 %v21263_v0  ;;  %488 = vmatprep.mubr.f32.mxu1 %v21263_v0  ;;  %v1289_v59 = vrot.slane %v15998_v50, %v15818_v10 }
  0x9f   :  { %659 = vmatprep.subr.mxu1 %v552_v6  ;;  %v767_v16 = vpop.permute.xlu1 %766  ;;  %v765_v17 = vpop.permute.xlu0 %764  ;;  %4271 = vrot.lane.b32.xlu1 %v15727_v3, %s15651_s16 }
  0xa0   :  { %v775_v18 = vsel %vm772_vm4, %v765_v17, %v767_v16  ;;  %4516 = vrot.lane.b32.xlu0 %v15720_v2, %s15652_s30 }
  0xa1   :  { %13756 = vmatmul.mubr.msk.f32.vlgmr.msra.gmra.mrb[0].mxu0 %vm132_vm2, %v83_v14  ;;  %13760 = vmatmul.mubr.msk.f32.vlgmr.msra.gmra.mrb[0].mxu1 %vm132_vm2, %v83_v14  ;;  %v801_v20 = vmul.f32 %v787_v12, %v775_v18  ;;  %v13779_v18 = vld [vmem:[%s21258_s2 + $0x78] sm:$0xff] }
  0xa2   :  { %660 = vmatpush1.msra.mxu1 %v551_v13  ;;  %405 = vmatprep.mubr.f32.mxu0 %v21263_v0  ;;  %v13777_v13 = vld [vmem:[%s21258_s2 + $0x68] sm:$0xff] }
  0xa3   :  { %494 = vmatprep.mubr.f32.mxu1 %v21263_v0  ;;  %571 = vmatpush1.msra.mxu0 %v549_v15  ;;  %v771_v22 = vpop.permute.xlu1 %770  ;;  %v769_v23 = vpop.permute.xlu0 %768 }
  0xa4   :  { %v773_v24 = vsel %vm772_vm4, %v769_v23, %v771_v22  ;;  %821 = vmatprep.subr.mxu0 %v801_v20  ;;  %4518 = vrot.lane.b32.xlu1 %v15732_v4, %s15652_s30  ;;  %v774_v33 = vsel %vm772_vm4, %v767_v16, %v769_v23  ;;  %v776_v36 = vsel %vm772_vm4, %v771_v22, %v765_v17  ;;  %v13778_v16 = vld [vmem:[%s21258_s2 + $0x70] sm:$0xff]  ;;  %vm4775_vm4 = vcmp.lt.s32.totalorder %v15812_v7, 110 }
  0xa5   :  { %13757 = vmatmul.mubr.msk.f32.gmra.mrb[2].mxu0 %vm132_vm2, %v84_v21  ;;  %13761 = vmatmul.mubr.msk.f32.gmra.mrb[2].mxu1 %vm132_vm2, %v84_v21  ;;  %v803_v25 = vmul.f32 %v795_v19, %v773_v24  ;;  %v802_v41 = vmul.f32 %v791_v31, %v774_v33  ;;  %v800_v43 = vmul.f32 %v783_v32, %v776_v36  ;;  %v16057_v17 = vld [vmem:[#allocation2 + $0x6] ss:$8 sm:$0xf] }
  0xa6   :  { %411 = vmatprep.mubr.f32.mxu0 %v21263_v0  ;;  %500 = vmatprep.mubr.f32.mxu1 %v21263_v0  ;;  %v1293_v19 = vrot.slane %v15998_v50, %v15820_v11  ;;  %v1285_v22 = vrot.slane %v15998_v50, %v15816_v9 }
  0xa7   :  { %910 = vmatprep.subr.mxu1 %v803_v25  ;;  %v15929_v27 = vpop.permute.xlu1 %1017  ;;  %v15931_v28 = vpop.permute.xlu0 %1015  ;;  %4520 = vrot.lane.b32.xlu0 %v15715_v1, %s15652_s30  ;;  %v1548_v25 = vrot.slane %v16057_v17, %v15814_v8 }
  0xa8   :  { %4522 = vrot.lane.b32.xlu1 %v15727_v3, %s15652_s30  ;;  %v1026_v39 = vsel %vm1023_vm5, %v15931_v28, %v15929_v27 }
  0xa9   :  { %13758 = vmatmul.mubr.msk.f32.gmra.mrb[4].mxu0 %vm132_vm2, %v85_v26  ;;  %13762 = vmatmul.mubr.msk.f32.gmra.mrb[4].mxu1 %vm132_vm2, %v85_v26  ;;  %v1052_v45 = vmul.f32 %v1038_v38, %v1026_v39  ;;  %v1540_v26 = vrot.slane %v16057_v17, %v15818_v10  ;;  %v16116_v38 = vld [vmem:[#allocation2 + $0x7] ss:$8 sm:$0xf] }
  0xaa   :  { %417 = vmatprep.mubr.f32.mxu0 %v21263_v0  ;;  %506 = vmatprep.mubr.f32.mxu1 %v21263_v0  ;;  %v13791_v39 = vld [vmem:[%s21258_s2 + $0x98] sm:$0xff] }
  0xab   :  { %v1022_v34 = vpop.permute.xlu1 %1021  ;;  %v1020_v35 = vpop.permute.xlu0 %1019  ;;  %4767 = vrot.lane.b32.xlu0 %v15720_v2, %s15653_s18 }
  0xac   :  { %v1024_v40 = vsel %vm1023_vm5, %v1020_v35, %v1022_v34  ;;  %4769 = vrot.lane.b32.xlu1 %v15732_v4, %s15653_s18  ;;  %v1025_v56 = vsel %vm1023_vm5, %v15929_v27, %v1020_v35  ;;  %v1027_v57 = vsel %vm1023_vm5, %v1022_v34, %v15931_v28  ;;  %v13789_v34 = vld [vmem:[%s21258_s2 + $0x88] sm:$0xff]  ;;  %vm5026_vm5 = vcmp.lt.s32.totalorder %v15812_v7, 98 }
  0xad   :  { %13759 = vmatmul.mubr.msk.f32.gmra.mrb[6].mxu0 %vm132_vm2, %v86_v30  ;;  %13763 = vmatmul.mubr.msk.f32.gmra.mrb[6].mxu1 %vm132_vm2, %v86_v30  ;;  %v1054_v44 = vmul.f32 %v1046_v37, %v1024_v40  ;;  %v1053_v62 = vmul.f32 %v1042_v52, %v1025_v56  ;;  %v1051_v5 = vmul.f32 %v1034_v55, %v1027_v57  ;;  %v13788_v30 = vld [vmem:[%s21258_s2 + $0x80] sm:$0xff]  ;;  %v13790_v37 = vld [vmem:[%s21258_s2 + $0x90] sm:$0xff]  ;;  %v13801_v55 = vld [vmem:[%s21258_s2 + $0xa8] sm:$0xff] }
  0xae   :  { %634 = vmatprep.mubr.f32.mxu0 %v21263_v0  ;;  %723 = vmatprep.mubr.f32.mxu1 %v21263_v0  ;;  %v1544_v40 = vrot.slane %v16057_v17, %v15820_v11 }
  0xaf   :  { %v15983_v47 = vpop.permute.xlu1 %1268  ;;  %v15985_v48 = vpop.permute.xlu0 %1266  ;;  %4771 = vrot.lane.b32.xlu0 %v15715_v1, %s15653_s18 }
  0xb0   :  { %4773 = vrot.lane.b32.xlu1 %v15727_v3, %s15653_s18  ;;  %v1277_v60 = vsel %vm1274_vm6, %v15985_v48, %v15983_v47  ;;  %s15658_s18 = smov 94  }
  0xb1   :  { %13768 = vmatmul.mubr.msk.f32.vlgmr.msra.gmra.mrb[0].mxu0 %vm132_vm2, %v13764_v42  ;;  %13772 = vmatmul.mubr.msk.f32.vlgmr.msra.gmra.mrb[0].mxu1 %vm132_vm2, %v13764_v42  ;;  %v1303_v12 = vmul.f32 %v1289_v59, %v1277_v60  ;;  %v16175_v59 = vld [vmem:[#allocation2 + $0x20] ss:$8 sm:$0xf] }
  0xb2   :  { %911 = vmatpush1.msra.mxu1 %v802_v41  ;;  %640 = vmatprep.mubr.f32.mxu0 %v21263_v0  ;;  %v13803_v60 = vld [vmem:[%s21258_s2 + $0xb8] sm:$0xff] }
  0xb3   :  { %729 = vmatprep.mubr.f32.mxu1 %v21263_v0  ;;  %822 = vmatpush1.msra.mxu0 %v800_v43  ;;  %v1273_v53 = vpop.permute.xlu1 %1272  ;;  %v1271_v54 = vpop.permute.xlu0 %1270  ;;  %v1536_v43 = vrot.slane %v16057_v17, %v15816_v9 }
  0xb4   :  { %1161 = vmatprep.subr.mxu1 %v1054_v44  ;;  %1072 = vmatprep.subr.mxu0 %v1052_v45  ;;  %v1275_v61 = vsel %vm1274_vm6, %v1271_v54, %v1273_v53  ;;  %v1276_v23 = vsel %vm1274_vm6, %v15983_v47, %v1271_v54  ;;  %v1278_v24 = vsel %vm1274_vm6, %v1273_v53, %v15985_v48  ;;  %vm5277_vm6 = vcmp.lt.s32.totalorder %v15812_v7, 97 }
  0xb5   :  { %13769 = vmatmul.mubr.msk.f32.gmra.mrb[2].mxu0 %vm132_vm2, %v13765_v46  ;;  %13773 = vmatmul.mubr.msk.f32.gmra.mrb[2].mxu1 %vm132_vm2, %v13765_v46  ;;  %v1305_v6 = vmul.f32 %v1297_v58, %v1275_v61  ;;  %v1304_v29 = vmul.f32 %v1293_v19, %v1276_v23  ;;  %v1302_v31 = vmul.f32 %v1285_v22, %v1278_v24  ;;  %v13802_v58 = vld [vmem:[%s21258_s2 + $0xb0] sm:$0xff]  ;;  %v13813_v22 = vld [vmem:[%s21258_s2 + $0xc8] sm:$0xff] }
  0xb6   :  { %646 = vmatprep.mubr.f32.mxu0 %v21263_v0  ;;  %735 = vmatprep.mubr.f32.mxu1 %v21263_v0  ;;  %v1799_v46 = vrot.slane %v16116_v38, %v15814_v8  ;;  %v1791_v47 = vrot.slane %v16116_v38, %v15818_v10  ;;  %v1795_v61 = vrot.slane %v16116_v38, %v15820_v11 }
  0xb7   :  { %v16042_v14 = vpop.permute.xlu1 %1519  ;;  %v16044_v15 = vpop.permute.xlu0 %1517  ;;  %5018 = vrot.lane.b32.xlu0 %v15720_v2, %s15654_s12  ;;  %5020 = vrot.lane.b32.xlu1 %v15732_v4, %s15654_s12 }
  0xb8   :  { %v1528_v27 = vsel %vm1525_vm7, %v16044_v15, %v16042_v14 }
  0xb9   :  { %13770 = vmatmul.mubr.msk.f32.gmra.mrb[4].mxu0 %vm132_vm2, %v13766_v49  ;;  %13774 = vmatmul.mubr.msk.f32.gmra.mrb[4].mxu1 %vm132_vm2, %v13766_v49  ;;  %v1554_v33 = vmul.f32 %v1540_v26, %v1528_v27  ;;  %v16234_v26 = vld [vmem:[#allocation2 + $0x21] ss:$8 sm:$0xf] }
  0xba   :  { %652 = vmatprep.mubr.f32.mxu0 %v21263_v0  ;;  %741 = vmatprep.mubr.f32.mxu1 %v21263_v0  ;;  %v13815_v27 = vld [vmem:[%s21258_s2 + $0xd8] sm:$0xff] }
  0xbb   :  { %v1524_v20 = vpop.permute.xlu1 %1523  ;;  %v1522_v21 = vpop.permute.xlu0 %1521  ;;  %5022 = vrot.lane.b32.xlu0 %v15715_v1, %s15654_s12  ;;  %5024 = vrot.lane.b32.xlu1 %v15727_v3, %s15654_s12 }
  0xbc   :  { %v1526_v28 = vsel %vm1525_vm7, %v1522_v21, %v1524_v20  ;;  %v1527_v44 = vsel %vm1525_vm7, %v16042_v14, %v1522_v21  ;;  %v1529_v45 = vsel %vm1525_vm7, %v1524_v20, %v16044_v15  ;;  %v2042_v14 = vrot.slane %v16175_v59, %v15818_v10 }
  0xbd   :  { %13771 = vmatmul.mubr.msk.f32.gmra.mrb[6].mxu0 %vm132_vm2, %v13767_v51  ;;  %13775 = vmatmul.mubr.msk.f32.gmra.mrb[6].mxu1 %vm132_vm2, %v13767_v51  ;;  %v1556_v32 = vmul.f32 %v1548_v25, %v1526_v28  ;;  %v1555_v50 = vmul.f32 %v1544_v40, %v1527_v44  ;;  %v13800_v51 = vld [vmem:[%s21258_s2 + $0xa0] sm:$0xff]  ;;  %v1553_v52 = vmul.f32 %v1536_v43, %v1529_v45  ;;  %v13814_v25 = vld [vmem:[%s21258_s2 + $0xd0] sm:$0xff]  ;;  %v13825_v43 = vld [vmem:[%s21258_s2 + $0xe8] sm:$0xff] }
  0xbe   :  { %885 = vmatprep.mubr.f32.mxu0 %v21263_v0  ;;  %974 = vmatprep.mubr.f32.mxu1 %v21263_v0  ;;  %v2046_v28 = vrot.slane %v16175_v59, %v15820_v11 }
  0xbf   :  { %v16101_v35 = vpop.permute.xlu1 %1770  ;;  %v16103_v36 = vpop.permute.xlu0 %1768  ;;  %5269 = vrot.lane.b32.xlu0 %v15720_v2, %s15655_s21  ;;  %5271 = vrot.lane.b32.xlu1 %v15732_v4, %s15655_s21 }
  0xc0   :  { %v1779_v48 = vsel %vm1776_vm8, %v16103_v36, %v16101_v35 }
  0xc1   :  { %13780 = vmatmul.mubr.msk.f32.vlgmr.msra.gmra.mrb[0].mxu0 %vm132_vm2, %v13776_v63  ;;  %13784 = vmatmul.mubr.msk.f32.vlgmr.msra.gmra.mrb[0].mxu1 %vm132_vm2, %v13776_v63  ;;  %v1805_v54 = vmul.f32 %v1791_v47, %v1779_v48  ;;  %v16293_v47 = vld [vmem:[#allocation2 + $0x22] ss:$8 sm:$0xf] }
  0xc2   :  { %1162 = vmatpush1.msra.mxu1 %v1053_v62  ;;  %891 = vmatprep.mubr.f32.mxu0 %v21263_v0  ;;  %v13827_v48 = vld [vmem:[%s21258_s2 + $0xf8] sm:$0xff] }
  0xc3   :  { %980 = vmatprep.mubr.f32.mxu1 %v21263_v0  ;;  %1073 = vmatpush1.msra.mxu0 %v1051_v5  ;;  %v1775_v41 = vpop.permute.xlu1 %1774  ;;  %v1773_v42 = vpop.permute.xlu0 %1772  ;;  %v1787_v5 = vrot.slane %v16116_v38, %v15816_v9 }
  0xc4   :  { %1412 = vmatprep.subr.mxu1 %v1305_v6  ;;  %1323 = vmatprep.subr.mxu0 %v1303_v12  ;;  %v1777_v49 = vsel %vm1776_vm8, %v1773_v42, %v1775_v41  ;;  %v1778_v6 = vsel %vm1776_vm8, %v16101_v35, %v1773_v42  ;;  %v1780_v12 = vsel %vm1776_vm8, %v1775_v41, %v16103_v36 }
  0xc5   :  { %13781 = vmatmul.mubr.msk.f32.gmra.mrb[2].mxu0 %vm132_vm2, %v13777_v13  ;;  %13785 = vmatmul.mubr.msk.f32.gmra.mrb[2].mxu1 %vm132_vm2, %v13777_v13  ;;  %v1807_v53 = vmul.f32 %v1799_v46, %v1777_v49  ;;  %v2050_v13 = vrot.slane %v16175_v59, %v15814_v8  ;;  %v1806_v17 = vmul.f32 %v1795_v61, %v1778_v6  ;;  %v13826_v46 = vld [vmem:[%s21258_s2 + $0xf0] sm:$0xff]  ;;  %v13839_v6 = vld [vmem:[%s21258_s2 + $0x118] sm:$0xff] }
  0xc6   :  { %897 = vmatprep.mubr.f32.mxu0 %v21263_v0  ;;  %986 = vmatprep.mubr.f32.mxu1 %v21263_v0  ;;  %v1804_v19 = vmul.f32 %v1787_v5, %v1780_v12  ;;  %v2293_v35 = vrot.slane %v16234_v26, %v15818_v10  ;;  %v2297_v49 = vrot.slane %v16234_v26, %v15820_v11  ;;  %v2786_v5 = vld [vmem:[#allocation2 + $0x23] ss:$8 sm:$0xf] }
  0xc7   :  { %5273 = vrot.lane.b32.xlu0 %v15715_v1, %s15655_s21  ;;  %5275 = vrot.lane.b32.xlu1 %v15727_v3, %s15655_s21  ;;  %v16160_v56 = vpop.permute.xlu1 %2021  ;;  %v16162_v57 = vpop.permute.xlu0 %2019  ;;  %v2548_v12 = vrot.slane %v16293_v47, %v15820_v11 }
  0xc8   :  { %v2030_v15 = vsel %vm2027_vm9, %v16162_v57, %v16160_v56 }
  0xc9   :  { %13782 = vmatmul.mubr.msk.f32.gmra.mrb[4].mxu0 %vm132_vm2, %v13778_v16  ;;  %13786 = vmatmul.mubr.msk.f32.gmra.mrb[4].mxu1 %vm132_vm2, %v13778_v16  ;;  %v2056_v21 = vmul.f32 %v2042_v14, %v2030_v15  ;;  %v2540_v15 = vrot.slane %v16293_v47, %v15816_v9 }
  0xca   :  { %903 = vmatprep.mubr.f32.mxu0 %v21263_v0  ;;  %992 = vmatprep.mubr.f32.mxu1 %v21263_v0 }
  0xcb   :  { %5520 = vrot.lane.b32.xlu0 %v15720_v2, %s15656_s15  ;;  %5522 = vrot.lane.b32.xlu1 %v15732_v4, %s15656_s15  ;;  %v2026_v62 = vpop.permute.xlu1 %2025  ;;  %v2024_v63 = vpop.permute.xlu0 %2023 }
  0xcc   :  { %v2028_v16 = vsel %vm2027_vm9, %v2024_v63, %v2026_v62 }
  0xcd   :  { %13783 = vmatmul.mubr.msk.f32.gmra.mrb[6].mxu0 %vm132_vm2, %v13779_v18  ;;  %13787 = vmatmul.mubr.msk.f32.gmra.mrb[6].mxu1 %vm132_vm2, %v13779_v18  ;;  %v13812_v18 = vld [vmem:[%s21258_s2 + $0xc0] sm:$0xff]  ;;  %v2058_v20 = vmul.f32 %v2050_v13, %v2028_v16 }
  0xce   :  { %1136 = vmatprep.mubr.f32.mxu0 %v21263_v0  ;;  %1225 = vmatprep.mubr.f32.mxu1 %v21263_v0 }
  0xcf   :  { %5524 = vrot.lane.b32.xlu0 %v15715_v1, %s15656_s15  ;;  %5526 = vrot.lane.b32.xlu1 %v15727_v3, %s15656_s15  ;;  %v16219_v23 = vpop.permute.xlu1 %2272  ;;  %v16221_v24 = vpop.permute.xlu0 %2270 }
  0xd0   :  { %v2281_v36 = vsel %vm2278_vm10, %v16221_v24, %v16219_v23 }
  0xd1   :  { %13792 = vmatmul.mubr.msk.f32.vlgmr.msra.gmra.mrb[0].mxu0 %vm132_vm2, %v13788_v30  ;;  %13796 = vmatmul.mubr.msk.f32.vlgmr.msra.gmra.mrb[0].mxu1 %vm132_vm2, %v13788_v30  ;;  %v2307_v42 = vmul.f32 %v2293_v35, %v2281_v36 }
  0xd2   :  { %1413 = vmatpush1.msra.mxu1 %v1304_v29  ;;  %1142 = vmatprep.mubr.f32.mxu0 %v21263_v0 }
  0xd3   :  { %1231 = vmatprep.mubr.f32.mxu1 %v21263_v0  ;;  %1324 = vmatpush1.msra.mxu0 %v1302_v31  ;;  %v2277_v29 = vpop.permute.xlu1 %2276  ;;  %v2275_v30 = vpop.permute.xlu0 %2274  ;;  %v2038_v31 = vrot.slane %v16175_v59, %v15816_v9 }
  0xd4   :  { %1663 = vmatprep.subr.mxu1 %v1556_v32  ;;  %1574 = vmatprep.subr.mxu0 %v1554_v33  ;;  %v2029_v32 = vsel %vm2027_vm9, %v16160_v56, %v2024_v63  ;;  %v2031_v33 = vsel %vm2027_vm9, %v2026_v62, %v16162_v57  ;;  %v13836_v56 = vld [vmem:[%s21258_s2 + $0x100] sm:$0xff]  ;;  %v13838_v63 = vld [vmem:[%s21258_s2 + $0x110] sm:$0xff] }
  0xd5   :  { %13793 = vmatmul.mubr.msk.f32.gmra.mrb[2].mxu0 %vm132_vm2, %v13789_v34  ;;  %13797 = vmatmul.mubr.msk.f32.gmra.mrb[2].mxu1 %vm132_vm2, %v13789_v34  ;;  %v2301_v34 = vrot.slane %v16234_v26, %v15814_v8  ;;  %v2057_v38 = vmul.f32 %v2046_v28, %v2029_v32  ;;  %v2055_v40 = vmul.f32 %v2038_v31, %v2031_v33  ;;  %v13850_v28 = vld [vmem:[%s21258_s2 + $0x130] sm:$0xff] }
  0xd6   :  { %1148 = vmatprep.mubr.f32.mxu0 %v21263_v0  ;;  %1237 = vmatprep.mubr.f32.mxu1 %v21263_v0  ;;  %v2799_v31 = vrot.slane %v2786_v5, %v15820_v11  ;;  %v2791_v32 = vrot.slane %v2786_v5, %v15816_v9 }
  0xd7   :  { %5771 = vrot.lane.b32.xlu0 %v15720_v2, %s15657_s27  ;;  %5773 = vrot.lane.b32.xlu1 %v15732_v4, %s15657_s27  ;;  %v16278_v44 = vpop.permute.xlu1 %2523  ;;  %v16280_v45 = vpop.permute.xlu0 %2521 }
  0xd9   :  { %13794 = vmatmul.mubr.msk.f32.gmra.mrb[4].mxu0 %vm132_vm2, %v13790_v37  ;;  %13798 = vmatmul.mubr.msk.f32.gmra.mrb[4].mxu1 %vm132_vm2, %v13790_v37  ;;  %v2279_v37 = vsel %vm2278_vm10, %v2275_v30, %v2277_v29 }
  0xda   :  { %1154 = vmatprep.mubr.f32.mxu0 %v21263_v0  ;;  %1243 = vmatprep.mubr.f32.mxu1 %v21263_v0  ;;  %v2309_v41 = vmul.f32 %v2301_v34, %v2279_v37 }
  0xdb   :  { %5775 = vrot.lane.b32.xlu0 %v15715_v1, %s15657_s27  ;;  %5777 = vrot.lane.b32.xlu1 %v15727_v3, %s15657_s27 }
  0xdd   :  { %13795 = vmatmul.mubr.msk.f32.gmra.mrb[6].mxu0 %vm132_vm2, %v13791_v39  ;;  %13799 = vmatmul.mubr.msk.f32.gmra.mrb[6].mxu1 %vm132_vm2, %v13791_v39  ;;  %v13824_v39 = vld [vmem:[%s21258_s2 + $0xe0] sm:$0xff] }
  0xde   :  { %1387 = vmatprep.mubr.f32.mxu0 %v21263_v0  ;;  %1476 = vmatprep.mubr.f32.mxu1 %v21263_v0 }
  0xdf   :  { %6022 = vrot.lane.b32.xlu0 %v15720_v2, %s15658_s18  ;;  %6024 = vrot.lane.b32.xlu1 %v15732_v4, %s15658_s18  ;;  %v2528_v2 = vpop.permute.xlu1 %2527  ;;  %v2526_v4 = vpop.permute.xlu0 %2525 }
  0xe0   :  { %v2531_v16 = vsel %vm2529_vm11, %v16278_v44, %v2526_v4 }
  0xe1   :  { %13804 = vmatmul.mubr.msk.f32.vlgmr.msra.gmra.mrb[0].mxu0 %vm132_vm2, %v13800_v51  ;;  %13808 = vmatmul.mubr.msk.f32.vlgmr.msra.gmra.mrb[0].mxu1 %vm132_vm2, %v13800_v51  ;;  %v2280_v51 = vsel %vm2278_vm10, %v16219_v23, %v2275_v30  ;;  %v13848_v23 = vld [vmem:[%s21258_s2 + $0x120] sm:$0xff]  ;;  %v13851_v30 = vld [vmem:[%s21258_s2 + $0x138] sm:$0xff] }
  0xe2   :  { %1664 = vmatpush1.msra.mxu1 %v1555_v50  ;;  %1393 = vmatprep.mubr.f32.mxu0 %v21263_v0  ;;  %v2289_v50 = vrot.slane %v16234_v26, %v15816_v9 }
  0xe3   :  { %1482 = vmatprep.mubr.f32.mxu1 %v21263_v0  ;;  %1575 = vmatpush1.msra.mxu0 %v1553_v52  ;;  %v2282_v52 = vsel %vm2278_vm10, %v2277_v29, %v16221_v24  ;;  %v2775_v61 = vpop.permute.xlu1 %2774  ;;  %v2773_v62 = vpop.permute.xlu0 %2772  ;;  %v3024_v29 = vld [vmem:[#allocation2 + $0x24] ss:$8 sm:$0xf]  ;;  %vm5528_vm10 = vcmp.lt.s32.totalorder %v15812_v7, 96 }
  0xe4   :  { %1914 = vmatprep.subr.mxu1 %v1807_v53  ;;  %1825 = vmatprep.subr.mxu0 %v1805_v54  ;;  %v2552_v53 = vrot.slane %v16293_v47, %v15814_v8  ;;  %v2544_v54 = vrot.slane %v16293_v47, %v15818_v10  ;;  %v2306_v57 = vmul.f32 %v2289_v50, %v2282_v52  ;;  %v13862_v47 = vld [vmem:[%s21258_s2 + $0x150] sm:$0xff] }
  0xe5   :  { %13805 = vmatmul.mubr.msk.f32.gmra.mrb[2].mxu0 %vm132_vm2, %v13801_v55  ;;  %13809 = vmatmul.mubr.msk.f32.gmra.mrb[2].mxu1 %vm132_vm2, %v13801_v55  ;;  %v2308_v55 = vmul.f32 %v2297_v49, %v2280_v51  ;;  %v3033_v35 = vrot.slane %v3024_v29, %v15818_v10  ;;  %v3041_v36 = vrot.slane %v3024_v29, %v15814_v8  ;;  %v13863_v49 = vld [vmem:[%s21258_s2 + $0x158] sm:$0xff] }
  0xe6   :  { %1399 = vmatprep.mubr.f32.mxu0 %v21263_v0  ;;  %1488 = vmatprep.mubr.f32.mxu1 %v21263_v0  ;;  %v3029_v50 = vrot.slane %v3024_v29, %v15816_v9  ;;  %v3037_v51 = vrot.slane %v3024_v29, %v15820_v11 }
  0xe7   :  { %6026 = vrot.lane.b32.xlu0 %v15715_v1, %s15658_s18  ;;  %6028 = vrot.lane.b32.xlu1 %v15727_v3, %s15658_s18  ;;  %v2532_v1 = vsel %vm2529_vm11, %v16280_v45, %v16278_v44  ;;  %v2530_v3 = vsel %vm2529_vm11, %v2526_v4, %v2528_v2  ;;  %v2779_v13 = vpop.permute.xlu1 %2778  ;;  %v2777_v14 = vpop.permute.xlu0 %2776  ;;  %v13861_v44 = vld [vmem:[%s21258_s2 + $0x148] sm:$0xff] }
  0xe8   :  { %v2558_v59 = vmul.f32 %v2544_v54, %v2532_v1  ;;  %v2782_v33 = vsel %vm2780_vm12, %v2775_v61, %v2777_v14  ;;  %v2784_v34 = vsel %vm2780_vm12, %v2779_v13, %v2773_v62 }
  0xe9   :  { %13806 = vmatmul.mubr.msk.f32.gmra.mrb[4].mxu0 %vm132_vm2, %v13802_v58  ;;  %13810 = vmatmul.mubr.msk.f32.gmra.mrb[4].mxu1 %vm132_vm2, %v13802_v58  ;;  %v2560_v58 = vmul.f32 %v2552_v53, %v2530_v3  ;;  %v2810_v37 = vmul.f32 %v2799_v31, %v2782_v33  ;;  %v13872_v3 = vld [vmem:[%s21258_s2 + $0x160] sm:$0xff]  ;;  %v13886_v31 = vld [vmem:[%s21258_s2 + $0x190] sm:$0xff] }
  0xea   :  { %1405 = vmatprep.mubr.f32.mxu0 %v21263_v0  ;;  %1494 = vmatprep.mubr.f32.mxu1 %v21263_v0 }
  0xed   :  { %13807 = vmatmul.mubr.msk.f32.gmra.mrb[6].mxu0 %vm132_vm2, %v13803_v60  ;;  %13811 = vmatmul.mubr.msk.f32.gmra.mrb[6].mxu1 %vm132_vm2, %v13803_v60  ;;  %v13837_v60 = vld [vmem:[%s21258_s2 + $0x108] sm:$0xff] }
  0xee   :  { %1638 = vmatprep.mubr.f32.mxu0 %v21263_v0  ;;  %1727 = vmatprep.mubr.f32.mxu1 %v21263_v0 }
  0xf1   :  { %13816 = vmatmul.mubr.msk.f32.vlgmr.msra.gmra.mrb[0].mxu0 %vm132_vm2, %v13812_v18  ;;  %13820 = vmatmul.mubr.msk.f32.vlgmr.msra.gmra.mrb[0].mxu1 %vm132_vm2, %v13812_v18  ;;  %v2803_v18 = vrot.slane %v2786_v5, %v15814_v8 }
  0xf2   :  { %1915 = vmatpush1.msra.mxu1 %v1806_v17  ;;  %1644 = vmatprep.mubr.f32.mxu0 %v21263_v0  ;;  %v2533_v17 = vsel %vm2529_vm11, %v2528_v2, %v16280_v45  ;;  %v3262_v45 = vpop.permute.xlu0 %3261  ;;  %vm5779_vm11 = vcmp.lt.s32.totalorder %v15812_v7, 95 }
  0xf3   :  { %1733 = vmatprep.mubr.f32.mxu1 %v21263_v0  ;;  %1826 = vmatpush1.msra.mxu0 %v1804_v19  ;;  %v2795_v19 = vrot.slane %v2786_v5, %v15818_v10  ;;  %v2557_v24 = vmul.f32 %v2540_v15, %v2533_v17  ;;  %v13874_v5 = vld [vmem:[%s21258_s2 + $0x170] sm:$0xff] }
  0xf4   :  { %2165 = vmatprep.subr.mxu1 %v2058_v20  ;;  %2076 = vmatprep.subr.mxu0 %v2056_v21  ;;  %v2783_v20 = vsel %vm2780_vm12, %v2773_v62, %v2775_v61  ;;  %v2781_v21 = vsel %vm2780_vm12, %v2777_v14, %v2779_v13  ;;  %v13873_v61 = vld [vmem:[%s21258_s2 + $0x168] sm:$0xff]  ;;  %v13875_v13 = vld [vmem:[%s21258_s2 + $0x178] sm:$0xff] }
  0xf5   :  { %13817 = vmatmul.mubr.msk.f32.gmra.mrb[2].mxu0 %vm132_vm2, %v13813_v22  ;;  %13821 = vmatmul.mubr.msk.f32.gmra.mrb[2].mxu1 %vm132_vm2, %v13813_v22  ;;  %v2559_v22 = vmul.f32 %v2548_v12, %v2531_v16  ;;  %v2809_v26 = vmul.f32 %v2795_v19, %v2783_v20 }
  0xf6   :  { %1650 = vmatprep.mubr.f32.mxu0 %v21263_v0  ;;  %1739 = vmatprep.mubr.f32.mxu1 %v21263_v0  ;;  %v3266_v2 = vpop.permute.xlu0 %3265 }
  0xf9   :  { %13818 = vmatmul.mubr.msk.f32.gmra.mrb[4].mxu0 %vm132_vm2, %v13814_v25  ;;  %13822 = vmatmul.mubr.msk.f32.gmra.mrb[4].mxu1 %vm132_vm2, %v13814_v25  ;;  %v2811_v25 = vmul.f32 %v2803_v18, %v2781_v21 }
  0xfa   :  { %1656 = vmatprep.mubr.f32.mxu0 %v21263_v0  ;;  %1745 = vmatprep.mubr.f32.mxu1 %v21263_v0  ;;  %v3513_v62 = vpop.permute.xlu0 %3512 }
  0xfd   :  { %13819 = vmatmul.mubr.msk.f32.gmra.mrb[6].mxu0 %vm132_vm2, %v13815_v27  ;;  %13823 = vmatmul.mubr.msk.f32.gmra.mrb[6].mxu1 %vm132_vm2, %v13815_v27  ;;  %v13849_v27 = vld [vmem:[%s21258_s2 + $0x128] sm:$0xff] }
  0xfe   :  { %1889 = vmatprep.mubr.f32.mxu0 %v21263_v0  ;;  %1978 = vmatprep.mubr.f32.mxu1 %v21263_v0  ;;  %v3517_v14 = vpop.permute.xlu0 %3516 }
 0x101   :  { %13828 = vmatmul.mubr.msk.f32.vlgmr.msra.gmra.mrb[0].mxu0 %vm132_vm2, %v13824_v39  ;;  %13832 = vmatmul.mubr.msk.f32.vlgmr.msra.gmra.mrb[0].mxu1 %vm132_vm2, %v13824_v39  ;;  %v2808_v39 = vmul.f32 %v2791_v32, %v2784_v34  ;;  %v16527_v32 = vld [vmem:[#allocation2 + $0x27] ss:$8 sm:$0xf] }
 0x102   :  { %2166 = vmatpush1.msra.mxu1 %v2057_v38  ;;  %1895 = vmatprep.mubr.f32.mxu0 %v21263_v0  ;;  %v13860_v38 = vld [vmem:[%s21258_s2 + $0x140] sm:$0xff]  ;;  %v3764_v29 = vpop.permute.xlu0 %3763  ;;  %v13887_v34 = vld [vmem:[%s21258_s2 + $0x198] sm:$0xff] }
 0x103   :  { %1984 = vmatprep.mubr.f32.mxu1 %v21263_v0  ;;  %2077 = vmatpush1.msra.mxu0 %v2055_v40  ;;  %v15580_v40 = vld [vmem:[%s21256_s0 + $0x8] sm:$0xff] }
 0x104   :  { %2416 = vmatprep.subr.mxu1 %v2309_v41  ;;  %2327 = vmatprep.subr.mxu0 %v2307_v42  ;;  %v3047_v41 = vmul.f32 %v15580_v40, %v3033_v35  ;;  %v15581_v42 = vld [vmem:[%s21256_s0 + $0x18] sm:$0xff]  ;;  %v3786_v40 = vrot.slane %v16527_v32, %v15818_v10 }
 0x105   :  { %13829 = vmatmul.mubr.msk.f32.gmra.mrb[2].mxu0 %vm132_vm2, %v13825_v43  ;;  %13833 = vmatmul.mubr.msk.f32.gmra.mrb[2].mxu1 %vm132_vm2, %v13825_v43  ;;  %v3049_v43 = vmul.f32 %v15581_v42, %v3041_v36 }
 0x106   :  { %1901 = vmatprep.mubr.f32.mxu0 %v21263_v0  ;;  %1990 = vmatprep.mubr.f32.mxu1 %v21263_v0  ;;  %v3768_v35 = vpop.permute.xlu0 %3767 }
 0x109   :  { %13830 = vmatmul.mubr.msk.f32.gmra.mrb[4].mxu0 %vm132_vm2, %v13826_v46  ;;  %13834 = vmatmul.mubr.msk.f32.gmra.mrb[4].mxu1 %vm132_vm2, %v13826_v46  ;;  %v3264_v46 = vpop.permute.xlu1 %3263 }
 0x10a   :  { %1907 = vmatprep.mubr.f32.mxu0 %v21263_v0  ;;  %1996 = vmatprep.mubr.f32.mxu1 %v21263_v0  ;;  %v3271_v54 = vsel %vm3269_vm13, %v3264_v46, %v3266_v2  ;;  %v3272_v16 = vsel %vm3269_vm13, %v3262_v45, %v3264_v46 }
 0x10d   :  { %13831 = vmatmul.mubr.msk.f32.gmra.mrb[6].mxu0 %vm132_vm2, %v13827_v48  ;;  %13835 = vmatmul.mubr.msk.f32.gmra.mrb[6].mxu1 %vm132_vm2, %v13827_v48  ;;  %v16433_v48 = vld [vmem:[#allocation2 + $0x25] ss:$8 sm:$0xf]  ;;  %v3268_v4 = vpop.permute.xlu1 %3267 }
 0x10e   :  { %2140 = vmatprep.mubr.f32.mxu0 %v21263_v0  ;;  %2229 = vmatprep.mubr.f32.mxu1 %v21263_v0  ;;  %v3284_v52 = vrot.slane %v16433_v48, %v15818_v10  ;;  %v3292_v53 = vrot.slane %v16433_v48, %v15814_v8  ;;  %v3273_v1 = vsel %vm3269_vm13, %v3268_v4, %v3262_v45  ;;  %v13896_v45 = vld [vmem:[%s21258_s2 + $0x1a0] sm:$0xff] }
 0x10f   :  { %v3280_v12 = vrot.slane %v16433_v48, %v15816_v9  ;;  %v3288_v17 = vrot.slane %v16433_v48, %v15820_v11  ;;  %v3270_v18 = vsel %vm3269_vm13, %v3266_v2, %v3268_v4  ;;  %v4015_v2 = vpop.permute.xlu0 %4014 }
 0x111   :  { %13840 = vmatmul.mubr.msk.f32.vlgmr.msra.gmra.mrb[0].mxu0 %vm132_vm2, %v13836_v56  ;;  %13844 = vmatmul.mubr.msk.f32.vlgmr.msra.gmra.mrb[0].mxu1 %vm132_vm2, %v13836_v56 }
 0x112   :  { %2417 = vmatpush1.msra.mxu1 %v2308_v55  ;;  %2146 = vmatprep.mubr.f32.mxu0 %v21263_v0  ;;  %v15582_v55 = vld [vmem:[%s21256_s0] sm:$0xff] }
 0x113   :  { %2235 = vmatprep.mubr.f32.mxu1 %v21263_v0  ;;  %2328 = vmatpush1.msra.mxu0 %v2306_v57  ;;  %v3046_v56 = vmul.f32 %v15582_v55, %v3029_v50  ;;  %v15583_v57 = vld [vmem:[%s21256_s0 + $0x10] sm:$0xff]  ;;  %v3790_v55 = vrot.slane %v16527_v32, %v15820_v11 }
 0x114   :  { %2667 = vmatprep.subr.mxu1 %v2560_v58  ;;  %2578 = vmatprep.subr.mxu0 %v2558_v59  ;;  %v3048_v58 = vmul.f32 %v15583_v57, %v3037_v51  ;;  %v3298_v59 = vmul.f32 %v3284_v52, %v3271_v54  ;;  %v13898_v50 = vld [vmem:[%s21258_s2 + $0x1b0] sm:$0xff]  ;;  %v3782_v52 = vrot.slane %v16527_v32, %v15816_v9  ;;  %v4019_v54 = vpop.permute.xlu0 %4018 }
 0x115   :  { %13841 = vmatmul.mubr.msk.f32.gmra.mrb[2].mxu0 %vm132_vm2, %v13837_v60  ;;  %13845 = vmatmul.mubr.msk.f32.gmra.mrb[2].mxu1 %vm132_vm2, %v13837_v60  ;;  %v3300_v60 = vmul.f32 %v3292_v53, %v3273_v1  ;;  %v16574_v51 = vld [vmem:[#allocation2 + $0x40] ss:$8 sm:$0xf] }
 0x116   :  { %2152 = vmatprep.mubr.f32.mxu0 %v21263_v0  ;;  %2241 = vmatprep.mubr.f32.mxu1 %v21263_v0  ;;  %v13899_v53 = vld [vmem:[%s21258_s2 + $0x1b8] sm:$0xff]  ;;  %v4037_v57 = vrot.slane %v16574_v51, %v15818_v10 }
 0x119   :  { %13842 = vmatmul.mubr.msk.f32.gmra.mrb[4].mxu0 %vm132_vm2, %v13838_v63  ;;  %13846 = vmatmul.mubr.msk.f32.gmra.mrb[4].mxu1 %vm132_vm2, %v13838_v63  ;;  %v3515_v63 = vpop.permute.xlu1 %3514 }
 0x11a   :  { %2158 = vmatprep.mubr.f32.mxu0 %v21263_v0  ;;  %2247 = vmatprep.mubr.f32.mxu1 %v21263_v0  ;;  %v3522_v21 = vsel %vm3520_vm14, %v3515_v63, %v3517_v14 }
 0x11d   :  { %13843 = vmatmul.mubr.msk.f32.gmra.mrb[6].mxu0 %vm132_vm2, %v13839_v6  ;;  %13847 = vmatmul.mubr.msk.f32.gmra.mrb[6].mxu1 %vm132_vm2, %v13839_v6  ;;  %v16480_v6 = vld [vmem:[#allocation2 + $0x26] ss:$8 sm:$0xf]  ;;  %v3519_v15 = vpop.permute.xlu1 %3518 }
 0x11e   :  { %2391 = vmatprep.mubr.f32.mxu0 %v21263_v0  ;;  %2480 = vmatprep.mubr.f32.mxu1 %v21263_v0  ;;  %v3535_v19 = vrot.slane %v16480_v6, %v15818_v10  ;;  %v3543_v20 = vrot.slane %v16480_v6, %v15814_v8  ;;  %v3531_v33 = vrot.slane %v16480_v6, %v15816_v9 }
 0x121   :  { %13852 = vmatmul.mubr.msk.f32.vlgmr.msra.gmra.mrb[0].mxu0 %vm132_vm2, %v13848_v23  ;;  %13856 = vmatmul.mubr.msk.f32.vlgmr.msra.gmra.mrb[0].mxu1 %vm132_vm2, %v13848_v23  ;;  %v3297_v23 = vmul.f32 %v3280_v12, %v3272_v16  ;;  %v13909_v12 = vld [vmem:[%s21258_s2 + $0x1c8] sm:$0xff] }
 0x122   :  { %2668 = vmatpush1.msra.mxu1 %v2559_v22  ;;  %2397 = vmatprep.mubr.f32.mxu0 %v21263_v0  ;;  %v3524_v22 = vsel %vm3520_vm14, %v3519_v15, %v3513_v62  ;;  %v16621_v16 = vld [vmem:[#allocation2 + $0x41] ss:$8 sm:$0xf] }
 0x123   :  { %2486 = vmatprep.mubr.f32.mxu1 %v21263_v0  ;;  %2579 = vmatpush1.msra.mxu0 %v2557_v24  ;;  %v13884_v24 = vld [vmem:[%s21258_s2 + $0x180] sm:$0xff] }
 0x124   :  { %2918 = vmatprep.subr.mxu1 %v2811_v25  ;;  %2829 = vmatprep.subr.mxu0 %v2809_v26  ;;  %v3299_v25 = vmul.f32 %v3288_v17, %v3270_v18  ;;  %v3549_v26 = vmul.f32 %v3535_v19, %v3522_v21  ;;  %v4033_v17 = vrot.slane %v16574_v51, %v15816_v9  ;;  %v13911_v18 = vld [vmem:[%s21258_s2 + $0x1d8] sm:$0xff] }
 0x125   :  { %13853 = vmatmul.mubr.msk.f32.gmra.mrb[2].mxu0 %vm132_vm2, %v13849_v27  ;;  %13857 = vmatmul.mubr.msk.f32.gmra.mrb[2].mxu1 %vm132_vm2, %v13849_v27  ;;  %v3551_v27 = vmul.f32 %v3543_v20, %v3524_v22  ;;  %v4041_v22 = vrot.slane %v16574_v51, %v15820_v11 }
 0x126   :  { %2403 = vmatprep.mubr.f32.mxu0 %v21263_v0  ;;  %2492 = vmatprep.mubr.f32.mxu1 %v21263_v0 }
 0x129   :  { %13854 = vmatmul.mubr.msk.f32.gmra.mrb[4].mxu0 %vm132_vm2, %v13850_v28  ;;  %13858 = vmatmul.mubr.msk.f32.gmra.mrb[4].mxu1 %vm132_vm2, %v13850_v28  ;;  %v13885_v28 = vld [vmem:[%s21258_s2 + $0x188] sm:$0xff] }
 0x12a   :  { %2409 = vmatprep.mubr.f32.mxu0 %v21263_v0  ;;  %2498 = vmatprep.mubr.f32.mxu1 %v21263_v0 }
 0x12d   :  { %13855 = vmatmul.mubr.msk.f32.gmra.mrb[6].mxu0 %vm132_vm2, %v13851_v30  ;;  %13859 = vmatmul.mubr.msk.f32.gmra.mrb[6].mxu1 %vm132_vm2, %v13851_v30  ;;  %v3766_v30 = vpop.permute.xlu1 %3765 }
 0x12e   :  { %2642 = vmatprep.mubr.f32.mxu0 %v21263_v0  ;;  %2731 = vmatprep.mubr.f32.mxu1 %v21263_v0  ;;  %v3773_v42 = vsel %vm3771_vm15, %v3766_v30, %v3768_v35 }
 0x131   :  { %13864 = vmatmul.mubr.msk.f32.vlgmr.msra.gmra.mrb[0].mxu0 %vm132_vm2, %v13860_v38  ;;  %13868 = vmatmul.mubr.msk.f32.vlgmr.msra.gmra.mrb[0].mxu1 %vm132_vm2, %v13860_v38  ;;  %v3770_v36 = vpop.permute.xlu1 %3769  ;;  %v3539_v38 = vrot.slane %v16480_v6, %v15820_v11 }
 0x132   :  { %2919 = vmatpush1.msra.mxu1 %v2810_v37  ;;  %2648 = vmatprep.mubr.f32.mxu0 %v21263_v0  ;;  %v3523_v37 = vsel %vm3520_vm14, %v3513_v62, %v3515_v63  ;;  %v13908_v62 = vld [vmem:[%s21258_s2 + $0x1c0] sm:$0xff] }
 0x133   :  { %2737 = vmatprep.mubr.f32.mxu1 %v21263_v0  ;;  %2830 = vmatpush1.msra.mxu0 %v2808_v39  ;;  %v3521_v39 = vsel %vm3520_vm14, %v3517_v14, %v3519_v15  ;;  %v13910_v15 = vld [vmem:[%s21258_s2 + $0x1d0] sm:$0xff]  ;;  %vm6030_vm14 = vcmp.lt.s32.totalorder %v15812_v7, 94 }
 0x134   :  { %3067 = vmatprep.subr.mxu0 %v3047_v41  ;;  %3156 = vmatprep.subr.mxu1 %v3049_v43  ;;  %v3794_v41 = vrot.slane %v16527_v32, %v15814_v8  ;;  %v3775_v43 = vsel %vm3771_vm15, %v3770_v36, %v3764_v29  ;;  %v3550_v46 = vmul.f32 %v3539_v38, %v3521_v39  ;;  %v13923_v39 = vld [vmem:[%s21258_s2 + $0x1f8] sm:$0xff] }
 0x135   :  { %13865 = vmatmul.mubr.msk.f32.gmra.mrb[2].mxu0 %vm132_vm2, %v13861_v44  ;;  %13869 = vmatmul.mubr.msk.f32.gmra.mrb[2].mxu1 %vm132_vm2, %v13861_v44  ;;  %v3548_v44 = vmul.f32 %v3531_v33, %v3523_v37  ;;  %v4017_v4 = vpop.permute.xlu1 %4016  ;;  %v13921_v33 = vld [vmem:[%s21258_s2 + $0x1e8] sm:$0xff]  ;;  %v4284_v38 = vrot.slane %v16621_v16, %v15816_v9 }
 0x136   :  { %2654 = vmatprep.mubr.f32.mxu0 %v21263_v0  ;;  %2743 = vmatprep.mubr.f32.mxu1 %v21263_v0  ;;  %v3802_v48 = vmul.f32 %v3794_v41, %v3775_v43  ;;  %v4025_v21 = vsel %vm4022_vm0, %v4015_v2, %v4017_v4  ;;  %v16668_v37 = vld [vmem:[#allocation2 + $0x42] ss:$8 sm:$0xf]  ;;  %v4292_v43 = vrot.slane %v16621_v16, %v15820_v11 }
 0x139   :  { %13866 = vmatmul.mubr.msk.f32.gmra.mrb[4].mxu0 %vm132_vm2, %v13862_v47  ;;  %13870 = vmatmul.mubr.msk.f32.gmra.mrb[4].mxu1 %vm132_vm2, %v13862_v47  ;;  %v3800_v47 = vmul.f32 %v3786_v40, %v3773_v42  ;;  %v4021_v1 = vpop.permute.xlu1 %4020 }
 0x13a   :  { %2660 = vmatprep.mubr.f32.mxu0 %v21263_v0  ;;  %2749 = vmatprep.mubr.f32.mxu1 %v21263_v0 }
 0x13d   :  { %13867 = vmatmul.mubr.msk.f32.gmra.mrb[6].mxu0 %vm132_vm2, %v13863_v49  ;;  %13871 = vmatmul.mubr.msk.f32.gmra.mrb[6].mxu1 %vm132_vm2, %v13863_v49  ;;  %v13897_v49 = vld [vmem:[%s21258_s2 + $0x1a8] sm:$0xff]  ;;  %v4268_v14 = vpop.permute.xlu1 %4267 }
 0x13e   :  { %2893 = vmatprep.mubr.f32.mxu0 %v21263_v0  ;;  %2982 = vmatprep.mubr.f32.mxu1 %v21263_v0 }
 0x141   :  { %13876 = vmatmul.mubr.msk.f32.vlgmr.msra.gmra.mrb[0].mxu0 %vm132_vm2, %v13872_v3  ;;  %13880 = vmatmul.mubr.msk.f32.vlgmr.msra.gmra.mrb[0].mxu1 %vm132_vm2, %v13872_v3  ;;  %v3774_v3 = vsel %vm3771_vm15, %v3764_v29, %v3766_v30  ;;  %v4272_v20 = vpop.permute.xlu1 %4271  ;;  %v13920_v29 = vld [vmem:[%s21258_s2 + $0x1e0] sm:$0xff] }
 0x142   :  { %2899 = vmatprep.mubr.f32.mxu0 %v21263_v0  ;;  %2988 = vmatprep.mubr.f32.mxu1 %v21263_v0 }
 0x143   :  { %3068 = vmatpush1.msra.mxu0 %v3046_v56  ;;  %3157 = vmatpush1.msra.mxu1 %v3048_v58  ;;  %v3772_v56 = vsel %vm3771_vm15, %v3768_v35, %v3770_v36  ;;  %v4045_v58 = vrot.slane %v16574_v51, %v15814_v8  ;;  %v13922_v36 = vld [vmem:[%s21258_s2 + $0x1f0] sm:$0xff] }
 0x144   :  { %3318 = vmatprep.subr.mxu0 %v3298_v59  ;;  %3407 = vmatprep.subr.mxu1 %v3300_v60  ;;  %v4024_v59 = vsel %vm4022_vm0, %v4017_v4, %v4019_v54  ;;  %v4026_v60 = vsel %vm4022_vm0, %v4021_v1, %v4015_v2  ;;  %v3801_v63 = vmul.f32 %v3790_v55, %v3772_v56  ;;  %v13932_v2 = vld [vmem:[%s21258_s2 + $0x200] sm:$0xff]  ;;  %v13935_v56 = vld [vmem:[%s21258_s2 + $0x218] sm:$0xff] }
 0x145   :  { %13877 = vmatmul.mubr.msk.f32.gmra.mrb[2].mxu0 %vm132_vm2, %v13873_v61  ;;  %13881 = vmatmul.mubr.msk.f32.gmra.mrb[2].mxu1 %vm132_vm2, %v13873_v61  ;;  %v3799_v61 = vmul.f32 %v3782_v52, %v3774_v3  ;;  %v4053_v6 = vmul.f32 %v4045_v58, %v4026_v60  ;;  %v4519_v35 = vpop.permute.xlu1 %4518  ;;  %v13933_v52 = vld [vmem:[%s21258_s2 + $0x208] sm:$0xff]  ;;  %v4535_v55 = vrot.slane %v16668_v37, %v15816_v9 }
 0x146   :  { %2905 = vmatprep.mubr.f32.mxu0 %v21263_v0  ;;  %2994 = vmatprep.mubr.f32.mxu1 %v21263_v0  ;;  %v16715_v3 = vld [vmem:[#allocation2 + $0x43] ss:$8 sm:$0xf]  ;;  %v4543_v60 = vrot.slane %v16668_v37, %v15820_v11 }
 0x149   :  { %13878 = vmatmul.mubr.msk.f32.gmra.mrb[4].mxu0 %vm132_vm2, %v13874_v5  ;;  %13882 = vmatmul.mubr.msk.f32.gmra.mrb[4].mxu1 %vm132_vm2, %v13874_v5  ;;  %v4051_v5 = vmul.f32 %v4037_v57, %v4024_v59  ;;  %v4523_v41 = vpop.permute.xlu1 %4522 }
 0x14a   :  { %2911 = vmatprep.mubr.f32.mxu0 %v21263_v0  ;;  %3000 = vmatprep.mubr.f32.mxu1 %v21263_v0 }
 0x14d   :  { %13879 = vmatmul.mubr.msk.f32.gmra.mrb[6].mxu0 %vm132_vm2, %v13875_v13  ;;  %13883 = vmatmul.mubr.msk.f32.gmra.mrb[6].mxu1 %vm132_vm2, %v13875_v13  ;;  %v4266_v13 = vpop.permute.xlu0 %4265 }
 0x14e   :  { %3131 = vmatprep.mubr.f32.mxu0 %v21263_v0  ;;  %3220 = vmatprep.mubr.f32.mxu1 %v21263_v0  ;;  %v4276_v42 = vsel %vm4273_vm1, %v4266_v13, %v4268_v14 }
 0x151   :  { %13888 = vmatmul.mubr.msk.f32.vlgmr.msra.gmra.mrb[0].mxu0 %vm132_vm2, %v13884_v24  ;;  %13892 = vmatmul.mubr.msk.f32.vlgmr.msra.gmra.mrb[0].mxu1 %vm132_vm2, %v13884_v24  ;;  %v4270_v19 = vpop.permute.xlu0 %4269  ;;  %v4288_v24 = vrot.slane %v16621_v16, %v15818_v10 }
 0x152   :  { %3319 = vmatpush1.msra.mxu0 %v3297_v23  ;;  %3137 = vmatprep.mubr.f32.mxu0 %v21263_v0  ;;  %v4023_v23 = vsel %vm4022_vm0, %v4019_v54, %v4021_v1  ;;  %v4770_v54 = vpop.permute.xlu1 %4769  ;;  %v13934_v1 = vld [vmem:[%s21258_s2 + $0x210] sm:$0xff] }
 0x153   :  { %3226 = vmatprep.mubr.f32.mxu1 %v21263_v0  ;;  %3408 = vmatpush1.msra.mxu1 %v3299_v25  ;;  %v4296_v25 = vrot.slane %v16621_v16, %v15814_v8  ;;  %v4052_v30 = vmul.f32 %v4041_v22, %v4023_v23  ;;  %v4786_v22 = vrot.slane %v16715_v3, %v15816_v9  ;;  %v13947_v23 = vld [vmem:[%s21258_s2 + $0x238] sm:$0xff] }
 0x154   :  { %3569 = vmatprep.subr.mxu0 %v3549_v26  ;;  %3658 = vmatprep.subr.mxu1 %v3551_v27  ;;  %v4275_v26 = vsel %vm4273_vm1, %v4268_v14, %v4270_v19  ;;  %v4277_v27 = vsel %vm4273_vm1, %v4272_v20, %v4266_v13  ;;  %v13944_v13 = vld [vmem:[%s21258_s2 + $0x220] sm:$0xff] }
 0x155   :  { %13889 = vmatmul.mubr.msk.f32.gmra.mrb[2].mxu0 %vm132_vm2, %v13885_v28  ;;  %13893 = vmatmul.mubr.msk.f32.gmra.mrb[2].mxu1 %vm132_vm2, %v13885_v28  ;;  %v4050_v28 = vmul.f32 %v4033_v17, %v4025_v21  ;;  %v4304_v32 = vmul.f32 %v4296_v25, %v4277_v27  ;;  %v13945_v17 = vld [vmem:[%s21258_s2 + $0x228] sm:$0xff]  ;;  %v4794_v27 = vrot.slane %v16715_v3, %v15820_v11 }
 0x156   :  { %3143 = vmatprep.mubr.f32.mxu0 %v21263_v0  ;;  %3232 = vmatprep.mubr.f32.mxu1 %v21263_v0  ;;  %v4774_v58 = vpop.permute.xlu1 %4773  ;;  %v16762_v21 = vld [vmem:[#allocation2 + $0x44] ss:$8 sm:$0xf] }
 0x159   :  { %13894 = vmatmul.mubr.msk.f32.gmra.mrb[4].mxu1 %vm132_vm2, %v13886_v31  ;;  %13890 = vmatmul.mubr.msk.f32.gmra.mrb[4].mxu0 %vm132_vm2, %v13886_v31  ;;  %v4302_v31 = vmul.f32 %v4288_v24, %v4275_v26 }
 0x15a   :  { %3149 = vmatprep.mubr.f32.mxu0 %v21263_v0  ;;  %3238 = vmatprep.mubr.f32.mxu1 %v21263_v0 }
 0x15d   :  { %13895 = vmatmul.mubr.msk.f32.gmra.mrb[6].mxu1 %vm132_vm2, %v13887_v34  ;;  %13891 = vmatmul.mubr.msk.f32.gmra.mrb[6].mxu0 %vm132_vm2, %v13887_v34  ;;  %v4517_v34 = vpop.permute.xlu0 %4516 }
 0x15e   :  { %3382 = vmatprep.mubr.f32.mxu0 %v21263_v0  ;;  %3471 = vmatprep.mubr.f32.mxu1 %v21263_v0  ;;  %v4527_v59 = vsel %vm4524_vm3, %v4517_v34, %v4519_v35 }
 0x161   :  { %13900 = vmatmul.mubr.msk.f32.vlgmr.msra.gmra.mrb[0].mxu0 %vm132_vm2, %v13896_v45  ;;  %13904 = vmatmul.mubr.msk.f32.vlgmr.msra.gmra.mrb[0].mxu1 %vm132_vm2, %v13896_v45  ;;  %v4521_v40 = vpop.permute.xlu0 %4520  ;;  %v4539_v45 = vrot.slane %v16668_v37, %v15818_v10 }
 0x162   :  { %3570 = vmatpush1.msra.mxu0 %v3548_v44  ;;  %3388 = vmatprep.mubr.f32.mxu0 %v21263_v0  ;;  %v4274_v44 = vsel %vm4273_vm1, %v4270_v19, %v4272_v20  ;;  %v5021_v19 = vpop.permute.xlu1 %5020  ;;  %v13946_v20 = vld [vmem:[%s21258_s2 + $0x230] sm:$0xff] }
 0x163   :  { %3477 = vmatprep.mubr.f32.mxu1 %v21263_v0  ;;  %3659 = vmatpush1.msra.mxu1 %v3550_v46  ;;  %v4547_v46 = vrot.slane %v16668_v37, %v15814_v8  ;;  %v4303_v4 = vmul.f32 %v4292_v43, %v4274_v44  ;;  %v5037_v43 = vrot.slane %v16762_v21, %v15816_v9  ;;  %v13959_v44 = vld [vmem:[%s21258_s2 + $0x258] sm:$0xff] }
 0x164   :  { %3820 = vmatprep.subr.mxu0 %v3800_v47  ;;  %3909 = vmatprep.subr.mxu1 %v3802_v48  ;;  %v4526_v47 = vsel %vm4524_vm3, %v4519_v35, %v4521_v40  ;;  %v4528_v48 = vsel %vm4524_vm3, %v4523_v41, %v4517_v34  ;;  %v13956_v34 = vld [vmem:[%s21258_s2 + $0x240] sm:$0xff] }
 0x165   :  { %13901 = vmatmul.mubr.msk.f32.gmra.mrb[2].mxu0 %vm132_vm2, %v13897_v49  ;;  %13905 = vmatmul.mubr.msk.f32.gmra.mrb[2].mxu1 %vm132_vm2, %v13897_v49  ;;  %v4301_v49 = vmul.f32 %v4284_v38, %v4276_v42  ;;  %v4555_v51 = vmul.f32 %v4547_v46, %v4528_v48  ;;  %v13957_v38 = vld [vmem:[%s21258_s2 + $0x248] sm:$0xff]  ;;  %v5045_v48 = vrot.slane %v16762_v21, %v15820_v11 }
 0x166   :  { %3394 = vmatprep.mubr.f32.mxu0 %v21263_v0  ;;  %3483 = vmatprep.mubr.f32.mxu1 %v21263_v0  ;;  %v5025_v25 = vpop.permute.xlu1 %5024  ;;  %v16809_v42 = vld [vmem:[#allocation2 + $0x45] ss:$8 sm:$0xf] }
 0x169   :  { %13906 = vmatmul.mubr.msk.f32.gmra.mrb[4].mxu1 %vm132_vm2, %v13898_v50  ;;  %13902 = vmatmul.mubr.msk.f32.gmra.mrb[4].mxu0 %vm132_vm2, %v13898_v50  ;;  %v4553_v50 = vmul.f32 %v4539_v45, %v4526_v47 }
 0x16a   :  { %3400 = vmatprep.mubr.f32.mxu0 %v21263_v0  ;;  %3489 = vmatprep.mubr.f32.mxu1 %v21263_v0 }
 0x16d   :  { %13907 = vmatmul.mubr.msk.f32.gmra.mrb[6].mxu1 %vm132_vm2, %v13899_v53  ;;  %13903 = vmatmul.mubr.msk.f32.gmra.mrb[6].mxu0 %vm132_vm2, %v13899_v53  ;;  %v4768_v53 = vpop.permute.xlu0 %4767 }
 0x16e   :  { %3633 = vmatprep.mubr.f32.mxu0 %v21263_v0  ;;  %3722 = vmatprep.mubr.f32.mxu1 %v21263_v0  ;;  %v4778_v26 = vsel %vm4775_vm4, %v4768_v53, %v4770_v54 }
 0x171   :  { %13912 = vmatmul.mubr.msk.f32.vlgmr.msra.gmra.mrb[0].mxu0 %vm132_vm2, %v13908_v62  ;;  %13916 = vmatmul.mubr.msk.f32.vlgmr.msra.gmra.mrb[0].mxu1 %vm132_vm2, %v13908_v62  ;;  %v4772_v57 = vpop.permute.xlu0 %4771  ;;  %v4790_v62 = vrot.slane %v16715_v3, %v15818_v10 }
 0x172   :  { %3821 = vmatpush1.msra.mxu0 %v3799_v61  ;;  %3639 = vmatprep.mubr.f32.mxu0 %v21263_v0  ;;  %v4525_v61 = vsel %vm4524_vm3, %v4521_v40, %v4523_v41  ;;  %v5272_v40 = vpop.permute.xlu1 %5271  ;;  %v13958_v41 = vld [vmem:[%s21258_s2 + $0x250] sm:$0xff] }
 0x173   :  { %3728 = vmatprep.mubr.f32.mxu1 %v21263_v0  ;;  %3910 = vmatpush1.msra.mxu1 %v3801_v63  ;;  %v4798_v63 = vrot.slane %v16715_v3, %v15814_v8  ;;  %v4554_v14 = vmul.f32 %v4543_v60, %v4525_v61  ;;  %v5288_v60 = vrot.slane %v16809_v42, %v15816_v9  ;;  %v13971_v61 = vld [vmem:[%s21258_s2 + $0x278] sm:$0xff] }
 0x174   :  { %4071 = vmatprep.subr.mxu0 %v4051_v5  ;;  %4160 = vmatprep.subr.mxu1 %v4053_v6  ;;  %v4777_v5 = vsel %vm4775_vm4, %v4770_v54, %v4772_v57  ;;  %v4779_v6 = vsel %vm4775_vm4, %v4774_v58, %v4768_v53  ;;  %v13968_v53 = vld [vmem:[%s21258_s2 + $0x260] sm:$0xff] }
 0x175   :  { %13913 = vmatmul.mubr.msk.f32.gmra.mrb[2].mxu0 %vm132_vm2, %v13909_v12  ;;  %13917 = vmatmul.mubr.msk.f32.gmra.mrb[2].mxu1 %vm132_vm2, %v13909_v12  ;;  %v4552_v12 = vmul.f32 %v4535_v55, %v4527_v59  ;;  %v4806_v16 = vmul.f32 %v4798_v63, %v4779_v6  ;;  %v13969_v55 = vld [vmem:[%s21258_s2 + $0x268] sm:$0xff]  ;;  %v5296_v6 = vrot.slane %v16809_v42, %v15820_v11 }
 0x176   :  { %3645 = vmatprep.mubr.f32.mxu0 %v21263_v0  ;;  %3734 = vmatprep.mubr.f32.mxu1 %v21263_v0  ;;  %v5276_v46 = vpop.permute.xlu1 %5275  ;;  %v16856_v59 = vld [vmem:[#allocation2 + $0x46] ss:$8 sm:$0xf] }
 0x179   :  { %13918 = vmatmul.mubr.msk.f32.gmra.mrb[4].mxu1 %vm132_vm2, %v13910_v15  ;;  %13914 = vmatmul.mubr.msk.f32.gmra.mrb[4].mxu0 %vm132_vm2, %v13910_v15  ;;  %v4804_v15 = vmul.f32 %v4790_v62, %v4777_v5 }
 0x17a   :  { %3651 = vmatprep.mubr.f32.mxu0 %v21263_v0  ;;  %3740 = vmatprep.mubr.f32.mxu1 %v21263_v0 }
 0x17d   :  { %13919 = vmatmul.mubr.msk.f32.gmra.mrb[6].mxu1 %vm132_vm2, %v13911_v18  ;;  %13915 = vmatmul.mubr.msk.f32.gmra.mrb[6].mxu0 %vm132_vm2, %v13911_v18  ;;  %v5019_v18 = vpop.permute.xlu0 %5018 }
 0x17e   :  { %3884 = vmatprep.mubr.f32.mxu0 %v21263_v0  ;;  %3973 = vmatprep.mubr.f32.mxu1 %v21263_v0  ;;  %v5029_v47 = vsel %vm5026_vm5, %v5019_v18, %v5021_v19 }
 0x181   :  { %13924 = vmatmul.mubr.msk.f32.vlgmr.msra.gmra.mrb[0].mxu0 %vm132_vm2, %v13920_v29  ;;  %13928 = vmatmul.mubr.msk.f32.vlgmr.msra.gmra.mrb[0].mxu1 %vm132_vm2, %v13920_v29  ;;  %v5023_v24 = vpop.permute.xlu0 %5022  ;;  %v5041_v29 = vrot.slane %v16762_v21, %v15818_v10 }
 0x182   :  { %4072 = vmatpush1.msra.mxu0 %v4050_v28  ;;  %3890 = vmatprep.mubr.f32.mxu0 %v21263_v0  ;;  %v4776_v28 = vsel %vm4775_vm4, %v4772_v57, %v4774_v58  ;;  %v5523_v57 = vpop.permute.xlu1 %5522  ;;  %v13970_v58 = vld [vmem:[%s21258_s2 + $0x270] sm:$0xff] }
 0x183   :  { %3979 = vmatprep.mubr.f32.mxu1 %v21263_v0  ;;  %4161 = vmatpush1.msra.mxu1 %v4052_v30  ;;  %v5049_v30 = vrot.slane %v16762_v21, %v15814_v8  ;;  %v4805_v35 = vmul.f32 %v4794_v27, %v4776_v28  ;;  %v5539_v27 = vrot.slane %v16856_v59, %v15816_v9  ;;  %v13983_v28 = vld [vmem:[%s21258_s2 + $0x298] sm:$0xff] }
 0x184   :  { %4322 = vmatprep.subr.mxu0 %v4302_v31  ;;  %4411 = vmatprep.subr.mxu1 %v4304_v32  ;;  %v5028_v31 = vsel %vm5026_vm5, %v5021_v19, %v5023_v24  ;;  %v5030_v32 = vsel %vm5026_vm5, %v5025_v25, %v5019_v18  ;;  %v13980_v18 = vld [vmem:[%s21258_s2 + $0x280] sm:$0xff] }
 0x185   :  { %13925 = vmatmul.mubr.msk.f32.gmra.mrb[2].mxu0 %vm132_vm2, %v13921_v33  ;;  %13929 = vmatmul.mubr.msk.f32.gmra.mrb[2].mxu1 %vm132_vm2, %v13921_v33  ;;  %v4803_v33 = vmul.f32 %v4786_v22, %v4778_v26  ;;  %v5057_v37 = vmul.f32 %v5049_v30, %v5030_v32  ;;  %v13981_v22 = vld [vmem:[%s21258_s2 + $0x288] sm:$0xff]  ;;  %v5547_v32 = vrot.slane %v16856_v59, %v15820_v11 }
 0x186   :  { %3896 = vmatprep.mubr.f32.mxu0 %v21263_v0  ;;  %3985 = vmatprep.mubr.f32.mxu1 %v21263_v0  ;;  %v5527_v63 = vpop.permute.xlu1 %5526  ;;  %v16903_v26 = vld [vmem:[#allocation2 + $0x47] ss:$8 sm:$0xf] }
 0x189   :  { %13930 = vmatmul.mubr.msk.f32.gmra.mrb[4].mxu1 %vm132_vm2, %v13922_v36  ;;  %13926 = vmatmul.mubr.msk.f32.gmra.mrb[4].mxu0 %vm132_vm2, %v13922_v36  ;;  %v5055_v36 = vmul.f32 %v5041_v29, %v5028_v31 }
 0x18a   :  { %3902 = vmatprep.mubr.f32.mxu0 %v21263_v0  ;;  %3991 = vmatprep.mubr.f32.mxu1 %v21263_v0 }
 0x18d   :  { %13931 = vmatmul.mubr.msk.f32.gmra.mrb[6].mxu1 %vm132_vm2, %v13923_v39  ;;  %13927 = vmatmul.mubr.msk.f32.gmra.mrb[6].mxu0 %vm132_vm2, %v13923_v39  ;;  %v5270_v39 = vpop.permute.xlu0 %5269 }
 0x18e   :  { %4135 = vmatprep.mubr.f32.mxu0 %v21263_v0  ;;  %4224 = vmatprep.mubr.f32.mxu1 %v21263_v0  ;;  %v5280_v5 = vsel %vm5277_vm6, %v5270_v39, %v5272_v40 }
 0x191   :  { %13936 = vmatmul.mubr.msk.f32.vlgmr.msra.gmra.mrb[0].mxu0 %vm132_vm2, %v13932_v2  ;;  %13940 = vmatmul.mubr.msk.f32.vlgmr.msra.gmra.mrb[0].mxu1 %vm132_vm2, %v13932_v2  ;;  %v5274_v45 = vpop.permute.xlu0 %5273  ;;  %v5292_v2 = vrot.slane %v16809_v42, %v15818_v10 }
 0x192   :  { %4323 = vmatpush1.msra.mxu0 %v4301_v49  ;;  %4141 = vmatprep.mubr.f32.mxu0 %v21263_v0  ;;  %v5027_v49 = vsel %vm5026_vm5, %v5023_v24, %v5025_v25  ;;  %v5774_v24 = vpop.permute.xlu1 %5773  ;;  %v13982_v25 = vld [vmem:[%s21258_s2 + $0x290] sm:$0xff] }
 0x193   :  { %4230 = vmatprep.mubr.f32.mxu1 %v21263_v0  ;;  %4412 = vmatpush1.msra.mxu1 %v4303_v4  ;;  %v5300_v4 = vrot.slane %v16809_v42, %v15814_v8  ;;  %v5056_v54 = vmul.f32 %v5045_v48, %v5027_v49  ;;  %v5790_v48 = vrot.slane %v16903_v26, %v15816_v9  ;;  %v13995_v49 = vld [vmem:[%s21258_s2 + $0x2b8] sm:$0xff] }
 0x194   :  { %4573 = vmatprep.subr.mxu0 %v4553_v50  ;;  %4662 = vmatprep.subr.mxu1 %v4555_v51  ;;  %v5279_v50 = vsel %vm5277_vm6, %v5272_v40, %v5274_v45  ;;  %v5281_v51 = vsel %vm5277_vm6, %v5276_v46, %v5270_v39  ;;  %v13992_v39 = vld [vmem:[%s21258_s2 + $0x2a0] sm:$0xff] }
 0x195   :  { %13937 = vmatmul.mubr.msk.f32.gmra.mrb[2].mxu0 %vm132_vm2, %v13933_v52  ;;  %13941 = vmatmul.mubr.msk.f32.gmra.mrb[2].mxu1 %vm132_vm2, %v13933_v52  ;;  %v5054_v52 = vmul.f32 %v5037_v43, %v5029_v47  ;;  %v5308_v3 = vmul.f32 %v5300_v4, %v5281_v51  ;;  %v13993_v43 = vld [vmem:[%s21258_s2 + $0x2a8] sm:$0xff]  ;;  %v5798_v51 = vrot.slane %v16903_v26, %v15820_v11 }
 0x196   :  { %4147 = vmatprep.mubr.f32.mxu0 %v21263_v0  ;;  %4236 = vmatprep.mubr.f32.mxu1 %v21263_v0  ;;  %v5778_v30 = vpop.permute.xlu1 %5777  ;;  %v6036_v47 = vld [vmem:[#allocation2 + $0x60] ss:$8 sm:$0xf] }
 0x199   :  { %13942 = vmatmul.mubr.msk.f32.gmra.mrb[4].mxu1 %vm132_vm2, %v13934_v1  ;;  %13938 = vmatmul.mubr.msk.f32.gmra.mrb[4].mxu0 %vm132_vm2, %v13934_v1  ;;  %v5306_v1 = vmul.f32 %v5292_v2, %v5279_v50 }
 0x19a   :  { %4153 = vmatprep.mubr.f32.mxu0 %v21263_v0  ;;  %4242 = vmatprep.mubr.f32.mxu1 %v21263_v0 }
 0x19d   :  { %13943 = vmatmul.mubr.msk.f32.gmra.mrb[6].mxu1 %vm132_vm2, %v13935_v56  ;;  %13939 = vmatmul.mubr.msk.f32.gmra.mrb[6].mxu0 %vm132_vm2, %v13935_v56  ;;  %v5521_v56 = vpop.permute.xlu0 %5520 }
 0x19e   :  { %4386 = vmatprep.mubr.f32.mxu0 %v21263_v0  ;;  %4475 = vmatprep.mubr.f32.mxu1 %v21263_v0  ;;  %v5531_v31 = vsel %vm5528_vm10, %v5521_v56, %v5523_v57 }
 0x1a1   :  { %13948 = vmatmul.mubr.msk.f32.vlgmr.msra.gmra.mrb[0].mxu0 %vm132_vm2, %v13944_v13  ;;  %13952 = vmatmul.mubr.msk.f32.vlgmr.msra.gmra.mrb[0].mxu1 %vm132_vm2, %v13944_v13  ;;  %v5525_v62 = vpop.permute.xlu0 %5524  ;;  %v5543_v13 = vrot.slane %v16856_v59, %v15818_v10 }
 0x1a2   :  { %4574 = vmatpush1.msra.mxu0 %v4552_v12  ;;  %4392 = vmatprep.mubr.f32.mxu0 %v21263_v0  ;;  %v5278_v12 = vsel %vm5277_vm6, %v5274_v45, %v5276_v46  ;;  %v6025_v45 = vpop.permute.xlu1 %6024  ;;  %v13994_v46 = vld [vmem:[%s21258_s2 + $0x2b0] sm:$0xff] }
 0x1a3   :  { %4481 = vmatprep.mubr.f32.mxu1 %v21263_v0  ;;  %4663 = vmatpush1.msra.mxu1 %v4554_v14  ;;  %v5551_v14 = vrot.slane %v16856_v59, %v15814_v8  ;;  %v5307_v19 = vmul.f32 %v5296_v6, %v5278_v12  ;;  %v6049_v6 = vrot.slane %v6036_v47, %v15820_v11 }
 0x1a4   :  { %4824 = vmatprep.subr.mxu0 %v4804_v15  ;;  %4913 = vmatprep.subr.mxu1 %v4806_v16  ;;  %v5530_v15 = vsel %vm5528_vm10, %v5523_v57, %v5525_v62  ;;  %v5532_v16 = vsel %vm5528_vm10, %v5527_v63, %v5521_v56  ;;  %v14004_v56 = vld [vmem:[%s21258_s2 + $0x2c0] sm:$0xff] }
 0x1a5   :  { %13949 = vmatmul.mubr.msk.f32.gmra.mrb[2].mxu0 %vm132_vm2, %v13945_v17  ;;  %13953 = vmatmul.mubr.msk.f32.gmra.mrb[2].mxu1 %vm132_vm2, %v13945_v17  ;;  %v5305_v17 = vmul.f32 %v5288_v60, %v5280_v5  ;;  %v5559_v21 = vmul.f32 %v5551_v14, %v5532_v16  ;;  %v14005_v60 = vld [vmem:[%s21258_s2 + $0x2c8] sm:$0xff]  ;;  %v14016_v14 = vld [vmem:[%s21258_s2 + $0x2e0] sm:$0xff] }
 0x1a6   :  { %4398 = vmatprep.mubr.f32.mxu0 %v21263_v0  ;;  %4487 = vmatprep.mubr.f32.mxu1 %v21263_v0  ;;  %v6029_v4 = vpop.permute.xlu1 %6028  ;;  %v14017_v16 = vld [vmem:[%s21258_s2 + $0x2e8] sm:$0xff] }
 0x1a9   :  { %13954 = vmatmul.mubr.msk.f32.gmra.mrb[4].mxu1 %vm132_vm2, %v13946_v20  ;;  %13950 = vmatmul.mubr.msk.f32.gmra.mrb[4].mxu0 %vm132_vm2, %v13946_v20  ;;  %v5557_v20 = vmul.f32 %v5543_v13, %v5530_v15 }
 0x1aa   :  { %4404 = vmatprep.mubr.f32.mxu0 %v21263_v0  ;;  %4493 = vmatprep.mubr.f32.mxu1 %v21263_v0 }
 0x1ad   :  { %13955 = vmatmul.mubr.msk.f32.gmra.mrb[6].mxu1 %vm132_vm2, %v13947_v23  ;;  %13951 = vmatmul.mubr.msk.f32.gmra.mrb[6].mxu0 %vm132_vm2, %v13947_v23  ;;  %v5772_v23 = vpop.permute.xlu0 %5771 }
 0x1ae   :  { %4637 = vmatprep.mubr.f32.mxu0 %v21263_v0  ;;  %4726 = vmatprep.mubr.f32.mxu1 %v21263_v0  ;;  %v5782_v50 = vsel %vm5779_vm11, %v5772_v23, %v5774_v24 }
 0x1b1   :  { %13960 = vmatmul.mubr.msk.f32.vlgmr.msra.gmra.mrb[0].mxu0 %vm132_vm2, %v13956_v34  ;;  %13964 = vmatmul.mubr.msk.f32.vlgmr.msra.gmra.mrb[0].mxu1 %vm132_vm2, %v13956_v34  ;;  %v5776_v29 = vpop.permute.xlu0 %5775  ;;  %v5794_v34 = vrot.slane %v16903_v26, %v15818_v10 }
 0x1b2   :  { %4825 = vmatpush1.msra.mxu0 %v4803_v33  ;;  %4643 = vmatprep.mubr.f32.mxu0 %v21263_v0  ;;  %v5529_v33 = vsel %vm5528_vm10, %v5525_v62, %v5527_v63  ;;  %v6041_v62 = vrot.slane %v6036_v47, %v15816_v9  ;;  %v14007_v63 = vld [vmem:[%s21258_s2 + $0x2d8] sm:$0xff] }
 0x1b3   :  { %4732 = vmatprep.mubr.f32.mxu1 %v21263_v0  ;;  %4914 = vmatpush1.msra.mxu1 %v4805_v35  ;;  %v5802_v35 = vrot.slane %v16903_v26, %v15814_v8  ;;  %v5558_v40 = vmul.f32 %v5547_v32, %v5529_v33 }
 0x1b4   :  { %5075 = vmatprep.subr.mxu0 %v5055_v36  ;;  %5164 = vmatprep.subr.mxu1 %v5057_v37  ;;  %v5781_v36 = vsel %vm5779_vm11, %v5774_v24, %v5776_v29  ;;  %v5783_v37 = vsel %vm5779_vm11, %v5778_v30, %v5772_v23 }
 0x1b5   :  { %13961 = vmatmul.mubr.msk.f32.gmra.mrb[2].mxu0 %vm132_vm2, %v13957_v38  ;;  %13965 = vmatmul.mubr.msk.f32.gmra.mrb[2].mxu1 %vm132_vm2, %v13957_v38  ;;  %v5556_v38 = vmul.f32 %v5539_v27, %v5531_v31  ;;  %v5810_v42 = vmul.f32 %v5802_v35, %v5783_v37 }
 0x1b6   :  { %4649 = vmatprep.mubr.f32.mxu0 %v21263_v0  ;;  %4738 = vmatprep.mubr.f32.mxu1 %v21263_v0 }
 0x1b9   :  { %13966 = vmatmul.mubr.msk.f32.gmra.mrb[4].mxu1 %vm132_vm2, %v13958_v41  ;;  %13962 = vmatmul.mubr.msk.f32.gmra.mrb[4].mxu0 %vm132_vm2, %v13958_v41  ;;  %v5808_v41 = vmul.f32 %v5794_v34, %v5781_v36 }
 0x1ba   :  { %4655 = vmatprep.mubr.f32.mxu0 %v21263_v0  ;;  %4744 = vmatprep.mubr.f32.mxu1 %v21263_v0 }
 0x1bd   :  { %13967 = vmatmul.mubr.msk.f32.gmra.mrb[6].mxu1 %vm132_vm2, %v13959_v44  ;;  %13963 = vmatmul.mubr.msk.f32.gmra.mrb[6].mxu0 %vm132_vm2, %v13959_v44  ;;  %v6023_v44 = vpop.permute.xlu0 %6022 }
 0x1be   :  { %4888 = vmatprep.mubr.f32.mxu0 %v21263_v0  ;;  %4977 = vmatprep.mubr.f32.mxu1 %v21263_v0  ;;  %v6033_v5 = vsel %vm6030_vm14, %v6023_v44, %v6025_v45 }
 0x1bf   :  { %v6058_v13 = vmul.f32 %v6041_v62, %v6033_v5 }
 0x1c1   :  { %13972 = vmatmul.mubr.msk.f32.vlgmr.msra.gmra.mrb[0].mxu0 %vm132_vm2, %v13968_v53  ;;  %13976 = vmatmul.mubr.msk.f32.vlgmr.msra.gmra.mrb[0].mxu1 %vm132_vm2, %v13968_v53  ;;  %v6027_v2 = vpop.permute.xlu0 %6026  ;;  %v6045_v53 = vrot.slane %v6036_v47, %v15818_v10 }
 0x1c2   :  { %5076 = vmatpush1.msra.mxu0 %v5054_v52  ;;  %4894 = vmatprep.mubr.f32.mxu0 %v21263_v0  ;;  %v5780_v52 = vsel %vm5779_vm11, %v5776_v29, %v5778_v30  ;;  %v6031_v12 = vsel %vm6030_vm14, %v6027_v2, %v6029_v4 }
 0x1c3   :  { %4983 = vmatprep.mubr.f32.mxu1 %v21263_v0  ;;  %5165 = vmatpush1.msra.mxu1 %v5056_v54  ;;  %v6053_v54 = vrot.slane %v6036_v47, %v15814_v8  ;;  %v5809_v57 = vmul.f32 %v5798_v51, %v5780_v52  ;;  %v6060_v15 = vmul.f32 %v6049_v6, %v6031_v12 }
 0x1c4   :  { %5326 = vmatprep.subr.mxu0 %v5306_v1  ;;  %5415 = vmatprep.subr.mxu1 %v5308_v3  ;;  %v6032_v1 = vsel %vm6030_vm14, %v6025_v45, %v6027_v2  ;;  %v6034_v3 = vsel %vm6030_vm14, %v6029_v4, %v6023_v44 }
 0x1c5   :  { %13973 = vmatmul.mubr.msk.f32.gmra.mrb[2].mxu0 %vm132_vm2, %v13969_v55  ;;  %13977 = vmatmul.mubr.msk.f32.gmra.mrb[2].mxu1 %vm132_vm2, %v13969_v55  ;;  %v5807_v55 = vmul.f32 %v5790_v48, %v5782_v50  ;;  %v6061_v59 = vmul.f32 %v6053_v54, %v6034_v3 }
 0x1c6   :  { %4900 = vmatprep.mubr.f32.mxu0 %v21263_v0  ;;  %4989 = vmatprep.mubr.f32.mxu1 %v21263_v0 }
 0x1c9   :  { %13978 = vmatmul.mubr.msk.f32.gmra.mrb[4].mxu1 %vm132_vm2, %v13970_v58  ;;  %13974 = vmatmul.mubr.msk.f32.gmra.mrb[4].mxu0 %vm132_vm2, %v13970_v58  ;;  %v6059_v58 = vmul.f32 %v6045_v53, %v6032_v1 }
 0x1ca   :  { %4906 = vmatprep.mubr.f32.mxu0 %v21263_v0  ;;  %4995 = vmatprep.mubr.f32.mxu1 %v21263_v0 }
 0x1cd   :  { %13979 = vmatmul.mubr.msk.f32.gmra.mrb[6].mxu1 %vm132_vm2, %v13971_v61  ;;  %13975 = vmatmul.mubr.msk.f32.gmra.mrb[6].mxu0 %vm132_vm2, %v13971_v61  ;;  %v14006_v61 = vld [vmem:[%s21258_s2 + $0x2d0] sm:$0xff] }
 0x1ce   :  { %5139 = vmatprep.mubr.f32.mxu0 %v21263_v0  ;;  %5228 = vmatprep.mubr.f32.mxu1 %v21263_v0 }
 0x1d1   :  { %13984 = vmatmul.mubr.msk.f32.vlgmr.msra.gmra.mrb[0].mxu0 %vm132_vm2, %v13980_v18  ;;  %13988 = vmatmul.mubr.msk.f32.vlgmr.msra.gmra.mrb[0].mxu1 %vm132_vm2, %v13980_v18  ;;  %v14019_v18 = vld [vmem:[%s21258_s2 + $0x2f8] sm:$0xff] }
 0x1d2   :  { %5327 = vmatpush1.msra.mxu0 %v5305_v17  ;;  %5145 = vmatprep.mubr.f32.mxu0 %v21263_v0  ;;  %v14018_v17 = vld [vmem:[%s21258_s2 + $0x2f0] sm:$0xff] }
 0x1d3   :  { %5234 = vmatprep.mubr.f32.mxu1 %v21263_v0  ;;  %5416 = vmatpush1.msra.mxu1 %v5307_v19  ;;  %v14028_v19 = vld [vmem:[%s21258_s2 + $0x300] sm:$0xff] }
 0x1d4   :  { %5577 = vmatprep.subr.mxu0 %v5557_v20  ;;  %5666 = vmatprep.subr.mxu1 %v5559_v21  ;;  %v14029_v20 = vld [vmem:[%s21258_s2 + $0x308] sm:$0xff]  ;;  %v14030_v21 = vld [vmem:[%s21258_s2 + $0x310] sm:$0xff] }
 0x1d5   :  { %13985 = vmatmul.mubr.msk.f32.gmra.mrb[2].mxu0 %vm132_vm2, %v13981_v22  ;;  %13989 = vmatmul.mubr.msk.f32.gmra.mrb[2].mxu1 %vm132_vm2, %v13981_v22  ;;  %v14031_v22 = vld [vmem:[%s21258_s2 + $0x318] sm:$0xff] }
 0x1d6   :  { %5151 = vmatprep.mubr.f32.mxu0 %v21263_v0  ;;  %5240 = vmatprep.mubr.f32.mxu1 %v21263_v0 }
 0x1d9   :  { %13990 = vmatmul.mubr.msk.f32.gmra.mrb[4].mxu1 %vm132_vm2, %v13982_v25  ;;  %13986 = vmatmul.mubr.msk.f32.gmra.mrb[4].mxu0 %vm132_vm2, %v13982_v25 }
 0x1da   :  { %5157 = vmatprep.mubr.f32.mxu0 %v21263_v0  ;;  %5246 = vmatprep.mubr.f32.mxu1 %v21263_v0 }
 0x1dd   :  { %13991 = vmatmul.mubr.msk.f32.gmra.mrb[6].mxu1 %vm132_vm2, %v13983_v28  ;;  %13987 = vmatmul.mubr.msk.f32.gmra.mrb[6].mxu0 %vm132_vm2, %v13983_v28 }
 0x1de   :  { %5390 = vmatprep.mubr.f32.mxu0 %v21263_v0  ;;  %5479 = vmatprep.mubr.f32.mxu1 %v21263_v0 }
 0x1e1   :  { %13996 = vmatmul.mubr.msk.f32.vlgmr.msra.gmra.mrb[0].mxu0 %vm132_vm2, %v13992_v39  ;;  %14000 = vmatmul.mubr.msk.f32.vlgmr.msra.gmra.mrb[0].mxu1 %vm132_vm2, %v13992_v39 }
 0x1e2   :  { %5578 = vmatpush1.msra.mxu0 %v5556_v38  ;;  %5396 = vmatprep.mubr.f32.mxu0 %v21263_v0 }
 0x1e3   :  { %5485 = vmatprep.mubr.f32.mxu1 %v21263_v0  ;;  %5667 = vmatpush1.msra.mxu1 %v5558_v40 }
 0x1e4   :  { %5828 = vmatprep.subr.mxu0 %v5808_v41  ;;  %5917 = vmatprep.subr.mxu1 %v5810_v42 }
 0x1e5   :  { %13997 = vmatmul.mubr.msk.f32.gmra.mrb[2].mxu0 %vm132_vm2, %v13993_v43  ;;  %14001 = vmatmul.mubr.msk.f32.gmra.mrb[2].mxu1 %vm132_vm2, %v13993_v43 }
 0x1e6   :  { %5402 = vmatprep.mubr.f32.mxu0 %v21263_v0  ;;  %5491 = vmatprep.mubr.f32.mxu1 %v21263_v0 }
 0x1e9   :  { %14002 = vmatmul.mubr.msk.f32.gmra.mrb[4].mxu1 %vm132_vm2, %v13994_v46  ;;  %13998 = vmatmul.mubr.msk.f32.gmra.mrb[4].mxu0 %vm132_vm2, %v13994_v46 }
 0x1ea   :  { %5408 = vmatprep.mubr.f32.mxu0 %v21263_v0  ;;  %5497 = vmatprep.mubr.f32.mxu1 %v21263_v0 }
 0x1ed   :  { %14003 = vmatmul.mubr.msk.f32.gmra.mrb[6].mxu1 %vm132_vm2, %v13995_v49  ;;  %13999 = vmatmul.mubr.msk.f32.gmra.mrb[6].mxu0 %vm132_vm2, %v13995_v49 }
 0x1ee   :  { %5641 = vmatprep.mubr.f32.mxu0 %v21263_v0  ;;  %5730 = vmatprep.mubr.f32.mxu1 %v21263_v0 }
 0x1f1   :  { %14008 = vmatmul.mubr.msk.f32.vlgmr.msra.gmra.mrb[0].mxu0 %vm132_vm2, %v14004_v56  ;;  %14012 = vmatmul.mubr.msk.f32.vlgmr.msra.gmra.mrb[0].mxu1 %vm132_vm2, %v14004_v56 }
 0x1f2   :  { %5829 = vmatpush1.msra.mxu0 %v5807_v55  ;;  %5647 = vmatprep.mubr.f32.mxu0 %v21263_v0 }
 0x1f3   :  { %5736 = vmatprep.mubr.f32.mxu1 %v21263_v0  ;;  %5918 = vmatpush1.msra.mxu1 %v5809_v57 }
 0x1f4   :  { %6079 = vmatprep.subr.mxu0 %v6059_v58  ;;  %6168 = vmatprep.subr.mxu1 %v6061_v59 }
 0x1f5   :  { %14009 = vmatmul.mubr.msk.f32.gmra.mrb[2].mxu0 %vm132_vm2, %v14005_v60  ;;  %14013 = vmatmul.mubr.msk.f32.gmra.mrb[2].mxu1 %vm132_vm2, %v14005_v60 }
 0x1f6   :  { %5653 = vmatprep.mubr.f32.mxu0 %v21263_v0  ;;  %5742 = vmatprep.mubr.f32.mxu1 %v21263_v0 }
 0x1f9   :  { %14014 = vmatmul.mubr.msk.f32.gmra.mrb[4].mxu1 %vm132_vm2, %v14006_v61  ;;  %14010 = vmatmul.mubr.msk.f32.gmra.mrb[4].mxu0 %vm132_vm2, %v14006_v61 }
 0x1fa   :  { %5659 = vmatprep.mubr.f32.mxu0 %v21263_v0  ;;  %5748 = vmatprep.mubr.f32.mxu1 %v21263_v0 }
 0x1fd   :  { %14015 = vmatmul.mubr.msk.f32.gmra.mrb[6].mxu1 %vm132_vm2, %v14007_v63  ;;  %14011 = vmatmul.mubr.msk.f32.gmra.mrb[6].mxu0 %vm132_vm2, %v14007_v63 }
 0x1fe   :  { %5892 = vmatprep.mubr.f32.mxu0 %v21263_v0  ;;  %5981 = vmatprep.mubr.f32.mxu1 %v21263_v0 }
 0x201   :  { %14020 = vmatmul.mubr.msk.f32.vlgmr.msra.gmra.mrb[0].mxu0 %vm132_vm2, %v14016_v14  ;;  %14024 = vmatmul.mubr.msk.f32.vlgmr.msra.gmra.mrb[0].mxu1 %vm132_vm2, %v14016_v14 }
 0x202   :  { %6080 = vmatpush1.msra.mxu0 %v6058_v13  ;;  %5898 = vmatprep.mubr.f32.mxu0 %v21263_v0 }
 0x203   :  { %5987 = vmatprep.mubr.f32.mxu1 %v21263_v0  ;;  %6169 = vmatpush1.msra.mxu1 %v6060_v15 }
 0x205   :  { %14021 = vmatmul.mubr.msk.f32.gmra.mrb[2].mxu0 %vm132_vm2, %v14017_v16  ;;  %14025 = vmatmul.mubr.msk.f32.gmra.mrb[2].mxu1 %vm132_vm2, %v14017_v16  ;;  %v6429_v16 = vld [vmem:[#allocation2 + $0x62] ss:$8 sm:$0xf] }
 0x206   :  { %5904 = vmatprep.mubr.f32.mxu0 %v21263_v0  ;;  %5993 = vmatprep.mubr.f32.mxu1 %v21263_v0 }
 0x209   :  { %14022 = vmatmul.mubr.msk.f32.gmra.mrb[4].mxu0 %vm132_vm2, %v14018_v17  ;;  %14026 = vmatmul.mubr.msk.f32.gmra.mrb[4].mxu1 %vm132_vm2, %v14018_v17 }
 0x20a   :  { %5910 = vmatprep.mubr.f32.mxu0 %v21263_v0  ;;  %5999 = vmatprep.mubr.f32.mxu1 %v21263_v0 }
 0x20d   :  { %14023 = vmatmul.mubr.msk.f32.gmra.mrb[6].mxu0 %vm132_vm2, %v14019_v18  ;;  %14027 = vmatmul.mubr.msk.f32.gmra.mrb[6].mxu1 %vm132_vm2, %v14019_v18 }
 0x20e   :  { %6143 = vmatprep.mubr.f32.mxu0 %v21263_v0  ;;  %6232 = vmatprep.mubr.f32.mxu1 %v21263_v0 }
 0x211   :  { %14032 = vmatmul.mubr.msk.f32.vlgmr.msra.gmra.mrb[0].mxu0 %vm132_vm2, %v14028_v19  ;;  %14036 = vmatmul.mubr.msk.f32.vlgmr.msra.gmra.mrb[0].mxu1 %vm132_vm2, %v14028_v19  ;;  %v17299_v19 = vrot.slane %v6429_v16, %v15818_v10 }
 0x212   :  { %6149 = vmatprep.mubr.f32.mxu0 %v21263_v0  ;;  %6238 = vmatprep.mubr.f32.mxu1 %v21263_v0 }
 0x213   :  { %21467 = vst [vmem:[#allocation23_spill] sm:$0xff] %v17299_v19 }
 0x215   :  { %14033 = vmatmul.mubr.msk.f32.gmra.mrb[2].mxu0 %vm132_vm2, %v14029_v20  ;;  %14037 = vmatmul.mubr.msk.f32.gmra.mrb[2].mxu1 %vm132_vm2, %v14029_v20 }
 0x216   :  { %6155 = vmatprep.mubr.f32.mxu0 %v21263_v0  ;;  %6244 = vmatprep.mubr.f32.mxu1 %v21263_v0 }
 0x219   :  { %14034 = vmatmul.mubr.msk.f32.gmra.mrb[4].mxu0 %vm132_vm2, %v14030_v21  ;;  %14038 = vmatmul.mubr.msk.f32.gmra.mrb[4].mxu1 %vm132_vm2, %v14030_v21 }
 0x21a   :  { %6161 = vmatprep.mubr.f32.mxu0 %v21263_v0  ;;  %6250 = vmatprep.mubr.f32.mxu1 %v21263_v0 }
 0x21d   :  { %14035 = vmatmul.mubr.msk.f32.gmra.mrb[6].mxu0 %vm132_vm2, %v14031_v22  ;;  %14039 = vmatmul.mubr.msk.f32.gmra.mrb[6].mxu1 %vm132_vm2, %v14031_v22  ;;  %vm6472_vm2 = vcmask 261120  }
 0x21e   :  { %6549 = vmatprep.mubr.f32.mxu0 %v21263_v0  ;;  %6638 = vmatprep.mubr.f32.mxu1 %v21263_v0 }
 0x2e4   :  { %v6145_v23 = vpop.f32.mrb[0].mxu0  ;;  %v6234_v24 = vpop.f32.mrb[0].mxu1 }
 0x2e5   :  { %v17064_v25 = vmax.f32 %v6145_v23, 0.0  ;;  %v6147_v26 = vpop.f32.mrb[1].mxu0  ;;  %v6236_v27 = vpop.f32.mrb[1].mxu1  ;;  %v17068_v30 = vmax.f32 %v6234_v24, 0.0  ;;  %v17308_v23 = vrot.slane %v6429_v16, %v15816_v9 }
 0x2e6   :  { %v17118_v43 = vmax.f32 %v6147_v26, 0.0  ;;  %v17124_v44 = vmax.f32 %v6236_v27, 0.0  ;;  %v17315_v27 = vrot.slane %v6429_v16, %v15814_v8 }
 0x2e7   :  { %21452 = vst [vmem:[#allocation8_spill] sm:$0xff] %v17064_v25  ;;  %6380 = vrot.lane.b32.xlu0 %v17064_v25, %s15642_s24  ;;  %21453 = vst [vmem:[#allocation9_spill] sm:$0xff] %v17068_v30 }
 0x2e8   :  { %v6151_v28 = vpop.f32.mrb[2].mxu0  ;;  %v6240_v29 = vpop.f32.mrb[2].mxu1  ;;  %21456 = vst [vmem:[#allocation12_spill] sm:$0xff] %v17118_v43  ;;  %21457 = vst [vmem:[#allocation13_spill] sm:$0xff] %v17124_v44 }
 0x2e9   :  { %v17070_v31 = vmax.f32 %v6151_v28, 0.0  ;;  %v6153_v32 = vpop.f32.mrb[3].mxu0  ;;  %v6242_v33 = vpop.f32.mrb[3].mxu1  ;;  %v17076_v36 = vmax.f32 %v6240_v29, 0.0 }
 0x2ea   :  { %v17126_v45 = vmax.f32 %v6153_v32, 0.0  ;;  %v17132_v46 = vmax.f32 %v6242_v33, 0.0 }
 0x2eb   :  { %21454 = vst [vmem:[#allocation10_spill] sm:$0xff] %v17070_v31  ;;  %6396 = vrot.lane.b32.xlu0 %v17068_v30, %s15642_s24  ;;  %6382 = vrot.lane.b32.xlu1 %v17070_v31, %s15642_s24  ;;  %21455 = vst [vmem:[#allocation11_spill] sm:$0xff] %v17076_v36 }
 0x2ec   :  { %v6157_v34 = vpop.f32.mrb[4].mxu0  ;;  %v6246_v35 = vpop.f32.mrb[4].mxu1  ;;  %21458 = vst [vmem:[#allocation14_spill] sm:$0xff] %v17126_v45  ;;  %21459 = vst [vmem:[#allocation15_spill] sm:$0xff] %v17132_v46 }
 0x2ed   :  { %v17078_v37 = vpop.f32.mrb[5].mxu0  ;;  %v17080_v38 = vpop.f32.mrb[5].mxu1  ;;  %v17166_v47 = vmax.f32 %v6157_v34, 0.0  ;;  %v17172_v48 = vmax.f32 %v6246_v35, 0.0  ;;  %v17330_v34 = vrot.slane %v6429_v16, %v15820_v11 }
 0x2ee   :  { %v17215_v50 = vmax.f32 %v17078_v37, 0.0  ;;  %v17226_v53 = vmax.f32 %v17080_v38, 0.0 }
 0x2ef   :  { %6289 = vrot.lane.b32.xlu0 %v17064_v25, %s15641_s23  ;;  %6398 = vrot.lane.b32.xlu1 %v17076_v36, %s15642_s24 }
 0x2f0   :  { %v6163_v39 = vpop.f32.mrb[6].mxu0  ;;  %v6252_v40 = vpop.f32.mrb[6].mxu1 }
 0x2f1   :  { %v17086_v41 = vpop.f32.mrb[7].mxu0  ;;  %v17088_v42 = vpop.f32.mrb[7].mxu1  ;;  %v17174_v49 = vmax.f32 %v6163_v39, 0.0  ;;  %v17180_v2 = vmax.f32 %v6252_v40, 0.0 }
 0x2f2   :  { %v17229_v54 = vmax.f32 %v17086_v41, 0.0  ;;  %v17238_v55 = vmax.f32 %v17088_v42, 0.0 }
 0x2f3   :  { %6305 = vrot.lane.b32.xlu0 %v17068_v30, %s15641_s23  ;;  %6291 = vrot.lane.b32.xlu1 %v17070_v31, %s15641_s23 }
 0x2f7   :  { %6853 = vrot.lane.b32.xlu0 %v17064_v25, %s15643_s25  ;;  %6307 = vrot.lane.b32.xlu1 %v17076_v36, %s15641_s23 }
 0x2fb   :  { %6869 = vrot.lane.b32.xlu0 %v17068_v30, %s15643_s25  ;;  %6855 = vrot.lane.b32.xlu1 %v17070_v31, %s15643_s25 }
 0x2ff   :  { %7151 = vrot.lane.b32.xlu0 %v17064_v25, %s15646_s28  ;;  %6871 = vrot.lane.b32.xlu1 %v17076_v36, %s15643_s25 }
 0x303   :  { %7167 = vrot.lane.b32.xlu0 %v17068_v30, %s15646_s28  ;;  %7153 = vrot.lane.b32.xlu1 %v17070_v31, %s15646_s28 }
 0x307   :  { %7699 = vrot.lane.b32.xlu0 %v17064_v25, %s15647_s29  ;;  %7169 = vrot.lane.b32.xlu1 %v17076_v36, %s15646_s28 }
 0x30b   :  { %7715 = vrot.lane.b32.xlu0 %v17068_v30, %s15647_s29  ;;  %7701 = vrot.lane.b32.xlu1 %v17070_v31, %s15647_s29 }
 0x30f   :  { %6388 = vrot.lane.b32.xlu0 %v17118_v43, %s15642_s24  ;;  %7717 = vrot.lane.b32.xlu1 %v17076_v36, %s15647_s29 }
 0x313   :  { %6404 = vrot.lane.b32.xlu0 %v17124_v44, %s15642_s24  ;;  %6390 = vrot.lane.b32.xlu1 %v17126_v45, %s15642_s24 }
 0x317   :  { %6297 = vrot.lane.b32.xlu0 %v17118_v43, %s15641_s23  ;;  %6406 = vrot.lane.b32.xlu1 %v17132_v46, %s15642_s24 }
 0x31b   :  { %6313 = vrot.lane.b32.xlu0 %v17124_v44, %s15641_s23  ;;  %6299 = vrot.lane.b32.xlu1 %v17126_v45, %s15641_s23 }
 0x31f   :  { %6861 = vrot.lane.b32.xlu0 %v17118_v43, %s15643_s25  ;;  %6315 = vrot.lane.b32.xlu1 %v17132_v46, %s15641_s23 }
 0x323   :  { %6877 = vrot.lane.b32.xlu0 %v17124_v44, %s15643_s25  ;;  %6863 = vrot.lane.b32.xlu1 %v17126_v45, %s15643_s25 }
 0x327   :  { %7159 = vrot.lane.b32.xlu0 %v17118_v43, %s15646_s28  ;;  %6879 = vrot.lane.b32.xlu1 %v17132_v46, %s15643_s25 }
 0x32b   :  { %7175 = vrot.lane.b32.xlu0 %v17124_v44, %s15646_s28  ;;  %7161 = vrot.lane.b32.xlu1 %v17126_v45, %s15646_s28 }
 0x32f   :  { %7707 = vrot.lane.b32.xlu0 %v17118_v43, %s15647_s29  ;;  %7177 = vrot.lane.b32.xlu1 %v17132_v46, %s15646_s28 }
 0x333   :  { %7723 = vrot.lane.b32.xlu0 %v17124_v44, %s15647_s29  ;;  %7709 = vrot.lane.b32.xlu1 %v17126_v45, %s15647_s29 }
 0x337   :  { %7725 = vrot.lane.b32.xlu1 %v17132_v46, %s15647_s29  ;;  %6384 = vrot.lane.b32.xlu0 %v17166_v47, %s15642_s24 }
 0x33b   :  { %6400 = vrot.lane.b32.xlu0 %v17172_v48, %s15642_s24  ;;  %6386 = vrot.lane.b32.xlu1 %v17174_v49, %s15642_s24 }
 0x33f   :  { %6293 = vrot.lane.b32.xlu0 %v17166_v47, %s15641_s23  ;;  %6402 = vrot.lane.b32.xlu1 %v17180_v2, %s15642_s24 }
 0x343   :  { %6309 = vrot.lane.b32.xlu0 %v17172_v48, %s15641_s23  ;;  %6295 = vrot.lane.b32.xlu1 %v17174_v49, %s15641_s23 }
 0x347   :  { %6857 = vrot.lane.b32.xlu0 %v17166_v47, %s15643_s25  ;;  %6311 = vrot.lane.b32.xlu1 %v17180_v2, %s15641_s23 }
 0x34b   :  { %6873 = vrot.lane.b32.xlu0 %v17172_v48, %s15643_s25  ;;  %6859 = vrot.lane.b32.xlu1 %v17174_v49, %s15643_s25 }
 0x34f   :  { %7155 = vrot.lane.b32.xlu0 %v17166_v47, %s15646_s28  ;;  %6875 = vrot.lane.b32.xlu1 %v17180_v2, %s15643_s25 }
 0x353   :  { %7171 = vrot.lane.b32.xlu0 %v17172_v48, %s15646_s28  ;;  %7157 = vrot.lane.b32.xlu1 %v17174_v49, %s15646_s28 }
 0x357   :  { %7703 = vrot.lane.b32.xlu0 %v17166_v47, %s15647_s29  ;;  %7173 = vrot.lane.b32.xlu1 %v17180_v2, %s15646_s28 }
 0x359   :  { %v6381_v4 = vpop.permute.xlu0 %6380 }
 0x35b   :  { %7719 = vrot.lane.b32.xlu0 %v17172_v48, %s15647_s29  ;;  %7705 = vrot.lane.b32.xlu1 %v17174_v49, %s15647_s29 }
 0x35d   :  { %v17217_v51 = vpop.permute.xlu0 %6396  ;;  %v17219_v52 = vpop.permute.xlu1 %6382 }
 0x35f   :  { %6392 = vrot.lane.b32.xlu0 %v17215_v50, %s15642_s24  ;;  %7721 = vrot.lane.b32.xlu1 %v17180_v2, %s15647_s29 }
 0x361   :  { %v17231_v1 = vpop.permute.xlu0 %6289  ;;  %v6399_v3 = vpop.permute.xlu1 %6398 }
 0x363   :  { %6408 = vrot.lane.b32.xlu0 %v17226_v53, %s15642_s24  ;;  %6394 = vrot.lane.b32.xlu1 %v17229_v54, %s15642_s24 }
 0x365   :  { %v17240_v56 = vpop.permute.xlu0 %6305  ;;  %v17242_v57 = vpop.permute.xlu1 %6291 }
 0x367   :  { %7997 = vrot.lane.b32.xlu0 %v17064_v25, %s15650_s10  ;;  %6410 = vrot.lane.b32.xlu1 %v17238_v55, %s15642_s24 }
 0x369   :  { %v17248_v58 = vpop.permute.xlu0 %6853  ;;  %v17250_v59 = vpop.permute.xlu1 %6307 }
 0x36b   :  { %6301 = vrot.lane.b32.xlu0 %v17215_v50, %s15641_s23  ;;  %7999 = vrot.lane.b32.xlu1 %v17070_v31, %s15650_s10 }
 0x36d   :  { %v17256_v60 = vpop.permute.xlu0 %6869  ;;  %v17258_v61 = vpop.permute.xlu1 %6855 }
 0x36f   :  { %6317 = vrot.lane.b32.xlu0 %v17226_v53, %s15641_s23  ;;  %8007 = vrot.lane.b32.xlu1 %v17126_v45, %s15650_s10 }
 0x371   :  { %v17264_v62 = vpop.permute.xlu0 %7151  ;;  %v17266_v63 = vpop.permute.xlu1 %6871 }
 0x372   :  { %21460 = vst [vmem:[#allocation16_spill] sm:$0xff] %v17264_v62 }
 0x373   :  { %6865 = vrot.lane.b32.xlu0 %v17215_v50, %s15643_s25  ;;  %6303 = vrot.lane.b32.xlu1 %v17229_v54, %s15641_s23 }
 0x375   :  { %v17272_v5 = vpop.permute.xlu0 %7167  ;;  %v17274_v6 = vpop.permute.xlu1 %7153 }
 0x376   :  { %21461 = vst [vmem:[#allocation17_spill] sm:$0xff] %v17272_v5 }
 0x377   :  { %6881 = vrot.lane.b32.xlu0 %v17226_v53, %s15643_s25  ;;  %6319 = vrot.lane.b32.xlu1 %v17238_v55, %s15641_s23 }
 0x379   :  { %v17280_v12 = vpop.permute.xlu0 %7699  ;;  %v17282_v13 = vpop.permute.xlu1 %7169 }
 0x37a   :  { %21462 = vst [vmem:[#allocation18_spill] sm:$0xff] %v17280_v12  ;;  %21463 = vst [vmem:[#allocation19_spill] sm:$0xff] %v17282_v13 }
 0x37b   :  { %7163 = vrot.lane.b32.xlu0 %v17215_v50, %s15646_s28  ;;  %8015 = vrot.lane.b32.xlu1 %v17076_v36, %s15650_s10 }
 0x37d   :  { %v17288_v14 = vpop.permute.xlu0 %7715  ;;  %v17290_v15 = vpop.permute.xlu1 %7701 }
 0x37e   :  { %21464 = vst [vmem:[#allocation20_spill] sm:$0xff] %v17288_v14  ;;  %21465 = vst [vmem:[#allocation21_spill] sm:$0xff] %v17290_v15 }
 0x37f   :  { %7179 = vrot.lane.b32.xlu0 %v17226_v53, %s15646_s28  ;;  %8023 = vrot.lane.b32.xlu1 %v17132_v46, %s15650_s10 }
 0x381   :  { %v6389_v17 = vpop.permute.xlu0 %6388  ;;  %v17296_v18 = vpop.permute.xlu1 %7717 }
 0x382   :  { %21466 = vst [vmem:[#allocation22_spill] sm:$0xff] %v17296_v18  ;;  %v6420_v20 = vsel %vm1776_vm8, %v6381_v4, %v6389_v17  ;;  %v6416_v39 = vsel %vm1776_vm8, %v6389_v17, %v17217_v51 }
 0x383   :  { %7711 = vrot.lane.b32.xlu0 %v17215_v50, %s15647_s29  ;;  %6867 = vrot.lane.b32.xlu1 %v17229_v54, %s15643_s25  ;;  %v6452_v26 = vmul.f32 %v17299_v19, %v6420_v20 }
 0x385   :  { %v6405_v21 = vpop.permute.xlu0 %6404  ;;  %v6391_v22 = vpop.permute.xlu1 %6390 }
 0x386   :  { %v6421_v24 = vsel %vm1776_vm8, %v17219_v52, %v6391_v22  ;;  %v6424_v28 = vsel %vm1776_vm8, %v6405_v21, %v6381_v4  ;;  %v6412_v32 = vsel %vm1776_vm8, %v17217_v51, %v6405_v21  ;;  %v6417_v33 = vsel %vm1776_vm8, %v6391_v22, %v6399_v3 }
 0x387   :  { %v6456_v29 = vmul.f32 %v17299_v19, %v6421_v24  ;;  %7727 = vrot.lane.b32.xlu0 %v17226_v53, %s15647_s29  ;;  %6883 = vrot.lane.b32.xlu1 %v17238_v55, %s15643_s25  ;;  %v6451_v40 = vmul.f32 %v17308_v23, %v6424_v28  ;;  %v6454_v4 = vmul.f32 %v17315_v27, %v6412_v32 }
 0x388   :  { %v6457_v16 = vmul.f32 %v17330_v34, %v6417_v33  ;;  %v6453_v51 = vmul.f32 %v17330_v34, %v6416_v39 }
 0x389   :  { %v17332_v35 = vpop.permute.xlu0 %6297  ;;  %v6407_v37 = vpop.permute.xlu1 %6406  ;;  %v14352_v38 = vpack.c.bf16 %v6456_v29, %v6452_v26 }
 0x38a   :  { %v6413_v41 = vsel %vm1776_vm8, %v6399_v3, %v6407_v37  ;;  %v6425_v42 = vsel %vm1776_vm8, %v6407_v37, %v17219_v52  ;;  %v14362_v24 = vpack.c.bf16 %v6457_v16, %v6453_v51  ;;  %v6329_v13 = vsel %vm1525_vm7, %v17231_v1, %v17332_v35 }
 0x38b   :  { %v6455_v20 = vmul.f32 %v17308_v23, %v6425_v42  ;;  %v6458_v21 = vmul.f32 %v17315_v27, %v6413_v41  ;;  %14353 = vmatprep.subr.bf16.mxu0 %v14352_v38  ;;  %8005 = vrot.lane.b32.xlu0 %v17118_v43, %s15650_s10 }
 0x38c   :  { %8003 = vrot.lane.b32.xlu1 %v17174_v49, %s15650_s10 }
 0x38d   :  { %v14354_v3 = vpack.c.bf16 %v6455_v20, %v6451_v40  ;;  %v17352_v17 = vpop.permute.xlu0 %6313  ;;  %v17354_v52 = vpop.permute.xlu1 %6299  ;;  %v14360_v22 = vpack.c.bf16 %v6458_v21, %v6454_v4 }
 0x38e   :  { %v6321_v5 = vsel %vm1525_vm7, %v17240_v56, %v17352_v17 }
 0x38f   :  { %14355 = vmatpush1.bf16.msra.mxu0 %v14354_v3  ;;  %14361 = vmatprep.subr.bf16.mxu1 %v14360_v22 }
 0x390   :  { %8013 = vrot.lane.b32.xlu0 %v17068_v30, %s15650_s10  ;;  %8019 = vrot.lane.b32.xlu1 %v17180_v2, %s15650_s10 }
 0x391   :  { %14363 = vmatpush1.bf16.msra.mxu1 %v14362_v24  ;;  %v17360_v26 = vpop.permute.xlu0 %6861  ;;  %v17362_v28 = vpop.permute.xlu1 %6315 }
 0x394   :  { %8021 = vrot.lane.b32.xlu0 %v17124_v44, %s15650_s10  ;;  %7165 = vrot.lane.b32.xlu1 %v17229_v54, %s15646_s28 }
 0x395   :  { %v17368_v29 = vpop.permute.xlu0 %6877  ;;  %v17370_v32 = vpop.permute.xlu1 %6863 }
 0x398   :  { %8001 = vrot.lane.b32.xlu0 %v17166_v47, %s15650_s10  ;;  %7181 = vrot.lane.b32.xlu1 %v17238_v55, %s15646_s28 }
 0x399   :  { %v17376_v33 = vpop.permute.xlu0 %7159  ;;  %v17378_v37 = vpop.permute.xlu1 %6879 }
 0x39a   :  { %21468 = vst [vmem:[#allocation24_spill] sm:$0xff] %v17376_v33 }
 0x39c   :  { %8009 = vrot.lane.b32.xlu0 %v17215_v50, %s15650_s10  ;;  %8297 = vrot.lane.b32.xlu1 %v17070_v31, %s15651_s16 }
 0x39d   :  { %v17384_v38 = vpop.permute.xlu0 %7175  ;;  %v17386_v39 = vpop.permute.xlu1 %7161 }
 0x39e   :  { %21469 = vst [vmem:[#allocation25_spill] sm:$0xff] %v17384_v38  ;;  %v6326_v38 = vsel %vm1525_vm7, %v17354_v52, %v17250_v59 }
 0x3a0   :  { %8017 = vrot.lane.b32.xlu0 %v17172_v48, %s15650_s10  ;;  %8305 = vrot.lane.b32.xlu1 %v17126_v45, %s15651_s16 }
 0x3a1   :  { %v17392_v40 = vpop.permute.xlu0 %7707  ;;  %v17394_v41 = vpop.permute.xlu1 %7177 }
 0x3a2   :  { %21470 = vst [vmem:[#allocation26_spill] sm:$0xff] %v17392_v40  ;;  %21471 = vst [vmem:[#allocation27_spill] sm:$0xff] %v17394_v41 }
 0x3a4   :  { %8025 = vrot.lane.b32.xlu0 %v17226_v53, %s15650_s10  ;;  %8313 = vrot.lane.b32.xlu1 %v17076_v36, %s15651_s16 }
 0x3a5   :  { %v17400_v42 = vpop.permute.xlu0 %7723  ;;  %v17402_v4 = vpop.permute.xlu1 %7709 }
 0x3a6   :  { %21472 = vst [vmem:[#allocation28_spill] sm:$0xff] %v17400_v42  ;;  %21473 = vst [vmem:[#allocation29_spill] sm:$0xff] %v17402_v4 }
 0x3a8   :  { %8295 = vrot.lane.b32.xlu0 %v17064_v25, %s15651_s16  ;;  %8321 = vrot.lane.b32.xlu1 %v17132_v46, %s15651_s16 }
 0x3a9   :  { %v17408_v16 = vpop.permute.xlu1 %7725  ;;  %v6385_v20 = vpop.permute.xlu0 %6384 }
 0x3aa   :  { %21474 = vst [vmem:[#allocation30_spill] sm:$0xff] %v17408_v16 }
 0x3ac   :  { %8303 = vrot.lane.b32.xlu0 %v17118_v43, %s15651_s16  ;;  %8301 = vrot.lane.b32.xlu1 %v17174_v49, %s15651_s16 }
 0x3ad   :  { %v6401_v21 = vpop.permute.xlu0 %6400  ;;  %v17414_v51 = vpop.permute.xlu1 %6386 }
 0x3b0   :  { %8311 = vrot.lane.b32.xlu0 %v17068_v30, %s15651_s16  ;;  %8317 = vrot.lane.b32.xlu1 %v17180_v2, %s15651_s16 }
 0x3b1   :  { %v17420_v3 = vpop.permute.xlu0 %6293  ;;  %v17422_v22 = vpop.permute.xlu1 %6402 }
 0x3b4   :  { %8319 = vrot.lane.b32.xlu0 %v17124_v44, %s15651_s16  ;;  %7713 = vrot.lane.b32.xlu1 %v17229_v54, %s15647_s29 }
 0x3b5   :  { %v17428_v24 = vpop.permute.xlu0 %6309  ;;  %v17430_v0 = vpop.permute.xlu1 %6295 }
 0x3b8   :  { %8299 = vrot.lane.b32.xlu0 %v17166_v47, %s15651_s16  ;;  %7729 = vrot.lane.b32.xlu1 %v17238_v55, %s15647_s29 }
 0x3b9   :  { %v17436_v42 = vpop.permute.xlu0 %6857  ;;  %v17438_v12 = vpop.permute.xlu1 %6311 }
 0x3bc   :  { %8307 = vrot.lane.b32.xlu0 %v17215_v50, %s15651_s16  ;;  %8595 = vrot.lane.b32.xlu1 %v17070_v31, %s15652_s30 }
 0x3bd   :  { %v17444_v16 = vpop.permute.xlu0 %6873  ;;  %v17446_v15 = vpop.permute.xlu1 %6859 }
 0x3c0   :  { %8315 = vrot.lane.b32.xlu0 %v17172_v48, %s15651_s16  ;;  %8603 = vrot.lane.b32.xlu1 %v17126_v45, %s15652_s30 }
 0x3c1   :  { %v17452_v40 = vpop.permute.xlu0 %7155  ;;  %v17454_v14 = vpop.permute.xlu1 %6875 }
 0x3c2   :  { %21475 = vst [vmem:[#allocation31_spill] sm:$0xff] %v17452_v40  ;;  %21476 = vst [vmem:[#allocation32_spill] sm:$0xff] %v17454_v14 }
 0x3c4   :  { %8323 = vrot.lane.b32.xlu0 %v17226_v53, %s15651_s16  ;;  %8011 = vrot.lane.b32.xlu1 %v17229_v54, %s15650_s10 }
 0x3c5   :  { %v17460_v4 = vpop.permute.xlu0 %7171  ;;  %v17462_v18 = vpop.permute.xlu1 %7157 }
 0x3c6   :  { %21477 = vst [vmem:[#allocation33_spill] sm:$0xff] %v17460_v4  ;;  %21478 = vst [vmem:[#allocation34_spill] sm:$0xff] %v17462_v18 }
 0x3c8   :  { %8593 = vrot.lane.b32.xlu0 %v17064_v25, %s15652_s30  ;;  %8027 = vrot.lane.b32.xlu1 %v17238_v55, %s15650_s10 }
 0x3c9   :  { %v17468_v45 = vpop.permute.xlu0 %7703  ;;  %v17470_v31 = vpop.permute.xlu1 %7173 }
 0x3ca   :  { %21479 = vst [vmem:[#allocation35_spill] sm:$0xff] %v17468_v45  ;;  %21480 = vst [vmem:[#allocation36_spill] sm:$0xff] %v17470_v31  ;;  %v6338_v31 = vld [vmem:[#allocation2 + $0x61] ss:$8 sm:$0xf] }
 0x3cc   :  { %8601 = vrot.lane.b32.xlu0 %v17118_v43, %s15652_s30  ;;  %8611 = vrot.lane.b32.xlu1 %v17076_v36, %s15652_s30  ;;  %v17502_v36 = vrot.slane %v6338_v31, %v15814_v8 }
 0x3cd   :  { %v17476_v40 = vpop.permute.xlu0 %7719  ;;  %v17478_v4 = vpop.permute.xlu1 %7705 }
 0x3ce   :  { %21481 = vst [vmem:[#allocation37_spill] sm:$0xff] %v17476_v40  ;;  %21482 = vst [vmem:[#allocation38_spill] sm:$0xff] %v17478_v4  ;;  %v17491_v40 = vrot.slane %v6338_v31, %v15818_v10  ;;  %v17494_v4 = vrot.slane %v6338_v31, %v15820_v11 }
 0x3cf   :  { %21487 = vst [vmem:[#allocation43_spill] sm:$0xff] %v17502_v36 }
 0x3d0   :  { %8609 = vrot.lane.b32.xlu0 %v17068_v30, %s15652_s30  ;;  %8619 = vrot.lane.b32.xlu1 %v17132_v46, %s15652_s30  ;;  %21484 = vst [vmem:[#allocation40_spill] sm:$0xff] %v17491_v40  ;;  %21485 = vst [vmem:[#allocation41_spill] sm:$0xff] %v17494_v4 }
 0x3d1   :  { %v6393_v25 = vpop.permute.xlu0 %6392  ;;  %v17484_v45 = vpop.permute.xlu1 %7721 }
 0x3d2   :  { %21483 = vst [vmem:[#allocation39_spill] sm:$0xff] %v17484_v45  ;;  %v6422_v43 = vsel %vm1776_vm8, %v6385_v20, %v6393_v25  ;;  %v17499_v45 = vrot.slane %v6338_v31, %v15816_v9 }
 0x3d3   :  { %v6460_v41 = vmul.f32 %v17299_v19, %v6422_v43 }
 0x3d4   :  { %8617 = vrot.lane.b32.xlu0 %v17124_v44, %s15652_s30  ;;  %8309 = vrot.lane.b32.xlu1 %v17229_v54, %s15651_s16  ;;  %21486 = vst [vmem:[#allocation42_spill] sm:$0xff] %v17499_v45  ;;  %v6330_v44 = vsel %vm1525_vm7, %v17242_v57, %v17354_v52 }
 0x3d5   :  { %v6409_v30 = vpop.permute.xlu0 %6408  ;;  %v6395_v46 = vpop.permute.xlu1 %6394 }
 0x3d6   :  { %v6423_v18 = vsel %vm1776_vm8, %v17414_v51, %v6395_v46  ;;  %v6419_v31 = vsel %vm1776_vm8, %v6395_v46, %v17422_v22  ;;  %v6414_v62 = vsel %vm1776_vm8, %v6401_v21, %v6409_v30  ;;  %v6426_v43 = vsel %vm1776_vm8, %v6409_v30, %v6385_v20 }
 0x3d7   :  { %v6464_v14 = vmul.f32 %v17299_v19, %v6423_v18  ;;  %v6365_v46 = vmul.f32 %v17491_v40, %v6330_v44  ;;  %v6322_v18 = vsel %vm1525_vm7, %v17250_v59, %v17362_v28  ;;  %v6418_v19 = vsel %vm1776_vm8, %v6393_v25, %v6401_v21 }
 0x3d8   :  { %8597 = vrot.lane.b32.xlu0 %v17166_v47, %s15652_s30  ;;  %8325 = vrot.lane.b32.xlu1 %v17238_v55, %s15651_s16  ;;  %v6334_v44 = vsel %vm1525_vm7, %v17362_v28, %v17242_v57  ;;  %v6465_v20 = vmul.f32 %v17330_v34, %v6419_v31  ;;  %v6459_v21 = vmul.f32 %v17308_v23, %v6426_v43 }
 0x3d9   :  { %v17543_v52 = vpop.permute.xlu0 %7997  ;;  %v6411_v33 = vpop.permute.xlu1 %6410  ;;  %v14356_v30 = vpack.c.bf16 %v6464_v14, %v6460_v41  ;;  %v6325_v57 = vsel %vm1525_vm7, %v17332_v35, %v17240_v56  ;;  %v6333_v28 = vsel %vm1525_vm7, %v17352_v17, %v17231_v1  ;;  %v6363_v1 = vmul.f32 %v17502_v36, %v6321_v5 }
 0x3da   :  { %21488 = vst [vmem:[#allocation44_spill] sm:$0xff] %v17543_v52  ;;  %v6415_v59 = vsel %vm1776_vm8, %v17422_v22, %v6411_v33  ;;  %v6427_v25 = vsel %vm1776_vm8, %v6411_v33, %v17414_v51  ;;  %v6462_v52 = vmul.f32 %v17315_v27, %v6414_v62  ;;  %v6367_v33 = vmul.f32 %v17502_v36, %v6322_v18 }
 0x3db   :  { %v6463_v14 = vmul.f32 %v17308_v23, %v6427_v25  ;;  %v6466_v41 = vmul.f32 %v17315_v27, %v6415_v59  ;;  %14357 = vmatprep.subr.bf16.mxu0 %v14356_v30  ;;  %v6461_v51 = vmul.f32 %v17330_v34, %v6418_v19  ;;  %v6361_v62 = vmul.f32 %v17491_v40, %v6329_v13  ;;  %v14040_v30 = vld [vmem:[%s21259_s3 + $0x20] sm:$0xff]  ;;  %v14041_v25 = vld [vmem:[%s21259_s3 + $0x28] sm:$0xff] }
 0x3dc   :  { %8605 = vrot.lane.b32.xlu0 %v17215_v50, %s15652_s30  ;;  %v6364_v22 = vmul.f32 %v17499_v45, %v6334_v44  ;;  %8599 = vrot.lane.b32.xlu1 %v17174_v49, %s15652_s30  ;;  %v6366_v17 = vmul.f32 %v17494_v4, %v6326_v38  ;;  %v6360_v18 = vmul.f32 %v17499_v45, %v6333_v28  ;;  %v6902_v59 = vld [vmem:[#allocation2 + $0x63] ss:$8 sm:$0xf]  ;;  %v21490_v28 = vmov 0.0  }
 0x3dd   :  { %v14358_v31 = vpack.c.bf16 %v6463_v14, %v6459_v21  ;;  %v6302_v56 = vpop.permute.xlu0 %6301  ;;  %v17576_v35 = vpop.permute.xlu1 %7999  ;;  %v14364_v43 = vpack.c.bf16 %v6466_v41, %v6462_v52  ;;  %v14366_v19 = vpack.c.bf16 %v6465_v20, %v6461_v51  ;;  %v14368_v13 = vpack.c.bf16 %v6365_v46, %v6361_v62 }
 0x3de   :  { %v6362_v44 = vmul.f32 %v17494_v4, %v6325_v57  ;;  %v14376_v5 = vpack.c.bf16 %v6367_v33, %v6363_v1  ;;  %v14370_v52 = vpack.c.bf16 %v6364_v22, %v6360_v18  ;;  %v6331_v21 = vsel %vm1525_vm7, %v17420_v3, %v6302_v56  ;;  %v14042_v18 = vld [vmem:[%s21259_s3 + $0x30] sm:$0xff] }
 0x3df   :  { %14359 = vmatpush1.bf16.msra.mxu0 %v14358_v31  ;;  %14365 = vmatprep.subr.bf16.mxu1 %v14364_v43  ;;  %v17602_v14 = vrot.slane %v6902_v59, %v15818_v10  ;;  %v6894_v41 = vsel %vm2027_vm9, %v17258_v61, %v17370_v32  ;;  %v6893_v51 = vsel %vm2027_vm9, %v17248_v58, %v17360_v26 }
 0x3e0   :  { %8613 = vrot.lane.b32.xlu0 %v17172_v48, %s15652_s30  ;;  %14367 = vmatpush1.bf16.msra.mxu1 %v14366_v19  ;;  %v14378_v46 = vpack.c.bf16 %v6366_v17, %v6362_v44  ;;  %v17618_v62 = vrot.slane %v6902_v59, %v15816_v9  ;;  %v17621_v22 = vrot.slane %v6902_v59, %v15814_v8 }
 0x3e1   :  { %8615 = vrot.lane.b32.xlu1 %v17180_v2, %s15652_s30  ;;  %14369 = vmatprep.subr.bf16.mxu0 %v14368_v13  ;;  %v6318_v38 = vpop.permute.xlu0 %6317  ;;  %v17589_v20 = vpop.permute.xlu1 %8007  ;;  %21489 = vst [vmem:[#allocation45_spill] sm:$0xff] %v17602_v14  ;;  %v6885_v43 = vsel %vm2027_vm9, %v17256_v60, %v17368_v29  ;;  %v6369_v1 = vmul.f32 %v17491_v40, %v6331_v21 }
 0x3e2   :  { %14377 = vmatprep.subr.bf16.mxu1 %v14376_v5  ;;  %14044 = vmatmul.mubr.msk.f32.vlgmr.msra.gmra.mrb[8].mxu0 %vm6472_vm2, %v14040_v30  ;;  %21491 = vst [vmem:[#allocation46_spill] sm:$0xff] %v17618_v62  ;;  %21492 = vst [vmem:[#allocation47_spill] sm:$0xff] %v17621_v22  ;;  %v6335_v17 = vsel %vm1525_vm7, %v6318_v38, %v17420_v3  ;;  %v6929_v13 = vmul.f32 %v17602_v14, %v6894_v41 }
 0x3e3   :  { %14048 = vmatmul.mubr.msk.f32.vlgmr.msra.gmra.mrb[8].mxu1 %vm6472_vm2, %v14040_v30  ;;  %14371 = vmatpush1.bf16.msra.mxu0 %v14370_v52  ;;  %v6323_v30 = vsel %vm1525_vm7, %v17428_v24, %v6318_v38  ;;  %v6886_v3 = vsel %vm2027_vm9, %v17266_v63, %v17378_v37  ;;  %v6898_v5 = vsel %vm2027_vm9, %v17378_v37, %v17258_v61 }
 0x3e4   :  { %8621 = vrot.lane.b32.xlu0 %v17226_v53, %s15652_s30  ;;  %14379 = vmatpush1.bf16.msra.mxu1 %v14378_v46  ;;  %v6368_v21 = vmul.f32 %v17499_v45, %v6335_v17  ;;  %v6371_v37 = vmul.f32 %v17502_v36, %v6323_v30  ;;  %v6890_v17 = vsel %vm2027_vm9, %v17370_v32, %v17266_v63 }
 0x3e5   :  { %8607 = vrot.lane.b32.xlu1 %v17229_v54, %s15652_s30  ;;  %v17610_v57 = vpop.permute.xlu0 %6865  ;;  %6555 = vmatprep.mubr.f32.mxu0 %v21490_v28  ;;  %v6304_v33 = vpop.permute.xlu1 %6303  ;;  %v6889_v32 = vsel %vm2027_vm9, %v17360_v26, %v17256_v60 }
 0x3e6   :  { %v6332_v31 = vsel %vm1525_vm7, %v17430_v0, %v6304_v33  ;;  %14045 = vmatmul.mubr.msk.f32.gmra.mrb[10].mxu0 %vm6472_vm2, %v14041_v25  ;;  %6644 = vmatprep.mubr.f32.mxu1 %v21490_v28  ;;  %v6328_v44 = vsel %vm1525_vm7, %v6304_v33, %v17438_v12 }
 0x3e7   :  { %v6373_v19 = vmul.f32 %v17491_v40, %v6332_v31  ;;  %14049 = vmatmul.mubr.msk.f32.gmra.mrb[10].mxu1 %vm6472_vm2, %v14041_v25  ;;  %6561 = vmatprep.mubr.f32.mxu0 %v21490_v28  ;;  %v6327_v25 = vsel %vm1525_vm7, %v6302_v56, %v17428_v24  ;;  %v6374_v33 = vmul.f32 %v17494_v4, %v6328_v44  ;;  %v14043_v56 = vld [vmem:[%s21259_s3 + $0x38] sm:$0xff] }
 0x3e8   :  { %6650 = vmatprep.mubr.f32.mxu1 %v21490_v28 }
 0x3e9   :  { %8623 = vrot.lane.b32.xlu1 %v17238_v55, %s15652_s30  ;;  %v17659_v52 = vpop.permute.xlu0 %6881  ;;  %v6320_v38 = vpop.permute.xlu1 %6319  ;;  %v14372_v46 = vpack.c.bf16 %v6373_v19, %v6369_v1  ;;  %v6931_v1 = vmul.f32 %v17621_v22, %v6886_v3  ;;  %v6370_v19 = vmul.f32 %v17494_v4, %v6327_v25  ;;  %v6928_v3 = vmul.f32 %v17618_v62, %v6898_v5  ;;  %v21521_v4 = vld [vmem:[#allocation22_spill] sm:$0xff] }
 0x3ea   :  { %v6324_v41 = vsel %vm1525_vm7, %v17438_v12, %v6320_v38  ;;  %v6336_v61 = vsel %vm1525_vm7, %v6320_v38, %v17430_v0  ;;  %14046 = vmatmul.mubr.msk.f32.gmra.mrb[12].mxu0 %vm6472_vm2, %v14042_v18  ;;  %v6925_v12 = vmul.f32 %v17602_v14, %v6893_v51  ;;  %v6897_v0 = vsel %vm2027_vm9, %v17368_v29, %v17248_v58 }
 0x3eb   :  { %v6372_v31 = vmul.f32 %v17499_v45, %v6336_v61  ;;  %v6375_v24 = vmul.f32 %v17502_v36, %v6324_v41  ;;  %14373 = vmatprep.subr.bf16.mxu0 %v14372_v46  ;;  %14050 = vmatmul.mubr.msk.f32.gmra.mrb[12].mxu1 %vm6472_vm2, %v14042_v18  ;;  %v17699_v29 = vrot.slane %v6902_v59, %v15820_v11  ;;  %v21522_v45 = vld [vmem:[#allocation29_spill] sm:$0xff] }
 0x3ec   :  { %6567 = vmatprep.mubr.f32.mxu0 %v21490_v28  ;;  %6656 = vmatprep.mubr.f32.mxu1 %v21490_v28  ;;  %v6927_v18 = vmul.f32 %v17621_v22, %v6885_v43  ;;  %v14384_v63 = vpack.c.bf16 %v6929_v13, %v6925_v12  ;;  %v14382_v38 = vpack.c.bf16 %v6374_v33, %v6370_v19  ;;  %v6376_v13 = vld [vmem:[%s21259_s3] sm:$0xff] }
 0x3ed   :  { %v14374_v30 = vpack.c.bf16 %v6372_v31, %v6368_v21  ;;  %v17693_v51 = vpop.permute.xlu0 %7163  ;;  %v17695_v44 = vpop.permute.xlu1 %8015  ;;  %v14380_v58 = vpack.c.bf16 %v6375_v24, %v6371_v37  ;;  %21493 = vst [vmem:[#allocation48_spill] sm:$0xff] %v17699_v29  ;;  %v6924_v46 = vmul.f32 %v17618_v62, %v6897_v0  ;;  %v6930_v59 = vmul.f32 %v17699_v29, %v6890_v17  ;;  %v7200_v21 = vld [vmem:[#allocation2 + $0x64] ss:$8 sm:$0xf] }
 0x3ee   :  { %14047 = vmatmul.mubr.msk.f32.gmra.mrb[14].mxu0 %vm6472_vm2, %v14043_v56  ;;  %v14392_v43 = vpack.c.bf16 %v6931_v1, %v6927_v18  ;;  %v6926_v26 = vmul.f32 %v17699_v29, %v6889_v32  ;;  %v6895_v61 = vsel %vm2027_vm9, %v17436_v42, %v17610_v57  ;;  %v6377_v37 = vld [vmem:[%s21259_s3 + $0x8] sm:$0xff]  ;;  %v17734_v24 = vrot.slane %v7200_v21, %v15818_v10  ;;  %v21499_v32 = vld [vmem:[#allocation16_spill] sm:$0xff] }
 0x3ef   :  { %14375 = vmatpush1.bf16.msra.mxu0 %v14374_v30  ;;  %14381 = vmatprep.subr.bf16.mxu1 %v14380_v58  ;;  %v14386_v25 = vpack.c.bf16 %v6928_v3, %v6924_v46  ;;  %v17743_v0 = vrot.slane %v7200_v21, %v15816_v9  ;;  %v7192_v1 = vsel %vm2780_vm12, %v17274_v6, %v17386_v39  ;;  %v6378_v3 = vld [vmem:[%s21259_s3 + $0x10] sm:$0xff]  ;;  %v21500_v46 = vld [vmem:[#allocation25_spill] sm:$0xff] }
 0x3f0   :  { %14051 = vmatmul.mubr.msk.f32.gmra.mrb[14].mxu1 %vm6472_vm2, %v14043_v56  ;;  %14385 = vmatprep.subr.bf16.mxu0 %v14384_v63  ;;  %v14394_v41 = vpack.c.bf16 %v6930_v59, %v6926_v26  ;;  %21494 = vst [vmem:[#allocation49_spill] sm:$0xff] %v17734_v24  ;;  %v17737_v56 = vrot.slane %v7200_v21, %v15820_v11  ;;  %v21498_v63 = vld [vmem:[#allocation24_spill] sm:$0xff]  ;;  %v21501_v59 = vld [vmem:[#allocation17_spill] sm:$0xff] }
 0x3f1   :  { %14383 = vmatpush1.bf16.msra.mxu1 %v14382_v38  ;;  %v17714_v5 = vpop.permute.xlu0 %7179  ;;  %6739 = vmatprep.mubr.f32.mxu0 %v21490_v28  ;;  %v17717_v60 = vpop.permute.xlu1 %8023  ;;  %21496 = vst [vmem:[#allocation51_spill] sm:$0xff] %v17743_v0  ;;  %v6933_v17 = vmul.f32 %v17602_v14, %v6895_v61  ;;  %v17753_v30 = vrot.slane %v7200_v21, %v15814_v8  ;;  %v21503_v21 = vld [vmem:[#allocation27_spill] sm:$0xff] }
 0x3f2   :  { %14393 = vmatprep.subr.bf16.mxu1 %v14392_v43  ;;  %14052 = vmatmul.mubr.msk.f32.vlgmr.msra.gmra.mrb[8].mxu0 %vm6472_vm2, %v6376_v13  ;;  %21495 = vst [vmem:[#allocation50_spill] sm:$0xff] %v17737_v56  ;;  %v6887_v58 = vsel %vm2027_vm9, %v17444_v16, %v17659_v52  ;;  %v6899_v18 = vsel %vm2027_vm9, %v17659_v52, %v17436_v42 }
 0x3f3   :  { %6828 = vmatprep.mubr.f32.mxu1 %v21490_v28  ;;  %14387 = vmatpush1.bf16.msra.mxu0 %v14386_v25  ;;  %21497 = vst [vmem:[#allocation52_spill] sm:$0xff] %v17753_v30  ;;  %v7191_v38 = vsel %vm2780_vm12, %v21499_v32, %v21498_v63  ;;  %v7183_v43 = vsel %vm2780_vm12, %v21501_v59, %v21500_v46 }
 0x3f4   :  { %14056 = vmatmul.mubr.msk.f32.vlgmr.msra.gmra.mrb[8].mxu1 %vm6472_vm2, %v6376_v13  ;;  %6745 = vmatprep.mubr.f32.mxu0 %v21490_v28  ;;  %v21502_v13 = vld [vmem:[#allocation32_spill] sm:$0xff]  ;;  %v7227_v25 = vmul.f32 %v17734_v24, %v7192_v1  ;;  %v6932_v1 = vmul.f32 %v17618_v62, %v6899_v18  ;;  %v7223_v18 = vmul.f32 %v17734_v24, %v7191_v38 }
 0x3f5   :  { %v17730_v33 = vpop.permute.xlu0 %7711  ;;  %v6868_v31 = vpop.permute.xlu1 %6867  ;;  %14395 = vmatpush1.bf16.msra.mxu1 %v14394_v41  ;;  %6834 = vmatprep.mubr.f32.mxu1 %v21490_v28  ;;  %v21504_v41 = vld [vmem:[#allocation19_spill] sm:$0xff] }
 0x3f6   :  { %v6896_v12 = vsel %vm2027_vm9, %v17446_v15, %v6868_v31  ;;  %14053 = vmatmul.mubr.msk.f32.gmra.mrb[10].mxu0 %vm6472_vm2, %v6377_v37  ;;  %v6892_v42 = vsel %vm2027_vm9, %v6868_v31, %v21502_v13  ;;  %v7184_v61 = vsel %vm2780_vm12, %v21504_v41, %v21503_v21 }
 0x3f7   :  { %v6937_v19 = vmul.f32 %v17602_v14, %v6896_v12  ;;  %6751 = vmatprep.mubr.f32.mxu0 %v21490_v28  ;;  %v7196_v12 = vsel %vm2780_vm12, %v21503_v21, %v17274_v6  ;;  %v6938_v21 = vmul.f32 %v17699_v29, %v6892_v42  ;;  %v7229_v42 = vmul.f32 %v17753_v30, %v7184_v61  ;;  %v17941_v14 = vld [vmem:[#allocation2 + $0x66] ss:$8 sm:$0xf] }
 0x3f8   :  { %14057 = vmatmul.mubr.msk.f32.gmra.mrb[10].mxu1 %vm6472_vm2, %v6377_v37  ;;  %v6891_v37 = vsel %vm2027_vm9, %v17610_v57, %v17444_v16 }
 0x3f9   :  { %v17780_v52 = vpop.permute.xlu0 %7727  ;;  %v14388_v26 = vpack.c.bf16 %v6937_v19, %v6933_v17  ;;  %v6884_v31 = vpop.permute.xlu1 %6883  ;;  %6840 = vmatprep.mubr.f32.mxu1 %v21490_v28  ;;  %v6935_v17 = vmul.f32 %v17621_v22, %v6887_v58  ;;  %v6379_v58 = vld [vmem:[%s21259_s3 + $0x18] sm:$0xff] }
 0x3fa   :  { %v6888_v19 = vsel %vm2027_vm9, %v21502_v13, %v6884_v31  ;;  %v6900_v6 = vsel %vm2027_vm9, %v6884_v31, %v17446_v15  ;;  %14054 = vmatmul.mubr.msk.f32.gmra.mrb[12].mxu0 %vm6472_vm2, %v6378_v3  ;;  %v7195_v15 = vsel %vm2780_vm12, %v21500_v46, %v21499_v32  ;;  %v7188_v13 = vsel %vm2780_vm12, %v17386_v39, %v21504_v41 }
 0x3fb   :  { %v6936_v16 = vmul.f32 %v17618_v62, %v6900_v6  ;;  %v6939_v57 = vmul.f32 %v17621_v22, %v6888_v19  ;;  %14389 = vmatprep.subr.bf16.mxu0 %v14388_v26  ;;  %6757 = vmatprep.mubr.f32.mxu0 %v21490_v28  ;;  %v7226_v26 = vmul.f32 %v17743_v0, %v7196_v12 }
 0x3fc   :  { %14058 = vmatmul.mubr.msk.f32.gmra.mrb[12].mxu1 %vm6472_vm2, %v6378_v3  ;;  %v6934_v31 = vmul.f32 %v17699_v29, %v6891_v37  ;;  %v7187_v39 = vsel %vm2780_vm12, %v21498_v63, %v21501_v59  ;;  %v7225_v46 = vmul.f32 %v17753_v30, %v7183_v43  ;;  %v14400_v3 = vpack.c.bf16 %v7227_v25, %v7223_v18  ;;  %v14060_v37 = vld [vmem:[%s21259_s3 + $0x40] sm:$0xff]  ;;  %v21515_v29 = vld [vmem:[#allocation11_spill] sm:$0xff] }
 0x3fd   :  { %v14390_v19 = vpack.c.bf16 %v6936_v16, %v6932_v1  ;;  %v17825_v38 = vpop.permute.xlu0 %8005  ;;  %6846 = vmatprep.mubr.f32.mxu1 %v21490_v28  ;;  %v14396_v32 = vpack.c.bf16 %v6939_v57, %v6935_v17  ;;  %v7222_v41 = vmul.f32 %v17743_v0, %v7195_v15  ;;  %v7228_v61 = vmul.f32 %v17737_v56, %v7188_v13  ;;  %v7450_v17 = vld [vmem:[#allocation2 + $0x65] ss:$8 sm:$0xf] }
 0x3fe   :  { %v17827_v6 = vpop.permute.xlu1 %8003  ;;  %14055 = vmatmul.mubr.msk.f32.gmra.mrb[14].mxu0 %vm6472_vm2, %v6379_v58  ;;  %v14398_v12 = vpack.c.bf16 %v6938_v21, %v6934_v31  ;;  %v14408_v63 = vpack.c.bf16 %v7229_v42, %v7225_v46  ;;  %v7224_v59 = vmul.f32 %v17737_v56, %v7187_v39  ;;  %v14061_v16 = vld [vmem:[%s21259_s3 + $0x48] sm:$0xff]  ;;  %v21505_v57 = vld [vmem:[#allocation31_spill] sm:$0xff]  ;;  %v17863_v15 = vrot.slane %v7450_v17, %v15816_v9  ;;  %v21507_v42 = vld [vmem:[#allocation34_spill] sm:$0xff] }
 0x3ff   :  { %14391 = vmatpush1.bf16.msra.mxu0 %v14390_v19  ;;  %14397 = vmatprep.subr.bf16.mxu1 %v14396_v32  ;;  %v14402_v43 = vpack.c.bf16 %v7226_v26, %v7222_v41  ;;  %v14062_v31 = vld [vmem:[%s21259_s3 + $0x50] sm:$0xff]  ;;  %v17874_v19 = vrot.slane %v7450_v17, %v15818_v10  ;;  %v17877_v32 = vrot.slane %v7450_v17, %v15814_v8 }
 0x400   :  { %14059 = vmatmul.mubr.msk.f32.gmra.mrb[14].mxu1 %vm6472_vm2, %v6379_v58  ;;  %14401 = vmatprep.subr.bf16.mxu0 %v14400_v3  ;;  %v14410_v21 = vpack.c.bf16 %v7228_v61, %v7224_v59  ;;  %v7193_v58 = vsel %vm2780_vm12, %v21505_v57, %v17693_v51  ;;  %21506 = vst [vmem:[#allocation24_spill] sm:$0xff] %v17863_v15  ;;  %v21511_v3 = vld [vmem:[#allocation33_spill] sm:$0xff] }
 0x401   :  { %14399 = vmatpush1.bf16.msra.mxu1 %v14398_v12  ;;  %7021 = vmatprep.mubr.f32.mxu0 %v21490_v28  ;;  %21508 = vst [vmem:[#allocation16_spill] sm:$0xff] %v17874_v19  ;;  %21509 = vst [vmem:[#allocation25_spill] sm:$0xff] %v17877_v32  ;;  %v17880_v39 = vrot.slane %v7450_v17, %v15820_v11  ;;  %v7231_v46 = vmul.f32 %v17734_v24, %v7193_v58 }
 0x402   :  { %v17843_v25 = vpop.permute.xlu0 %8013  ;;  %14409 = vmatprep.subr.bf16.mxu1 %v14408_v63  ;;  %v17846_v1 = vpop.permute.xlu1 %8019  ;;  %14064 = vmatmul.mubr.msk.f32.vlgmr.msra.gmra.mrb[8].mxu0 %vm6472_vm2, %v14060_v37  ;;  %v7185_v41 = vsel %vm2780_vm12, %v21511_v3, %v17714_v5  ;;  %v7197_v61 = vsel %vm2780_vm12, %v17714_v5, %v21505_v57 }
 0x403   :  { %7110 = vmatprep.mubr.f32.mxu1 %v21490_v28  ;;  %14403 = vmatpush1.bf16.msra.mxu0 %v14402_v43  ;;  %21510 = vst [vmem:[#allocation17_spill] sm:$0xff] %v17880_v39  ;;  %v21513_v43 = vld [vmem:[#allocation8_spill] sm:$0xff]  ;;  %v17905_v5 = vmul.f32 %v17880_v39, %v21515_v29  ;;  %v7233_v29 = vmul.f32 %v17753_v30, %v7185_v41 }
 0x404   :  { %14068 = vmatmul.mubr.msk.f32.vlgmr.msra.gmra.mrb[8].mxu1 %vm6472_vm2, %v14060_v37  ;;  %7027 = vmatprep.mubr.f32.mxu0 %v21490_v28  ;;  %v21512_v37 = vld [vmem:[#allocation36_spill] sm:$0xff]  ;;  %v7472_v17 = vmul.f32 %v17863_v15, %v21513_v43  ;;  %v21517_v43 = vld [vmem:[#allocation15_spill] sm:$0xff] }
 0x405   :  { %14411 = vmatpush1.bf16.msra.mxu1 %v14410_v21  ;;  %7116 = vmatprep.mubr.f32.mxu1 %v21490_v28  ;;  %v21514_v21 = vld [vmem:[#allocation10_spill] sm:$0xff]  ;;  %v7479_v62 = vmul.f32 %v17877_v32, %v21517_v43  ;;  %v21520_v43 = vld [vmem:[#allocation9_spill] sm:$0xff] }
 0x406   :  { %v17859_v18 = vpop.permute.xlu0 %8021  ;;  %v7166_v13 = vpop.permute.xlu1 %7165  ;;  %14065 = vmatmul.mubr.msk.f32.gmra.mrb[10].mxu0 %vm6472_vm2, %v14061_v16  ;;  %v7476_v58 = vmul.f32 %v17863_v15, %v21514_v21  ;;  %v7230_v21 = vmul.f32 %v17743_v0, %v7197_v61 }
 0x407   :  { %v7194_v26 = vsel %vm2780_vm12, %v21507_v42, %v7166_v13  ;;  %7033 = vmatprep.mubr.f32.mxu0 %v21490_v28  ;;  %v7190_v63 = vsel %vm2780_vm12, %v7166_v13, %v21512_v37 }
 0x408   :  { %v7235_v12 = vmul.f32 %v17734_v24, %v7194_v26  ;;  %14069 = vmatmul.mubr.msk.f32.gmra.mrb[10].mxu1 %vm6472_vm2, %v14061_v16  ;;  %v7189_v16 = vsel %vm2780_vm12, %v17693_v51, %v21511_v3  ;;  %v21516_v26 = vld [vmem:[#allocation14_spill] sm:$0xff]  ;;  %v7236_v3 = vmul.f32 %v17737_v56, %v7190_v63  ;;  %v7474_v63 = vmul.f32 %v17880_v39, %v21520_v43 }
 0x409   :  { %7122 = vmatprep.mubr.f32.mxu1 %v21490_v28  ;;  %v7477_v24 = vmul.f32 %v17874_v19, %v21516_v26 }
 0x40a   :  { %v17896_v59 = vpop.permute.xlu0 %8001  ;;  %v7182_v57 = vpop.permute.xlu1 %7181  ;;  %14066 = vmatmul.mubr.msk.f32.gmra.mrb[12].mxu0 %vm6472_vm2, %v14062_v31  ;;  %v14404_v13 = vpack.c.bf16 %v7235_v12, %v7231_v46  ;;  %v14063_v46 = vld [vmem:[%s21259_s3 + $0x58] sm:$0xff]  ;;  %v14426_v43 = vpack.c.bf16 %v17905_v5, %v7474_v63  ;;  %v7487_v5 = vmul.f32 %v17877_v32, %v17238_v55  ;;  %v17986_v55 = vrot.slane %v17941_v14, %v15814_v8  ;;  %v21529_v63 = vld [vmem:[#allocation18_spill] sm:$0xff] }
 0x40b   :  { %v7186_v22 = vsel %vm2780_vm12, %v21512_v37, %v7182_v57  ;;  %v7198_v51 = vsel %vm2780_vm12, %v7182_v57, %v21507_v42  ;;  %7039 = vmatprep.mubr.f32.mxu0 %v21490_v28  ;;  %v21518_v42 = vld [vmem:[#allocation12_spill] sm:$0xff]  ;;  %v21519_v57 = vld [vmem:[#allocation13_spill] sm:$0xff] }
 0x40c   :  { %v7234_v61 = vmul.f32 %v17743_v0, %v7198_v51  ;;  %v7237_v41 = vmul.f32 %v17753_v30, %v7186_v22  ;;  %14070 = vmatmul.mubr.msk.f32.gmra.mrb[12].mxu1 %vm6472_vm2, %v14062_v31  ;;  %14405 = vmatprep.subr.bf16.mxu0 %v14404_v13  ;;  %v7473_v37 = vmul.f32 %v17874_v19, %v21518_v42 }
 0x40d   :  { %7128 = vmatprep.mubr.f32.mxu1 %v21490_v28  ;;  %v7475_v26 = vmul.f32 %v17877_v32, %v21519_v57  ;;  %v7232_v22 = vmul.f32 %v17737_v56, %v7189_v16  ;;  %v14418_v0 = vpack.c.bf16 %v7476_v58, %v7472_v17  ;;  %v7485_v57 = vmul.f32 %v17874_v19, %v17229_v54 }
 0x40e   :  { %v17932_v12 = vpop.permute.xlu0 %8009  ;;  %v14406_v51 = vpack.c.bf16 %v7234_v61, %v7230_v21  ;;  %v17944_v31 = vpop.permute.xlu1 %8297  ;;  %14067 = vmatmul.mubr.msk.f32.gmra.mrb[14].mxu0 %vm6472_vm2, %v14063_v46  ;;  %v14412_v13 = vpack.c.bf16 %v7237_v41, %v7233_v29  ;;  %v14416_v30 = vpack.c.bf16 %v7477_v24, %v7473_v37  ;;  %v7736_v16 = vsel %vm3269_vm13, %v21522_v45, %v21521_v4  ;;  %v14072_v24 = vld [vmem:[%s21259_s3 + $0x60] sm:$0xff]  ;;  %v21527_v61 = vld [vmem:[#allocation30_spill] sm:$0xff] }
 0x40f   :  { %7319 = vmatprep.mubr.f32.mxu0 %v21490_v28  ;;  %v14424_v42 = vpack.c.bf16 %v7479_v62, %v7475_v26  ;;  %v14414_v21 = vpack.c.bf16 %v7236_v3, %v7232_v22  ;;  %v7481_v62 = vmul.f32 %v17874_v19, %v17215_v50  ;;  %v17963_v54 = vrot.slane %v17941_v14, %v15818_v10  ;;  %v21524_v29 = vld [vmem:[#allocation20_spill] sm:$0xff]  ;;  %v21526_v50 = vld [vmem:[#allocation21_spill] sm:$0xff] }
 0x410   :  { %14071 = vmatmul.mubr.msk.f32.gmra.mrb[14].mxu1 %vm6472_vm2, %v14063_v46  ;;  %14407 = vmatpush1.bf16.msra.mxu0 %v14406_v51  ;;  %v7483_v58 = vmul.f32 %v17877_v32, %v17226_v53  ;;  %v21525_v46 = vld [vmem:[#allocation26_spill] sm:$0xff]  ;;  %v7744_v41 = vsel %vm3269_vm13, %v21527_v61, %v21526_v50  ;;  %v7484_v53 = vmul.f32 %v17863_v15, %v17174_v49  ;;  %v21530_v22 = vld [vmem:[#allocation28_spill] sm:$0xff]  ;;  %v14073_v49 = vld [vmem:[%s21259_s3 + $0x68] sm:$0xff] }
 0x411   :  { %21523 = vst [vmem:[#allocation32_spill] sm:$0xff] %v17963_v54  ;;  %14413 = vmatprep.subr.bf16.mxu1 %v14412_v13  ;;  %14417 = vmatprep.subr.bf16.mxu0 %v14416_v30  ;;  %v7735_v3 = vsel %vm3269_vm13, %v21525_v46, %v21524_v29  ;;  %21528 = vst [vmem:[#allocation27_spill] sm:$0xff] %v17986_v55  ;;  %v7775_v37 = vmul.f32 %v17963_v54, %v7736_v16 }
 0x412   :  { %v17965_v17 = vpop.permute.xlu0 %8017  ;;  %14415 = vmatpush1.bf16.msra.mxu1 %v14414_v21  ;;  %v17979_v30 = vpop.permute.xlu1 %8305  ;;  %7408 = vmatprep.mubr.f32.mxu1 %v21490_v28  ;;  %v14420_v26 = vpack.c.bf16 %v7485_v57, %v7481_v62  ;;  %v7743_v51 = vsel %vm3269_vm13, %v21530_v22, %v21529_v63  ;;  %v7480_v13 = vmul.f32 %v17863_v15, %v17166_v47 }
 0x413   :  { %14425 = vmatprep.subr.bf16.mxu1 %v14424_v42  ;;  %14076 = vmatmul.mubr.msk.f32.vlgmr.msra.gmra.mrb[8].mxu0 %vm6472_vm2, %v14072_v24  ;;  %v7486_v42 = vmul.f32 %v17880_v39, %v17180_v2  ;;  %v7771_v57 = vmul.f32 %v17963_v54, %v7735_v3  ;;  %v7777_v16 = vmul.f32 %v17986_v55, %v7744_v41 }
 0x414   :  { %14419 = vmatpush1.bf16.msra.mxu0 %v14418_v0  ;;  %7325 = vmatprep.mubr.f32.mxu0 %v21490_v28  ;;  %v14428_v21 = vpack.c.bf16 %v7487_v5, %v7483_v58  ;;  %v14422_v32 = vpack.c.bf16 %v7484_v53, %v7480_v13  ;;  %v7482_v47 = vmul.f32 %v17880_v39, %v17172_v48  ;;  %v14075_v53 = vld [vmem:[%s21259_s3 + $0x78] sm:$0xff] }
 0x415   :  { %14080 = vmatmul.mubr.msk.f32.vlgmr.msra.gmra.mrb[8].mxu1 %vm6472_vm2, %v14072_v24  ;;  %14421 = vmatprep.subr.bf16.mxu0 %v14420_v26  ;;  %v7773_v2 = vmul.f32 %v17986_v55, %v7743_v51  ;;  %v14432_v3 = vpack.c.bf16 %v7775_v37, %v7771_v57  ;;  %v18031_v41 = vrot.slane %v17941_v14, %v15816_v9  ;;  %v21533_v57 = vld [vmem:[#allocation35_spill] sm:$0xff] }
 0x416   :  { %v18005_v0 = vpop.permute.xlu0 %8025  ;;  %14427 = vmatpush1.bf16.msra.mxu1 %v14426_v43  ;;  %v18007_v62 = vpop.permute.xlu1 %8313  ;;  %7414 = vmatprep.mubr.f32.mxu1 %v21490_v28  ;;  %v14430_v24 = vpack.c.bf16 %v7486_v42, %v7482_v47  ;;  %v14074_v43 = vld [vmem:[%s21259_s3 + $0x70] sm:$0xff]  ;;  %v7739_v37 = vsel %vm3269_vm13, %v21529_v63, %v21525_v46  ;;  %v18050_v26 = vrot.slane %v17941_v14, %v15820_v11  ;;  %v14084_v14 = vld [vmem:[%s21259_s3 + $0x80] sm:$0xff]  ;;  %v21534_v47 = vld [vmem:[#allocation37_spill] sm:$0xff] }
 0x417   :  { %14429 = vmatprep.subr.bf16.mxu1 %v14428_v21  ;;  %14077 = vmatmul.mubr.msk.f32.gmra.mrb[10].mxu0 %vm6472_vm2, %v14073_v49  ;;  %v14440_v48 = vpack.c.bf16 %v7777_v16, %v7773_v2  ;;  %21531 = vst [vmem:[#allocation19_spill] sm:$0xff] %v18031_v41  ;;  %v7731_v46 = vsel %vm3269_vm13, %v21524_v29, %v21530_v22  ;;  %v8046_v22 = vld [vmem:[#allocation2 + $0x67] ss:$8 sm:$0xf] }
 0x418   :  { %14423 = vmatpush1.bf16.msra.mxu0 %v14422_v32  ;;  %7331 = vmatprep.mubr.f32.mxu0 %v21490_v28  ;;  %v7740_v32 = vsel %vm3269_vm13, %v21526_v50, %v21522_v45  ;;  %v7732_v45 = vsel %vm3269_vm13, %v21521_v4, %v21527_v61  ;;  %21532 = vst [vmem:[#allocation31_spill] sm:$0xff] %v18050_v26 }
 0x419   :  { %14081 = vmatmul.mubr.msk.f32.gmra.mrb[10].mxu1 %vm6472_vm2, %v14073_v49  ;;  %14433 = vmatprep.subr.bf16.mxu0 %v14432_v3  ;;  %v7774_v51 = vmul.f32 %v18031_v41, %v7740_v32  ;;  %v7770_v4 = vmul.f32 %v18031_v41, %v7739_v37  ;;  %v7776_v61 = vmul.f32 %v18050_v26, %v7732_v45  ;;  %v14085_v3 = vld [vmem:[%s21259_s3 + $0x88] sm:$0xff] }
 0x41a   :  { %v18019_v58 = vpop.permute.xlu0 %8295  ;;  %14431 = vmatpush1.bf16.msra.mxu1 %v14430_v24  ;;  %v18021_v5 = vpop.permute.xlu1 %8321  ;;  %7420 = vmatprep.mubr.f32.mxu1 %v21490_v28  ;;  %v7772_v13 = vmul.f32 %v18050_v26, %v7731_v46  ;;  %v7741_v16 = vsel %vm3269_vm13, %v21533_v57, %v17730_v33  ;;  %v7737_v2 = vsel %vm3269_vm13, %v17730_v33, %v21534_v47  ;;  %v21537_v46 = vld [vmem:[#allocation39_spill] sm:$0xff] }
 0x41b   :  { %14441 = vmatprep.subr.bf16.mxu1 %v14440_v48  ;;  %14078 = vmatmul.mubr.msk.f32.gmra.mrb[12].mxu0 %vm6472_vm2, %v14074_v43  ;;  %v14434_v42 = vpack.c.bf16 %v7774_v51, %v7770_v4  ;;  %v18088_v24 = vrot.slane %v8046_v22, %v15818_v10  ;;  %v18098_v33 = vrot.slane %v8046_v22, %v15816_v9 }
 0x41c   :  { %7337 = vmatprep.mubr.f32.mxu0 %v21490_v28  ;;  %v14442_v21 = vpack.c.bf16 %v7776_v61, %v7772_v13  ;;  %v8034_v32 = vsel %vm4022_vm0, %v17589_v20, %v17695_v44  ;;  %v7779_v45 = vmul.f32 %v17963_v54, %v7737_v2  ;;  %v7733_v51 = vsel %vm3269_vm13, %v21534_v47, %v17780_v52  ;;  %v21538_v61 = vld [vmem:[#allocation38_spill] sm:$0xff] }
 0x41d   :  { %14082 = vmatmul.mubr.msk.f32.gmra.mrb[12].mxu1 %vm6472_vm2, %v14074_v43  ;;  %21535 = vst [vmem:[#allocation34_spill] sm:$0xff] %v18088_v24  ;;  %v8033_v43 = vsel %vm4022_vm0, %v17825_v38, %v17843_v25  ;;  %21536 = vst [vmem:[#allocation33_spill] sm:$0xff] %v18098_v33  ;;  %v7745_v13 = vsel %vm3269_vm13, %v17780_v52, %v21533_v57  ;;  %v14086_v47 = vld [vmem:[%s21259_s3 + $0x90] sm:$0xff]  ;;  %v8073_v2 = vmul.f32 %v18088_v24, %v8034_v32 }
 0x41e   :  { %v18046_v50 = vpop.permute.xlu0 %8303  ;;  %v18053_v49 = vpop.permute.xlu1 %8301  ;;  %7426 = vmatprep.mubr.f32.mxu1 %v21490_v28  ;;  %v18134_v39 = vrot.slane %v8046_v22, %v15814_v8  ;;  %v8042_v52 = vsel %vm4022_vm0, %v17717_v60, %v17576_v35 }
 0x41f   :  { %14079 = vmatmul.mubr.msk.f32.gmra.mrb[14].mxu0 %vm6472_vm2, %v14075_v53 }
 0x420   :  { %7569 = vmatprep.mubr.f32.mxu0 %v21490_v28  ;;  %21540 = vst [vmem:[#allocation8_spill] sm:$0xff] %v18134_v39 }
 0x421   :  { %14083 = vmatmul.mubr.msk.f32.gmra.mrb[14].mxu1 %vm6472_vm2, %v14075_v53  ;;  %v7778_v53 = vmul.f32 %v18031_v41, %v7741_v16 }
 0x422   :  { %v18068_v63 = vpop.permute.xlu0 %8311  ;;  %v18071_v29 = vpop.permute.xlu1 %8317  ;;  %7658 = vmatprep.mubr.f32.mxu1 %v21490_v28 }
 0x423   :  { %14088 = vmatmul.mubr.msk.f32.vlgmr.msra.gmra.mrb[8].mxu0 %vm6472_vm2, %v14084_v14 }
 0x424   :  { %14435 = vmatpush1.bf16.msra.mxu0 %v14434_v42  ;;  %7575 = vmatprep.mubr.f32.mxu0 %v21490_v28  ;;  %v8069_v42 = vmul.f32 %v18088_v24, %v8033_v43  ;;  %v7780_v43 = vmul.f32 %v18050_v26, %v7733_v51 }
 0x425   :  { %14092 = vmatmul.mubr.msk.f32.vlgmr.msra.gmra.mrb[8].mxu1 %vm6472_vm2, %v14084_v14 }
 0x426   :  { %v18095_v48 = vpop.permute.xlu0 %8319  ;;  %14443 = vmatpush1.bf16.msra.mxu1 %v14442_v21  ;;  %v7714_v37 = vpop.permute.xlu1 %7713  ;;  %7664 = vmatprep.mubr.f32.mxu1 %v21490_v28 }
 0x427   :  { %v7738_v4 = vsel %vm3269_vm13, %v7714_v37, %v21537_v46  ;;  %v7742_v14 = vsel %vm3269_vm13, %v21538_v61, %v7714_v37  ;;  %14089 = vmatmul.mubr.msk.f32.gmra.mrb[10].mxu0 %vm6472_vm2, %v14085_v3  ;;  %v18131_v37 = vrot.slane %v8046_v22, %v15820_v11 }
 0x428   :  { %v7782_v16 = vmul.f32 %v18031_v41, %v7742_v14  ;;  %v7783_v21 = vmul.f32 %v17963_v54, %v7738_v4  ;;  %7581 = vmatprep.mubr.f32.mxu0 %v21490_v28  ;;  %v21541_v4 = vld [vmem:[#allocation44_spill] sm:$0xff]  ;;  %v7781_v54 = vmul.f32 %v17986_v55, %v7745_v13  ;;  %v14448_v13 = vpack.c.bf16 %v8073_v2, %v8069_v42 }
 0x429   :  { %21539 = vst [vmem:[#allocation36_spill] sm:$0xff] %v18131_v37  ;;  %14093 = vmatmul.mubr.msk.f32.gmra.mrb[10].mxu1 %vm6472_vm2, %v14085_v3  ;;  %v8041_v32 = vsel %vm4022_vm0, %v17859_v18, %v21541_v4  ;;  %v8037_v3 = vsel %vm4022_vm0, %v21541_v4, %v17825_v38  ;;  %v14087_v38 = vld [vmem:[%s21259_s3 + $0x98] sm:$0xff] }
 0x42a   :  { %v18141_v57 = vpop.permute.xlu0 %8299  ;;  %v14438_v14 = vpack.c.bf16 %v7782_v16, %v7778_v53  ;;  %v7730_v41 = vpop.permute.xlu1 %7729  ;;  %7670 = vmatprep.mubr.f32.mxu1 %v21490_v28  ;;  %v14436_v22 = vpack.c.bf16 %v7783_v21, %v7779_v45  ;;  %v8068_v42 = vmul.f32 %v18098_v33, %v8037_v3  ;;  %v8035_v3 = vsel %vm4022_vm0, %v17932_v12, %v17965_v17 }
 0x42b   :  { %v7734_v51 = vsel %vm3269_vm13, %v21537_v46, %v7730_v41  ;;  %v7746_v19 = vsel %vm3269_vm13, %v7730_v41, %v21538_v61  ;;  %14090 = vmatmul.mubr.msk.f32.gmra.mrb[12].mxu0 %vm6472_vm2, %v14086_v47  ;;  %v8038_v46 = vsel %vm4022_vm0, %v17576_v35, %v17589_v20  ;;  %v8029_v41 = vsel %vm4022_vm0, %v17843_v25, %v17859_v18 }
 0x42c   :  { %v7784_v53 = vmul.f32 %v18050_v26, %v7734_v51  ;;  %v7785_v45 = vmul.f32 %v17986_v55, %v7746_v19  ;;  %14437 = vmatprep.subr.bf16.mxu0 %v14436_v22  ;;  %7587 = vmatprep.mubr.f32.mxu0 %v21490_v28  ;;  %v8071_v19 = vmul.f32 %v18134_v39, %v8041_v32  ;;  %v14097_v22 = vld [vmem:[%s21259_s3 + $0xa8] sm:$0xff] }
 0x42d   :  { %14094 = vmatmul.mubr.msk.f32.gmra.mrb[12].mxu1 %vm6472_vm2, %v14086_v47  ;;  %14439 = vmatpush1.bf16.msra.mxu0 %v14438_v14  ;;  %v8030_v20 = vsel %vm4022_vm0, %v17695_v44, %v17717_v60  ;;  %v8075_v25 = vmul.f32 %v18134_v39, %v8042_v52  ;;  %v8072_v18 = vmul.f32 %v18098_v33, %v8038_v46 }
 0x42e   :  { %v18177_v61 = vpop.permute.xlu0 %8307  ;;  %v14446_v16 = vpack.c.bf16 %v7784_v53, %v7780_v43  ;;  %v18180_v21 = vpop.permute.xlu1 %8595  ;;  %14449 = vmatprep.subr.bf16.mxu0 %v14448_v13  ;;  %7676 = vmatprep.mubr.f32.mxu1 %v21490_v28  ;;  %v14444_v35 = vpack.c.bf16 %v7785_v45, %v7781_v54  ;;  %v8070_v47 = vmul.f32 %v18131_v37, %v8029_v41  ;;  %v14096_v54 = vld [vmem:[%s21259_s3 + $0xa0] sm:$0xff] }
 0x42f   :  { %14091 = vmatmul.mubr.msk.f32.gmra.mrb[14].mxu0 %vm6472_vm2, %v14087_v38  ;;  %v14456_v44 = vpack.c.bf16 %v8075_v25, %v8071_v19  ;;  %v8074_v60 = vmul.f32 %v18131_v37, %v8030_v20  ;;  %v14450_v52 = vpack.c.bf16 %v8072_v18, %v8068_v42  ;;  %v8344_v43 = vld [vmem:[#allocation2 + $0x80] ss:$8 sm:$0xf]  ;;  %v8039_v14 = vsel %vm4022_vm0, %v17896_v59, %v17932_v12 }
 0x430   :  { %14445 = vmatprep.subr.bf16.mxu1 %v14444_v35  ;;  %7867 = vmatprep.mubr.f32.mxu0 %v21490_v28  ;;  %v18216_v51 = vrot.slane %v8344_v43, %v15816_v9  ;;  %v8331_v53 = vsel %vm4273_vm1, %v18046_v50, %v18068_v63  ;;  %v8031_v13 = vsel %vm4022_vm0, %v17965_v17, %v18005_v0  ;;  %v14098_v20 = vld [vmem:[%s21259_s3 + $0xb0] sm:$0xff] }
 0x431   :  { %14095 = vmatmul.mubr.msk.f32.gmra.mrb[14].mxu1 %vm6472_vm2, %v14087_v38  ;;  %v14458_v32 = vpack.c.bf16 %v8074_v60, %v8070_v47  ;;  %v8043_v12 = vsel %vm4022_vm0, %v18005_v0, %v17896_v59  ;;  %v18234_v38 = vrot.slane %v8344_v43, %v15818_v10  ;;  %v8076_v41 = vmul.f32 %v18098_v33, %v8039_v14 }
 0x432   :  { %v18196_v2 = vpop.permute.xlu0 %8315  ;;  %14447 = vmatpush1.bf16.msra.mxu1 %v14446_v16  ;;  %v18199_v4 = vpop.permute.xlu1 %8603  ;;  %7956 = vmatprep.mubr.f32.mxu1 %v21490_v28  ;;  %21542 = vst [vmem:[#allocation10_spill] sm:$0xff] %v18216_v51  ;;  %v8332_v19 = vsel %vm4273_vm1, %v17979_v30, %v18007_v62  ;;  %v8077_v0 = vmul.f32 %v18088_v24, %v8035_v3 }
 0x433   :  { %14457 = vmatprep.subr.bf16.mxu1 %v14456_v44  ;;  %14100 = vmatmul.mubr.msk.f32.vlgmr.msra.gmra.mrb[8].mxu0 %vm6472_vm2, %v14096_v54  ;;  %21543 = vst [vmem:[#allocation11_spill] sm:$0xff] %v18234_v38  ;;  %v8367_v42 = vmul.f32 %v18234_v38, %v8331_v53  ;;  %v8078_v25 = vmul.f32 %v18131_v37, %v8031_v13 }
 0x434   :  { %14451 = vmatpush1.bf16.msra.mxu0 %v14450_v52  ;;  %7873 = vmatprep.mubr.f32.mxu0 %v21490_v28  ;;  %v8079_v18 = vmul.f32 %v18134_v39, %v8043_v12  ;;  %v18260_v47 = vrot.slane %v8344_v43, %v15820_v11  ;;  %v8371_v60 = vmul.f32 %v18234_v38, %v8332_v19 }
 0x435   :  { %14104 = vmatmul.mubr.msk.f32.vlgmr.msra.gmra.mrb[8].mxu1 %vm6472_vm2, %v14096_v54  ;;  %v18263_v54 = vrot.slane %v8344_v43, %v15814_v8  ;;  %v8339_v52 = vsel %vm4273_vm1, %v18095_v48, %v18019_v58  ;;  %v8340_v43 = vsel %vm4273_vm1, %v18021_v5, %v17944_v31 }
 0x436   :  { %v18223_v45 = vpop.permute.xlu0 %8323  ;;  %14459 = vmatpush1.bf16.msra.mxu1 %v14458_v32  ;;  %v8012_v46 = vpop.permute.xlu1 %8011  ;;  %7962 = vmatprep.mubr.f32.mxu1 %v21490_v28  ;;  %21544 = vst [vmem:[#allocation14_spill] sm:$0xff] %v18260_v47 }
 0x437   :  { %v8036_v17 = vsel %vm4022_vm0, %v8012_v46, %v17846_v1  ;;  %v8040_v59 = vsel %vm4022_vm0, %v17827_v6, %v8012_v46  ;;  %14101 = vmatmul.mubr.msk.f32.gmra.mrb[10].mxu0 %vm6472_vm2, %v14097_v22  ;;  %21545 = vst [vmem:[#allocation15_spill] sm:$0xff] %v18263_v54 }
 0x438   :  { %v8080_v16 = vmul.f32 %v18098_v33, %v8040_v59  ;;  %v8081_v35 = vmul.f32 %v18088_v24, %v8036_v17  ;;  %7879 = vmatprep.mubr.f32.mxu0 %v21490_v28 }
 0x439   :  { %14105 = vmatmul.mubr.msk.f32.gmra.mrb[10].mxu1 %vm6472_vm2, %v14097_v22  ;;  %v8335_v22 = vsel %vm4273_vm1, %v18019_v58, %v18046_v50  ;;  %v14099_v58 = vld [vmem:[%s21259_s3 + $0xb8] sm:$0xff]  ;;  %v8369_v50 = vmul.f32 %v18263_v54, %v8339_v52  ;;  %v8337_v52 = vsel %vm4273_vm1, %v18141_v57, %v18177_v61 }
 0x43a   :  { %v18266_v44 = vpop.permute.xlu0 %8593  ;;  %v14454_v32 = vpack.c.bf16 %v8080_v16, %v8076_v41  ;;  %v8028_v14 = vpop.permute.xlu1 %8027  ;;  %7968 = vmatprep.mubr.f32.mxu1 %v21490_v28  ;;  %v14452_v3 = vpack.c.bf16 %v8081_v35, %v8077_v0  ;;  %v14464_v41 = vpack.c.bf16 %v8371_v60, %v8367_v42  ;;  %v8366_v17 = vmul.f32 %v18216_v51, %v8335_v22  ;;  %v14108_v16 = vld [vmem:[%s21259_s3 + $0xc0] sm:$0xff] }
 0x43b   :  { %v8032_v53 = vsel %vm4022_vm0, %v17846_v1, %v8028_v14  ;;  %v8044_v13 = vsel %vm4022_vm0, %v8028_v14, %v17827_v6  ;;  %14102 = vmatmul.mubr.msk.f32.gmra.mrb[12].mxu0 %vm6472_vm2, %v14098_v20  ;;  %v8336_v1 = vsel %vm4273_vm1, %v17944_v31, %v17979_v30  ;;  %v8327_v6 = vsel %vm4273_vm1, %v18068_v63, %v18095_v48 }
 0x43c   :  { %v8082_v12 = vmul.f32 %v18131_v37, %v8032_v53  ;;  %v8083_v46 = vmul.f32 %v18134_v39, %v8044_v13  ;;  %14453 = vmatprep.subr.bf16.mxu0 %v14452_v3  ;;  %7885 = vmatprep.mubr.f32.mxu0 %v21490_v28  ;;  %v8328_v30 = vsel %vm4273_vm1, %v18007_v62, %v18021_v5 }
 0x43d   :  { %14106 = vmatmul.mubr.msk.f32.gmra.mrb[12].mxu1 %vm6472_vm2, %v14098_v20  ;;  %14455 = vmatpush1.bf16.msra.mxu0 %v14454_v32  ;;  %v8373_v63 = vmul.f32 %v18263_v54, %v8340_v43  ;;  %v8370_v48 = vmul.f32 %v18216_v51, %v8336_v1  ;;  %v8368_v42 = vmul.f32 %v18260_v47, %v8327_v6  ;;  %v14109_v32 = vld [vmem:[%s21259_s3 + $0xc8] sm:$0xff]  ;;  %v14110_v1 = vld [vmem:[%s21259_s3 + $0xd0] sm:$0xff] }
 0x43e   :  { %v18305_v19 = vpop.permute.xlu0 %8601  ;;  %v14462_v59 = vpack.c.bf16 %v8082_v12, %v8078_v25  ;;  %v18308_v0 = vpop.permute.xlu1 %8611  ;;  %14465 = vmatprep.subr.bf16.mxu0 %v14464_v41  ;;  %7974 = vmatprep.mubr.f32.mxu1 %v21490_v28  ;;  %v14460_v31 = vpack.c.bf16 %v8083_v46, %v8079_v18  ;;  %v8372_v62 = vmul.f32 %v18260_v47, %v8328_v30  ;;  %v8642_v25 = vld [vmem:[#allocation2 + $0x81] ss:$8 sm:$0xf] }
 0x43f   :  { %14103 = vmatmul.mubr.msk.f32.gmra.mrb[14].mxu0 %vm6472_vm2, %v14099_v58  ;;  %v14472_v20 = vpack.c.bf16 %v8373_v63, %v8369_v50  ;;  %v14466_v5 = vpack.c.bf16 %v8370_v48, %v8366_v17  ;;  %v8333_v14 = vsel %vm4273_vm1, %v18177_v61, %v18196_v2  ;;  %v18342_v3 = vrot.slane %v8642_v25, %v15816_v9 }
 0x440   :  { %14461 = vmatprep.subr.bf16.mxu1 %v14460_v31  ;;  %8165 = vmatprep.mubr.f32.mxu0 %v21490_v28  ;;  %v14474_v60 = vpack.c.bf16 %v8372_v62, %v8368_v42  ;;  %v8329_v53 = vsel %vm4273_vm1, %v18196_v2, %v18223_v45  ;;  %v8341_v61 = vsel %vm4273_vm1, %v18223_v45, %v18141_v57 }
 0x441   :  { %14107 = vmatmul.mubr.msk.f32.gmra.mrb[14].mxu1 %vm6472_vm2, %v14099_v58  ;;  %21546 = vst [vmem:[#allocation12_spill] sm:$0xff] %v18342_v3  ;;  %v18357_v9 = vrot.slane %v8642_v25, %v15818_v10  ;;  %v8374_v12 = vmul.f32 %v18216_v51, %v8337_v52  ;;  %v8630_v46 = vsel %vm4524_vm3, %v18199_v4, %v18308_v0 }
 0x442   :  { %v8610_v35 = vpop.permute.xlu0 %8609  ;;  %14463 = vmatpush1.bf16.msra.mxu1 %v14462_v59  ;;  %v18325_v18 = vpop.permute.xlu1 %8619  ;;  %8254 = vmatprep.mubr.f32.mxu1 %v21490_v28  ;;  %v8375_v57 = vmul.f32 %v18234_v38, %v8333_v14  ;;  %v8376_v6 = vmul.f32 %v18260_v47, %v8329_v53  ;;  %v8377_v50 = vmul.f32 %v18263_v54, %v8341_v61  ;;  %v14120_v61 = vld [vmem:[%s21259_s3 + $0xe0] sm:$0xff] }
 0x443   :  { %14473 = vmatprep.subr.bf16.mxu1 %v14472_v20  ;;  %14112 = vmatmul.mubr.msk.f32.vlgmr.msra.gmra.mrb[8].mxu0 %vm6472_vm2, %v14108_v16  ;;  %v8629_v43 = vsel %vm4524_vm3, %v18305_v19, %v8610_v35  ;;  %21547 = vst [vmem:[#allocation13_spill] sm:$0xff] %v18357_v9  ;;  %v18383_v17 = vrot.slane %v8642_v25, %v15820_v11 }
 0x444   :  { %14467 = vmatpush1.bf16.msra.mxu0 %v14466_v5  ;;  %8171 = vmatprep.mubr.f32.mxu0 %v21490_v28  ;;  %v8665_v45 = vmul.f32 %v18357_v9, %v8629_v43  ;;  %v18386_v59 = vrot.slane %v8642_v25, %v15814_v8  ;;  %v8669_v30 = vmul.f32 %v18357_v9, %v8630_v46 }
 0x445   :  { %14116 = vmatmul.mubr.msk.f32.vlgmr.msra.gmra.mrb[8].mxu1 %vm6472_vm2, %v14108_v16  ;;  %21548 = vst [vmem:[#allocation9_spill] sm:$0xff] %v18383_v17  ;;  %v8633_v8 = vsel %vm4524_vm3, %v18266_v44, %v18305_v19  ;;  %v8638_v11 = vsel %vm4524_vm3, %v18325_v18, %v18180_v21  ;;  %v14111_v19 = vld [vmem:[%s21259_s3 + $0xd8] sm:$0xff] }
 0x446   :  { %v8618_v22 = vpop.permute.xlu0 %8617  ;;  %14475 = vmatpush1.bf16.msra.mxu1 %v14474_v60  ;;  %v8310_v13 = vpop.permute.xlu1 %8309  ;;  %8260 = vmatprep.mubr.f32.mxu1 %v21490_v28  ;;  %21549 = vst [vmem:[#allocation22_spill] sm:$0xff] %v18386_v59 }
 0x447   :  { %v8334_v2 = vsel %vm4273_vm1, %v8310_v13, %v18071_v29  ;;  %v8338_v10 = vsel %vm4273_vm1, %v18053_v49, %v8310_v13  ;;  %14113 = vmatmul.mubr.msk.f32.gmra.mrb[10].mxu0 %vm6472_vm2, %v14109_v32  ;;  %v8637_v63 = vsel %vm4524_vm3, %v8618_v22, %v18266_v44  ;;  %v14480_v44 = vpack.c.bf16 %v8669_v30, %v8665_v45 }
 0x448   :  { %v8378_v41 = vmul.f32 %v18216_v51, %v8338_v10  ;;  %v8379_v58 = vmul.f32 %v18234_v38, %v8334_v2  ;;  %8177 = vmatprep.mubr.f32.mxu0 %v21490_v28  ;;  %v8667_v60 = vmul.f32 %v18386_v59, %v8637_v63 }
 0x449   :  { %14117 = vmatmul.mubr.msk.f32.gmra.mrb[10].mxu1 %vm6472_vm2, %v14109_v32  ;;  %v8664_v32 = vmul.f32 %v18342_v3, %v8633_v8 }
 0x44a   :  { %v18389_v31 = vpop.permute.xlu0 %8597  ;;  %v14470_v48 = vpack.c.bf16 %v8378_v41, %v8374_v12  ;;  %v8326_v42 = vpop.permute.xlu1 %8325  ;;  %8266 = vmatprep.mubr.f32.mxu1 %v21490_v28  ;;  %v14468_v16 = vpack.c.bf16 %v8379_v58, %v8375_v57  ;;  %v14121_v57 = vld [vmem:[%s21259_s3 + $0xe8] sm:$0xff] }
 0x44b   :  { %v8330_v20 = vsel %vm4273_vm1, %v18071_v29, %v8326_v42  ;;  %v8342_v62 = vsel %vm4273_vm1, %v8326_v42, %v18053_v49  ;;  %14114 = vmatmul.mubr.msk.f32.gmra.mrb[12].mxu0 %vm6472_vm2, %v14110_v1  ;;  %v8634_v29 = vsel %vm4524_vm3, %v18180_v21, %v18199_v4  ;;  %v8625_v49 = vsel %vm4524_vm3, %v8610_v35, %v8618_v22 }
 0x44c   :  { %v8380_v5 = vmul.f32 %v18260_v47, %v8330_v20  ;;  %v8381_v25 = vmul.f32 %v18263_v54, %v8342_v62  ;;  %14469 = vmatprep.subr.bf16.mxu0 %v14468_v16  ;;  %8183 = vmatprep.mubr.f32.mxu0 %v21490_v28  ;;  %v8626_v21 = vsel %vm4524_vm3, %v18308_v0, %v18325_v18  ;;  %v14122_v16 = vld [vmem:[%s21259_s3 + $0xf0] sm:$0xff] }
 0x44d   :  { %14118 = vmatmul.mubr.msk.f32.gmra.mrb[12].mxu1 %vm6472_vm2, %v14110_v1  ;;  %14471 = vmatpush1.bf16.msra.mxu0 %v14470_v48  ;;  %v8671_v4 = vmul.f32 %v18386_v59, %v8638_v11  ;;  %v8668_v35 = vmul.f32 %v18342_v3, %v8634_v29  ;;  %v8666_v22 = vmul.f32 %v18383_v17, %v8625_v49  ;;  %v14123_v49 = vld [vmem:[%s21259_s3 + $0xf8] sm:$0xff] }
 0x44e   :  { %v8606_v52 = vpop.permute.xlu0 %8605  ;;  %v14478_v14 = vpack.c.bf16 %v8380_v5, %v8376_v6  ;;  %v8600_v43 = vpop.permute.xlu1 %8599  ;;  %14481 = vmatprep.subr.bf16.mxu0 %v14480_v44  ;;  %8272 = vmatprep.mubr.f32.mxu1 %v21490_v28  ;;  %v14476_v53 = vpack.c.bf16 %v8381_v25, %v8377_v50  ;;  %v8670_v18 = vmul.f32 %v18383_v17, %v8626_v21 }
 0x44f   :  { %14115 = vmatmul.mubr.msk.f32.gmra.mrb[14].mxu0 %vm6472_vm2, %v14111_v19  ;;  %v14488_v12 = vpack.c.bf16 %v8671_v4, %v8667_v60  ;;  %v14482_v0 = vpack.c.bf16 %v8668_v35, %v8664_v32  ;;  %v8635_v10 = vsel %vm4524_vm3, %v18389_v31, %v8606_v52  ;;  %v14132_v32 = vld [vmem:[%s21259_s3 + $0x100] sm:$0xff] }
 0x450   :  { %14477 = vmatprep.subr.bf16.mxu1 %v14476_v53  ;;  %8463 = vmatprep.mubr.f32.mxu0 %v21490_v28  ;;  %v14490_v2 = vpack.c.bf16 %v8670_v18, %v8666_v22  ;;  %v8672_v1 = vmul.f32 %v18342_v3, %v8635_v10  ;;  %v14135_v53 = vld [vmem:[%s21259_s3 + $0x118] sm:$0xff] }
 0x451   :  { %14119 = vmatmul.mubr.msk.f32.gmra.mrb[14].mxu1 %vm6472_vm2, %v14111_v19 }
 0x452   :  { %v8614_v13 = vpop.permute.xlu0 %8613  ;;  %14479 = vmatpush1.bf16.msra.mxu1 %v14478_v14  ;;  %8552 = vmatprep.mubr.f32.mxu1 %v21490_v28  ;;  %v14133_v14 = vld [vmem:[%s21259_s3 + $0x108] sm:$0xff] }
 0x453   :  { %v8616_v46 = vpop.permute.xlu1 %8615  ;;  %14489 = vmatprep.subr.bf16.mxu1 %v14488_v12  ;;  %14124 = vmatmul.mubr.msk.f32.vlgmr.msra.gmra.mrb[8].mxu0 %vm6472_vm2, %v14120_v61  ;;  %v8631_v45 = vsel %vm4524_vm3, %v8606_v52, %v8614_v13 }
 0x454   :  { %14483 = vmatpush1.bf16.msra.mxu0 %v14482_v0  ;;  %8469 = vmatprep.mubr.f32.mxu0 %v21490_v28  ;;  %v8673_v30 = vmul.f32 %v18357_v9, %v8631_v45 }
 0x455   :  { %14128 = vmatmul.mubr.msk.f32.vlgmr.msra.gmra.mrb[8].mxu1 %vm6472_vm2, %v14120_v61 }
 0x456   :  { %v8622_v41 = vpop.permute.xlu0 %8621  ;;  %14491 = vmatpush1.bf16.msra.mxu1 %v14490_v2  ;;  %8558 = vmatprep.mubr.f32.mxu1 %v21490_v28 }
 0x457   :  { %v8608_v58 = vpop.permute.xlu1 %8607  ;;  %14125 = vmatmul.mubr.msk.f32.gmra.mrb[10].mxu0 %vm6472_vm2, %v14121_v57  ;;  %v8627_v63 = vsel %vm4524_vm3, %v8614_v13, %v8622_v41  ;;  %v8639_v8 = vsel %vm4524_vm3, %v8622_v41, %v18389_v31 }
 0x458   :  { %v8632_v6 = vsel %vm4524_vm3, %v8608_v58, %v8616_v46  ;;  %v8636_v50 = vsel %vm4524_vm3, %v8600_v43, %v8608_v58  ;;  %8475 = vmatprep.mubr.f32.mxu0 %v21490_v28  ;;  %v8674_v5 = vmul.f32 %v18383_v17, %v8627_v63  ;;  %v8675_v19 = vmul.f32 %v18386_v59, %v8639_v8 }
 0x459   :  { %v8676_v48 = vmul.f32 %v18342_v3, %v8636_v50  ;;  %v8677_v42 = vmul.f32 %v18357_v9, %v8632_v6  ;;  %14129 = vmatmul.mubr.msk.f32.gmra.mrb[10].mxu1 %vm6472_vm2, %v14121_v57 }
 0x45a   :  { %8564 = vmatprep.mubr.f32.mxu1 %v21490_v28 }
 0x45b   :  { %v14486_v11 = vpack.c.bf16 %v8676_v48, %v8672_v1  ;;  %v8624_v20 = vpop.permute.xlu1 %8623  ;;  %v14484_v62 = vpack.c.bf16 %v8677_v42, %v8673_v30  ;;  %14126 = vmatmul.mubr.msk.f32.gmra.mrb[12].mxu0 %vm6472_vm2, %v14122_v16 }
 0x45c   :  { %v8628_v25 = vsel %vm4524_vm3, %v8616_v46, %v8624_v20  ;;  %v8640_v44 = vsel %vm4524_vm3, %v8624_v20, %v8600_v43  ;;  %8481 = vmatprep.mubr.f32.mxu0 %v21490_v28  ;;  %v14134_v43 = vld [vmem:[%s21259_s3 + $0x110] sm:$0xff] }
 0x45d   :  { %v8678_v31 = vmul.f32 %v18383_v17, %v8628_v25  ;;  %v8679_v29 = vmul.f32 %v18386_v59, %v8640_v44  ;;  %14485 = vmatprep.subr.bf16.mxu0 %v14484_v62  ;;  %14130 = vmatmul.mubr.msk.f32.gmra.mrb[12].mxu1 %vm6472_vm2, %v14122_v16  ;;  %v21563_v17 = vld [vmem:[#allocation23_spill] sm:$0xff] }
 0x45e   :  { %14487 = vmatpush1.bf16.msra.mxu0 %v14486_v11  ;;  %8570 = vmatprep.mubr.f32.mxu1 %v21490_v28 }
 0x45f   :  { %v14494_v60 = vpack.c.bf16 %v8678_v31, %v8674_v5  ;;  %v14492_v52 = vpack.c.bf16 %v8679_v29, %v8675_v19  ;;  %14127 = vmatmul.mubr.msk.f32.gmra.mrb[14].mxu0 %vm6472_vm2, %v14123_v49 }
 0x460   :  { %8761 = vmatprep.mubr.f32.mxu0 %v21490_v28 }
 0x461   :  { %14493 = vmatprep.subr.bf16.mxu1 %v14492_v52  ;;  %14131 = vmatmul.mubr.msk.f32.gmra.mrb[14].mxu1 %vm6472_vm2, %v14123_v49 }
 0x462   :  { %14495 = vmatpush1.bf16.msra.mxu1 %v14494_v60  ;;  %8850 = vmatprep.mubr.f32.mxu1 %v21490_v28 }
 0x463   :  { %14136 = vmatmul.mubr.msk.f32.vlgmr.msra.gmra.mrb[8].mxu0 %vm6472_vm2, %v14132_v32 }
 0x464   :  { %8767 = vmatprep.mubr.f32.mxu0 %v21490_v28 }
 0x465   :  { %14140 = vmatmul.mubr.msk.f32.vlgmr.msra.gmra.mrb[8].mxu1 %vm6472_vm2, %v14132_v32 }
 0x466   :  { %8856 = vmatprep.mubr.f32.mxu1 %v21490_v28 }
 0x467   :  { %14137 = vmatmul.mubr.msk.f32.gmra.mrb[10].mxu0 %vm6472_vm2, %v14133_v14 }
 0x468   :  { %8773 = vmatprep.mubr.f32.mxu0 %v21490_v28 }
 0x469   :  { %14141 = vmatmul.mubr.msk.f32.gmra.mrb[10].mxu1 %vm6472_vm2, %v14133_v14 }
 0x46a   :  { %8862 = vmatprep.mubr.f32.mxu1 %v21490_v28 }
 0x46b   :  { %14138 = vmatmul.mubr.msk.f32.gmra.mrb[12].mxu0 %vm6472_vm2, %v14134_v43 }
 0x46c   :  { %8779 = vmatprep.mubr.f32.mxu0 %v21490_v28 }
 0x46d   :  { %14142 = vmatmul.mubr.msk.f32.gmra.mrb[12].mxu1 %vm6472_vm2, %v14134_v43 }
 0x46e   :  { %8868 = vmatprep.mubr.f32.mxu1 %v21490_v28 }
 0x46f   :  { %14139 = vmatmul.mubr.msk.f32.gmra.mrb[14].mxu0 %vm6472_vm2, %v14135_v53 }
 0x470   :  { %9120 = vmatprep.mubr.f32.mxu0 %v21490_v28 }
 0x471   :  { %14143 = vmatmul.mubr.msk.f32.gmra.mrb[14].mxu1 %vm6472_vm2, %v14135_v53 }
 0x472   :  { %9209 = vmatprep.mubr.f32.mxu1 %v21490_v28 }
 0x536   :  { %v8763_v21 = vpop.f32.mrb[8].mxu0 }
 0x537   :  { %v18521_v4 = vmax.f32 %v8763_v21, 0.0  ;;  %v8765_v35 = vpop.f32.mrb[9].mxu0 }
 0x538   :  { %v8852_v22 = vpop.f32.mrb[8].mxu1  ;;  %v18575_v63 = vmax.f32 %v8765_v35, 0.0 }
 0x539   :  { %21550 = vst [vmem:[#allocation29_spill] sm:$0xff] %v18521_v4  ;;  %v8854_v61 = vpop.f32.mrb[9].mxu1  ;;  %8975 = vrot.lane.b32.xlu0 %v18521_v4, %s15642_s24  ;;  %v18525_v12 = vmax.f32 %v8852_v22, 0.0 }
 0x53a   :  { %v8769_v13 = vpop.f32.mrb[10].mxu0  ;;  %21554 = vst [vmem:[#allocation30_spill] sm:$0xff] %v18575_v63  ;;  %v18581_v48 = vmax.f32 %v8854_v61, 0.0 }
 0x53b   :  { %21551 = vst [vmem:[#allocation20_spill] sm:$0xff] %v18525_v12  ;;  %v18527_v0 = vmax.f32 %v8769_v13, 0.0  ;;  %v8771_v18 = vpop.f32.mrb[11].mxu0 }
 0x53c   :  { %v8858_v46 = vpop.f32.mrb[10].mxu1  ;;  %21555 = vst [vmem:[#allocation18_spill] sm:$0xff] %v18581_v48  ;;  %v18583_v42 = vmax.f32 %v8771_v18, 0.0 }
 0x53d   :  { %21552 = vst [vmem:[#allocation26_spill] sm:$0xff] %v18527_v0  ;;  %v8860_v2 = vpop.f32.mrb[11].mxu1  ;;  %8991 = vrot.lane.b32.xlu0 %v18525_v12, %s15642_s24  ;;  %8977 = vrot.lane.b32.xlu1 %v18527_v0, %s15642_s24  ;;  %v18533_v57 = vmax.f32 %v8858_v46, 0.0 }
 0x53e   :  { %v8775_v10 = vpop.f32.mrb[12].mxu0  ;;  %21556 = vst [vmem:[#allocation28_spill] sm:$0xff] %v18583_v42  ;;  %v18589_v16 = vmax.f32 %v8860_v2, 0.0 }
 0x53f   :  { %21553 = vst [vmem:[#allocation21_spill] sm:$0xff] %v18533_v57  ;;  %v18535_v45 = vpop.f32.mrb[13].mxu0  ;;  %v18623_v8 = vmax.f32 %v8775_v10, 0.0 }
 0x540   :  { %v8864_v41 = vpop.f32.mrb[12].mxu1  ;;  %21557 = vst [vmem:[#allocation35_spill] sm:$0xff] %v18589_v16  ;;  %v18672_v25 = vmax.f32 %v18535_v45, 0.0 }
 0x541   :  { %v18537_v58 = vpop.f32.mrb[13].mxu1  ;;  %8907 = vrot.lane.b32.xlu0 %v18521_v4, %s15641_s23  ;;  %8993 = vrot.lane.b32.xlu1 %v18533_v57, %s15642_s24  ;;  %v18629_v11 = vmax.f32 %v8864_v41, 0.0 }
 0x542   :  { %v8781_v1 = vpop.f32.mrb[14].mxu0  ;;  %v18679_v31 = vmax.f32 %v18537_v58, 0.0 }
 0x543   :  { %v18543_v6 = vpop.f32.mrb[15].mxu0  ;;  %v18631_v20 = vmax.f32 %v8781_v1, 0.0 }
 0x544   :  { %v8870_v50 = vpop.f32.mrb[14].mxu1  ;;  %v18682_v29 = vmax.f32 %v18543_v6, 0.0 }
 0x545   :  { %v18545_v30 = vpop.f32.mrb[15].mxu1  ;;  %8923 = vrot.lane.b32.xlu0 %v18525_v12, %s15641_s23  ;;  %8909 = vrot.lane.b32.xlu1 %v18527_v0, %s15641_s23  ;;  %v18637_v62 = vmax.f32 %v8870_v50, 0.0 }
 0x546   :  { %v18691_v52 = vmax.f32 %v18545_v30, 0.0 }
 0x549   :  { %9424 = vrot.lane.b32.xlu0 %v18521_v4, %s15643_s25  ;;  %8925 = vrot.lane.b32.xlu1 %v18533_v57, %s15641_s23 }
 0x54d   :  { %9440 = vrot.lane.b32.xlu0 %v18525_v12, %s15643_s25  ;;  %9426 = vrot.lane.b32.xlu1 %v18527_v0, %s15643_s25 }
 0x551   :  { %9699 = vrot.lane.b32.xlu0 %v18521_v4, %s15646_s28  ;;  %9442 = vrot.lane.b32.xlu1 %v18533_v57, %s15643_s25 }
 0x555   :  { %9715 = vrot.lane.b32.xlu0 %v18525_v12, %s15646_s28  ;;  %9701 = vrot.lane.b32.xlu1 %v18527_v0, %s15646_s28 }
 0x559   :  { %10201 = vrot.lane.b32.xlu0 %v18521_v4, %s15647_s29  ;;  %9717 = vrot.lane.b32.xlu1 %v18533_v57, %s15646_s28 }
 0x55d   :  { %10217 = vrot.lane.b32.xlu0 %v18525_v12, %s15647_s29  ;;  %10203 = vrot.lane.b32.xlu1 %v18527_v0, %s15647_s29 }
 0x561   :  { %8983 = vrot.lane.b32.xlu0 %v18575_v63, %s15642_s24  ;;  %10219 = vrot.lane.b32.xlu1 %v18533_v57, %s15647_s29 }
 0x565   :  { %8999 = vrot.lane.b32.xlu0 %v18581_v48, %s15642_s24  ;;  %8985 = vrot.lane.b32.xlu1 %v18583_v42, %s15642_s24 }
 0x569   :  { %8915 = vrot.lane.b32.xlu0 %v18575_v63, %s15641_s23  ;;  %9001 = vrot.lane.b32.xlu1 %v18589_v16, %s15642_s24 }
 0x56d   :  { %8931 = vrot.lane.b32.xlu0 %v18581_v48, %s15641_s23  ;;  %8917 = vrot.lane.b32.xlu1 %v18583_v42, %s15641_s23 }
 0x571   :  { %9432 = vrot.lane.b32.xlu0 %v18575_v63, %s15643_s25  ;;  %8933 = vrot.lane.b32.xlu1 %v18589_v16, %s15641_s23 }
 0x575   :  { %9448 = vrot.lane.b32.xlu0 %v18581_v48, %s15643_s25  ;;  %9434 = vrot.lane.b32.xlu1 %v18583_v42, %s15643_s25 }
 0x579   :  { %9707 = vrot.lane.b32.xlu0 %v18575_v63, %s15646_s28  ;;  %9450 = vrot.lane.b32.xlu1 %v18589_v16, %s15643_s25 }
 0x57d   :  { %9723 = vrot.lane.b32.xlu0 %v18581_v48, %s15646_s28  ;;  %9709 = vrot.lane.b32.xlu1 %v18583_v42, %s15646_s28 }
 0x581   :  { %10209 = vrot.lane.b32.xlu0 %v18575_v63, %s15647_s29  ;;  %9725 = vrot.lane.b32.xlu1 %v18589_v16, %s15646_s28 }
 0x585   :  { %10225 = vrot.lane.b32.xlu0 %v18581_v48, %s15647_s29  ;;  %10211 = vrot.lane.b32.xlu1 %v18583_v42, %s15647_s29 }
 0x589   :  { %10227 = vrot.lane.b32.xlu1 %v18589_v16, %s15647_s29  ;;  %8979 = vrot.lane.b32.xlu0 %v18623_v8, %s15642_s24 }
 0x58d   :  { %8995 = vrot.lane.b32.xlu0 %v18629_v11, %s15642_s24  ;;  %8981 = vrot.lane.b32.xlu1 %v18631_v20, %s15642_s24 }
 0x591   :  { %8911 = vrot.lane.b32.xlu0 %v18623_v8, %s15641_s23  ;;  %8997 = vrot.lane.b32.xlu1 %v18637_v62, %s15642_s24 }
 0x595   :  { %8927 = vrot.lane.b32.xlu0 %v18629_v11, %s15641_s23  ;;  %8913 = vrot.lane.b32.xlu1 %v18631_v20, %s15641_s23 }
 0x599   :  { %9428 = vrot.lane.b32.xlu0 %v18623_v8, %s15643_s25  ;;  %8929 = vrot.lane.b32.xlu1 %v18637_v62, %s15641_s23 }
 0x59d   :  { %9444 = vrot.lane.b32.xlu0 %v18629_v11, %s15643_s25  ;;  %9430 = vrot.lane.b32.xlu1 %v18631_v20, %s15643_s25 }
 0x5a1   :  { %9703 = vrot.lane.b32.xlu0 %v18623_v8, %s15646_s28  ;;  %9446 = vrot.lane.b32.xlu1 %v18637_v62, %s15643_s25 }
 0x5a5   :  { %9719 = vrot.lane.b32.xlu0 %v18629_v11, %s15646_s28  ;;  %9705 = vrot.lane.b32.xlu1 %v18631_v20, %s15646_s28 }
 0x5a9   :  { %10205 = vrot.lane.b32.xlu0 %v18623_v8, %s15647_s29  ;;  %9721 = vrot.lane.b32.xlu1 %v18637_v62, %s15646_s28 }
 0x5ab   :  { %v8976_v5 = vpop.permute.xlu0 %8975 }
 0x5ad   :  { %10221 = vrot.lane.b32.xlu0 %v18629_v11, %s15647_s29  ;;  %10207 = vrot.lane.b32.xlu1 %v18631_v20, %s15647_s29 }
 0x5af   :  { %v8992_v44 = vpop.permute.xlu0 %8991  ;;  %v8978_v19 = vpop.permute.xlu1 %8977 }
 0x5b1   :  { %8987 = vrot.lane.b32.xlu0 %v18672_v25, %s15642_s24  ;;  %10223 = vrot.lane.b32.xlu1 %v18637_v62, %s15647_s29 }
 0x5b3   :  { %v18684_v49 = vpop.permute.xlu0 %8907  ;;  %v8994_v60 = vpop.permute.xlu1 %8993 }
 0x5b5   :  { %9003 = vrot.lane.b32.xlu0 %v18679_v31, %s15642_s24  ;;  %8989 = vrot.lane.b32.xlu1 %v18682_v29, %s15642_s24 }
 0x5b7   :  { %v18693_v32 = vpop.permute.xlu0 %8923  ;;  %v18695_v14 = vpop.permute.xlu1 %8909 }
 0x5b9   :  { %10476 = vrot.lane.b32.xlu0 %v18521_v4, %s15650_s10  ;;  %9005 = vrot.lane.b32.xlu1 %v18691_v52, %s15642_s24 }
 0x5bb   :  { %v18701_v43 = vpop.permute.xlu0 %9424  ;;  %v18703_v53 = vpop.permute.xlu1 %8925 }
 0x5bd   :  { %8919 = vrot.lane.b32.xlu0 %v18672_v25, %s15641_s23  ;;  %10478 = vrot.lane.b32.xlu1 %v18527_v0, %s15650_s10 }
 0x5bf   :  { %v18709_v21 = vpop.permute.xlu0 %9440  ;;  %v18711_v35 = vpop.permute.xlu1 %9426 }
 0x5c1   :  { %8935 = vrot.lane.b32.xlu0 %v18679_v31, %s15641_s23  ;;  %10486 = vrot.lane.b32.xlu1 %v18583_v42, %s15650_s10 }
 0x5c3   :  { %v18717_v22 = vpop.permute.xlu0 %9699  ;;  %v18719_v61 = vpop.permute.xlu1 %9442 }
 0x5c5   :  { %9436 = vrot.lane.b32.xlu0 %v18672_v25, %s15643_s25  ;;  %8921 = vrot.lane.b32.xlu1 %v18682_v29, %s15641_s23 }
 0x5c7   :  { %v18725_v13 = vpop.permute.xlu0 %9715  ;;  %v18727_v18 = vpop.permute.xlu1 %9701 }
 0x5c9   :  { %9452 = vrot.lane.b32.xlu0 %v18679_v31, %s15643_s25  ;;  %8937 = vrot.lane.b32.xlu1 %v18691_v52, %s15641_s23 }
 0x5cb   :  { %v18733_v46 = vpop.permute.xlu0 %10201  ;;  %v18735_v2 = vpop.permute.xlu1 %9717 }
 0x5cc   :  { %21558 = vst [vmem:[#allocation37_spill] sm:$0xff] %v18733_v46  ;;  %21559 = vst [vmem:[#allocation39_spill] sm:$0xff] %v18735_v2 }
 0x5cd   :  { %9711 = vrot.lane.b32.xlu0 %v18672_v25, %s15646_s28  ;;  %10494 = vrot.lane.b32.xlu1 %v18533_v57, %s15650_s10 }
 0x5cf   :  { %v18741_v10 = vpop.permute.xlu0 %10217  ;;  %v18743_v45 = vpop.permute.xlu1 %10203 }
 0x5d0   :  { %21560 = vst [vmem:[#allocation38_spill] sm:$0xff] %v18741_v10  ;;  %21561 = vst [vmem:[#allocation44_spill] sm:$0xff] %v18743_v45 }
 0x5d1   :  { %9727 = vrot.lane.b32.xlu0 %v18679_v31, %s15646_s28  ;;  %10502 = vrot.lane.b32.xlu1 %v18589_v16, %s15650_s10 }
 0x5d3   :  { %v8984_v41 = vpop.permute.xlu0 %8983  ;;  %v18749_v58 = vpop.permute.xlu1 %10219 }
 0x5d4   :  { %21562 = vst [vmem:[#allocation53_spill] sm:$0xff] %v18749_v58  ;;  %v9015_v1 = vsel %vm1776_vm8, %v8976_v5, %v8984_v41 }
 0x5d5   :  { %10213 = vrot.lane.b32.xlu0 %v18672_v25, %s15647_s29  ;;  %9438 = vrot.lane.b32.xlu1 %v18682_v29, %s15643_s25  ;;  %v9024_v3 = vmul.f32 %v9015_v1, %v21563_v17 }
 0x5d7   :  { %v9000_v6 = vpop.permute.xlu0 %8999  ;;  %v8986_v50 = vpop.permute.xlu1 %8985 }
 0x5d8   :  { %v9016_v30 = vsel %vm1776_vm8, %v8978_v19, %v8986_v50  ;;  %v9019_v59 = vsel %vm1776_vm8, %v9000_v6, %v8976_v5  ;;  %v9007_v47 = vsel %vm1776_vm8, %v8992_v44, %v9000_v6  ;;  %v9012_v51 = vsel %vm1776_vm8, %v8986_v50, %v8994_v60 }
 0x5d9   :  { %v9028_v9 = vmul.f32 %v9016_v30, %v21563_v17  ;;  %10229 = vrot.lane.b32.xlu0 %v18679_v31, %s15647_s29  ;;  %9454 = vrot.lane.b32.xlu1 %v18691_v52, %s15643_s25  ;;  %v9011_v5 = vsel %vm1776_vm8, %v8984_v41, %v8992_v44  ;;  %v9023_v30 = vmul.f32 %v9019_v59, %v17308_v23 }
 0x5da   :  { %v9026_v50 = vmul.f32 %v9007_v47, %v17315_v27  ;;  %v9029_v33 = vmul.f32 %v9012_v51, %v17330_v34 }
 0x5db   :  { %v18771_v54 = vpop.permute.xlu0 %8915  ;;  %v9002_v1 = vpop.permute.xlu1 %9001  ;;  %v14496_v38 = vpack.c.bf16 %v9028_v9, %v9024_v3  ;;  %v9025_v3 = vmul.f32 %v9011_v5, %v17330_v34 }
 0x5dc   :  { %v9008_v37 = vsel %vm1776_vm8, %v8994_v60, %v9002_v1  ;;  %v9020_v6 = vsel %vm1776_vm8, %v9002_v1, %v8978_v19 }
 0x5dd   :  { %v9027_v39 = vmul.f32 %v9020_v6, %v17308_v23  ;;  %v9030_v24 = vmul.f32 %v9008_v37, %v17315_v27  ;;  %14497 = vmatprep.subr.bf16.mxu0 %v14496_v38  ;;  %10484 = vrot.lane.b32.xlu0 %v18575_v63, %s15650_s10  ;;  %v14506_v51 = vpack.c.bf16 %v9029_v33, %v9025_v3 }
 0x5de   :  { %10482 = vrot.lane.b32.xlu1 %v18631_v20, %s15650_s10 }
 0x5df   :  { %v14498_v9 = vpack.c.bf16 %v9027_v39, %v9023_v30  ;;  %v18789_v59 = vpop.permute.xlu0 %8931  ;;  %v18791_v44 = vpop.permute.xlu1 %8917  ;;  %v14504_v47 = vpack.c.bf16 %v9030_v24, %v9026_v50 }
 0x5e0   :  { %v8944_v56 = vsel %vm1525_vm7, %v18791_v44, %v18703_v53 }
 0x5e1   :  { %14499 = vmatpush1.bf16.msra.mxu0 %v14498_v9  ;;  %14505 = vmatprep.subr.bf16.mxu1 %v14504_v47 }
 0x5e2   :  { %10492 = vrot.lane.b32.xlu0 %v18525_v12, %s15650_s10  ;;  %10498 = vrot.lane.b32.xlu1 %v18637_v62, %s15650_s10 }
 0x5e3   :  { %14507 = vmatpush1.bf16.msra.mxu1 %v14506_v51  ;;  %v18797_v37 = vpop.permute.xlu0 %9432  ;;  %v18799_v38 = vpop.permute.xlu1 %8933 }
 0x5e6   :  { %10500 = vrot.lane.b32.xlu0 %v18581_v48, %s15650_s10  ;;  %9713 = vrot.lane.b32.xlu1 %v18682_v29, %s15646_s28 }
 0x5e7   :  { %v18805_v39 = vpop.permute.xlu0 %9448  ;;  %v18807_v24 = vpop.permute.xlu1 %9434 }
 0x5ea   :  { %10480 = vrot.lane.b32.xlu0 %v18623_v8, %s15650_s10  ;;  %9729 = vrot.lane.b32.xlu1 %v18691_v52, %s15646_s28 }
 0x5eb   :  { %v18813_v33 = vpop.permute.xlu0 %9707  ;;  %v18815_v19 = vpop.permute.xlu1 %9450 }
 0x5ee   :  { %10488 = vrot.lane.b32.xlu0 %v18672_v25, %s15650_s10  ;;  %10753 = vrot.lane.b32.xlu1 %v18527_v0, %s15651_s16 }
 0x5ef   :  { %v18821_v60 = vpop.permute.xlu0 %9723  ;;  %v18823_v41 = vpop.permute.xlu1 %9709 }
 0x5f2   :  { %10496 = vrot.lane.b32.xlu0 %v18629_v11, %s15650_s10  ;;  %10761 = vrot.lane.b32.xlu1 %v18583_v42, %s15651_s16 }
 0x5f3   :  { %v18829_v1 = vpop.permute.xlu0 %10209  ;;  %v18831_v5 = vpop.permute.xlu1 %9725 }
 0x5f4   :  { %21564 = vst [vmem:[#allocation54_spill] sm:$0xff] %v18829_v1  ;;  %21565 = vst [vmem:[#allocation55_spill] sm:$0xff] %v18831_v5 }
 0x5f6   :  { %10504 = vrot.lane.b32.xlu0 %v18679_v31, %s15650_s10  ;;  %10769 = vrot.lane.b32.xlu1 %v18533_v57, %s15651_s16 }
 0x5f7   :  { %v18837_v30 = vpop.permute.xlu0 %10225  ;;  %v18839_v6 = vpop.permute.xlu1 %10211 }
 0x5f8   :  { %21566 = vst [vmem:[#allocation56_spill] sm:$0xff] %v18837_v30  ;;  %21567 = vst [vmem:[#allocation57_spill] sm:$0xff] %v18839_v6 }
 0x5fa   :  { %10751 = vrot.lane.b32.xlu0 %v18521_v4, %s15651_s16  ;;  %10777 = vrot.lane.b32.xlu1 %v18589_v16, %s15651_s16 }
 0x5fb   :  { %v18845_v50 = vpop.permute.xlu1 %10227  ;;  %v8980_v3 = vpop.permute.xlu0 %8979 }
 0x5fc   :  { %21568 = vst [vmem:[#allocation58_spill] sm:$0xff] %v18845_v50 }
 0x5fe   :  { %10759 = vrot.lane.b32.xlu0 %v18575_v63, %s15651_s16  ;;  %10757 = vrot.lane.b32.xlu1 %v18631_v20, %s15651_s16 }
 0x5ff   :  { %v8996_v9 = vpop.permute.xlu0 %8995  ;;  %v18851_v47 = vpop.permute.xlu1 %8981 }
 0x602   :  { %10767 = vrot.lane.b32.xlu0 %v18525_v12, %s15651_s16  ;;  %10773 = vrot.lane.b32.xlu1 %v18637_v62, %s15651_s16 }
 0x603   :  { %v18857_v51 = vpop.permute.xlu0 %8911  ;;  %v8998_v26 = vpop.permute.xlu1 %8997 }
 0x606   :  { %10775 = vrot.lane.b32.xlu0 %v18581_v48, %s15651_s16  ;;  %10215 = vrot.lane.b32.xlu1 %v18682_v29, %s15647_s29 }
 0x607   :  { %v18863_v55 = vpop.permute.xlu0 %8927  ;;  %v18865_v30 = vpop.permute.xlu1 %8913 }
 0x60a   :  { %10755 = vrot.lane.b32.xlu0 %v18623_v8, %s15651_s16  ;;  %10231 = vrot.lane.b32.xlu1 %v18691_v52, %s15647_s29 }
 0x60b   :  { %v18871_v46 = vpop.permute.xlu0 %9428  ;;  %v18873_v50 = vpop.permute.xlu1 %8929 }
 0x60e   :  { %10763 = vrot.lane.b32.xlu0 %v18672_v25, %s15651_s16  ;;  %11028 = vrot.lane.b32.xlu1 %v18527_v0, %s15652_s30 }
 0x60f   :  { %v18879_v45 = vpop.permute.xlu0 %9444  ;;  %v18881_v1 = vpop.permute.xlu1 %9430 }
 0x612   :  { %10771 = vrot.lane.b32.xlu0 %v18629_v11, %s15651_s16  ;;  %11036 = vrot.lane.b32.xlu1 %v18583_v42, %s15652_s30 }
 0x613   :  { %v18887_v10 = vpop.permute.xlu0 %9703  ;;  %v18889_v6 = vpop.permute.xlu1 %9446 }
 0x614   :  { %21569 = vst [vmem:[#allocation59_spill] sm:$0xff] %v18887_v10 }
 0x616   :  { %10779 = vrot.lane.b32.xlu0 %v18679_v31, %s15651_s16  ;;  %10490 = vrot.lane.b32.xlu1 %v18682_v29, %s15650_s10 }
 0x617   :  { %v18895_v58 = vpop.permute.xlu0 %9719  ;;  %v18897_v0 = vpop.permute.xlu1 %9705 }
 0x618   :  { %21570 = vst [vmem:[#allocation60_spill] sm:$0xff] %v18895_v58  ;;  %21571 = vst [vmem:[#allocation61_spill] sm:$0xff] %v18897_v0  ;;  %v8939_v0 = vsel %vm1525_vm7, %v18693_v32, %v18789_v59 }
 0x61a   :  { %11026 = vrot.lane.b32.xlu0 %v18521_v4, %s15652_s30  ;;  %10506 = vrot.lane.b32.xlu1 %v18691_v52, %s15650_s10 }
 0x61b   :  { %v18903_v42 = vpop.permute.xlu0 %10205  ;;  %v18905_v15 = vpop.permute.xlu1 %9721 }
 0x61c   :  { %21572 = vst [vmem:[#allocation62_spill] sm:$0xff] %v18903_v42  ;;  %21573 = vst [vmem:[#allocation63_spill] sm:$0xff] %v18905_v15 }
 0x61e   :  { %11034 = vrot.lane.b32.xlu0 %v18575_v63, %s15652_s30  ;;  %11044 = vrot.lane.b32.xlu1 %v18533_v57, %s15652_s30 }
 0x61f   :  { %v18911_v10 = vpop.permute.xlu0 %10221  ;;  %v18913_v58 = vpop.permute.xlu1 %10207 }
 0x620   :  { %21574 = vst [vmem:[#allocation64_spill] sm:$0xff] %v18911_v10  ;;  %21575 = vst [vmem:[#allocation65_spill] sm:$0xff] %v18913_v58 }
 0x622   :  { %11042 = vrot.lane.b32.xlu0 %v18525_v12, %s15652_s30  ;;  %11052 = vrot.lane.b32.xlu1 %v18589_v16, %s15652_s30  ;;  %v8948_v12 = vsel %vm1525_vm7, %v18695_v14, %v18791_v44  ;;  %v8947_v16 = vsel %vm1525_vm7, %v18684_v49, %v18771_v54 }
 0x623   :  { %v8988_v4 = vpop.permute.xlu0 %8987  ;;  %v18919_v42 = vpop.permute.xlu1 %10223 }
 0x624   :  { %21576 = vst [vmem:[#allocation66_spill] sm:$0xff] %v18919_v42  ;;  %v9017_v15 = vsel %vm1776_vm8, %v8980_v3, %v8988_v4 }
 0x626   :  { %11050 = vrot.lane.b32.xlu0 %v18581_v48, %s15652_s30  ;;  %10765 = vrot.lane.b32.xlu1 %v18682_v29, %s15651_s16  ;;  %v9032_v48 = vmul.f32 %v9017_v15, %v21563_v17 }
 0x627   :  { %v9004_v10 = vpop.permute.xlu0 %9003  ;;  %v8990_v58 = vpop.permute.xlu1 %8989 }
 0x628   :  { %v9018_v42 = vsel %vm1776_vm8, %v18851_v47, %v8990_v58  ;;  %v9014_v63 = vsel %vm1776_vm8, %v8990_v58, %v8998_v26  ;;  %v9009_v2 = vsel %vm1776_vm8, %v8996_v9, %v9004_v10  ;;  %v9021_v15 = vsel %vm1776_vm8, %v9004_v10, %v8980_v3 }
 0x629   :  { %v9036_v57 = vmul.f32 %v9018_v42, %v21563_v17  ;;  %v8960_v42 = vmul.f32 %v8948_v12, %v17491_v40  ;;  %v8940_v58 = vsel %vm1525_vm7, %v18703_v53, %v18799_v38  ;;  %v9013_v17 = vsel %vm1776_vm8, %v8988_v4, %v8996_v9 }
 0x62a   :  { %11030 = vrot.lane.b32.xlu0 %v18623_v8, %s15652_s30  ;;  %10781 = vrot.lane.b32.xlu1 %v18691_v52, %s15651_s16  ;;  %v8952_v12 = vsel %vm1525_vm7, %v18799_v38, %v18695_v14  ;;  %v9037_v3 = vmul.f32 %v9014_v63, %v17330_v34  ;;  %v9031_v9 = vmul.f32 %v9021_v15, %v17308_v23 }
 0x62b   :  { %v18965_v44 = vpop.permute.xlu0 %10476  ;;  %v9006_v5 = vpop.permute.xlu1 %9005  ;;  %v14500_v10 = vpack.c.bf16 %v9036_v57, %v9032_v48  ;;  %v8943_v63 = vsel %vm1525_vm7, %v18771_v54, %v18693_v32  ;;  %v8962_v14 = vmul.f32 %v8940_v58, %v17502_v36  ;;  %v9033_v38 = vmul.f32 %v9013_v17, %v17330_v34 }
 0x62c   :  { %21577 = vst [vmem:[#allocation67_spill] sm:$0xff] %v18965_v44  ;;  %v9010_v53 = vsel %vm1776_vm8, %v8998_v26, %v9006_v5  ;;  %v9022_v4 = vsel %vm1776_vm8, %v9006_v5, %v18851_v47  ;;  %v9034_v44 = vmul.f32 %v9009_v2, %v17315_v27  ;;  %v8951_v26 = vsel %vm1525_vm7, %v18789_v59, %v18684_v49  ;;  %v21578_v5 = vld [vmem:[#allocation42_spill] sm:$0xff]  ;;  %v21579_v59 = vld [vmem:[#allocation41_spill] sm:$0xff] }
 0x62d   :  { %v9035_v57 = vmul.f32 %v9022_v4, %v17308_v23  ;;  %v9038_v48 = vmul.f32 %v9010_v53, %v17315_v27  ;;  %14501 = vmatprep.subr.bf16.mxu0 %v14500_v10  ;;  %v8956_v2 = vmul.f32 %v8947_v16, %v17491_v40  ;;  %v8959_v47 = vmul.f32 %v8952_v12, %v21578_v5  ;;  %v14144_v12 = vld [vmem:[%s21260_s4 + $0x20] sm:$0xff] }
 0x62e   :  { %11038 = vrot.lane.b32.xlu0 %v18672_v25, %s15652_s30  ;;  %11032 = vrot.lane.b32.xlu1 %v18631_v20, %s15652_s30  ;;  %v8958_v49 = vmul.f32 %v8939_v0, %v17502_v36  ;;  %v8961_v58 = vmul.f32 %v8944_v56, %v21579_v59  ;;  %v14510_v17 = vpack.c.bf16 %v9037_v3, %v9033_v38 }
 0x62f   :  { %v14502_v15 = vpack.c.bf16 %v9035_v57, %v9031_v9  ;;  %v8920_v54 = vpop.permute.xlu0 %8919  ;;  %v18997_v32 = vpop.permute.xlu1 %10478  ;;  %v14508_v10 = vpack.c.bf16 %v9038_v48, %v9034_v44  ;;  %v8955_v53 = vmul.f32 %v8951_v26, %v21578_v5  ;;  %v14512_v16 = vpack.c.bf16 %v8960_v42, %v8956_v2  ;;  %v14145_v9 = vld [vmem:[%s21260_s4 + $0x28] sm:$0xff] }
 0x630   :  { %v8957_v4 = vmul.f32 %v8943_v63, %v21579_v59  ;;  %v14520_v44 = vpack.c.bf16 %v8962_v14, %v8958_v49  ;;  %v8949_v57 = vsel %vm1525_vm7, %v18857_v51, %v8920_v54  ;;  %v9465_v48 = vsel %vm2027_vm9, %v18711_v35, %v18807_v24  ;;  %v14146_v49 = vld [vmem:[%s21260_s4 + $0x30] sm:$0xff] }
 0x631   :  { %14503 = vmatpush1.bf16.msra.mxu0 %v14502_v15  ;;  %14509 = vmatprep.subr.bf16.mxu1 %v14508_v10  ;;  %v14514_v0 = vpack.c.bf16 %v8959_v47, %v8955_v53  ;;  %v9464_v14 = vsel %vm2027_vm9, %v18701_v43, %v18797_v37  ;;  %v9456_v2 = vsel %vm2027_vm9, %v18709_v21, %v18805_v39 }
 0x632   :  { %11046 = vrot.lane.b32.xlu0 %v18629_v11, %s15652_s30  ;;  %14511 = vmatpush1.bf16.msra.mxu1 %v14510_v17  ;;  %v14522_v42 = vpack.c.bf16 %v8961_v58, %v8957_v4  ;;  %v8964_v47 = vmul.f32 %v8949_v57, %v17491_v40  ;;  %v21580_v58 = vld [vmem:[#allocation45_spill] sm:$0xff] }
 0x633   :  { %11048 = vrot.lane.b32.xlu1 %v18637_v62, %s15652_s30  ;;  %14513 = vmatprep.subr.bf16.mxu0 %v14512_v16  ;;  %v8936_v56 = vpop.permute.xlu0 %8935  ;;  %v19010_v3 = vpop.permute.xlu1 %10486  ;;  %v9477_v17 = vmul.f32 %v9465_v48, %v21580_v58 }
 0x634   :  { %14521 = vmatprep.subr.bf16.mxu1 %v14520_v44  ;;  %14148 = vmatmul.mubr.msk.f32.vlgmr.msra.gmra.mrb[16].mxu0 %vm6472_vm2, %v14144_v12  ;;  %v8953_v15 = vsel %vm1525_vm7, %v8936_v56, %v18857_v51  ;;  %v8941_v53 = vsel %vm1525_vm7, %v18863_v55, %v8936_v56  ;;  %v9457_v51 = vsel %vm2027_vm9, %v18719_v61, %v18815_v19 }
 0x635   :  { %14152 = vmatmul.mubr.msk.f32.vlgmr.msra.gmra.mrb[16].mxu1 %vm6472_vm2, %v14144_v12  ;;  %14515 = vmatpush1.bf16.msra.mxu0 %v14514_v0  ;;  %v9469_v12 = vsel %vm2027_vm9, %v18815_v19, %v18711_v35  ;;  %v8945_v56 = vsel %vm1525_vm7, %v8920_v54, %v18863_v55  ;;  %v8966_v19 = vmul.f32 %v8941_v53, %v17502_v36  ;;  %v14147_v54 = vld [vmem:[%s21260_s4 + $0x38] sm:$0xff] }
 0x636   :  { %11054 = vrot.lane.b32.xlu0 %v18679_v31, %s15652_s30  ;;  %14523 = vmatpush1.bf16.msra.mxu1 %v14522_v42  ;;  %v8963_v42 = vmul.f32 %v8953_v15, %v21578_v5  ;;  %v8965_v15 = vmul.f32 %v8945_v56, %v21579_v59 }
 0x637   :  { %11040 = vrot.lane.b32.xlu1 %v18682_v29, %s15652_s30  ;;  %v19028_v63 = vpop.permute.xlu0 %9436  ;;  %9126 = vmatprep.mubr.f32.mxu0 %v21490_v28  ;;  %v8922_v26 = vpop.permute.xlu1 %8921 }
 0x638   :  { %v8950_v38 = vsel %vm1525_vm7, %v18865_v30, %v8922_v26  ;;  %14149 = vmatmul.mubr.msk.f32.gmra.mrb[18].mxu0 %vm6472_vm2, %v14145_v9  ;;  %9215 = vmatprep.mubr.f32.mxu1 %v21490_v28  ;;  %v8946_v16 = vsel %vm1525_vm7, %v8922_v26, %v18873_v50  ;;  %v21581_v26 = vld [vmem:[#allocation47_spill] sm:$0xff] }
 0x639   :  { %v8968_v10 = vmul.f32 %v8950_v38, %v17491_v40  ;;  %14153 = vmatmul.mubr.msk.f32.gmra.mrb[18].mxu1 %vm6472_vm2, %v14145_v9  ;;  %9132 = vmatprep.mubr.f32.mxu0 %v21490_v28  ;;  %v8969_v57 = vmul.f32 %v8946_v16, %v21579_v59  ;;  %v9479_v38 = vmul.f32 %v9457_v51, %v21581_v26 }
 0x63a   :  { %9221 = vmatprep.mubr.f32.mxu1 %v21490_v28 }
 0x63b   :  { %11056 = vrot.lane.b32.xlu1 %v18691_v52, %s15652_s30  ;;  %v19071_v4 = vpop.permute.xlu0 %9452  ;;  %v8938_v44 = vpop.permute.xlu1 %8937  ;;  %v14516_v0 = vpack.c.bf16 %v8968_v10, %v8964_v47  ;;  %v9461_v47 = vsel %vm2027_vm9, %v18807_v24, %v18719_v61  ;;  %v9460_v61 = vsel %vm2027_vm9, %v18797_v37, %v18709_v21  ;;  %v14526_v24 = vpack.c.bf16 %v8969_v57, %v8965_v15  ;;  %v8973_v15 = vld [vmem:[%s21260_s4 + $0x10] sm:$0xff] }
 0x63c   :  { %v8942_v9 = vsel %vm1525_vm7, %v18873_v50, %v8938_v44  ;;  %v8954_v35 = vsel %vm1525_vm7, %v8938_v44, %v18865_v30  ;;  %14150 = vmatmul.mubr.msk.f32.gmra.mrb[20].mxu0 %vm6472_vm2, %v14146_v49  ;;  %v9473_v50 = vmul.f32 %v9464_v14, %v21580_v58  ;;  %v9468_v30 = vsel %vm2027_vm9, %v18805_v39, %v18701_v43 }
 0x63d   :  { %v8967_v48 = vmul.f32 %v8954_v35, %v21578_v5  ;;  %v8970_v55 = vmul.f32 %v8942_v9, %v17502_v36  ;;  %14517 = vmatprep.subr.bf16.mxu0 %v14516_v0  ;;  %14154 = vmatmul.mubr.msk.f32.gmra.mrb[20].mxu1 %vm6472_vm2, %v14146_v49  ;;  %v9475_v39 = vmul.f32 %v9456_v2, %v21581_v26  ;;  %v21582_v49 = vld [vmem:[#allocation46_spill] sm:$0xff]  ;;  %v21583_v0 = vld [vmem:[#allocation48_spill] sm:$0xff] }
 0x63e   :  { %9138 = vmatprep.mubr.f32.mxu0 %v21490_v28  ;;  %9227 = vmatprep.mubr.f32.mxu1 %v21490_v28  ;;  %v9476_v16 = vmul.f32 %v9469_v12, %v21582_v49  ;;  %v14528_v51 = vpack.c.bf16 %v9477_v17, %v9473_v50  ;;  %v9472_v44 = vmul.f32 %v9468_v30, %v21582_v49  ;;  %v8971_v17 = vld [vmem:[%s21260_s4] sm:$0xff] }
 0x63f   :  { %v14518_v10 = vpack.c.bf16 %v8967_v48, %v8963_v42  ;;  %v19105_v14 = vpop.permute.xlu0 %9711  ;;  %v19107_v53 = vpop.permute.xlu1 %10494  ;;  %v14524_v43 = vpack.c.bf16 %v8970_v55, %v8966_v19  ;;  %v9478_v56 = vmul.f32 %v9461_v47, %v21583_v0  ;;  %v14536_v2 = vpack.c.bf16 %v9479_v38, %v9475_v39  ;;  %v8972_v19 = vld [vmem:[%s21260_s4 + $0x8] sm:$0xff] }
 0x640   :  { %14151 = vmatmul.mubr.msk.f32.gmra.mrb[22].mxu0 %vm6472_vm2, %v14147_v54  ;;  %v9474_v37 = vmul.f32 %v9460_v61, %v21583_v0  ;;  %v14530_v42 = vpack.c.bf16 %v9476_v16, %v9472_v44  ;;  %v9466_v35 = vsel %vm2027_vm9, %v18871_v46, %v19028_v63  ;;  %v9458_v38 = vsel %vm2027_vm9, %v18879_v45, %v19071_v4  ;;  %v21584_v16 = vld [vmem:[#allocation49_spill] sm:$0xff]  ;;  %v21585_v61 = vld [vmem:[#allocation55_spill] sm:$0xff] }
 0x641   :  { %14519 = vmatpush1.bf16.msra.mxu0 %v14518_v10  ;;  %14525 = vmatprep.subr.bf16.mxu1 %v14524_v43  ;;  %v9481_v50 = vmul.f32 %v9466_v35, %v21580_v58  ;;  %v9470_v47 = vsel %vm2027_vm9, %v19071_v4, %v18871_v46  ;;  %v9739_v10 = vsel %vm2780_vm12, %v18717_v22, %v18813_v33 }
 0x642   :  { %14155 = vmatmul.mubr.msk.f32.gmra.mrb[22].mxu1 %vm6472_vm2, %v14147_v54  ;;  %14529 = vmatprep.subr.bf16.mxu0 %v14528_v51  ;;  %v14538_v9 = vpack.c.bf16 %v9478_v56, %v9474_v37  ;;  %v9740_v54 = vsel %vm2780_vm12, %v18727_v18, %v18823_v41  ;;  %v9731_v43 = vsel %vm2780_vm12, %v18725_v13, %v18821_v60 }
 0x643   :  { %14527 = vmatpush1.bf16.msra.mxu1 %v14526_v24  ;;  %v19123_v12 = vpop.permute.xlu0 %9727  ;;  %9310 = vmatprep.mubr.f32.mxu0 %v21490_v28  ;;  %v19126_v21 = vpop.permute.xlu1 %10502  ;;  %v9752_v51 = vmul.f32 %v9740_v54, %v21584_v16  ;;  %v21586_v24 = vld [vmem:[#allocation39_spill] sm:$0xff]  ;;  %v9744_v56 = vsel %vm2780_vm12, %v21585_v61, %v18727_v18  ;;  %v9480_v37 = vmul.f32 %v9470_v47, %v21582_v49 }
 0x644   :  { %14537 = vmatprep.subr.bf16.mxu1 %v14536_v2  ;;  %14156 = vmatmul.mubr.msk.f32.vlgmr.msra.gmra.mrb[16].mxu0 %vm6472_vm2, %v8971_v17  ;;  %v9732_v44 = vsel %vm2780_vm12, %v21586_v24, %v21585_v61  ;;  %v9462_v2 = vsel %vm2027_vm9, %v19028_v63, %v18879_v45  ;;  %v21589_v61 = vld [vmem:[#allocation50_spill] sm:$0xff] }
 0x645   :  { %9399 = vmatprep.mubr.f32.mxu1 %v21490_v28  ;;  %14531 = vmatpush1.bf16.msra.mxu0 %v14530_v42  ;;  %v9483_v42 = vmul.f32 %v9458_v38, %v21581_v26  ;;  %v9482_v38 = vmul.f32 %v9462_v2, %v21583_v0 }
 0x646   :  { %14160 = vmatmul.mubr.msk.f32.vlgmr.msra.gmra.mrb[16].mxu1 %vm6472_vm2, %v8971_v17  ;;  %9316 = vmatprep.mubr.f32.mxu0 %v21490_v28 }
 0x647   :  { %v19139_v57 = vpop.permute.xlu0 %10213  ;;  %v9439_v48 = vpop.permute.xlu1 %9438  ;;  %14539 = vmatpush1.bf16.msra.mxu1 %v14538_v9  ;;  %9405 = vmatprep.mubr.f32.mxu1 %v21490_v28 }
 0x648   :  { %v9467_v55 = vsel %vm2027_vm9, %v18881_v1, %v9439_v48  ;;  %14157 = vmatmul.mubr.msk.f32.gmra.mrb[18].mxu0 %vm6472_vm2, %v8972_v19  ;;  %v9463_v46 = vsel %vm2027_vm9, %v9439_v48, %v18889_v6  ;;  %v9736_v48 = vsel %vm2780_vm12, %v18823_v41, %v21586_v24 }
 0x649   :  { %v9485_v30 = vmul.f32 %v9467_v55, %v21580_v58  ;;  %9322 = vmatprep.mubr.f32.mxu0 %v21490_v28  ;;  %v9486_v35 = vmul.f32 %v9463_v46, %v21583_v0  ;;  %v21587_v55 = vld [vmem:[#allocation52_spill] sm:$0xff]  ;;  %v9753_v24 = vmul.f32 %v9736_v48, %v21589_v61 }
 0x64a   :  { %14161 = vmatmul.mubr.msk.f32.gmra.mrb[18].mxu1 %vm6472_vm2, %v8972_v19  ;;  %v8974_v19 = vld [vmem:[%s21260_s4 + $0x18] sm:$0xff]  ;;  %v9754_v54 = vmul.f32 %v9732_v44, %v21587_v55  ;;  %v9750_v41 = vmul.f32 %v9731_v43, %v21587_v55 }
 0x64b   :  { %v19177_v4 = vpop.permute.xlu0 %10229  ;;  %v14532_v39 = vpack.c.bf16 %v9485_v30, %v9481_v50  ;;  %v9455_v17 = vpop.permute.xlu1 %9454  ;;  %9411 = vmatprep.mubr.f32.mxu1 %v21490_v28  ;;  %v21588_v50 = vld [vmem:[#allocation51_spill] sm:$0xff]  ;;  %v14542_v44 = vpack.c.bf16 %v9486_v35, %v9482_v38 }
 0x64c   :  { %v9459_v9 = vsel %vm2027_vm9, %v18889_v6, %v9455_v17  ;;  %v9471_v18 = vsel %vm2027_vm9, %v9455_v17, %v18881_v1  ;;  %14158 = vmatmul.mubr.msk.f32.gmra.mrb[20].mxu0 %vm6472_vm2, %v8973_v15  ;;  %v9748_v6 = vmul.f32 %v9739_v10, %v21584_v16  ;;  %v9743_v1 = vsel %vm2780_vm12, %v18821_v60, %v18717_v22  ;;  %v21593_v38 = vld [vmem:[#allocation63_spill] sm:$0xff] }
 0x64d   :  { %v9484_v45 = vmul.f32 %v9471_v18, %v21582_v49  ;;  %v9487_v63 = vmul.f32 %v9459_v9, %v21581_v26  ;;  %14533 = vmatprep.subr.bf16.mxu0 %v14532_v39  ;;  %9328 = vmatprep.mubr.f32.mxu0 %v21490_v28  ;;  %v9751_v30 = vmul.f32 %v9744_v56, %v21588_v50  ;;  %v14164_v56 = vld [vmem:[%s21260_s4 + $0x40] sm:$0xff] }
 0x64e   :  { %14162 = vmatmul.mubr.msk.f32.gmra.mrb[20].mxu1 %vm6472_vm2, %v8973_v15  ;;  %v9735_v60 = vsel %vm2780_vm12, %v18813_v33, %v18725_v13  ;;  %v14544_v15 = vpack.c.bf16 %v9752_v51, %v9748_v6  ;;  %v9747_v39 = vmul.f32 %v9743_v1, %v21588_v50  ;;  %v14552_v13 = vpack.c.bf16 %v9754_v54, %v9750_v41  ;;  %v21592_v1 = vld [vmem:[#allocation60_spill] sm:$0xff]  ;;  %v21595_v41 = vld [vmem:[#allocation26_spill] sm:$0xff] }
 0x64f   :  { %v14534_v47 = vpack.c.bf16 %v9484_v45, %v9480_v37  ;;  %v19222_v10 = vpop.permute.xlu0 %10484  ;;  %9417 = vmatprep.mubr.f32.mxu1 %v21490_v28  ;;  %v14540_v22 = vpack.c.bf16 %v9487_v63, %v9483_v42  ;;  %v9749_v33 = vmul.f32 %v9735_v60, %v21589_v61  ;;  %v14165_v37 = vld [vmem:[%s21260_s4 + $0x48] sm:$0xff]  ;;  %v21590_v42 = vld [vmem:[#allocation59_spill] sm:$0xff]  ;;  %v9733_v48 = vsel %vm2780_vm12, %v21592_v1, %v19123_v12  ;;  %v21594_v60 = vld [vmem:[#allocation24_spill] sm:$0xff] }
 0x650   :  { %v19224_v46 = vpop.permute.xlu1 %10482  ;;  %14159 = vmatmul.mubr.msk.f32.gmra.mrb[22].mxu0 %vm6472_vm2, %v8974_v19  ;;  %v14546_v43 = vpack.c.bf16 %v9751_v30, %v9747_v39  ;;  %v9741_v9 = vsel %vm2780_vm12, %v21590_v42, %v19105_v14  ;;  %v21591_v45 = vld [vmem:[#allocation61_spill] sm:$0xff]  ;;  %v9745_v54 = vsel %vm2780_vm12, %v19123_v12, %v21590_v42  ;;  %v9737_v12 = vsel %vm2780_vm12, %v19105_v14, %v21592_v1 }
 0x651   :  { %14535 = vmatpush1.bf16.msra.mxu0 %v14534_v47  ;;  %14541 = vmatprep.subr.bf16.mxu1 %v14540_v22  ;;  %v14554_v17 = vpack.c.bf16 %v9753_v24, %v9749_v33  ;;  %v9756_v6 = vmul.f32 %v9741_v9, %v21584_v16  ;;  %v21598_v33 = vld [vmem:[#allocation17_spill] sm:$0xff]  ;;  %v9758_v42 = vmul.f32 %v9733_v48, %v21587_v55 }
 0x652   :  { %14163 = vmatmul.mubr.msk.f32.gmra.mrb[22].mxu1 %vm6472_vm2, %v8974_v19  ;;  %14545 = vmatprep.subr.bf16.mxu0 %v14544_v15  ;;  %v14166_v19 = vld [vmem:[%s21260_s4 + $0x50] sm:$0xff]  ;;  %v9978_v15 = vmul.f32 %v21595_v41, %v21594_v60 }
 0x653   :  { %14543 = vmatpush1.bf16.msra.mxu1 %v14542_v44  ;;  %9569 = vmatprep.mubr.f32.mxu0 %v21490_v28  ;;  %v21596_v44 = vld [vmem:[#allocation16_spill] sm:$0xff] }
 0x654   :  { %v19240_v51 = vpop.permute.xlu0 %10492  ;;  %14553 = vmatprep.subr.bf16.mxu1 %v14552_v13  ;;  %v19243_v2 = vpop.permute.xlu1 %10498  ;;  %14168 = vmatmul.mubr.msk.f32.vlgmr.msra.gmra.mrb[16].mxu0 %vm6472_vm2, %v14164_v56 }
 0x655   :  { %9658 = vmatprep.mubr.f32.mxu1 %v21490_v28  ;;  %14547 = vmatpush1.bf16.msra.mxu0 %v14546_v43  ;;  %v21599_v43 = vld [vmem:[#allocation21_spill] sm:$0xff] }
 0x656   :  { %14172 = vmatmul.mubr.msk.f32.vlgmr.msra.gmra.mrb[16].mxu1 %vm6472_vm2, %v14164_v56  ;;  %9575 = vmatprep.mubr.f32.mxu0 %v21490_v28  ;;  %v21597_v56 = vld [vmem:[#allocation28_spill] sm:$0xff] }
 0x657   :  { %14555 = vmatpush1.bf16.msra.mxu1 %v14554_v17  ;;  %9664 = vmatprep.mubr.f32.mxu1 %v21490_v28  ;;  %v9979_v13 = vmul.f32 %v21597_v56, %v21596_v44  ;;  %v19295_v17 = vmul.f32 %v21599_v43, %v21598_v33  ;;  %v9757_v56 = vmul.f32 %v9737_v12, %v21589_v61  ;;  %v21606_v12 = vld [vmem:[#allocation53_spill] sm:$0xff] }
 0x658   :  { %v19256_v18 = vpop.permute.xlu0 %10500  ;;  %v9714_v35 = vpop.permute.xlu1 %9713  ;;  %14169 = vmatmul.mubr.msk.f32.gmra.mrb[18].mxu0 %vm6472_vm2, %v14165_v37 }
 0x659   :  { %v9742_v63 = vsel %vm2780_vm12, %v21591_v45, %v9714_v35  ;;  %9581 = vmatprep.mubr.f32.mxu0 %v21490_v28  ;;  %v9738_v47 = vsel %vm2780_vm12, %v9714_v35, %v21593_v38  ;;  %v14167_v35 = vld [vmem:[%s21260_s4 + $0x58] sm:$0xff] }
 0x65a   :  { %v9760_v30 = vmul.f32 %v9742_v63, %v21584_v16  ;;  %14173 = vmatmul.mubr.msk.f32.gmra.mrb[18].mxu1 %vm6472_vm2, %v14165_v37  ;;  %v9755_v37 = vmul.f32 %v9745_v54, %v21588_v50  ;;  %v9761_v63 = vmul.f32 %v9738_v47, %v21589_v61 }
 0x65b   :  { %9670 = vmatprep.mubr.f32.mxu1 %v21490_v28 }
 0x65c   :  { %v19281_v22 = vpop.permute.xlu0 %10480  ;;  %v9730_v39 = vpop.permute.xlu1 %9729  ;;  %14170 = vmatmul.mubr.msk.f32.gmra.mrb[20].mxu0 %vm6472_vm2, %v14166_v19  ;;  %v14548_v24 = vpack.c.bf16 %v9760_v30, %v9756_v6  ;;  %v21601_v30 = vld [vmem:[#allocation25_spill] sm:$0xff]  ;;  %v14558_v59 = vpack.c.bf16 %v9761_v63, %v9757_v56  ;;  %v21610_v56 = vld [vmem:[#allocation44_spill] sm:$0xff] }
 0x65d   :  { %v9734_v9 = vsel %vm2780_vm12, %v21593_v38, %v9730_v39  ;;  %v9746_v14 = vsel %vm2780_vm12, %v9730_v39, %v21591_v45  ;;  %9587 = vmatprep.mubr.f32.mxu0 %v21490_v28  ;;  %v21600_v45 = vld [vmem:[#allocation30_spill] sm:$0xff]  ;;  %v21602_v38 = vld [vmem:[#allocation35_spill] sm:$0xff]  ;;  %v21603_v39 = vld [vmem:[#allocation29_spill] sm:$0xff]  ;;  %v9989_v63 = vmul.f32 %v18691_v52, %v21601_v30 }
 0x65e   :  { %v9759_v6 = vmul.f32 %v9746_v14, %v21588_v50  ;;  %v9762_v1 = vmul.f32 %v9734_v9, %v21587_v55  ;;  %14174 = vmatmul.mubr.msk.f32.gmra.mrb[20].mxu1 %vm6472_vm2, %v14166_v19  ;;  %14549 = vmatprep.subr.bf16.mxu0 %v14548_v24  ;;  %v9975_v54 = vmul.f32 %v21600_v45, %v21596_v44  ;;  %v21604_v24 = vld [vmem:[#allocation20_spill] sm:$0xff]  ;;  %v21605_v45 = vld [vmem:[#allocation18_spill] sm:$0xff] }
 0x65f   :  { %9676 = vmatprep.mubr.f32.mxu1 %v21490_v28  ;;  %v9981_v41 = vmul.f32 %v21602_v38, %v21601_v30  ;;  %v9974_v47 = vmul.f32 %v21603_v39, %v21594_v60  ;;  %v9976_v14 = vmul.f32 %v21604_v24, %v21598_v33  ;;  %v9977_v38 = vmul.f32 %v21605_v45, %v21601_v30  ;;  %v21614_v45 = vld [vmem:[#allocation56_spill] sm:$0xff] }
 0x660   :  { %v19313_v48 = vpop.permute.xlu0 %10488  ;;  %v14550_v43 = vpack.c.bf16 %v9759_v6, %v9755_v37  ;;  %v19323_v9 = vpop.permute.xlu1 %10753  ;;  %14171 = vmatmul.mubr.msk.f32.gmra.mrb[22].mxu0 %vm6472_vm2, %v14167_v35  ;;  %v14556_v19 = vpack.c.bf16 %v9762_v1, %v9758_v42  ;;  %v14560_v0 = vpack.c.bf16 %v9979_v13, %v9975_v54  ;;  %v9987_v39 = vmul.f32 %v18682_v29, %v21596_v44  ;;  %v21607_v37 = vld [vmem:[#allocation57_spill] sm:$0xff]  ;;  %v14176_v13 = vld [vmem:[%s21260_s4 + $0x60] sm:$0xff]  ;;  %v21608_v54 = vld [vmem:[#allocation38_spill] sm:$0xff] }
 0x661   :  { %9844 = vmatprep.mubr.f32.mxu0 %v21490_v28  ;;  %v14562_v58 = vpack.c.bf16 %v9978_v15, %v9974_v47  ;;  %v10238_v6 = vsel %vm3269_vm13, %v21607_v37, %v21606_v12  ;;  %v14570_v42 = vpack.c.bf16 %v19295_v17, %v9976_v14  ;;  %v14568_v29 = vpack.c.bf16 %v9981_v41, %v9977_v38  ;;  %v21612_v41 = vld [vmem:[#allocation32_spill] sm:$0xff]  ;;  %v21613_v14 = vld [vmem:[#allocation37_spill] sm:$0xff] }
 0x662   :  { %14175 = vmatmul.mubr.msk.f32.gmra.mrb[22].mxu1 %vm6472_vm2, %v14167_v35  ;;  %14551 = vmatpush1.bf16.msra.mxu0 %v14550_v43  ;;  %v9983_v1 = vmul.f32 %v18672_v25, %v21596_v44  ;;  %v21609_v35 = vld [vmem:[#allocation54_spill] sm:$0xff]  ;;  %v9986_v25 = vmul.f32 %v18631_v20, %v21594_v60  ;;  %v10254_v52 = vmul.f32 %v10238_v6, %v21612_v41  ;;  %v14177_v20 = vld [vmem:[%s21260_s4 + $0x68] sm:$0xff]  ;;  %v21615_v6 = vld [vmem:[#allocation27_spill] sm:$0xff] }
 0x663   :  { %14557 = vmatprep.subr.bf16.mxu1 %v14556_v19  ;;  %14561 = vmatprep.subr.bf16.mxu0 %v14560_v0  ;;  %v10237_v47 = vsel %vm3269_vm13, %v21609_v35, %v21608_v54  ;;  %v21611_v43 = vld [vmem:[#allocation58_spill] sm:$0xff]  ;;  %v9985_v24 = vmul.f32 %v18679_v31, %v21601_v30  ;;  %v9982_v38 = vmul.f32 %v18623_v8, %v21594_v60 }
 0x664   :  { %v19342_v15 = vpop.permute.xlu0 %10496  ;;  %v10246_v17 = vsel %vm3269_vm13, %v21611_v43, %v21610_v56  ;;  %14559 = vmatpush1.bf16.msra.mxu1 %v14558_v59  ;;  %v19356_v0 = vpop.permute.xlu1 %10761  ;;  %9933 = vmatprep.mubr.f32.mxu1 %v21490_v28  ;;  %v14564_v19 = vpack.c.bf16 %v9987_v39, %v9983_v1  ;;  %v10245_v59 = vsel %vm3269_vm13, %v21614_v45, %v21613_v14 }
 0x665   :  { %14569 = vmatprep.subr.bf16.mxu1 %v14568_v29  ;;  %14180 = vmatmul.mubr.msk.f32.vlgmr.msra.gmra.mrb[16].mxu0 %vm6472_vm2, %v14176_v13  ;;  %v9988_v39 = vmul.f32 %v18637_v62, %v21598_v33  ;;  %v10250_v31 = vmul.f32 %v10237_v47, %v21612_v41  ;;  %v10256_v29 = vmul.f32 %v10246_v17, %v21615_v6 }
 0x666   :  { %14563 = vmatpush1.bf16.msra.mxu0 %v14562_v58  ;;  %9850 = vmatprep.mubr.f32.mxu0 %v21490_v28  ;;  %v14572_v1 = vpack.c.bf16 %v9989_v63, %v9985_v24  ;;  %v14566_v44 = vpack.c.bf16 %v9986_v25, %v9982_v38  ;;  %v9984_v8 = vmul.f32 %v18629_v11, %v21598_v33  ;;  %v14179_v25 = vld [vmem:[%s21260_s4 + $0x78] sm:$0xff] }
 0x667   :  { %14184 = vmatmul.mubr.msk.f32.vlgmr.msra.gmra.mrb[16].mxu1 %vm6472_vm2, %v14176_v13  ;;  %14565 = vmatprep.subr.bf16.mxu0 %v14564_v19  ;;  %v10252_v62 = vmul.f32 %v10245_v59, %v21615_v6  ;;  %v14576_v47 = vpack.c.bf16 %v10254_v52, %v10250_v31  ;;  %v10241_v52 = vsel %vm3269_vm13, %v21613_v14, %v21609_v35 }
 0x668   :  { %v19380_v58 = vpop.permute.xlu0 %10504  ;;  %14571 = vmatpush1.bf16.msra.mxu1 %v14570_v42  ;;  %v19382_v30 = vpop.permute.xlu1 %10769  ;;  %9939 = vmatprep.mubr.f32.mxu1 %v21490_v28  ;;  %v14574_v13 = vpack.c.bf16 %v9988_v39, %v9984_v8  ;;  %v14178_v42 = vld [vmem:[%s21260_s4 + $0x70] sm:$0xff]  ;;  %v10234_v19 = vsel %vm3269_vm13, %v21606_v12, %v21611_v43  ;;  %v10233_v35 = vsel %vm3269_vm13, %v21608_v54, %v21614_v45  ;;  %v21617_v12 = vld [vmem:[#allocation31_spill] sm:$0xff]  ;;  %v21619_v8 = vld [vmem:[#allocation64_spill] sm:$0xff] }
 0x669   :  { %14573 = vmatprep.subr.bf16.mxu1 %v14572_v1  ;;  %14181 = vmatmul.mubr.msk.f32.gmra.mrb[18].mxu0 %vm6472_vm2, %v14177_v20  ;;  %v14584_v11 = vpack.c.bf16 %v10256_v29, %v10252_v62  ;;  %v10255_v43 = vmul.f32 %v10234_v19, %v21617_v12  ;;  %v10251_v39 = vmul.f32 %v10233_v35, %v21617_v12  ;;  %v21618_v45 = vld [vmem:[#allocation62_spill] sm:$0xff]  ;;  %v21621_v35 = vld [vmem:[#allocation65_spill] sm:$0xff] }
 0x66a   :  { %14567 = vmatpush1.bf16.msra.mxu0 %v14566_v44  ;;  %9856 = vmatprep.mubr.f32.mxu0 %v21490_v28  ;;  %v10242_v44 = vsel %vm3269_vm13, %v21610_v56, %v21607_v37  ;;  %v21616_v56 = vld [vmem:[#allocation19_spill] sm:$0xff]  ;;  %v10243_v29 = vsel %vm3269_vm13, %v21618_v45, %v19139_v57  ;;  %v10239_v62 = vsel %vm3269_vm13, %v19139_v57, %v21619_v8  ;;  %v21620_v19 = vld [vmem:[#allocation66_spill] sm:$0xff] }
 0x66b   :  { %14185 = vmatmul.mubr.msk.f32.gmra.mrb[18].mxu1 %vm6472_vm2, %v14177_v20  ;;  %14577 = vmatprep.subr.bf16.mxu0 %v14576_v47  ;;  %v10253_v24 = vmul.f32 %v10242_v44, %v21616_v56  ;;  %v10249_v14 = vmul.f32 %v10241_v52, %v21616_v56  ;;  %v14188_v20 = vld [vmem:[%s21260_s4 + $0x80] sm:$0xff]  ;;  %v14586_v1 = vpack.c.bf16 %v10255_v43, %v10251_v39  ;;  %v14189_v47 = vld [vmem:[%s21260_s4 + $0x88] sm:$0xff] }
 0x66c   :  { %v19394_v63 = vpop.permute.xlu0 %10751  ;;  %14575 = vmatpush1.bf16.msra.mxu1 %v14574_v13  ;;  %v19396_v17 = vpop.permute.xlu1 %10777  ;;  %9945 = vmatprep.mubr.f32.mxu1 %v21490_v28  ;;  %v10512_v13 = vsel %vm4022_vm0, %v19222_v10, %v19240_v51  ;;  %v10513_v57 = vsel %vm4022_vm0, %v19010_v3, %v19107_v53  ;;  %v10235_v52 = vsel %vm3269_vm13, %v21619_v8, %v19177_v4 }
 0x66d   :  { %14585 = vmatprep.subr.bf16.mxu1 %v14584_v11  ;;  %14182 = vmatmul.mubr.msk.f32.gmra.mrb[20].mxu0 %vm6472_vm2, %v14178_v42  ;;  %v14578_v31 = vpack.c.bf16 %v10253_v24, %v10249_v14  ;;  %v10257_v11 = vmul.f32 %v10243_v29, %v21616_v56  ;;  %v10247_v43 = vsel %vm3269_vm13, %v19177_v4, %v21618_v45 }
 0x66e   :  { %9862 = vmatprep.mubr.f32.mxu0 %v21490_v28  ;;  %v10259_v45 = vmul.f32 %v10235_v52, %v21617_v12  ;;  %v10260_v33 = vmul.f32 %v10247_v43, %v21615_v6 }
 0x66f   :  { %14186 = vmatmul.mubr.msk.f32.gmra.mrb[20].mxu1 %vm6472_vm2, %v14178_v42 }
 0x670   :  { %v19417_v37 = vpop.permute.xlu0 %10759  ;;  %v19420_v59 = vpop.permute.xlu1 %10757  ;;  %9951 = vmatprep.mubr.f32.mxu1 %v21490_v28 }
 0x671   :  { %14183 = vmatmul.mubr.msk.f32.gmra.mrb[22].mxu0 %vm6472_vm2, %v14179_v25 }
 0x672   :  { %10071 = vmatprep.mubr.f32.mxu0 %v21490_v28 }
 0x673   :  { %14187 = vmatmul.mubr.msk.f32.gmra.mrb[22].mxu1 %vm6472_vm2, %v14179_v25  ;;  %v10258_v25 = vmul.f32 %v10239_v62, %v21612_v41  ;;  %v10521_v62 = vsel %vm4022_vm0, %v19126_v21, %v18997_v32 }
 0x674   :  { %v19435_v38 = vpop.permute.xlu0 %10767  ;;  %v19438_v54 = vpop.permute.xlu1 %10773  ;;  %10160 = vmatprep.mubr.f32.mxu1 %v21490_v28 }
 0x675   :  { %14192 = vmatmul.mubr.msk.f32.vlgmr.msra.gmra.mrb[16].mxu0 %vm6472_vm2, %v14188_v20 }
 0x676   :  { %14579 = vmatpush1.bf16.msra.mxu0 %v14578_v31  ;;  %10077 = vmatprep.mubr.f32.mxu0 %v21490_v28 }
 0x677   :  { %14196 = vmatmul.mubr.msk.f32.vlgmr.msra.gmra.mrb[16].mxu1 %vm6472_vm2, %v14188_v20  ;;  %v21622_v20 = vld [vmem:[#allocation34_spill] sm:$0xff] }
 0x678   :  { %v19459_v42 = vpop.permute.xlu0 %10775  ;;  %14587 = vmatpush1.bf16.msra.mxu1 %v14586_v1  ;;  %v10216_v44 = vpop.permute.xlu1 %10215  ;;  %10166 = vmatprep.mubr.f32.mxu1 %v21490_v28  ;;  %v10525_v39 = vmul.f32 %v10512_v13, %v21622_v20  ;;  %v14190_v1 = vld [vmem:[%s21260_s4 + $0x90] sm:$0xff]  ;;  %v10529_v8 = vmul.f32 %v10513_v57, %v21622_v20  ;;  %v21623_v13 = vld [vmem:[#allocation67_spill] sm:$0xff] }
 0x679   :  { %v10240_v24 = vsel %vm3269_vm13, %v10216_v44, %v21620_v19  ;;  %v10244_v14 = vsel %vm3269_vm13, %v21621_v35, %v10216_v44  ;;  %14193 = vmatmul.mubr.msk.f32.gmra.mrb[18].mxu0 %vm6472_vm2, %v14189_v47  ;;  %v10520_v44 = vsel %vm4022_vm0, %v19256_v18, %v21623_v13 }
 0x67a   :  { %v10261_v31 = vmul.f32 %v10244_v14, %v21616_v56  ;;  %v10262_v29 = vmul.f32 %v10240_v24, %v21612_v41  ;;  %10083 = vmatprep.mubr.f32.mxu0 %v21490_v28  ;;  %v14592_v43 = vpack.c.bf16 %v10529_v8, %v10525_v39 }
 0x67b   :  { %14197 = vmatmul.mubr.msk.f32.gmra.mrb[18].mxu1 %vm6472_vm2, %v14189_v47  ;;  %v10516_v47 = vsel %vm4022_vm0, %v21623_v13, %v19222_v10  ;;  %v14191_v10 = vld [vmem:[%s21260_s4 + $0x98] sm:$0xff] }
 0x67c   :  { %v19496_v4 = vpop.permute.xlu0 %10755  ;;  %v14582_v24 = vpack.c.bf16 %v10261_v31, %v10257_v11  ;;  %v10232_v14 = vpop.permute.xlu1 %10231  ;;  %10172 = vmatprep.mubr.f32.mxu1 %v21490_v28  ;;  %v14580_v57 = vpack.c.bf16 %v10262_v29, %v10258_v25  ;;  %v21624_v31 = vld [vmem:[#allocation8_spill] sm:$0xff]  ;;  %v21625_v29 = vld [vmem:[#allocation33_spill] sm:$0xff] }
 0x67d   :  { %v10236_v52 = vsel %vm3269_vm13, %v21620_v19, %v10232_v14  ;;  %v10248_v60 = vsel %vm3269_vm13, %v10232_v14, %v21621_v35  ;;  %14194 = vmatmul.mubr.msk.f32.gmra.mrb[20].mxu0 %vm6472_vm2, %v14190_v1  ;;  %v10517_v19 = vsel %vm4022_vm0, %v18997_v32, %v19010_v3  ;;  %v10508_v35 = vsel %vm4022_vm0, %v19240_v51, %v19256_v18 }
 0x67e   :  { %v10263_v11 = vmul.f32 %v10236_v52, %v21617_v12  ;;  %v10264_v25 = vmul.f32 %v10248_v60, %v21615_v6  ;;  %14581 = vmatprep.subr.bf16.mxu0 %v14580_v57  ;;  %10089 = vmatprep.mubr.f32.mxu0 %v21490_v28  ;;  %v10527_v60 = vmul.f32 %v10520_v44, %v21624_v31  ;;  %v14201_v52 = vld [vmem:[%s21260_s4 + $0xa8] sm:$0xff] }
 0x67f   :  { %14198 = vmatmul.mubr.msk.f32.gmra.mrb[20].mxu1 %vm6472_vm2, %v14190_v1  ;;  %14583 = vmatpush1.bf16.msra.mxu0 %v14582_v24  ;;  %v10524_v8 = vmul.f32 %v10516_v47, %v21625_v29  ;;  %v10509_v3 = vsel %vm4022_vm0, %v19107_v53, %v19126_v21  ;;  %v10531_v51 = vmul.f32 %v10521_v62, %v21624_v31  ;;  %v21626_v1 = vld [vmem:[#allocation36_spill] sm:$0xff] }
 0x680   :  { %v19532_v39 = vpop.permute.xlu0 %10763  ;;  %v14590_v13 = vpack.c.bf16 %v10263_v11, %v10259_v45  ;;  %v19535_v14 = vpop.permute.xlu1 %11028  ;;  %14593 = vmatprep.subr.bf16.mxu0 %v14592_v43  ;;  %10178 = vmatprep.mubr.f32.mxu1 %v21490_v28  ;;  %v14588_v32 = vpack.c.bf16 %v10264_v25, %v10260_v33  ;;  %v10528_v18 = vmul.f32 %v10517_v19, %v21625_v29  ;;  %v14200_v33 = vld [vmem:[%s21260_s4 + $0xa0] sm:$0xff] }
 0x681   :  { %14195 = vmatmul.mubr.msk.f32.gmra.mrb[22].mxu0 %vm6472_vm2, %v14191_v10  ;;  %v10526_v44 = vmul.f32 %v10508_v35, %v21626_v1  ;;  %v14600_v53 = vpack.c.bf16 %v10531_v51, %v10527_v60  ;;  %v10530_v21 = vmul.f32 %v10509_v3, %v21626_v1  ;;  %v10518_v47 = vsel %vm4022_vm0, %v19281_v22, %v19313_v48  ;;  %v14202_v51 = vld [vmem:[%s21260_s4 + $0xb0] sm:$0xff] }
 0x682   :  { %14589 = vmatprep.subr.bf16.mxu1 %v14588_v32  ;;  %10346 = vmatprep.mubr.f32.mxu0 %v21490_v28  ;;  %v14594_v62 = vpack.c.bf16 %v10528_v18, %v10524_v8  ;;  %v10514_v11 = vsel %vm4022_vm0, %v19313_v48, %v19342_v15  ;;  %v10787_v25 = vsel %vm4273_vm1, %v19417_v37, %v19435_v38 }
 0x683   :  { %14199 = vmatmul.mubr.msk.f32.gmra.mrb[22].mxu1 %vm6472_vm2, %v14191_v10  ;;  %v14602_v57 = vpack.c.bf16 %v10530_v21, %v10526_v44  ;;  %v10510_v10 = vsel %vm4022_vm0, %v19342_v15, %v19380_v58  ;;  %v10522_v19 = vsel %vm4022_vm0, %v19380_v58, %v19281_v22  ;;  %v10532_v35 = vmul.f32 %v10518_v47, %v21625_v29  ;;  %v21627_v58 = vld [vmem:[#allocation11_spill] sm:$0xff] }
 0x684   :  { %v19551_v45 = vpop.permute.xlu0 %10771  ;;  %14591 = vmatpush1.bf16.msra.mxu1 %v14590_v13  ;;  %v19554_v24 = vpop.permute.xlu1 %11036  ;;  %10435 = vmatprep.mubr.f32.mxu1 %v21490_v28  ;;  %v10788_v60 = vsel %vm4273_vm1, %v19356_v0, %v19382_v30  ;;  %v10533_v22 = vmul.f32 %v10514_v11, %v21622_v20  ;;  %v10800_v13 = vmul.f32 %v10787_v25, %v21627_v58 }
 0x685   :  { %14601 = vmatprep.subr.bf16.mxu1 %v14600_v53  ;;  %14204 = vmatmul.mubr.msk.f32.vlgmr.msra.gmra.mrb[16].mxu0 %vm6472_vm2, %v14200_v33  ;;  %v10534_v18 = vmul.f32 %v10510_v10, %v21626_v1  ;;  %v10535_v44 = vmul.f32 %v10522_v19, %v21624_v31  ;;  %v10804_v53 = vmul.f32 %v10788_v60, %v21627_v58 }
 0x686   :  { %14595 = vmatpush1.bf16.msra.mxu0 %v14594_v62  ;;  %10352 = vmatprep.mubr.f32.mxu0 %v21490_v28  ;;  %v10795_v21 = vsel %vm4273_vm1, %v19459_v42, %v19394_v63  ;;  %v10796_v11 = vsel %vm4273_vm1, %v19396_v17, %v19323_v9 }
 0x687   :  { %14208 = vmatmul.mubr.msk.f32.vlgmr.msra.gmra.mrb[16].mxu1 %vm6472_vm2, %v14200_v33 }
 0x688   :  { %v19575_v43 = vpop.permute.xlu0 %10779  ;;  %14603 = vmatpush1.bf16.msra.mxu1 %v14602_v57  ;;  %v10491_v48 = vpop.permute.xlu1 %10490  ;;  %10441 = vmatprep.mubr.f32.mxu1 %v21490_v28 }
 0x689   :  { %v10515_v15 = vsel %vm4022_vm0, %v10491_v48, %v19243_v2  ;;  %v10519_v8 = vsel %vm4022_vm0, %v19224_v46, %v10491_v48  ;;  %14205 = vmatmul.mubr.msk.f32.gmra.mrb[18].mxu0 %vm6472_vm2, %v14201_v52 }
 0x68a   :  { %v10536_v32 = vmul.f32 %v10519_v8, %v21625_v29  ;;  %v10537_v3 = vmul.f32 %v10515_v15, %v21622_v20  ;;  %10358 = vmatprep.mubr.f32.mxu0 %v21490_v28  ;;  %v21629_v8 = vld [vmem:[#allocation10_spill] sm:$0xff] }
 0x68b   :  { %14209 = vmatmul.mubr.msk.f32.gmra.mrb[18].mxu1 %vm6472_vm2, %v14201_v52  ;;  %v10791_v52 = vsel %vm4273_vm1, %v19394_v63, %v19417_v37  ;;  %v14203_v63 = vld [vmem:[%s21260_s4 + $0xb8] sm:$0xff] }
 0x68c   :  { %v19609_v33 = vpop.permute.xlu0 %11026  ;;  %v14598_v62 = vpack.c.bf16 %v10536_v32, %v10532_v35  ;;  %v10507_v57 = vpop.permute.xlu1 %10506  ;;  %10447 = vmatprep.mubr.f32.mxu1 %v21490_v28  ;;  %v14596_v47 = vpack.c.bf16 %v10537_v3, %v10533_v22  ;;  %v14608_v35 = vpack.c.bf16 %v10804_v53, %v10800_v13  ;;  %v21628_v37 = vld [vmem:[#allocation15_spill] sm:$0xff]  ;;  %v10799_v22 = vmul.f32 %v10791_v52, %v21629_v8  ;;  %v21630_v3 = vld [vmem:[#allocation14_spill] sm:$0xff] }
 0x68d   :  { %v10511_v25 = vsel %vm4022_vm0, %v19243_v2, %v10507_v57  ;;  %v10523_v10 = vsel %vm4022_vm0, %v10507_v57, %v19224_v46  ;;  %14206 = vmatmul.mubr.msk.f32.gmra.mrb[20].mxu0 %vm6472_vm2, %v14202_v51  ;;  %v10792_v2 = vsel %vm4273_vm1, %v19323_v9, %v19356_v0  ;;  %v10783_v46 = vsel %vm4273_vm1, %v19435_v38, %v19459_v42 }
 0x68e   :  { %v10538_v19 = vmul.f32 %v10511_v25, %v21626_v1  ;;  %v10539_v48 = vmul.f32 %v10523_v10, %v21624_v31  ;;  %14597 = vmatprep.subr.bf16.mxu0 %v14596_v47  ;;  %10364 = vmatprep.mubr.f32.mxu0 %v21490_v28  ;;  %v10802_v60 = vmul.f32 %v10795_v21, %v21628_v37  ;;  %v14213_v47 = vld [vmem:[%s21260_s4 + $0xc8] sm:$0xff] }
 0x68f   :  { %14210 = vmatmul.mubr.msk.f32.gmra.mrb[20].mxu1 %vm6472_vm2, %v14202_v51  ;;  %14599 = vmatpush1.bf16.msra.mxu0 %v14598_v62  ;;  %v10784_v0 = vsel %vm4273_vm1, %v19382_v30, %v19396_v17  ;;  %v10806_v38 = vmul.f32 %v10796_v11, %v21628_v37  ;;  %v10803_v42 = vmul.f32 %v10792_v2, %v21629_v8 }
 0x690   :  { %v11035_v15 = vpop.permute.xlu0 %11034  ;;  %v14606_v13 = vpack.c.bf16 %v10538_v19, %v10534_v18  ;;  %v19649_v32 = vpop.permute.xlu1 %11044  ;;  %14609 = vmatprep.subr.bf16.mxu0 %v14608_v35  ;;  %10453 = vmatprep.mubr.f32.mxu1 %v21490_v28  ;;  %v14604_v9 = vpack.c.bf16 %v10539_v48, %v10535_v44  ;;  %v10801_v51 = vmul.f32 %v10783_v46, %v21630_v3  ;;  %v14212_v18 = vld [vmem:[%s21260_s4 + $0xc0] sm:$0xff] }
 0x691   :  { %14207 = vmatmul.mubr.msk.f32.gmra.mrb[22].mxu0 %vm6472_vm2, %v14203_v63  ;;  %v14616_v53 = vpack.c.bf16 %v10806_v38, %v10802_v60  ;;  %v10805_v30 = vmul.f32 %v10784_v0, %v21630_v3  ;;  %v14610_v17 = vpack.c.bf16 %v10803_v42, %v10799_v22  ;;  %v10793_v57 = vsel %vm4273_vm1, %v19496_v4, %v19532_v39  ;;  %v14214_v22 = vld [vmem:[%s21260_s4 + $0xd0] sm:$0xff] }
 0x692   :  { %14605 = vmatprep.subr.bf16.mxu1 %v14604_v9  ;;  %10621 = vmatprep.mubr.f32.mxu0 %v21490_v28  ;;  %v10789_v11 = vsel %vm4273_vm1, %v19532_v39, %v19551_v45  ;;  %v10785_v10 = vsel %vm4273_vm1, %v19551_v45, %v19575_v43  ;;  %v10797_v19 = vsel %vm4273_vm1, %v19575_v43, %v19496_v4  ;;  %v21631_v43 = vld [vmem:[#allocation13_spill] sm:$0xff] }
 0x693   :  { %14211 = vmatmul.mubr.msk.f32.gmra.mrb[22].mxu1 %vm6472_vm2, %v14203_v63  ;;  %v14618_v62 = vpack.c.bf16 %v10805_v30, %v10801_v51  ;;  %v10807_v39 = vmul.f32 %v10793_v57, %v21629_v8  ;;  %v11063_v35 = vsel %vm4524_vm3, %v19554_v24, %v19649_v32  ;;  %v10808_v4 = vmul.f32 %v10789_v11, %v21627_v58 }
 0x694   :  { %v11043_v44 = vpop.permute.xlu0 %11042  ;;  %14607 = vmatpush1.bf16.msra.mxu1 %v14606_v13  ;;  %v19666_v21 = vpop.permute.xlu1 %11052  ;;  %10710 = vmatprep.mubr.f32.mxu1 %v21490_v28  ;;  %v10809_v13 = vmul.f32 %v10785_v10, %v21630_v3  ;;  %v10810_v9 = vmul.f32 %v10797_v19, %v21628_v37  ;;  %v11079_v38 = vmul.f32 %v11063_v35, %v21631_v43 }
 0x695   :  { %14617 = vmatprep.subr.bf16.mxu1 %v14616_v53  ;;  %14216 = vmatmul.mubr.msk.f32.vlgmr.msra.gmra.mrb[16].mxu0 %vm6472_vm2, %v14212_v18  ;;  %v11062_v52 = vsel %vm4524_vm3, %v11035_v15, %v11043_v44  ;;  %v11066_v30 = vsel %vm4524_vm3, %v19609_v33, %v11035_v15  ;;  %v14215_v15 = vld [vmem:[%s21260_s4 + $0xd8] sm:$0xff] }
 0x696   :  { %14611 = vmatpush1.bf16.msra.mxu0 %v14610_v17  ;;  %10627 = vmatprep.mubr.f32.mxu0 %v21490_v28  ;;  %v11075_v2 = vmul.f32 %v11062_v52, %v21631_v43  ;;  %v11071_v17 = vsel %vm4524_vm3, %v19666_v21, %v19535_v14  ;;  %v21632_v52 = vld [vmem:[#allocation22_spill] sm:$0xff] }
 0x697   :  { %14220 = vmatmul.mubr.msk.f32.vlgmr.msra.gmra.mrb[16].mxu1 %vm6472_vm2, %v14212_v18 }
 0x698   :  { %v11051_v25 = vpop.permute.xlu0 %11050  ;;  %14619 = vmatpush1.bf16.msra.mxu1 %v14618_v62  ;;  %v10766_v48 = vpop.permute.xlu1 %10765  ;;  %10716 = vmatprep.mubr.f32.mxu1 %v21490_v28 }
 0x699   :  { %v10790_v45 = vsel %vm4273_vm1, %v10766_v48, %v19438_v54  ;;  %v10794_v63 = vsel %vm4273_vm1, %v19420_v59, %v10766_v48  ;;  %14217 = vmatmul.mubr.msk.f32.gmra.mrb[18].mxu0 %vm6472_vm2, %v14213_v47  ;;  %v11070_v42 = vsel %vm4524_vm3, %v11051_v25, %v19609_v33  ;;  %v14624_v33 = vpack.c.bf16 %v11079_v38, %v11075_v2  ;;  %v21633_v48 = vld [vmem:[#allocation12_spill] sm:$0xff]  ;;  %v14225_v38 = vld [vmem:[%s21260_s4 + $0xe8] sm:$0xff] }
 0x69a   :  { %v10811_v46 = vmul.f32 %v10794_v63, %v21629_v8  ;;  %v10812_v60 = vmul.f32 %v10790_v45, %v21627_v58  ;;  %10633 = vmatprep.mubr.f32.mxu0 %v21490_v28  ;;  %v11077_v10 = vmul.f32 %v11070_v42, %v21632_v52  ;;  %v14224_v2 = vld [vmem:[%s21260_s4 + $0xe0] sm:$0xff]  ;;  %v21646_v58 = vld [vmem:[#allocation23_spill] sm:$0xff] }
 0x69b   :  { %14221 = vmatmul.mubr.msk.f32.gmra.mrb[18].mxu1 %vm6472_vm2, %v14213_v47 }
 0x69c   :  { %v19717_v0 = vpop.permute.xlu0 %11030  ;;  %v14614_v51 = vpack.c.bf16 %v10811_v46, %v10807_v39  ;;  %v10782_v18 = vpop.permute.xlu1 %10781  ;;  %10722 = vmatprep.mubr.f32.mxu1 %v21490_v28  ;;  %v14612_v53 = vpack.c.bf16 %v10812_v60, %v10808_v4  ;;  %v11074_v39 = vmul.f32 %v11066_v30, %v21633_v48 }
 0x69d   :  { %v10786_v62 = vsel %vm4273_vm1, %v19438_v54, %v10782_v18  ;;  %v10798_v57 = vsel %vm4273_vm1, %v10782_v18, %v19420_v59  ;;  %14218 = vmatmul.mubr.msk.f32.gmra.mrb[20].mxu0 %vm6472_vm2, %v14214_v22  ;;  %v11067_v54 = vsel %vm4524_vm3, %v19535_v14, %v19554_v24  ;;  %v11058_v59 = vsel %vm4524_vm3, %v11043_v44, %v11051_v25  ;;  %v21634_v25 = vld [vmem:[#allocation9_spill] sm:$0xff] }
 0x69e   :  { %v10813_v47 = vmul.f32 %v10786_v62, %v21630_v3  ;;  %v10814_v11 = vmul.f32 %v10798_v57, %v21628_v37  ;;  %14613 = vmatprep.subr.bf16.mxu0 %v14612_v53  ;;  %10639 = vmatprep.mubr.f32.mxu0 %v21490_v28  ;;  %v11059_v14 = vsel %vm4524_vm3, %v19649_v32, %v19666_v21 }
 0x69f   :  { %14222 = vmatmul.mubr.msk.f32.gmra.mrb[20].mxu1 %vm6472_vm2, %v14214_v22  ;;  %14615 = vmatpush1.bf16.msra.mxu0 %v14614_v51  ;;  %v11081_v24 = vmul.f32 %v11071_v17, %v21632_v52  ;;  %v11078_v44 = vmul.f32 %v11067_v54, %v21633_v48  ;;  %v11076_v4 = vmul.f32 %v11058_v59, %v21634_v25 }
 0x6a0   :  { %v11039_v19 = vpop.permute.xlu0 %11038  ;;  %v14622_v35 = vpack.c.bf16 %v10813_v47, %v10809_v13  ;;  %v11033_v45 = vpop.permute.xlu1 %11032  ;;  %14625 = vmatprep.subr.bf16.mxu0 %v14624_v33  ;;  %10728 = vmatprep.mubr.f32.mxu1 %v21490_v28  ;;  %v14620_v63 = vpack.c.bf16 %v10814_v11, %v10810_v9  ;;  %v11080_v21 = vmul.f32 %v11059_v14, %v21634_v25  ;;  %v14226_v33 = vld [vmem:[%s21260_s4 + $0xf0] sm:$0xff] }
 0x6a1   :  { %14219 = vmatmul.mubr.msk.f32.gmra.mrb[22].mxu0 %vm6472_vm2, %v14215_v15  ;;  %v14632_v60 = vpack.c.bf16 %v11081_v24, %v11077_v10  ;;  %v14626_v32 = vpack.c.bf16 %v11078_v44, %v11074_v39  ;;  %v11068_v9 = vsel %vm4524_vm3, %v19717_v0, %v11039_v19  ;;  %v14227_v24 = vld [vmem:[%s21260_s4 + $0xf8] sm:$0xff] }
 0x6a2   :  { %14621 = vmatprep.subr.bf16.mxu1 %v14620_v63  ;;  %10896 = vmatprep.mubr.f32.mxu0 %v21490_v28  ;;  %v14634_v13 = vpack.c.bf16 %v11080_v21, %v11076_v4  ;;  %v11082_v53 = vmul.f32 %v11068_v9, %v21633_v48  ;;  %v14236_v4 = vld [vmem:[%s21260_s4 + $0x100] sm:$0xff] }
 0x6a3   :  { %14223 = vmatmul.mubr.msk.f32.gmra.mrb[22].mxu1 %vm6472_vm2, %v14215_v15 }
 0x6a4   :  { %v11047_v46 = vpop.permute.xlu0 %11046  ;;  %14623 = vmatpush1.bf16.msra.mxu1 %v14622_v35  ;;  %10985 = vmatprep.mubr.f32.mxu1 %v21490_v28 }
 0x6a5   :  { %v11049_v22 = vpop.permute.xlu1 %11048  ;;  %14633 = vmatprep.subr.bf16.mxu1 %v14632_v60  ;;  %14228 = vmatmul.mubr.msk.f32.vlgmr.msra.gmra.mrb[16].mxu0 %vm6472_vm2, %v14224_v2  ;;  %v11064_v42 = vsel %vm4524_vm3, %v11039_v19, %v11047_v46  ;;  %v14239_v60 = vld [vmem:[%s21260_s4 + $0x118] sm:$0xff] }
 0x6a6   :  { %14627 = vmatpush1.bf16.msra.mxu0 %v14626_v32  ;;  %10902 = vmatprep.mubr.f32.mxu0 %v21490_v28  ;;  %v11083_v62 = vmul.f32 %v11064_v42, %v21631_v43 }
 0x6a7   :  { %14232 = vmatmul.mubr.msk.f32.vlgmr.msra.gmra.mrb[16].mxu1 %vm6472_vm2, %v14224_v2  ;;  %v14237_v2 = vld [vmem:[%s21260_s4 + $0x108] sm:$0xff] }
 0x6a8   :  { %v11055_v51 = vpop.permute.xlu0 %11054  ;;  %14635 = vmatpush1.bf16.msra.mxu1 %v14634_v13  ;;  %10991 = vmatprep.mubr.f32.mxu1 %v21490_v28 }
 0x6a9   :  { %v11041_v18 = vpop.permute.xlu1 %11040  ;;  %14229 = vmatmul.mubr.msk.f32.gmra.mrb[18].mxu0 %vm6472_vm2, %v14225_v38  ;;  %v11060_v57 = vsel %vm4524_vm3, %v11047_v46, %v11055_v51  ;;  %v11072_v15 = vsel %vm4524_vm3, %v11055_v51, %v19717_v0  ;;  %v14238_v46 = vld [vmem:[%s21260_s4 + $0x110] sm:$0xff] }
 0x6aa   :  { %v11065_v30 = vsel %vm4524_vm3, %v11041_v18, %v11049_v22  ;;  %v11069_v17 = vsel %vm4524_vm3, %v11033_v45, %v11041_v18  ;;  %10908 = vmatprep.mubr.f32.mxu0 %v21490_v28  ;;  %v11084_v19 = vmul.f32 %v11060_v57, %v21634_v25  ;;  %v11085_v63 = vmul.f32 %v11072_v15, %v21632_v52 }
 0x6ab   :  { %v11086_v47 = vmul.f32 %v11069_v17, %v21633_v48  ;;  %v11087_v11 = vmul.f32 %v11065_v30, %v21631_v43  ;;  %14233 = vmatmul.mubr.msk.f32.gmra.mrb[18].mxu1 %vm6472_vm2, %v14225_v38 }
 0x6ac   :  { %10997 = vmatprep.mubr.f32.mxu1 %v21490_v28 }
 0x6ad   :  { %v14630_v54 = vpack.c.bf16 %v11086_v47, %v11082_v53  ;;  %v11057_v59 = vpop.permute.xlu1 %11056  ;;  %v14628_v10 = vpack.c.bf16 %v11087_v11, %v11083_v62  ;;  %14230 = vmatmul.mubr.msk.f32.gmra.mrb[20].mxu0 %vm6472_vm2, %v14226_v33 }
 0x6ae   :  { %v11061_v39 = vsel %vm4524_vm3, %v11049_v22, %v11057_v59  ;;  %v11073_v35 = vsel %vm4524_vm3, %v11057_v59, %v11033_v45  ;;  %10914 = vmatprep.mubr.f32.mxu0 %v21490_v28 }
 0x6af   :  { %v11088_v0 = vmul.f32 %v11061_v39, %v21634_v25  ;;  %v11089_v14 = vmul.f32 %v11073_v35, %v21632_v52  ;;  %14629 = vmatprep.subr.bf16.mxu0 %v14628_v10  ;;  %14234 = vmatmul.mubr.msk.f32.gmra.mrb[20].mxu1 %vm6472_vm2, %v14226_v33 }
 0x6b0   :  { %14631 = vmatpush1.bf16.msra.mxu0 %v14630_v54  ;;  %11003 = vmatprep.mubr.f32.mxu1 %v21490_v28 }
 0x6b1   :  { %v14638_v44 = vpack.c.bf16 %v11088_v0, %v11084_v19  ;;  %v14636_v45 = vpack.c.bf16 %v11089_v14, %v11085_v63  ;;  %14231 = vmatmul.mubr.msk.f32.gmra.mrb[22].mxu0 %vm6472_vm2, %v14227_v24 }
 0x6b2   :  { %11171 = vmatprep.mubr.f32.mxu0 %v21490_v28 }
 0x6b3   :  { %14637 = vmatprep.subr.bf16.mxu1 %v14636_v45  ;;  %14235 = vmatmul.mubr.msk.f32.gmra.mrb[22].mxu1 %vm6472_vm2, %v14227_v24 }
 0x6b4   :  { %14639 = vmatpush1.bf16.msra.mxu1 %v14638_v44  ;;  %11260 = vmatprep.mubr.f32.mxu1 %v21490_v28 }
 0x6b5   :  { %14240 = vmatmul.mubr.msk.f32.vlgmr.msra.gmra.mrb[16].mxu0 %vm6472_vm2, %v14236_v4 }
 0x6b6   :  { %11177 = vmatprep.mubr.f32.mxu0 %v21490_v28 }
 0x6b7   :  { %14244 = vmatmul.mubr.msk.f32.vlgmr.msra.gmra.mrb[16].mxu1 %vm6472_vm2, %v14236_v4 }
 0x6b8   :  { %11266 = vmatprep.mubr.f32.mxu1 %v21490_v28 }
 0x6b9   :  { %14241 = vmatmul.mubr.msk.f32.gmra.mrb[18].mxu0 %vm6472_vm2, %v14237_v2 }
 0x6ba   :  { %11183 = vmatprep.mubr.f32.mxu0 %v21490_v28 }
 0x6bb   :  { %14245 = vmatmul.mubr.msk.f32.gmra.mrb[18].mxu1 %vm6472_vm2, %v14237_v2 }
 0x6bc   :  { %11272 = vmatprep.mubr.f32.mxu1 %v21490_v28 }
 0x6bd   :  { %14242 = vmatmul.mubr.msk.f32.gmra.mrb[20].mxu0 %vm6472_vm2, %v14238_v46 }
 0x6be   :  { %11189 = vmatprep.mubr.f32.mxu0 %v21490_v28 }
 0x6bf   :  { %14246 = vmatmul.mubr.msk.f32.gmra.mrb[20].mxu1 %vm6472_vm2, %v14238_v46 }
 0x6c0   :  { %11278 = vmatprep.mubr.f32.mxu1 %v21490_v28 }
 0x6c1   :  { %14243 = vmatmul.mubr.msk.f32.gmra.mrb[22].mxu0 %vm6472_vm2, %v14239_v60 }
 0x6c2   :  { %11530 = vmatprep.mubr.f32.mxu0 %v21490_v28 }
 0x6c3   :  { %14247 = vmatmul.mubr.msk.f32.gmra.mrb[22].mxu1 %vm6472_vm2, %v14239_v60 }
 0x6c4   :  { %11619 = vmatprep.mubr.f32.mxu1 %v21490_v28 }
 0x788   :  { %v11173_v32 = vpop.f32.mrb[16].mxu0 }
 0x789   :  { %v19848_v21 = vmax.f32 %v11173_v32, 0.0  ;;  %v11175_v22 = vpop.f32.mrb[17].mxu0 }
 0x78a   :  { %v11262_v13 = vpop.f32.mrb[16].mxu1  ;;  %v19902_v10 = vmax.f32 %v11175_v22, 0.0 }
 0x78b   :  { %21635 = vst [vmem:[#allocation46_spill] sm:$0xff] %v19848_v21  ;;  %v11264_v9 = vpop.f32.mrb[17].mxu1  ;;  %11385 = vrot.lane.b32.xlu0 %v19848_v21, %s15642_s24  ;;  %v19852_v42 = vmax.f32 %v11262_v13, 0.0 }
 0x78c   :  { %v11179_v38 = vpop.f32.mrb[18].mxu0  ;;  %21639 = vst [vmem:[#allocation61_spill] sm:$0xff] %v19902_v10  ;;  %v19908_v19 = vmax.f32 %v11264_v9, 0.0 }
 0x78d   :  { %21636 = vst [vmem:[#allocation55_spill] sm:$0xff] %v19852_v42  ;;  %v19854_v51 = vmax.f32 %v11179_v38, 0.0  ;;  %v11181_v18 = vpop.f32.mrb[19].mxu0 }
 0x78e   :  { %v11268_v53 = vpop.f32.mrb[18].mxu1  ;;  %21640 = vst [vmem:[#allocation60_spill] sm:$0xff] %v19908_v19  ;;  %v19910_v39 = vmax.f32 %v11181_v18, 0.0 }
 0x78f   :  { %21637 = vst [vmem:[#allocation39_spill] sm:$0xff] %v19854_v51  ;;  %v11270_v30 = vpop.f32.mrb[19].mxu1  ;;  %11401 = vrot.lane.b32.xlu0 %v19852_v42, %s15642_s24  ;;  %11387 = vrot.lane.b32.xlu1 %v19854_v51, %s15642_s24  ;;  %v19860_v62 = vmax.f32 %v11268_v53, 0.0 }
 0x790   :  { %v11185_v17 = vpop.f32.mrb[20].mxu0  ;;  %21641 = vst [vmem:[#allocation63_spill] sm:$0xff] %v19910_v39  ;;  %v19916_v35 = vmax.f32 %v11270_v30, 0.0 }
 0x791   :  { %21638 = vst [vmem:[#allocation59_spill] sm:$0xff] %v19860_v62  ;;  %v19862_v57 = vpop.f32.mrb[21].mxu0  ;;  %v19950_v63 = vmax.f32 %v11185_v17, 0.0 }
 0x792   :  { %v11274_v47 = vpop.f32.mrb[20].mxu1  ;;  %21642 = vst [vmem:[#allocation26_spill] sm:$0xff] %v19916_v35  ;;  %v19999_v45 = vmax.f32 %v19862_v57, 0.0 }
 0x793   :  { %v19864_v11 = vpop.f32.mrb[21].mxu1  ;;  %11317 = vrot.lane.b32.xlu0 %v19848_v21, %s15641_s23  ;;  %11403 = vrot.lane.b32.xlu1 %v19860_v62, %s15642_s24  ;;  %21643 = vst [vmem:[#allocation28_spill] sm:$0xff] %v19950_v63  ;;  %v19956_v0 = vmax.f32 %v11274_v47, 0.0 }
 0x794   :  { %v11191_v33 = vpop.f32.mrb[22].mxu0  ;;  %v20006_v46 = vmax.f32 %v19864_v11, 0.0 }
 0x795   :  { %v19870_v15 = vpop.f32.mrb[23].mxu0  ;;  %v19958_v14 = vmax.f32 %v11191_v33, 0.0 }
 0x796   :  { %v11280_v54 = vpop.f32.mrb[22].mxu1  ;;  %v20009_v60 = vmax.f32 %v19870_v15, 0.0 }
 0x797   :  { %v19872_v59 = vpop.f32.mrb[23].mxu1  ;;  %11333 = vrot.lane.b32.xlu0 %v19852_v42, %s15641_s23  ;;  %11319 = vrot.lane.b32.xlu1 %v19854_v51, %s15641_s23  ;;  %v19964_v24 = vmax.f32 %v11280_v54, 0.0 }
 0x798   :  { %v20018_v13 = vmax.f32 %v19872_v59, 0.0 }
 0x79b   :  { %11834 = vrot.lane.b32.xlu0 %v19848_v21, %s15643_s25  ;;  %11335 = vrot.lane.b32.xlu1 %v19860_v62, %s15641_s23 }
 0x79f   :  { %11850 = vrot.lane.b32.xlu0 %v19852_v42, %s15643_s25  ;;  %11836 = vrot.lane.b32.xlu1 %v19854_v51, %s15643_s25 }
 0x7a3   :  { %12109 = vrot.lane.b32.xlu0 %v19848_v21, %s15646_s28  ;;  %11852 = vrot.lane.b32.xlu1 %v19860_v62, %s15643_s25 }
 0x7a7   :  { %12125 = vrot.lane.b32.xlu0 %v19852_v42, %s15646_s28  ;;  %12111 = vrot.lane.b32.xlu1 %v19854_v51, %s15646_s28 }
 0x7ab   :  { %12611 = vrot.lane.b32.xlu0 %v19848_v21, %s15647_s29  ;;  %12127 = vrot.lane.b32.xlu1 %v19860_v62, %s15646_s28 }
 0x7af   :  { %12627 = vrot.lane.b32.xlu0 %v19852_v42, %s15647_s29  ;;  %12613 = vrot.lane.b32.xlu1 %v19854_v51, %s15647_s29 }
 0x7b3   :  { %11393 = vrot.lane.b32.xlu0 %v19902_v10, %s15642_s24  ;;  %12629 = vrot.lane.b32.xlu1 %v19860_v62, %s15647_s29 }
 0x7b7   :  { %11409 = vrot.lane.b32.xlu0 %v19908_v19, %s15642_s24  ;;  %11395 = vrot.lane.b32.xlu1 %v19910_v39, %s15642_s24 }
 0x7bb   :  { %11325 = vrot.lane.b32.xlu0 %v19902_v10, %s15641_s23  ;;  %11411 = vrot.lane.b32.xlu1 %v19916_v35, %s15642_s24 }
 0x7bf   :  { %11341 = vrot.lane.b32.xlu0 %v19908_v19, %s15641_s23  ;;  %11327 = vrot.lane.b32.xlu1 %v19910_v39, %s15641_s23 }
 0x7c3   :  { %11842 = vrot.lane.b32.xlu0 %v19902_v10, %s15643_s25  ;;  %11343 = vrot.lane.b32.xlu1 %v19916_v35, %s15641_s23 }
 0x7c7   :  { %11858 = vrot.lane.b32.xlu0 %v19908_v19, %s15643_s25  ;;  %11844 = vrot.lane.b32.xlu1 %v19910_v39, %s15643_s25 }
 0x7cb   :  { %12117 = vrot.lane.b32.xlu0 %v19902_v10, %s15646_s28  ;;  %11860 = vrot.lane.b32.xlu1 %v19916_v35, %s15643_s25 }
 0x7cf   :  { %12133 = vrot.lane.b32.xlu0 %v19908_v19, %s15646_s28  ;;  %12119 = vrot.lane.b32.xlu1 %v19910_v39, %s15646_s28 }
 0x7d3   :  { %12619 = vrot.lane.b32.xlu0 %v19902_v10, %s15647_s29  ;;  %12135 = vrot.lane.b32.xlu1 %v19916_v35, %s15646_s28 }
 0x7d7   :  { %12635 = vrot.lane.b32.xlu0 %v19908_v19, %s15647_s29  ;;  %12621 = vrot.lane.b32.xlu1 %v19910_v39, %s15647_s29 }
 0x7db   :  { %12637 = vrot.lane.b32.xlu1 %v19916_v35, %s15647_s29  ;;  %11389 = vrot.lane.b32.xlu0 %v19950_v63, %s15642_s24 }
 0x7df   :  { %11405 = vrot.lane.b32.xlu0 %v19956_v0, %s15642_s24  ;;  %11391 = vrot.lane.b32.xlu1 %v19958_v14, %s15642_s24 }
 0x7e3   :  { %11321 = vrot.lane.b32.xlu0 %v19950_v63, %s15641_s23  ;;  %11407 = vrot.lane.b32.xlu1 %v19964_v24, %s15642_s24 }
 0x7e7   :  { %11337 = vrot.lane.b32.xlu0 %v19956_v0, %s15641_s23  ;;  %11323 = vrot.lane.b32.xlu1 %v19958_v14, %s15641_s23 }
 0x7eb   :  { %11838 = vrot.lane.b32.xlu0 %v19950_v63, %s15643_s25  ;;  %11339 = vrot.lane.b32.xlu1 %v19964_v24, %s15641_s23 }
 0x7ef   :  { %11854 = vrot.lane.b32.xlu0 %v19956_v0, %s15643_s25  ;;  %11840 = vrot.lane.b32.xlu1 %v19958_v14, %s15643_s25 }
 0x7f3   :  { %12113 = vrot.lane.b32.xlu0 %v19950_v63, %s15646_s28  ;;  %11856 = vrot.lane.b32.xlu1 %v19964_v24, %s15643_s25 }
 0x7f7   :  { %12129 = vrot.lane.b32.xlu0 %v19956_v0, %s15646_s28  ;;  %12115 = vrot.lane.b32.xlu1 %v19958_v14, %s15646_s28 }
 0x7fb   :  { %12615 = vrot.lane.b32.xlu0 %v19950_v63, %s15647_s29  ;;  %12131 = vrot.lane.b32.xlu1 %v19964_v24, %s15646_s28 }
 0x7fd   :  { %v11386_v44 = vpop.permute.xlu0 %11385 }
 0x7ff   :  { %12631 = vrot.lane.b32.xlu0 %v19956_v0, %s15647_s29  ;;  %12617 = vrot.lane.b32.xlu1 %v19958_v14, %s15647_s29 }
 0x801   :  { %v11402_v4 = vpop.permute.xlu0 %11401  ;;  %v11388_v2 = vpop.permute.xlu1 %11387 }
 0x803   :  { %11397 = vrot.lane.b32.xlu0 %v19999_v45, %s15642_s24  ;;  %12633 = vrot.lane.b32.xlu1 %v19964_v24, %s15647_s29 }
 0x805   :  { %v20011_v32 = vpop.permute.xlu0 %11317  ;;  %v11404_v22 = vpop.permute.xlu1 %11403 }
 0x807   :  { %11413 = vrot.lane.b32.xlu0 %v20006_v46, %s15642_s24  ;;  %11399 = vrot.lane.b32.xlu1 %v20009_v60, %s15642_s24 }
 0x809   :  { %v20020_v9 = vpop.permute.xlu0 %11333  ;;  %v20022_v38 = vpop.permute.xlu1 %11319 }
 0x80a   :  { %21644 = vst [vmem:[#allocation21_spill] sm:$0xff] %v20020_v9 }
 0x80b   :  { %12886 = vrot.lane.b32.xlu0 %v19848_v21, %s15650_s10  ;;  %11415 = vrot.lane.b32.xlu1 %v20018_v13, %s15642_s24 }
 0x80d   :  { %v20028_v18 = vpop.permute.xlu0 %11834  ;;  %v20030_v53 = vpop.permute.xlu1 %11335 }
 0x80e   :  { %21645 = vst [vmem:[#allocation30_spill] sm:$0xff] %v20030_v53 }
 0x80f   :  { %11329 = vrot.lane.b32.xlu0 %v19999_v45, %s15641_s23  ;;  %12888 = vrot.lane.b32.xlu1 %v19854_v51, %s15650_s10 }
 0x811   :  { %v20036_v30 = vpop.permute.xlu0 %11850  ;;  %v20038_v17 = vpop.permute.xlu1 %11836 }
 0x813   :  { %11345 = vrot.lane.b32.xlu0 %v20006_v46, %s15641_s23  ;;  %12896 = vrot.lane.b32.xlu1 %v19910_v39, %s15650_s10 }
 0x815   :  { %v20044_v57 = vpop.permute.xlu0 %12109  ;;  %v20046_v47 = vpop.permute.xlu1 %11852 }
 0x817   :  { %11846 = vrot.lane.b32.xlu0 %v19999_v45, %s15643_s25  ;;  %11331 = vrot.lane.b32.xlu1 %v20009_v60, %s15641_s23 }
 0x819   :  { %v20052_v11 = vpop.permute.xlu0 %12125  ;;  %v20054_v33 = vpop.permute.xlu1 %12111 }
 0x81b   :  { %11862 = vrot.lane.b32.xlu0 %v20006_v46, %s15643_s25  ;;  %11347 = vrot.lane.b32.xlu1 %v20018_v13, %s15641_s23 }
 0x81d   :  { %v20060_v15 = vpop.permute.xlu0 %12611  ;;  %v20062_v54 = vpop.permute.xlu1 %12127 }
 0x81f   :  { %12121 = vrot.lane.b32.xlu0 %v19999_v45, %s15646_s28  ;;  %12904 = vrot.lane.b32.xlu1 %v19860_v62, %s15650_s10 }
 0x821   :  { %v20068_v59 = vpop.permute.xlu0 %12627  ;;  %v20070_v25 = vpop.permute.xlu1 %12613 }
 0x823   :  { %12137 = vrot.lane.b32.xlu0 %v20006_v46, %s15646_s28  ;;  %12912 = vrot.lane.b32.xlu1 %v19916_v35, %s15650_s10 }
 0x825   :  { %v11394_v48 = vpop.permute.xlu0 %11393  ;;  %v20076_v52 = vpop.permute.xlu1 %12629 }
 0x826   :  { %v11425_v43 = vsel %vm1776_vm8, %v11386_v44, %v11394_v48 }
 0x827   :  { %12623 = vrot.lane.b32.xlu0 %v19999_v45, %s15647_s29  ;;  %11848 = vrot.lane.b32.xlu1 %v20009_v60, %s15643_s25  ;;  %v11434_v1 = vmul.f32 %v11425_v43, %v21646_v58 }
 0x829   :  { %v11410_v3 = vpop.permute.xlu0 %11409  ;;  %v11396_v8 = vpop.permute.xlu1 %11395 }
 0x82a   :  { %v11426_v37 = vsel %vm1776_vm8, %v11388_v2, %v11396_v8  ;;  %v11429_v20 = vsel %vm1776_vm8, %v11410_v3, %v11386_v44  ;;  %v11417_v29 = vsel %vm1776_vm8, %v11402_v4, %v11410_v3  ;;  %v11422_v28 = vsel %vm1776_vm8, %v11396_v8, %v11404_v22 }
 0x82b   :  { %v11438_v31 = vmul.f32 %v11426_v37, %v21646_v58  ;;  %12639 = vrot.lane.b32.xlu0 %v20006_v46, %s15647_s29  ;;  %11864 = vrot.lane.b32.xlu1 %v20018_v13, %s15643_s25  ;;  %v11421_v44 = vsel %vm1776_vm8, %v11394_v48, %v11402_v4  ;;  %v11433_v37 = vmul.f32 %v11429_v20, %v17308_v23 }
 0x82c   :  { %v11436_v8 = vmul.f32 %v11417_v29, %v17315_v27  ;;  %v11439_v53 = vmul.f32 %v11422_v28, %v17330_v34  ;;  %v11435_v20 = vmul.f32 %v11421_v44, %v17330_v34 }
 0x82d   :  { %v20098_v5 = vpop.permute.xlu0 %11325  ;;  %v11412_v43 = vpop.permute.xlu1 %11411  ;;  %v14640_v36 = vpack.c.bf16 %v11438_v31, %v11434_v1 }
 0x82e   :  { %v11418_v40 = vsel %vm1776_vm8, %v11404_v22, %v11412_v43  ;;  %v11430_v3 = vsel %vm1776_vm8, %v11412_v43, %v11388_v2  ;;  %v14650_v28 = vpack.c.bf16 %v11439_v53, %v11435_v20 }
 0x82f   :  { %v11437_v9 = vmul.f32 %v11430_v3, %v17308_v23  ;;  %v11440_v58 = vmul.f32 %v11418_v40, %v17315_v27  ;;  %14641 = vmatprep.subr.bf16.mxu0 %v14640_v36  ;;  %12894 = vrot.lane.b32.xlu0 %v19902_v10, %s15650_s10 }
 0x830   :  { %12892 = vrot.lane.b32.xlu1 %v19958_v14, %s15650_s10 }
 0x831   :  { %v14642_v31 = vpack.c.bf16 %v11437_v9, %v11433_v37  ;;  %v20116_v1 = vpop.permute.xlu0 %11341  ;;  %v20118_v48 = vpop.permute.xlu1 %11327  ;;  %v14648_v29 = vpack.c.bf16 %v11440_v58, %v11436_v8 }
 0x833   :  { %14643 = vmatpush1.bf16.msra.mxu0 %v14642_v31  ;;  %14649 = vmatprep.subr.bf16.mxu1 %v14648_v29 }
 0x834   :  { %12902 = vrot.lane.b32.xlu0 %v19852_v42, %s15650_s10  ;;  %12908 = vrot.lane.b32.xlu1 %v19964_v24, %s15650_s10 }
 0x835   :  { %14651 = vmatpush1.bf16.msra.mxu1 %v14650_v28  ;;  %v20124_v36 = vpop.permute.xlu0 %11842  ;;  %v20126_v40 = vpop.permute.xlu1 %11343 }
 0x838   :  { %12910 = vrot.lane.b32.xlu0 %v19908_v19, %s15650_s10  ;;  %12123 = vrot.lane.b32.xlu1 %v20009_v60, %s15646_s28 }
 0x839   :  { %v11859_v58 = vpop.permute.xlu0 %11858  ;;  %v20132_v4 = vpop.permute.xlu1 %11844 }
 0x83a   :  { %v11866_v2 = vsel %vm2027_vm9, %v20036_v30, %v11859_v58  ;;  %v11878_v22 = vsel %vm2027_vm9, %v11859_v58, %v20028_v18 }
 0x83b   :  { %v20151_v37 = vmul.f32 %v11878_v22, %v21582_v49  ;;  %v20154_v3 = vmul.f32 %v11866_v2, %v21581_v26 }
 0x83c   :  { %12890 = vrot.lane.b32.xlu0 %v19950_v63, %s15650_s10  ;;  %12139 = vrot.lane.b32.xlu1 %v20018_v13, %s15646_s28 }
 0x83d   :  { %v12118_v9 = vpop.permute.xlu0 %12117  ;;  %v11861_v53 = vpop.permute.xlu1 %11860 }
 0x83e   :  { %v11867_v43 = vsel %vm2027_vm9, %v20046_v47, %v11861_v53  ;;  %v11879_v44 = vsel %vm2027_vm9, %v11861_v53, %v20038_v17  ;;  %v12145_v31 = vsel %vm2780_vm12, %v12118_v9, %v20052_v11  ;;  %v12149_v29 = vsel %vm2780_vm12, %v20044_v57, %v12118_v9 }
 0x83f   :  { %v20157_v8 = vmul.f32 %v11879_v44, %v21582_v49  ;;  %v20160_v20 = vmul.f32 %v11867_v43, %v21581_v26  ;;  %v20183_v43 = vmul.f32 %v12149_v29, %v21584_v16  ;;  %v20186_v44 = vmul.f32 %v12145_v31, %v21589_v61 }
 0x840   :  { %12898 = vrot.lane.b32.xlu0 %v19999_v45, %s15650_s10  ;;  %13163 = vrot.lane.b32.xlu1 %v19854_v51, %s15651_s16 }
 0x841   :  { %v12134_v58 = vpop.permute.xlu0 %12133  ;;  %v12120_v2 = vpop.permute.xlu1 %12119  ;;  %21647 = vst [vmem:[#allocation35_spill] sm:$0xff] %v20186_v44  ;;  %v21668_v44 = vld [vmem:[#allocation30_spill] sm:$0xff] }
 0x842   :  { %v12146_v53 = vsel %vm2780_vm12, %v12120_v2, %v20062_v54  ;;  %v12150_v9 = vsel %vm2780_vm12, %v20054_v33, %v12120_v2  ;;  %v12141_v22 = vsel %vm2780_vm12, %v20052_v11, %v12134_v58  ;;  %v12153_v2 = vsel %vm2780_vm12, %v12134_v58, %v20044_v57 }
 0x843   :  { %v20189_v28 = vmul.f32 %v12150_v9, %v21584_v16  ;;  %v20192_v26 = vmul.f32 %v12146_v53, %v21589_v61  ;;  %v20215_v58 = vmul.f32 %v12153_v2, %v21588_v50  ;;  %v20218_v31 = vmul.f32 %v12141_v22, %v21587_v55 }
 0x844   :  { %12906 = vrot.lane.b32.xlu0 %v19956_v0, %s15650_s10  ;;  %13171 = vrot.lane.b32.xlu1 %v19910_v39, %s15651_s16 }
 0x845   :  { %21648 = vst [vmem:[#allocation29_spill] sm:$0xff] %v20192_v26  ;;  %v12620_v29 = vpop.permute.xlu0 %12619  ;;  %v12136_v53 = vpop.permute.xlu1 %12135  ;;  %21649 = vst [vmem:[#allocation20_spill] sm:$0xff] %v20215_v58  ;;  %v11354_v26 = vsel %vm1525_vm7, %v20118_v48, %v21668_v44 }
 0x846   :  { %v12142_v11 = vsel %vm2780_vm12, %v20062_v54, %v12136_v53  ;;  %v12154_v57 = vsel %vm2780_vm12, %v12136_v53, %v20054_v33  ;;  %v12647_v54 = vsel %vm3269_vm13, %v12620_v29, %v20068_v59  ;;  %v12651_v33 = vsel %vm3269_vm13, %v20060_v15, %v12620_v29 }
 0x847   :  { %v20221_v61 = vmul.f32 %v12154_v57, %v21588_v50  ;;  %v20224_v16 = vmul.f32 %v12142_v11, %v21587_v55  ;;  %v20247_v9 = vmul.f32 %v12651_v33, %v21616_v56  ;;  %v20250_v22 = vmul.f32 %v12647_v54, %v21612_v41 }
 0x848   :  { %12914 = vrot.lane.b32.xlu0 %v20006_v46, %s15650_s10  ;;  %13179 = vrot.lane.b32.xlu1 %v19860_v62, %s15651_s16 }
 0x849   :  { %21650 = vst [vmem:[#allocation18_spill] sm:$0xff] %v20221_v61  ;;  %v12636_v2 = vpop.permute.xlu0 %12635  ;;  %v12622_v53 = vpop.permute.xlu1 %12621  ;;  %21651 = vst [vmem:[#allocation53_spill] sm:$0xff] %v20247_v9 }
 0x84a   :  { %v12648_v57 = vsel %vm3269_vm13, %v12622_v53, %v20076_v52  ;;  %v12652_v29 = vsel %vm3269_vm13, %v20070_v25, %v12622_v53  ;;  %21652 = vst [vmem:[#allocation57_spill] sm:$0xff] %v20250_v22  ;;  %v12643_v11 = vsel %vm3269_vm13, %v20068_v59, %v12636_v2  ;;  %v12655_v53 = vsel %vm3269_vm13, %v12636_v2, %v20060_v15 }
 0x84b   :  { %v20253_v55 = vmul.f32 %v12652_v29, %v21616_v56  ;;  %v20256_v50 = vmul.f32 %v12648_v57, %v21612_v41  ;;  %v20281_v2 = vmul.f32 %v12643_v11, %v21617_v12  ;;  %v20284_v54 = vmul.f32 %v12655_v53, %v21615_v6 }
 0x84c   :  { %13161 = vrot.lane.b32.xlu0 %v19848_v21, %s15651_s16  ;;  %13187 = vrot.lane.b32.xlu1 %v19916_v35, %s15651_s16 }
 0x84d   :  { %21653 = vst [vmem:[#allocation38_spill] sm:$0xff] %v20253_v55  ;;  %21654 = vst [vmem:[#allocation54_spill] sm:$0xff] %v20256_v50  ;;  %v12638_v33 = vpop.permute.xlu1 %12637  ;;  %v20270_v57 = vpop.permute.xlu0 %11389 }
 0x84e   :  { %v12644_v59 = vsel %vm3269_vm13, %v20076_v52, %v12638_v33  ;;  %v12656_v15 = vsel %vm3269_vm13, %v12638_v33, %v20070_v25  ;;  %21655 = vst [vmem:[#allocation44_spill] sm:$0xff] %v20281_v2  ;;  %21656 = vst [vmem:[#allocation58_spill] sm:$0xff] %v20284_v54 }
 0x84f   :  { %v20287_v41 = vmul.f32 %v12644_v59, %v21617_v12  ;;  %v20290_v56 = vmul.f32 %v12656_v15, %v21615_v6 }
 0x850   :  { %13169 = vrot.lane.b32.xlu0 %v19902_v10, %s15651_s16  ;;  %13167 = vrot.lane.b32.xlu1 %v19958_v14, %s15651_s16 }
 0x851   :  { %21657 = vst [vmem:[#allocation37_spill] sm:$0xff] %v20287_v41  ;;  %21658 = vst [vmem:[#allocation56_spill] sm:$0xff] %v20290_v56  ;;  %v11406_v25 = vpop.permute.xlu0 %11405  ;;  %v20298_v11 = vpop.permute.xlu1 %11391 }
 0x854   :  { %13177 = vrot.lane.b32.xlu0 %v19852_v42, %s15651_s16  ;;  %13183 = vrot.lane.b32.xlu1 %v19964_v24, %s15651_s16 }
 0x855   :  { %v20306_v33 = vpop.permute.xlu0 %11321  ;;  %v11408_v59 = vpop.permute.xlu1 %11407 }
 0x858   :  { %13185 = vrot.lane.b32.xlu0 %v19908_v19, %s15651_s16  ;;  %12625 = vrot.lane.b32.xlu1 %v20009_v60, %s15647_s29 }
 0x859   :  { %v20312_v15 = vpop.permute.xlu0 %11337  ;;  %v20314_v52 = vpop.permute.xlu1 %11323 }
 0x85c   :  { %13165 = vrot.lane.b32.xlu0 %v19950_v63, %s15651_s16  ;;  %12641 = vrot.lane.b32.xlu1 %v20018_v13, %s15647_s29 }
 0x85d   :  { %v20320_v53 = vpop.permute.xlu0 %11838  ;;  %v20322_v29 = vpop.permute.xlu1 %11339 }
 0x860   :  { %13173 = vrot.lane.b32.xlu0 %v19999_v45, %s15651_s16  ;;  %13438 = vrot.lane.b32.xlu1 %v19854_v51, %s15652_s30 }
 0x861   :  { %v20328_v6 = vpop.permute.xlu0 %11854  ;;  %v20330_v12 = vpop.permute.xlu1 %11840 }
 0x864   :  { %13181 = vrot.lane.b32.xlu0 %v19956_v0, %s15651_s16  ;;  %13446 = vrot.lane.b32.xlu1 %v19910_v39, %s15652_s30 }
 0x865   :  { %v20336_v2 = vpop.permute.xlu0 %12113  ;;  %v20338_v41 = vpop.permute.xlu1 %11856 }
 0x868   :  { %13189 = vrot.lane.b32.xlu0 %v20006_v46, %s15651_s16  ;;  %12900 = vrot.lane.b32.xlu1 %v20009_v60, %s15650_s10 }
 0x869   :  { %v20344_v9 = vpop.permute.xlu0 %12129  ;;  %v20346_v55 = vpop.permute.xlu1 %12115 }
 0x86a   :  { %21659 = vst [vmem:[#allocation62_spill] sm:$0xff] %v20344_v9  ;;  %21660 = vst [vmem:[#allocation64_spill] sm:$0xff] %v20346_v55  ;;  %v21667_v55 = vld [vmem:[#allocation21_spill] sm:$0xff] }
 0x86c   :  { %13436 = vrot.lane.b32.xlu0 %v19848_v21, %s15652_s30  ;;  %12916 = vrot.lane.b32.xlu1 %v20018_v13, %s15650_s10 }
 0x86d   :  { %v20352_v54 = vpop.permute.xlu0 %12615  ;;  %v20354_v56 = vpop.permute.xlu1 %12131 }
 0x86e   :  { %21661 = vst [vmem:[#allocation66_spill] sm:$0xff] %v20352_v54  ;;  %21662 = vst [vmem:[#allocation65_spill] sm:$0xff] %v20354_v56  ;;  %v11349_v56 = vsel %vm1525_vm7, %v21667_v55, %v20116_v1 }
 0x870   :  { %13444 = vrot.lane.b32.xlu0 %v19902_v10, %s15652_s30  ;;  %13454 = vrot.lane.b32.xlu1 %v19860_v62, %s15652_s30  ;;  %v11357_v62 = vsel %vm1525_vm7, %v20011_v32, %v20098_v5 }
 0x871   :  { %v20360_v22 = vpop.permute.xlu0 %12631  ;;  %v20362_v50 = vpop.permute.xlu1 %12617 }
 0x872   :  { %21663 = vst [vmem:[#allocation67_spill] sm:$0xff] %v20360_v22  ;;  %21664 = vst [vmem:[#allocation68_spill] sm:$0xff] %v20362_v50 }
 0x874   :  { %13452 = vrot.lane.b32.xlu0 %v19852_v42, %s15652_s30  ;;  %13462 = vrot.lane.b32.xlu1 %v19916_v35, %s15652_s30  ;;  %v11358_v42 = vsel %vm1525_vm7, %v20022_v38, %v20118_v48 }
 0x875   :  { %v11398_v21 = vpop.permute.xlu0 %11397  ;;  %v20368_v54 = vpop.permute.xlu1 %12633 }
 0x876   :  { %21665 = vst [vmem:[#allocation69_spill] sm:$0xff] %v20368_v54  ;;  %v11427_v51 = vsel %vm1776_vm8, %v20270_v57, %v11398_v21  ;;  %v11423_v48 = vsel %vm1776_vm8, %v11398_v21, %v11406_v25 }
 0x878   :  { %13460 = vrot.lane.b32.xlu0 %v19908_v19, %s15652_s30  ;;  %13175 = vrot.lane.b32.xlu1 %v20009_v60, %s15651_s16  ;;  %v21666_v19 = vld [vmem:[#allocation23_spill] sm:$0xff] }
 0x879   :  { %v11414_v50 = vpop.permute.xlu0 %11413  ;;  %v11400_v22 = vpop.permute.xlu1 %11399  ;;  %v11442_v35 = vmul.f32 %v11427_v51, %v21666_v19 }
 0x87a   :  { %v11428_v54 = vsel %vm1776_vm8, %v20298_v11, %v11400_v22  ;;  %v11424_v10 = vsel %vm1776_vm8, %v11400_v22, %v11408_v59  ;;  %v11419_v9 = vsel %vm1776_vm8, %v11406_v25, %v11414_v50  ;;  %v11431_v51 = vsel %vm1776_vm8, %v11414_v50, %v20270_v57 }
 0x87b   :  { %v11446_v39 = vmul.f32 %v11428_v54, %v21666_v19  ;;  %v21669_v19 = vld [vmem:[#allocation40_spill] sm:$0xff]  ;;  %v11350_v54 = vsel %vm1525_vm7, %v21668_v44, %v20126_v40  ;;  %v11447_v57 = vmul.f32 %v11424_v10, %v17330_v34  ;;  %v11441_v25 = vmul.f32 %v11431_v51, %v17308_v23 }
 0x87c   :  { %13440 = vrot.lane.b32.xlu0 %v19950_v63, %s15652_s30  ;;  %v11370_v22 = vmul.f32 %v11358_v42, %v21669_v19  ;;  %13191 = vrot.lane.b32.xlu1 %v20018_v13, %s15651_s16  ;;  %v11362_v42 = vsel %vm1525_vm7, %v20126_v40, %v20022_v38  ;;  %v11444_v63 = vmul.f32 %v11419_v9, %v17315_v27 }
 0x87d   :  { %v20416_v58 = vpop.permute.xlu0 %12886  ;;  %v11416_v61 = vpop.permute.xlu1 %11415  ;;  %v14644_v50 = vpack.c.bf16 %v11446_v39, %v11442_v35  ;;  %v11353_v10 = vsel %vm1525_vm7, %v20098_v5, %v21667_v55  ;;  %v11361_v38 = vsel %vm1525_vm7, %v20116_v1, %v20011_v32  ;;  %v21672_v1 = vld [vmem:[#allocation41_spill] sm:$0xff] }
 0x87e   :  { %v11420_v44 = vsel %vm1776_vm8, %v11408_v59, %v11416_v61  ;;  %v11432_v21 = vsel %vm1776_vm8, %v11416_v61, %v20298_v11  ;;  %v21670_v61 = vld [vmem:[#allocation43_spill] sm:$0xff]  ;;  %v11443_v11 = vmul.f32 %v11423_v48, %v17330_v34 }
 0x87f   :  { %v11445_v39 = vmul.f32 %v11432_v21, %v17308_v23  ;;  %v11448_v35 = vmul.f32 %v11420_v44, %v17315_v27  ;;  %14645 = vmatprep.subr.bf16.mxu0 %v14644_v50  ;;  %v11372_v40 = vmul.f32 %v11350_v54, %v21670_v61  ;;  %v11366_v23 = vmul.f32 %v11357_v62, %v21669_v19  ;;  %v21671_v27 = vld [vmem:[#allocation42_spill] sm:$0xff]  ;;  %v14248_v50 = vld [vmem:[%s21261_s5 + $0x20] sm:$0xff]  ;;  %v14249_v21 = vld [vmem:[%s21261_s5 + $0x28] sm:$0xff] }
 0x880   :  { %13448 = vrot.lane.b32.xlu0 %v19999_v45, %s15652_s30  ;;  %v11369_v9 = vmul.f32 %v11362_v42, %v21671_v27  ;;  %13442 = vrot.lane.b32.xlu1 %v19958_v14, %s15652_s30  ;;  %v11368_v32 = vmul.f32 %v11349_v56, %v21670_v61  ;;  %v11371_v54 = vmul.f32 %v11354_v26, %v21672_v1 }
 0x881   :  { %v14646_v59 = vpack.c.bf16 %v11445_v39, %v11441_v25  ;;  %v11330_v5 = vpop.permute.xlu0 %11329  ;;  %v20448_v55 = vpop.permute.xlu1 %12888  ;;  %v14652_v51 = vpack.c.bf16 %v11448_v35, %v11444_v63  ;;  %v14654_v34 = vpack.c.bf16 %v11447_v57, %v11443_v11  ;;  %v11365_v48 = vmul.f32 %v11361_v38, %v21671_v27 }
 0x882   :  { %v14656_v62 = vpack.c.bf16 %v11370_v22, %v11366_v23  ;;  %v11367_v42 = vmul.f32 %v11353_v10, %v21672_v1  ;;  %v14664_v63 = vpack.c.bf16 %v11372_v40, %v11368_v32  ;;  %v11359_v25 = vsel %vm1525_vm7, %v20306_v33, %v11330_v5 }
 0x883   :  { %14647 = vmatpush1.bf16.msra.mxu0 %v14646_v59  ;;  %14653 = vmatprep.subr.bf16.mxu1 %v14652_v51  ;;  %v14658_v56 = vpack.c.bf16 %v11369_v9, %v11365_v48  ;;  %v21673_v35 = vmov 0.0   ;;  %v11875_v38 = vsel %vm2027_vm9, %v20038_v17, %v20132_v4  ;;  %v11374_v11 = vmul.f32 %v11359_v25, %v21669_v19  ;;  %v14250_v17 = vld [vmem:[%s21261_s5 + $0x30] sm:$0xff] }
 0x884   :  { %13456 = vrot.lane.b32.xlu0 %v19956_v0, %s15652_s30  ;;  %14655 = vmatpush1.bf16.msra.mxu1 %v14654_v34  ;;  %v14666_v22 = vpack.c.bf16 %v11371_v54, %v11367_v42 }
 0x885   :  { %13458 = vrot.lane.b32.xlu1 %v19964_v24, %s15652_s30  ;;  %14657 = vmatprep.subr.bf16.mxu0 %v14656_v62  ;;  %v11346_v26 = vpop.permute.xlu0 %11345  ;;  %v20461_v57 = vpop.permute.xlu1 %12896  ;;  %v11355_v62 = vsel %vm1525_vm7, %v11330_v5, %v20312_v15  ;;  %v14251_v5 = vld [vmem:[%s21261_s5 + $0x38] sm:$0xff] }
 0x886   :  { %14665 = vmatprep.subr.bf16.mxu1 %v14664_v63  ;;  %v20467_v44 = vsel %vm4022_vm0, %v20448_v55, %v20461_v57  ;;  %14252 = vmatmul.mubr.msk.f32.vlgmr.msra.gmra.mrb[24].mxu0 %vm6472_vm2, %v14248_v50  ;;  %v11363_v23 = vsel %vm1525_vm7, %v11346_v26, %v20306_v33  ;;  %v11351_v59 = vsel %vm1525_vm7, %v20312_v15, %v11346_v26 }
 0x887   :  { %14256 = vmatmul.mubr.msk.f32.vlgmr.msra.gmra.mrb[24].mxu1 %vm6472_vm2, %v14248_v50  ;;  %14659 = vmatpush1.bf16.msra.mxu0 %v14658_v56  ;;  %v11874_v33 = vsel %vm2027_vm9, %v20028_v18, %v20124_v36  ;;  %v11373_v50 = vmul.f32 %v11363_v23, %v21671_v27  ;;  %v11376_v63 = vmul.f32 %v11351_v59, %v21670_v61 }
 0x888   :  { %13464 = vrot.lane.b32.xlu0 %v20006_v46, %s15652_s30  ;;  %14667 = vmatpush1.bf16.msra.mxu1 %v14666_v22  ;;  %v21677_v59 = vpack.c.bf16 %v20157_v8, %v20151_v37 }
 0x889   :  { %13450 = vrot.lane.b32.xlu1 %v20009_v60, %s15652_s30  ;;  %v20481_v39 = vpop.permute.xlu0 %11846  ;;  %11536 = vmatprep.mubr.f32.mxu0 %v21673_v35  ;;  %v11332_v10 = vpop.permute.xlu1 %11331 }
 0x88a   :  { %v11360_v40 = vsel %vm1525_vm7, %v20314_v52, %v11332_v10  ;;  %14253 = vmatmul.mubr.msk.f32.gmra.mrb[26].mxu0 %vm6472_vm2, %v14249_v21  ;;  %11625 = vmatprep.mubr.f32.mxu1 %v21673_v35  ;;  %v11356_v51 = vsel %vm1525_vm7, %v11332_v10, %v20322_v29 }
 0x88b   :  { %v11378_v9 = vmul.f32 %v11360_v40, %v21669_v19  ;;  %14257 = vmatmul.mubr.msk.f32.gmra.mrb[26].mxu1 %vm6472_vm2, %v14249_v21  ;;  %11542 = vmatprep.mubr.f32.mxu0 %v21673_v35  ;;  %v21674_v19 = vld [vmem:[#allocation45_spill] sm:$0xff]  ;;  %v11379_v56 = vmul.f32 %v11356_v51, %v21672_v1 }
 0x88c   :  { %v11887_v32 = vmul.f32 %v11875_v38, %v21674_v19  ;;  %11631 = vmatprep.mubr.f32.mxu1 %v21673_v35  ;;  %v11870_v38 = vsel %vm2027_vm9, %v20124_v36, %v20036_v30  ;;  %v21676_v36 = vpack.c.bf16 %v20160_v20, %v20154_v3  ;;  %v11382_v51 = vld [vmem:[%s21261_s5 + $0x8] sm:$0xff] }
 0x88d   :  { %13466 = vrot.lane.b32.xlu1 %v20018_v13, %s15652_s30  ;;  %v11863_v54 = vpop.permute.xlu0 %11862  ;;  %v11348_v34 = vpop.permute.xlu1 %11347  ;;  %v14660_v48 = vpack.c.bf16 %v11378_v9, %v11374_v11 }
 0x88e   :  { %v11352_v18 = vsel %vm1525_vm7, %v20322_v29, %v11348_v34  ;;  %v11364_v42 = vsel %vm1525_vm7, %v11348_v34, %v20314_v52  ;;  %14254 = vmatmul.mubr.msk.f32.gmra.mrb[28].mxu0 %vm6472_vm2, %v14250_v17  ;;  %v11883_v29 = vmul.f32 %v11874_v33, %v21674_v19  ;;  %v11871_v52 = vsel %vm2027_vm9, %v20132_v4, %v20046_v47  ;;  %v21675_v47 = vld [vmem:[#allocation48_spill] sm:$0xff] }
 0x88f   :  { %v11377_v26 = vmul.f32 %v11364_v42, %v21671_v27  ;;  %v11380_v15 = vmul.f32 %v11352_v18, %v21670_v61  ;;  %14661 = vmatprep.subr.bf16.mxu0 %v14660_v48  ;;  %14258 = vmatmul.mubr.msk.f32.gmra.mrb[28].mxu1 %vm6472_vm2, %v14250_v17  ;;  %v11375_v27 = vmul.f32 %v11355_v62, %v21672_v1  ;;  %v11381_v1 = vld [vmem:[%s21261_s5] sm:$0xff]  ;;  %v11383_v48 = vld [vmem:[%s21261_s5 + $0x10] sm:$0xff]  ;;  %v21678_v42 = vld [vmem:[#allocation47_spill] sm:$0xff] }
 0x890   :  { %11548 = vmatprep.mubr.f32.mxu0 %v21673_v35  ;;  %11637 = vmatprep.mubr.f32.mxu1 %v21673_v35  ;;  %v14672_v10 = vpack.c.bf16 %v11887_v32, %v11883_v29  ;;  %v11888_v4 = vmul.f32 %v11871_v52, %v21675_v47  ;;  %v11884_v30 = vmul.f32 %v11870_v38, %v21675_v47 }
 0x891   :  { %v14662_v22 = vpack.c.bf16 %v11377_v26, %v11373_v50  ;;  %v20543_v61 = vpop.permute.xlu0 %12121  ;;  %v20545_v21 = vpop.permute.xlu1 %12904  ;;  %v14668_v25 = vpack.c.bf16 %v11380_v15, %v11376_v63  ;;  %v14670_v40 = vpack.c.bf16 %v11379_v56, %v11375_v27  ;;  %v11876_v17 = vsel %vm2027_vm9, %v20320_v53, %v20481_v39 }
 0x892   :  { %14255 = vmatmul.mubr.msk.f32.gmra.mrb[30].mxu0 %vm6472_vm2, %v14251_v5  ;;  %v14682_v9 = vpack.c.bf16 %v11888_v4, %v11884_v30  ;;  %v11891_v32 = vmul.f32 %v11876_v17, %v21674_v19  ;;  %v11868_v8 = vsel %vm2027_vm9, %v20328_v6, %v11863_v54  ;;  %v11880_v34 = vsel %vm2027_vm9, %v11863_v54, %v20320_v53  ;;  %v21685_v17 = vld [vmem:[#allocation62_spill] sm:$0xff] }
 0x893   :  { %14663 = vmatpush1.bf16.msra.mxu0 %v14662_v22  ;;  %14669 = vmatprep.subr.bf16.mxu1 %v14668_v25  ;;  %v11872_v53 = vsel %vm2027_vm9, %v20481_v39, %v20328_v6  ;;  %v11890_v18 = vmul.f32 %v11880_v34, %v21582_v49  ;;  %v11893_v63 = vmul.f32 %v11868_v8, %v21678_v42  ;;  %v21679_v22 = vld [vmem:[#allocation33_spill] sm:$0xff] }
 0x894   :  { %14259 = vmatmul.mubr.msk.f32.gmra.mrb[30].mxu1 %vm6472_vm2, %v14251_v5  ;;  %14673 = vmatprep.subr.bf16.mxu0 %v14672_v10  ;;  %v11384_v5 = vld [vmem:[%s21261_s5 + $0x18] sm:$0xff]  ;;  %v20641_v25 = vmul.f32 %v20467_v44, %v21679_v22 }
 0x895   :  { %14671 = vmatpush1.bf16.msra.mxu1 %v14670_v40  ;;  %v20558_v11 = vpop.permute.xlu0 %12137  ;;  %11720 = vmatprep.mubr.f32.mxu0 %v21673_v35  ;;  %v20561_v23 = vpop.permute.xlu1 %12912  ;;  %v14268_v40 = vld [vmem:[%s21261_s5 + $0x40] sm:$0xff] }
 0x896   :  { %14681 = vmatprep.subr.bf16.mxu1 %v21676_v36  ;;  %14260 = vmatmul.mubr.msk.f32.vlgmr.msra.gmra.mrb[24].mxu0 %vm6472_vm2, %v11381_v1  ;;  %v21683_v36 = vld [vmem:[#allocation20_spill] sm:$0xff] }
 0x897   :  { %11809 = vmatprep.mubr.f32.mxu1 %v21673_v35  ;;  %14675 = vmatpush1.bf16.msra.mxu0 %v21677_v59  ;;  %v12147_v59 = vsel %vm2780_vm12, %v20543_v61, %v21685_v17 }
 0x898   :  { %14264 = vmatmul.mubr.msk.f32.vlgmr.msra.gmra.mrb[24].mxu1 %vm6472_vm2, %v11381_v1  ;;  %11726 = vmatprep.mubr.f32.mxu0 %v21673_v35  ;;  %v21681_v1 = vpack.c.bf16 %v20224_v16, %v20218_v31  ;;  %v14269_v16 = vld [vmem:[%s21261_s5 + $0x48] sm:$0xff]  ;;  %v12931_v31 = vsel %vm4022_vm0, %v20561_v23, %v20448_v55 }
 0x899   :  { %v20580_v3 = vpop.permute.xlu0 %12623  ;;  %v11849_v20 = vpop.permute.xlu1 %11848  ;;  %14683 = vmatpush1.bf16.msra.mxu1 %v14682_v9  ;;  %11815 = vmatprep.mubr.f32.mxu1 %v21673_v35 }
 0x89a   :  { %v11877_v33 = vsel %vm2027_vm9, %v20330_v12, %v11849_v20  ;;  %14261 = vmatmul.mubr.msk.f32.gmra.mrb[26].mxu0 %vm6472_vm2, %v11382_v51 }
 0x89b   :  { %v11895_v37 = vmul.f32 %v11877_v33, %v21674_v19  ;;  %11732 = vmatprep.mubr.f32.mxu0 %v21673_v35  ;;  %v11873_v19 = vsel %vm2027_vm9, %v11849_v20, %v20338_v41  ;;  %v21687_v20 = vld [vmem:[#allocation35_spill] sm:$0xff] }
 0x89c   :  { %14265 = vmatmul.mubr.msk.f32.gmra.mrb[26].mxu1 %vm6472_vm2, %v11382_v51  ;;  %v11896_v15 = vmul.f32 %v11873_v19, %v21675_v47  ;;  %v21686_v51 = vld [vmem:[#allocation29_spill] sm:$0xff] }
 0x89d   :  { %v20604_v62 = vpop.permute.xlu0 %12639  ;;  %v14676_v50 = vpack.c.bf16 %v11895_v37, %v11891_v32  ;;  %v11865_v54 = vpop.permute.xlu1 %11864  ;;  %11821 = vmatprep.mubr.f32.mxu1 %v21673_v35  ;;  %v21688_v33 = vpack.c.bf16 %v21686_v51, %v21687_v20  ;;  %v21689_v37 = vld [vmem:[#allocation49_spill] sm:$0xff]  ;;  %v21700_v20 = vld [vmem:[#allocation26_spill] sm:$0xff] }
 0x89e   :  { %v11869_v56 = vsel %vm2027_vm9, %v20338_v41, %v11865_v54  ;;  %v11881_v26 = vsel %vm2027_vm9, %v11865_v54, %v20330_v12  ;;  %14262 = vmatmul.mubr.msk.f32.gmra.mrb[28].mxu0 %vm6472_vm2, %v11383_v48  ;;  %v11892_v41 = vmul.f32 %v11872_v53, %v21675_v47  ;;  %v21680_v47 = vpack.c.bf16 %v20189_v28, %v20183_v43  ;;  %v21682_v43 = vld [vmem:[#allocation18_spill] sm:$0xff]  ;;  %v21692_v54 = vld [vmem:[#allocation64_spill] sm:$0xff]  ;;  %v21699_v51 = vld [vmem:[#allocation25_spill] sm:$0xff] }
 0x89f   :  { %v11894_v6 = vmul.f32 %v11881_v26, %v21582_v49  ;;  %v11897_v39 = vmul.f32 %v11869_v56, %v21678_v42  ;;  %14677 = vmatprep.subr.bf16.mxu0 %v14676_v50  ;;  %11738 = vmatprep.mubr.f32.mxu0 %v21673_v35  ;;  %v12151_v28 = vsel %vm2780_vm12, %v20336_v2, %v20543_v61  ;;  %v21691_v50 = vld [vmem:[#allocation65_spill] sm:$0xff]  ;;  %v21693_v42 = vld [vmem:[#allocation50_spill] sm:$0xff] }
 0x8a0   :  { %14266 = vmatmul.mubr.msk.f32.gmra.mrb[28].mxu1 %vm6472_vm2, %v11383_v48  ;;  %v14686_v10 = vpack.c.bf16 %v11896_v15, %v11892_v41  ;;  %v21684_v9 = vpack.c.bf16 %v21682_v43, %v21683_v36  ;;  %v12166_v8 = vmul.f32 %v12151_v28, %v21689_v37  ;;  %v21690_v48 = vld [vmem:[#allocation8_spill] sm:$0xff]  ;;  %v12155_v56 = vsel %vm2780_vm12, %v20558_v11, %v20336_v2 }
 0x8a1   :  { %v14678_v12 = vpack.c.bf16 %v11894_v6, %v11890_v18  ;;  %v20629_v29 = vpop.permute.xlu0 %12894  ;;  %11827 = vmatprep.mubr.f32.mxu1 %v21673_v35  ;;  %v14684_v49 = vpack.c.bf16 %v11897_v39, %v11893_v63  ;;  %v20698_v61 = vmul.f32 %v12931_v31, %v21690_v48  ;;  %v12167_v63 = vmul.f32 %v12147_v59, %v21693_v42  ;;  %v21697_v43 = vld [vmem:[#allocation52_spill] sm:$0xff] }
 0x8a2   :  { %v20631_v52 = vpop.permute.xlu1 %12892  ;;  %v12926_v27 = vsel %vm4022_vm0, %v20416_v58, %v20629_v29  ;;  %14263 = vmatmul.mubr.msk.f32.gmra.mrb[30].mxu0 %vm6472_vm2, %v11384_v5  ;;  %v12143_v6 = vsel %vm2780_vm12, %v21685_v17, %v20558_v11  ;;  %v21698_v17 = vld [vmem:[#allocation61_spill] sm:$0xff] }
 0x8a3   :  { %v20644_v38 = vmul.f32 %v12926_v27, %v21679_v22  ;;  %14679 = vmatpush1.bf16.msra.mxu0 %v14678_v12  ;;  %14685 = vmatprep.subr.bf16.mxu1 %v14684_v49  ;;  %v21694_v49 = vld [vmem:[#allocation51_spill] sm:$0xff]  ;;  %v12168_v36 = vmul.f32 %v12143_v6, %v21697_v43 }
 0x8a4   :  { %14267 = vmatmul.mubr.msk.f32.gmra.mrb[30].mxu1 %vm6472_vm2, %v11384_v5  ;;  %14689 = vmatprep.subr.bf16.mxu0 %v21680_v47  ;;  %v12165_v27 = vmul.f32 %v12155_v56, %v21694_v49  ;;  %v21695_v47 = vld [vmem:[#allocation16_spill] sm:$0xff]  ;;  %v21704_v56 = vld [vmem:[#allocation46_spill] sm:$0xff]  ;;  %v21706_v6 = vld [vmem:[#allocation59_spill] sm:$0xff] }
 0x8a5   :  { %v14738_v44 = vpack.c.bf16 %v20641_v25, %v20644_v38  ;;  %14687 = vmatpush1.bf16.msra.mxu1 %v14686_v10  ;;  %11979 = vmatprep.mubr.f32.mxu0 %v21673_v35  ;;  %v12385_v59 = vmul.f32 %v21698_v17, %v21695_v47 }
 0x8a6   :  { %v20655_v4 = vpop.permute.xlu0 %12902  ;;  %14697 = vmatprep.subr.bf16.mxu1 %v21681_v1  ;;  %v20661_v30 = vpop.permute.xlu1 %12908  ;;  %14272 = vmatmul.mubr.msk.f32.vlgmr.msra.gmra.mrb[24].mxu0 %vm6472_vm2, %v14268_v40  ;;  %v21696_v1 = vld [vmem:[#allocation63_spill] sm:$0xff] }
 0x8a7   :  { %12068 = vmatprep.mubr.f32.mxu1 %v21673_v35  ;;  %14691 = vmatpush1.bf16.msra.mxu0 %v21684_v9  ;;  %v12389_v28 = vmul.f32 %v21696_v1, %v21695_v47 }
 0x8a8   :  { %14276 = vmatmul.mubr.msk.f32.vlgmr.msra.gmra.mrb[24].mxu1 %vm6472_vm2, %v14268_v40  ;;  %11985 = vmatprep.mubr.f32.mxu0 %v21673_v35  ;;  %v14271_v40 = vld [vmem:[%s21261_s5 + $0x58] sm:$0xff] }
 0x8a9   :  { %14699 = vmatpush1.bf16.msra.mxu1 %v21688_v33  ;;  %12074 = vmatprep.mubr.f32.mxu1 %v21673_v35  ;;  %v12391_v33 = vmul.f32 %v21700_v20, %v21699_v51  ;;  %v21709_v20 = vld [vmem:[#allocation54_spill] sm:$0xff] }
 0x8aa   :  { %v20688_v32 = vpop.permute.xlu0 %12910  ;;  %v12124_v34 = vpop.permute.xlu1 %12123  ;;  %14273 = vmatmul.mubr.msk.f32.gmra.mrb[26].mxu0 %vm6472_vm2, %v14269_v16 }
 0x8ab   :  { %v12930_v55 = vsel %vm4022_vm0, %v20688_v32, %v20416_v58  ;;  %v12148_v53 = vsel %vm2780_vm12, %v12124_v34, %v21691_v50  ;;  %v12152_v18 = vsel %vm2780_vm12, %v21692_v54, %v12124_v34  ;;  %11991 = vmatprep.mubr.f32.mxu0 %v21673_v35  ;;  %v14270_v58 = vld [vmem:[%s21261_s5 + $0x50] sm:$0xff]  ;;  %v21701_v34 = vld [vmem:[#allocation24_spill] sm:$0xff] }
 0x8ac   :  { %v20701_v19 = vmul.f32 %v12930_v55, %v21690_v48  ;;  %v12170_v26 = vmul.f32 %v12152_v18, %v21689_v37  ;;  %v12171_v15 = vmul.f32 %v12148_v53, %v21693_v42  ;;  %14277 = vmatmul.mubr.msk.f32.gmra.mrb[26].mxu1 %vm6472_vm2, %v14269_v16  ;;  %v21703_v18 = vld [vmem:[#allocation60_spill] sm:$0xff]  ;;  %v12397_v42 = vmul.f32 %v20009_v60, %v21695_v47 }
 0x8ad   :  { %12080 = vmatprep.mubr.f32.mxu1 %v21673_v35  ;;  %v12393_v60 = vmul.f32 %v19999_v45, %v21695_v47  ;;  %v12395_v45 = vmul.f32 %v20006_v46, %v21699_v51  ;;  %v21708_v47 = vld [vmem:[#allocation28_spill] sm:$0xff] }
 0x8ae   :  { %v20725_v39 = vpop.permute.xlu0 %12890  ;;  %v14744_v5 = vpack.c.bf16 %v20698_v61, %v20701_v19  ;;  %v14702_v41 = vpack.c.bf16 %v12171_v15, %v12167_v63  ;;  %v12140_v2 = vpop.permute.xlu1 %12139  ;;  %14274 = vmatmul.mubr.msk.f32.gmra.mrb[28].mxu0 %vm6472_vm2, %v14270_v58  ;;  %v14692_v12 = vpack.c.bf16 %v12170_v26, %v12166_v8  ;;  %v14280_v63 = vld [vmem:[%s21261_s5 + $0x60] sm:$0xff]  ;;  %v12384_v26 = vmul.f32 %v21704_v56, %v21701_v34  ;;  %v21705_v15 = vld [vmem:[#allocation17_spill] sm:$0xff] }
 0x8af   :  { %v12144_v10 = vsel %vm2780_vm12, %v21691_v50, %v12140_v2  ;;  %v12156_v11 = vsel %vm2780_vm12, %v12140_v2, %v21692_v54  ;;  %11997 = vmatprep.mubr.f32.mxu0 %v21673_v35  ;;  %v21702_v50 = vld [vmem:[#allocation39_spill] sm:$0xff]  ;;  %v14704_v54 = vpack.c.bf16 %v12389_v28, %v12385_v59  ;;  %v12390_v2 = vmul.f32 %v21706_v6, %v21705_v15 }
 0x8b0   :  { %v12169_v9 = vmul.f32 %v12156_v11, %v21694_v49  ;;  %v12172_v16 = vmul.f32 %v12144_v10, %v21697_v43  ;;  %14278 = vmatmul.mubr.msk.f32.gmra.mrb[28].mxu1 %vm6472_vm2, %v14270_v58  ;;  %14693 = vmatprep.subr.bf16.mxu0 %v14692_v12  ;;  %v12388_v53 = vmul.f32 %v21702_v50, %v21701_v34  ;;  %v21713_v50 = vld [vmem:[#allocation58_spill] sm:$0xff]  ;;  %v21716_v6 = vld [vmem:[#allocation67_spill] sm:$0xff] }
 0x8b1   :  { %12086 = vmatprep.mubr.f32.mxu1 %v21673_v35  ;;  %v12387_v58 = vmul.f32 %v21703_v18, %v21699_v51  ;;  %v12396_v28 = vmul.f32 %v19958_v14, %v21701_v34  ;;  %v14708_v43 = vpack.c.bf16 %v12397_v42, %v12393_v60  ;;  %v12398_v14 = vmul.f32 %v19964_v24, %v21705_v15  ;;  %v14292_v42 = vld [vmem:[%s21261_s5 + $0x80] sm:$0xff]  ;;  %v21718_v60 = vld [vmem:[#allocation53_spill] sm:$0xff] }
 0x8b2   :  { %v20748_v31 = vpop.permute.xlu0 %12898  ;;  %v14694_v37 = vpack.c.bf16 %v12169_v9, %v12165_v27  ;;  %v20755_v8 = vpop.permute.xlu1 %13163  ;;  %14275 = vmatmul.mubr.msk.f32.gmra.mrb[30].mxu0 %vm6472_vm2, %v14271_v40  ;;  %v14700_v55 = vpack.c.bf16 %v12172_v16, %v12168_v36  ;;  %v12399_v27 = vmul.f32 %v20018_v13, %v21699_v51  ;;  %v14706_v11 = vpack.c.bf16 %v12388_v53, %v12384_v26  ;;  %v14282_v51 = vld [vmem:[%s21261_s5 + $0x70] sm:$0xff] }
 0x8b3   :  { %12254 = vmatprep.mubr.f32.mxu0 %v21673_v35  ;;  %v14712_v49 = vpack.c.bf16 %v12391_v33, %v12387_v58  ;;  %v12392_v36 = vmul.f32 %v21708_v47, %v21701_v34  ;;  %v12394_v59 = vmul.f32 %v19956_v0, %v21705_v15  ;;  %v21710_v33 = vld [vmem:[#allocation57_spill] sm:$0xff]  ;;  %v21712_v34 = vld [vmem:[#allocation56_spill] sm:$0xff]  ;;  %v21715_v26 = vld [vmem:[#allocation66_spill] sm:$0xff] }
 0x8b4   :  { %14279 = vmatmul.mubr.msk.f32.gmra.mrb[30].mxu1 %vm6472_vm2, %v14271_v40  ;;  %14695 = vmatpush1.bf16.msra.mxu0 %v14694_v37  ;;  %v21707_v40 = vld [vmem:[#allocation55_spill] sm:$0xff]  ;;  %v14716_v46 = vpack.c.bf16 %v12399_v27, %v12395_v45  ;;  %v21711_v37 = vpack.c.bf16 %v21709_v20, %v21710_v33  ;;  %v21714_v53 = vpack.c.bf16 %v21712_v34, %v21713_v50  ;;  %v21721_v45 = vld [vmem:[#allocation37_spill] sm:$0xff]  ;;  %v14294_v34 = vld [vmem:[%s21261_s5 + $0x90] sm:$0xff] }
 0x8b5   :  { %14701 = vmatprep.subr.bf16.mxu1 %v14700_v55  ;;  %14705 = vmatprep.subr.bf16.mxu0 %v14704_v54  ;;  %v12386_v1 = vmul.f32 %v21707_v40, %v21705_v15  ;;  %v14710_v17 = vpack.c.bf16 %v12396_v28, %v12392_v36  ;;  %v14718_v24 = vpack.c.bf16 %v12398_v14, %v12394_v59  ;;  %v14283_v54 = vld [vmem:[%s21261_s5 + $0x78] sm:$0xff]  ;;  %v21724_v36 = vld [vmem:[#allocation32_spill] sm:$0xff] }
 0x8b6   :  { %v20773_v12 = vpop.permute.xlu0 %12906  ;;  %14703 = vmatpush1.bf16.msra.mxu1 %v14702_v41  ;;  %v20779_v10 = vpop.permute.xlu1 %13171  ;;  %12343 = vmatprep.mubr.f32.mxu1 %v21673_v35  ;;  %v14281_v41 = vld [vmem:[%s21261_s5 + $0x68] sm:$0xff]  ;;  %v12653_v15 = vsel %vm3269_vm13, %v21715_v26, %v20580_v3  ;;  %v12922_v40 = vsel %vm4022_vm0, %v20629_v29, %v20655_v4  ;;  %v21720_v28 = vld [vmem:[#allocation19_spill] sm:$0xff]  ;;  %v12645_v14 = vsel %vm3269_vm13, %v21716_v6, %v20604_v62 }
 0x8b7   :  { %14713 = vmatprep.subr.bf16.mxu1 %v14712_v49  ;;  %14284 = vmatmul.mubr.msk.f32.vlgmr.msra.gmra.mrb[24].mxu0 %vm6472_vm2, %v14280_v63  ;;  %v14714_v13 = vpack.c.bf16 %v12390_v2, %v12386_v1  ;;  %v12649_v2 = vsel %vm3269_vm13, %v20580_v3, %v21716_v6  ;;  %v21717_v49 = vld [vmem:[#allocation38_spill] sm:$0xff]  ;;  %v12923_v3 = vsel %vm4022_vm0, %v20461_v57, %v20545_v21  ;;  %v21729_v6 = vld [vmem:[#allocation27_spill] sm:$0xff] }
 0x8b8   :  { %14707 = vmatpush1.bf16.msra.mxu0 %v14706_v11  ;;  %12260 = vmatprep.mubr.f32.mxu0 %v21673_v35  ;;  %v21719_v27 = vpack.c.bf16 %v21717_v49, %v21718_v60  ;;  %v14293_v11 = vld [vmem:[%s21261_s5 + $0x88] sm:$0xff]  ;;  %v12668_v29 = vmul.f32 %v12649_v2, %v21724_v36  ;;  %v12924_v61 = vsel %vm4022_vm0, %v20748_v31, %v20773_v12 }
 0x8b9   :  { %14288 = vmatmul.mubr.msk.f32.vlgmr.msra.gmra.mrb[24].mxu1 %vm6472_vm2, %v14280_v63  ;;  %14709 = vmatprep.subr.bf16.mxu0 %v14708_v43  ;;  %v12667_v43 = vmul.f32 %v12653_v15, %v21720_v28 }
 0x8ba   :  { %v20798_v9 = vpop.permute.xlu0 %12914  ;;  %14715 = vmatpush1.bf16.msra.mxu1 %v14714_v13  ;;  %v20800_v16 = vpop.permute.xlu1 %13179  ;;  %12349 = vmatprep.mubr.f32.mxu1 %v21673_v35  ;;  %v21722_v13 = vld [vmem:[#allocation44_spill] sm:$0xff] }
 0x8bb   :  { %14717 = vmatprep.subr.bf16.mxu1 %v14716_v46  ;;  %14285 = vmatmul.mubr.msk.f32.gmra.mrb[26].mxu0 %vm6472_vm2, %v14281_v41  ;;  %v21725_v46 = vld [vmem:[#allocation69_spill] sm:$0xff]  ;;  %v12920_v38 = vsel %vm4022_vm0, %v20773_v12, %v20798_v9 }
 0x8bc   :  { %14711 = vmatpush1.bf16.msra.mxu0 %v14710_v17  ;;  %12266 = vmatprep.mubr.f32.mxu0 %v21673_v35  ;;  %v21726_v17 = vld [vmem:[#allocation68_spill] sm:$0xff] }
 0x8bd   :  { %14289 = vmatmul.mubr.msk.f32.gmra.mrb[26].mxu1 %vm6472_vm2, %v14281_v41  ;;  %14721 = vmatprep.subr.bf16.mxu0 %v21711_v37  ;;  %v21723_v41 = vpack.c.bf16 %v21721_v45, %v21722_v13 }
 0x8be   :  { %v20814_v55 = vpop.permute.xlu0 %13161  ;;  %14719 = vmatpush1.bf16.msra.mxu1 %v14718_v24  ;;  %v20816_v0 = vpop.permute.xlu1 %13187  ;;  %12355 = vmatprep.mubr.f32.mxu1 %v21673_v35  ;;  %v12657_v24 = vsel %vm3269_vm13, %v20604_v62, %v21715_v26  ;;  %v21728_v26 = vld [vmem:[#allocation31_spill] sm:$0xff] }
 0x8bf   :  { %14729 = vmatprep.subr.bf16.mxu1 %v21714_v53  ;;  %14286 = vmatmul.mubr.msk.f32.gmra.mrb[28].mxu0 %vm6472_vm2, %v14282_v51  ;;  %v12669_v15 = vmul.f32 %v12645_v14, %v21728_v26  ;;  %v12670_v2 = vmul.f32 %v12657_v24, %v21729_v6 }
 0x8c0   :  { %12272 = vmatprep.mubr.f32.mxu0 %v21673_v35 }
 0x8c1   :  { %14290 = vmatmul.mubr.msk.f32.gmra.mrb[28].mxu1 %vm6472_vm2, %v14282_v51  ;;  %v21727_v51 = vld [vmem:[#allocation34_spill] sm:$0xff] }
 0x8c2   :  { %v20828_v18 = vpop.permute.xlu0 %13169  ;;  %v20830_v58 = vpop.permute.xlu1 %13167  ;;  %12361 = vmatprep.mubr.f32.mxu1 %v21673_v35  ;;  %v12935_v20 = vmul.f32 %v12922_v40, %v21727_v51  ;;  %v12939_v53 = vmul.f32 %v12923_v3, %v21727_v51  ;;  %v14295_v3 = vld [vmem:[%s21261_s5 + $0x98] sm:$0xff] }
 0x8c3   :  { %14287 = vmatmul.mubr.msk.f32.gmra.mrb[30].mxu0 %vm6472_vm2, %v14283_v54 }
 0x8c4   :  { %12481 = vmatprep.mubr.f32.mxu0 %v21673_v35  ;;  %v14736_v40 = vpack.c.bf16 %v12939_v53, %v12935_v20 }
 0x8c5   :  { %14291 = vmatmul.mubr.msk.f32.gmra.mrb[30].mxu1 %vm6472_vm2, %v14283_v54 }
 0x8c6   :  { %v20839_v63 = vpop.permute.xlu0 %13177  ;;  %v20841_v56 = vpop.permute.xlu1 %13183  ;;  %12570 = vmatprep.mubr.f32.mxu1 %v21673_v35 }
 0x8c7   :  { %14296 = vmatmul.mubr.msk.f32.vlgmr.msra.gmra.mrb[24].mxu0 %vm6472_vm2, %v14292_v42  ;;  %v13197_v19 = vsel %vm4273_vm1, %v20828_v18, %v20839_v63 }
 0x8c8   :  { %14723 = vmatpush1.bf16.msra.mxu0 %v21719_v27  ;;  %12487 = vmatprep.mubr.f32.mxu0 %v21673_v35 }
 0x8c9   :  { %14300 = vmatmul.mubr.msk.f32.vlgmr.msra.gmra.mrb[24].mxu1 %vm6472_vm2, %v14292_v42 }
 0x8ca   :  { %v20865_v1 = vpop.permute.xlu0 %13185  ;;  %14731 = vmatpush1.bf16.msra.mxu1 %v21723_v41  ;;  %v12626_v47 = vpop.permute.xlu1 %12625  ;;  %12576 = vmatprep.mubr.f32.mxu1 %v21673_v35 }
 0x8cb   :  { %v12650_v57 = vsel %vm3269_vm13, %v12626_v47, %v21725_v46  ;;  %v12654_v59 = vsel %vm3269_vm13, %v21726_v17, %v12626_v47  ;;  %14297 = vmatmul.mubr.msk.f32.gmra.mrb[26].mxu0 %vm6472_vm2, %v14293_v11  ;;  %v12919_v47 = vsel %vm4022_vm0, %v20545_v21, %v20561_v23  ;;  %v12928_v23 = vsel %vm4022_vm0, %v20725_v39, %v20748_v31 }
 0x8cc   :  { %v12671_v33 = vmul.f32 %v12654_v59, %v21720_v28  ;;  %v12672_v37 = vmul.f32 %v12650_v57, %v21724_v36  ;;  %12493 = vmatprep.mubr.f32.mxu0 %v21673_v35  ;;  %v12918_v28 = vsel %vm4022_vm0, %v20655_v4, %v20688_v32  ;;  %v21730_v4 = vld [vmem:[#allocation36_spill] sm:$0xff]  ;;  %v14305_v57 = vld [vmem:[%s21261_s5 + $0xa8] sm:$0xff]  ;;  %v12942_v31 = vmul.f32 %v12928_v23, %v21679_v22 }
 0x8cd   :  { %14301 = vmatmul.mubr.msk.f32.gmra.mrb[26].mxu1 %vm6472_vm2, %v14293_v11  ;;  %v12936_v32 = vmul.f32 %v12918_v28, %v21730_v4  ;;  %v14304_v36 = vld [vmem:[%s21261_s5 + $0xa0] sm:$0xff]  ;;  %v12940_v14 = vmul.f32 %v12919_v47, %v21730_v4  ;;  %v21734_v47 = vld [vmem:[#allocation14_spill] sm:$0xff] }
 0x8ce   :  { %v20900_v50 = vpop.permute.xlu0 %13165  ;;  %v14726_v54 = vpack.c.bf16 %v12671_v33, %v12667_v43  ;;  %v12642_v62 = vpop.permute.xlu1 %12641  ;;  %12582 = vmatprep.mubr.f32.mxu1 %v21673_v35  ;;  %v14724_v42 = vpack.c.bf16 %v12672_v37, %v12668_v29  ;;  %v14306_v37 = vld [vmem:[%s21261_s5 + $0xb0] sm:$0xff] }
 0x8cf   :  { %v12646_v49 = vsel %vm3269_vm13, %v21725_v46, %v12642_v62  ;;  %v12658_v60 = vsel %vm3269_vm13, %v12642_v62, %v21726_v17  ;;  %14298 = vmatmul.mubr.msk.f32.gmra.mrb[28].mxu0 %vm6472_vm2, %v14294_v34  ;;  %v14746_v21 = vpack.c.bf16 %v12940_v14, %v12936_v32  ;;  %v13198_v17 = vsel %vm4273_vm1, %v20779_v10, %v20800_v16  ;;  %v14316_v32 = vld [vmem:[%s21261_s5 + $0xc0] sm:$0xff] }
 0x8d0   :  { %v12673_v27 = vmul.f32 %v12646_v49, %v21728_v26  ;;  %v12674_v11 = vmul.f32 %v12658_v60, %v21729_v6  ;;  %14725 = vmatprep.subr.bf16.mxu0 %v14724_v42  ;;  %12499 = vmatprep.mubr.f32.mxu0 %v21673_v35  ;;  %v13201_v6 = vsel %vm4273_vm1, %v20814_v55, %v20828_v18  ;;  %v21732_v18 = vld [vmem:[#allocation15_spill] sm:$0xff] }
 0x8d1   :  { %14302 = vmatmul.mubr.msk.f32.gmra.mrb[28].mxu1 %vm6472_vm2, %v14294_v34  ;;  %14727 = vmatpush1.bf16.msra.mxu0 %v14726_v54  ;;  %v12944_v34 = vmul.f32 %v12920_v38, %v21730_v4 }
 0x8d2   :  { %v20924_v43 = vpop.permute.xlu0 %13173  ;;  %v14734_v45 = vpack.c.bf16 %v12673_v27, %v12669_v15  ;;  %v20926_v13 = vpop.permute.xlu1 %13438  ;;  %14737 = vmatprep.subr.bf16.mxu0 %v14736_v40  ;;  %12588 = vmatprep.mubr.f32.mxu1 %v21673_v35  ;;  %v14732_v41 = vpack.c.bf16 %v12674_v11, %v12670_v2  ;;  %v13206_v15 = vsel %vm4273_vm1, %v20816_v0, %v20755_v8 }
 0x8d3   :  { %14299 = vmatmul.mubr.msk.f32.gmra.mrb[30].mxu0 %vm6472_vm2, %v14295_v3 }
 0x8d4   :  { %14733 = vmatprep.subr.bf16.mxu1 %v14732_v41  ;;  %12756 = vmatprep.mubr.f32.mxu0 %v21673_v35 }
 0x8d5   :  { %14303 = vmatmul.mubr.msk.f32.gmra.mrb[30].mxu1 %vm6472_vm2, %v14295_v3  ;;  %v21733_v3 = vld [vmem:[#allocation10_spill] sm:$0xff] }
 0x8d6   :  { %v20940_v29 = vpop.permute.xlu0 %13181  ;;  %14735 = vmatpush1.bf16.msra.mxu1 %v14734_v45  ;;  %v20943_v46 = vpop.permute.xlu1 %13446  ;;  %12845 = vmatprep.mubr.f32.mxu1 %v21673_v35  ;;  %v13209_v28 = vmul.f32 %v13201_v6, %v21733_v3 }
 0x8d7   :  { %14745 = vmatprep.subr.bf16.mxu1 %v14744_v5  ;;  %14308 = vmatmul.mubr.msk.f32.vlgmr.msra.gmra.mrb[24].mxu0 %vm6472_vm2, %v14304_v36 }
 0x8d8   :  { %14739 = vmatpush1.bf16.msra.mxu0 %v14738_v44  ;;  %12762 = vmatprep.mubr.f32.mxu0 %v21673_v35  ;;  %v12932_v44 = vsel %vm4022_vm0, %v20798_v9, %v20725_v39  ;;  %v12943_v39 = vmul.f32 %v12924_v61, %v21727_v51  ;;  %v21731_v9 = vld [vmem:[#allocation11_spill] sm:$0xff]  ;;  %v14317_v61 = vld [vmem:[%s21261_s5 + $0xc8] sm:$0xff] }
 0x8d9   :  { %14312 = vmatmul.mubr.msk.f32.vlgmr.msra.gmra.mrb[24].mxu1 %vm6472_vm2, %v14304_v36  ;;  %v13210_v24 = vmul.f32 %v13197_v19, %v21731_v9  ;;  %v12945_v53 = vmul.f32 %v12932_v44, %v21690_v48  ;;  %v13214_v62 = vmul.f32 %v13198_v17, %v21731_v9  ;;  %v13199_v19 = vsel %vm4273_vm1, %v20924_v43, %v20940_v29 }
 0x8da   :  { %v20970_v25 = vpop.permute.xlu0 %13189  ;;  %14747 = vmatpush1.bf16.msra.mxu1 %v14746_v21  ;;  %v12901_v5 = vpop.permute.xlu1 %12900  ;;  %12851 = vmatprep.mubr.f32.mxu1 %v21673_v35 }
 0x8db   :  { %v12925_v12 = vsel %vm4022_vm0, %v12901_v5, %v20661_v30  ;;  %v12929_v59 = vsel %vm4022_vm0, %v20631_v52, %v12901_v5  ;;  %14309 = vmatmul.mubr.msk.f32.gmra.mrb[26].mxu0 %vm6472_vm2, %v14305_v57  ;;  %v14752_v11 = vpack.c.bf16 %v13214_v62, %v13210_v24  ;;  %v13195_v5 = vsel %vm4273_vm1, %v20940_v29, %v20970_v25 }
 0x8dc   :  { %v12946_v20 = vmul.f32 %v12929_v59, %v21679_v22  ;;  %v12947_v33 = vmul.f32 %v12925_v12, %v21727_v51  ;;  %12768 = vmatprep.mubr.f32.mxu0 %v21673_v35  ;;  %v13205_v22 = vsel %vm4273_vm1, %v20865_v1, %v20814_v55  ;;  %v14307_v55 = vld [vmem:[%s21261_s5 + $0xb8] sm:$0xff] }
 0x8dd   :  { %14313 = vmatmul.mubr.msk.f32.gmra.mrb[26].mxu1 %vm6472_vm2, %v14305_v57  ;;  %v13203_v57 = vsel %vm4273_vm1, %v20900_v50, %v20924_v43 }
 0x8de   :  { %v21004_v54 = vpop.permute.xlu0 %13436  ;;  %v14742_v51 = vpack.c.bf16 %v12946_v20, %v12942_v31  ;;  %v12917_v42 = vpop.permute.xlu1 %12916  ;;  %12857 = vmatprep.mubr.f32.mxu1 %v21673_v35  ;;  %v14740_v26 = vpack.c.bf16 %v12947_v33, %v12943_v39  ;;  %v13207_v31 = vsel %vm4273_vm1, %v20970_v25, %v20900_v50  ;;  %v13217_v43 = vmul.f32 %v13203_v57, %v21733_v3  ;;  %v21735_v25 = vld [vmem:[#allocation13_spill] sm:$0xff]  ;;  %v14318_v33 = vld [vmem:[%s21261_s5 + $0xd0] sm:$0xff] }
 0x8df   :  { %v12921_v2 = vsel %vm4022_vm0, %v20661_v30, %v12917_v42  ;;  %v12933_v49 = vsel %vm4022_vm0, %v12917_v42, %v20631_v52  ;;  %14310 = vmatmul.mubr.msk.f32.gmra.mrb[28].mxu0 %vm6472_vm2, %v14306_v37  ;;  %v13202_v30 = vsel %vm4273_vm1, %v20755_v8, %v20779_v10  ;;  %v13193_v52 = vsel %vm4273_vm1, %v20839_v63, %v20865_v1 }
 0x8e0   :  { %v12948_v60 = vmul.f32 %v12921_v2, %v21730_v4  ;;  %v12949_v27 = vmul.f32 %v12933_v49, %v21690_v48  ;;  %14741 = vmatprep.subr.bf16.mxu0 %v14740_v26  ;;  %12774 = vmatprep.mubr.f32.mxu0 %v21673_v35  ;;  %v13212_v48 = vmul.f32 %v13205_v22, %v21732_v18 }
 0x8e1   :  { %14314 = vmatmul.mubr.msk.f32.gmra.mrb[28].mxu1 %vm6472_vm2, %v14306_v37  ;;  %14743 = vmatpush1.bf16.msra.mxu0 %v14742_v51  ;;  %v13194_v10 = vsel %vm4273_vm1, %v20800_v16, %v20816_v0  ;;  %v13216_v63 = vmul.f32 %v13206_v15, %v21732_v18  ;;  %v13213_v1 = vmul.f32 %v13202_v30, %v21733_v3 }
 0x8e2   :  { %v13445_v40 = vpop.permute.xlu0 %13444  ;;  %v14750_v45 = vpack.c.bf16 %v12948_v60, %v12944_v34  ;;  %v21044_v41 = vpop.permute.xlu1 %13454  ;;  %14753 = vmatprep.subr.bf16.mxu0 %v14752_v11  ;;  %12863 = vmatprep.mubr.f32.mxu1 %v21673_v35  ;;  %v14748_v8 = vpack.c.bf16 %v12949_v27, %v12945_v53  ;;  %v13211_v4 = vmul.f32 %v13193_v52, %v21734_v47  ;;  %v14319_v27 = vld [vmem:[%s21261_s5 + $0xd8] sm:$0xff]  ;;  %v21736_v11 = vld [vmem:[#allocation22_spill] sm:$0xff]  ;;  %v21737_v52 = vld [vmem:[#allocation12_spill] sm:$0xff] }
 0x8e3   :  { %14311 = vmatmul.mubr.msk.f32.gmra.mrb[30].mxu0 %vm6472_vm2, %v14307_v55  ;;  %v14760_v14 = vpack.c.bf16 %v13216_v63, %v13212_v48  ;;  %v13215_v16 = vmul.f32 %v13194_v10, %v21734_v47  ;;  %v14754_v0 = vpack.c.bf16 %v13213_v1, %v13209_v28  ;;  %v13473_v12 = vsel %vm4524_vm3, %v20943_v46, %v21044_v41  ;;  %v14328_v10 = vld [vmem:[%s21261_s5 + $0xe0] sm:$0xff] }
 0x8e4   :  { %14749 = vmatprep.subr.bf16.mxu1 %v14748_v8  ;;  %13031 = vmatprep.mubr.f32.mxu0 %v21673_v35  ;;  %v13218_v50 = vmul.f32 %v13199_v19, %v21731_v9  ;;  %v13219_v37 = vmul.f32 %v13195_v5, %v21734_v47  ;;  %v13220_v34 = vmul.f32 %v13207_v31, %v21732_v18  ;;  %v14330_v31 = vld [vmem:[%s21261_s5 + $0xf0] sm:$0xff] }
 0x8e5   :  { %14315 = vmatmul.mubr.msk.f32.gmra.mrb[30].mxu1 %vm6472_vm2, %v14307_v55  ;;  %v14762_v23 = vpack.c.bf16 %v13215_v16, %v13211_v4  ;;  %v13489_v62 = vmul.f32 %v13473_v12, %v21735_v25  ;;  %v13476_v26 = vsel %vm4524_vm3, %v21004_v54, %v13445_v40 }
 0x8e6   :  { %v13453_v36 = vpop.permute.xlu0 %13452  ;;  %14751 = vmatpush1.bf16.msra.mxu1 %v14750_v45  ;;  %v21061_v21 = vpop.permute.xlu1 %13462  ;;  %13120 = vmatprep.mubr.f32.mxu1 %v21673_v35  ;;  %v21738_v45 = vld [vmem:[#allocation9_spill] sm:$0xff] }
 0x8e7   :  { %14761 = vmatprep.subr.bf16.mxu1 %v14760_v14  ;;  %14320 = vmatmul.mubr.msk.f32.vlgmr.msra.gmra.mrb[24].mxu0 %vm6472_vm2, %v14316_v32  ;;  %v13472_v38 = vsel %vm4524_vm3, %v13445_v40, %v13453_v36  ;;  %v13481_v15 = vsel %vm4524_vm3, %v21061_v21, %v20926_v13  ;;  %v14329_v14 = vld [vmem:[%s21261_s5 + $0xe8] sm:$0xff] }
 0x8e8   :  { %14755 = vmatpush1.bf16.msra.mxu0 %v14754_v0  ;;  %13037 = vmatprep.mubr.f32.mxu0 %v21673_v35  ;;  %v13485_v39 = vmul.f32 %v13472_v38, %v21735_v25 }
 0x8e9   :  { %14324 = vmatmul.mubr.msk.f32.vlgmr.msra.gmra.mrb[24].mxu1 %vm6472_vm2, %v14316_v32 }
 0x8ea   :  { %v13461_v44 = vpop.permute.xlu0 %13460  ;;  %14763 = vmatpush1.bf16.msra.mxu1 %v14762_v23  ;;  %v13176_v17 = vpop.permute.xlu1 %13175  ;;  %13126 = vmatprep.mubr.f32.mxu1 %v21673_v35 }
 0x8eb   :  { %v13200_v29 = vsel %vm4273_vm1, %v13176_v17, %v20841_v56  ;;  %v13204_v59 = vsel %vm4273_vm1, %v20830_v58, %v13176_v17  ;;  %14321 = vmatmul.mubr.msk.f32.gmra.mrb[26].mxu0 %vm6472_vm2, %v14317_v61 }
 0x8ec   :  { %v13221_v24 = vmul.f32 %v13204_v59, %v21733_v3  ;;  %v13222_v20 = vmul.f32 %v13200_v29, %v21731_v9  ;;  %13043 = vmatprep.mubr.f32.mxu0 %v21673_v35  ;;  %v13480_v9 = vsel %vm4524_vm3, %v13461_v44, %v21004_v54  ;;  %v14768_v54 = vpack.c.bf16 %v13489_v62, %v13485_v39  ;;  %v14342_v62 = vld [vmem:[%s21261_s5 + $0x110] sm:$0xff] }
 0x8ed   :  { %14325 = vmatmul.mubr.msk.f32.gmra.mrb[26].mxu1 %vm6472_vm2, %v14317_v61  ;;  %v13487_v55 = vmul.f32 %v13480_v9, %v21736_v11  ;;  %v14343_v9 = vld [vmem:[%s21261_s5 + $0x118] sm:$0xff] }
 0x8ee   :  { %v21112_v53 = vpop.permute.xlu0 %13440  ;;  %v14758_v22 = vpack.c.bf16 %v13221_v24, %v13217_v43  ;;  %v13192_v51 = vpop.permute.xlu1 %13191  ;;  %13132 = vmatprep.mubr.f32.mxu1 %v21673_v35  ;;  %v14756_v42 = vpack.c.bf16 %v13222_v20, %v13218_v50 }
 0x8ef   :  { %v13196_v6 = vsel %vm4273_vm1, %v20841_v56, %v13192_v51  ;;  %v13208_v2 = vsel %vm4273_vm1, %v13192_v51, %v20830_v58  ;;  %14322 = vmatmul.mubr.msk.f32.gmra.mrb[28].mxu0 %vm6472_vm2, %v14318_v33  ;;  %v13477_v56 = vsel %vm4524_vm3, %v20926_v13, %v20943_v46  ;;  %v13468_v58 = vsel %vm4524_vm3, %v13453_v36, %v13461_v44 }
 0x8f0   :  { %v13223_v49 = vmul.f32 %v13196_v6, %v21734_v47  ;;  %v13224_v60 = vmul.f32 %v13208_v2, %v21732_v18  ;;  %14757 = vmatprep.subr.bf16.mxu0 %v14756_v42  ;;  %13049 = vmatprep.mubr.f32.mxu0 %v21673_v35  ;;  %v13484_v18 = vmul.f32 %v13476_v26, %v21737_v52 }
 0x8f1   :  { %14326 = vmatmul.mubr.msk.f32.gmra.mrb[28].mxu1 %vm6472_vm2, %v14318_v33  ;;  %14759 = vmatpush1.bf16.msra.mxu0 %v14758_v22  ;;  %v13469_v13 = vsel %vm4524_vm3, %v21044_v41, %v21061_v21  ;;  %v13491_v46 = vmul.f32 %v13481_v15, %v21736_v11  ;;  %v13488_v28 = vmul.f32 %v13477_v56, %v21737_v52  ;;  %v14331_v33 = vld [vmem:[%s21261_s5 + $0xf8] sm:$0xff] }
 0x8f2   :  { %v13449_v30 = vpop.permute.xlu0 %13448  ;;  %v14766_v48 = vpack.c.bf16 %v13223_v49, %v13219_v37  ;;  %v13443_v40 = vpop.permute.xlu1 %13442  ;;  %14769 = vmatprep.subr.bf16.mxu0 %v14768_v54  ;;  %13138 = vmatprep.mubr.f32.mxu1 %v21673_v35  ;;  %v14764_v3 = vpack.c.bf16 %v13224_v60, %v13220_v34  ;;  %v13486_v8 = vmul.f32 %v13468_v58, %v21738_v45  ;;  %v14340_v34 = vld [vmem:[%s21261_s5 + $0x100] sm:$0xff] }
 0x8f3   :  { %14323 = vmatmul.mubr.msk.f32.gmra.mrb[30].mxu0 %vm6472_vm2, %v14319_v27  ;;  %v14776_v1 = vpack.c.bf16 %v13491_v46, %v13487_v55  ;;  %v14770_v41 = vpack.c.bf16 %v13488_v28, %v13484_v18  ;;  %v13490_v47 = vmul.f32 %v13469_v13, %v21738_v45  ;;  %v13478_v36 = vsel %vm4524_vm3, %v21112_v53, %v13449_v30 }
 0x8f4   :  { %14765 = vmatprep.subr.bf16.mxu1 %v14764_v3  ;;  %13306 = vmatprep.mubr.f32.mxu0 %v21673_v35  ;;  %v13492_v23 = vmul.f32 %v13478_v36, %v21737_v52 }
 0x8f5   :  { %14327 = vmatmul.mubr.msk.f32.gmra.mrb[30].mxu1 %vm6472_vm2, %v14319_v27  ;;  %v14778_v32 = vpack.c.bf16 %v13490_v47, %v13486_v8 }
 0x8f6   :  { %v13457_v63 = vpop.permute.xlu0 %13456  ;;  %14767 = vmatpush1.bf16.msra.mxu1 %v14766_v48  ;;  %13395 = vmatprep.mubr.f32.mxu1 %v21673_v35 }
 0x8f7   :  { %v13459_v4 = vpop.permute.xlu1 %13458  ;;  %14777 = vmatprep.subr.bf16.mxu1 %v14776_v1  ;;  %14332 = vmatmul.mubr.msk.f32.vlgmr.msra.gmra.mrb[24].mxu0 %vm6472_vm2, %v14328_v10  ;;  %v13474_v16 = vsel %vm4524_vm3, %v13449_v30, %v13457_v63 }
 0x8f8   :  { %14771 = vmatpush1.bf16.msra.mxu0 %v14770_v41  ;;  %13312 = vmatprep.mubr.f32.mxu0 %v21673_v35  ;;  %v13493_v19 = vmul.f32 %v13474_v16, %v21735_v25 }
 0x8f9   :  { %14336 = vmatmul.mubr.msk.f32.vlgmr.msra.gmra.mrb[24].mxu1 %vm6472_vm2, %v14328_v10 }
 0x8fa   :  { %v13465_v0 = vpop.permute.xlu0 %13464  ;;  %14779 = vmatpush1.bf16.msra.mxu1 %v14778_v32  ;;  %13401 = vmatprep.mubr.f32.mxu1 %v21673_v35 }
 0x8fb   :  { %v13451_v21 = vpop.permute.xlu1 %13450  ;;  %14333 = vmatmul.mubr.msk.f32.gmra.mrb[26].mxu0 %vm6472_vm2, %v14329_v14  ;;  %v13470_v38 = vsel %vm4524_vm3, %v13457_v63, %v13465_v0  ;;  %v13482_v17 = vsel %vm4524_vm3, %v13465_v0, %v21112_v53  ;;  %v14341_v53 = vld [vmem:[%s21261_s5 + $0x108] sm:$0xff]  ;;  %s15659_s5 = smov [#allocation5]  }
 0x8fc   :  { %v13475_v57 = vsel %vm4524_vm3, %v13451_v21, %v13459_v4  ;;  %v13479_v61 = vsel %vm4524_vm3, %v13443_v40, %v13451_v21  ;;  %13318 = vmatprep.mubr.f32.mxu0 %v21673_v35  ;;  %v13494_v59 = vmul.f32 %v13470_v38, %v21738_v45  ;;  %v13495_v39 = vmul.f32 %v13482_v17, %v21736_v11  ;;  %s13732_s18 = sshll.u32 %s15659_s5, 4  ;;  %s13733_s18 = int_to_ptr.vmem [resolvable:$true] %s13732_s18 }
 0x8fd   :  { %v13496_v44 = vmul.f32 %v13479_v61, %v21737_v52  ;;  %v13497_v5 = vmul.f32 %v13475_v57, %v21735_v25  ;;  %14337 = vmatmul.mubr.msk.f32.gmra.mrb[26].mxu1 %vm6472_vm2, %v14329_v14  ;;  %s15606_s19 = scalar_lea.vmem %s13733_s18, 2048  ;;  %p15611_p9 = scmp.lt.s32.totalorder %s13733_s18, %s13733_s18 }
 0x8fe   :  { %13407 = vmatprep.mubr.f32.mxu1 %v21673_v35  ;;  %p15607_p8 = scmp.ne.s32.totalorder %s13733_s18, %s15606_s19  ;;  %p15612_p10 = scmp.lt.s32.totalorder %s15606_s19, %s15606_s19 }
 0x8ff   :  { %v14774_v43 = vpack.c.bf16 %v13496_v44, %v13492_v23  ;;  %v13467_v12 = vpop.permute.xlu1 %13466  ;;  %v14772_v29 = vpack.c.bf16 %v13497_v5, %v13493_v19  ;;  %14334 = vmatmul.mubr.msk.f32.gmra.mrb[28].mxu0 %vm6472_vm2, %v14330_v31 }
 0x900   :  { %v13471_v50 = vsel %vm4524_vm3, %v13459_v4, %v13467_v12  ;;  %v13483_v25 = vsel %vm4524_vm3, %v13467_v12, %v13443_v40  ;;  %13324 = vmatprep.mubr.f32.mxu0 %v21673_v35  ;;  %p15613_p11 = por %p15612_p10, %p15611_p9 }
 0x901   :  { %v13498_v24 = vmul.f32 %v13471_v50, %v21738_v45  ;;  %v13499_v20 = vmul.f32 %v13483_v25, %v21736_v11  ;;  %14773 = vmatprep.subr.bf16.mxu0 %v14772_v29  ;;  %14338 = vmatmul.mubr.msk.f32.gmra.mrb[28].mxu1 %vm6472_vm2, %v14330_v31 }
 0x902   :  { %14775 = vmatpush1.bf16.msra.mxu0 %v14774_v43  ;;  %13413 = vmatprep.mubr.f32.mxu1 %v21673_v35  ;;  %p15614_p12 = pnand %p15613_p11, %p15607_p8 }
 0x903   :  { %v14782_v7 = vpack.c.bf16 %v13498_v24, %v13494_v59  ;;  %v14780_v37 = vpack.c.bf16 %v13499_v20, %v13495_v39  ;;  %14335 = vmatmul.mubr.msk.f32.gmra.mrb[30].mxu0 %vm6472_vm2, %v14331_v33 }
 0x904   :  { %13581 = vmatprep.mubr.f32.mxu0 %v21673_v35 }
 0x905   :  { %14781 = vmatprep.subr.bf16.mxu1 %v14780_v37  ;;  %14339 = vmatmul.mubr.msk.f32.gmra.mrb[30].mxu1 %vm6472_vm2, %v14331_v33 }
 0x906   :  { %14783 = vmatpush1.bf16.msra.mxu1 %v14782_v7  ;;  %13670 = vmatprep.mubr.f32.mxu1 %v21673_v35 }
 0x907   :  { %14344 = vmatmul.mubr.msk.f32.vlgmr.msra.gmra.mrb[24].mxu0 %vm6472_vm2, %v14340_v34 }
 0x908   :  { %13587 = vmatprep.mubr.f32.mxu0 %v21673_v35 }
 0x909   :  { %14348 = vmatmul.mubr.msk.f32.vlgmr.msra.gmra.mrb[24].mxu1 %vm6472_vm2, %v14340_v34 }
 0x90a   :  { %13676 = vmatprep.mubr.f32.mxu1 %v21673_v35 }
 0x90b   :  { %14345 = vmatmul.mubr.msk.f32.gmra.mrb[26].mxu0 %vm6472_vm2, %v14341_v53 }
 0x90c   :  { %13593 = vmatprep.mubr.f32.mxu0 %v21673_v35 }
 0x90d   :  { %14349 = vmatmul.mubr.msk.f32.gmra.mrb[26].mxu1 %vm6472_vm2, %v14341_v53 }
 0x90e   :  { %13682 = vmatprep.mubr.f32.mxu1 %v21673_v35 }
 0x90f   :  { %14346 = vmatmul.mubr.msk.f32.gmra.mrb[28].mxu0 %vm6472_vm2, %v14342_v62 }
 0x910   :  { %13599 = vmatprep.mubr.f32.mxu0 %v21673_v35 }
 0x911   :  { %14350 = vmatmul.mubr.msk.f32.gmra.mrb[28].mxu1 %vm6472_vm2, %v14342_v62 }
 0x912   :  { %13688 = vmatprep.mubr.f32.mxu1 %v21673_v35 }
 0x913   :  { %14347 = vmatmul.mubr.msk.f32.gmra.mrb[30].mxu0 %vm6472_vm2, %v14343_v9 }
 0x915   :  { %14351 = vmatmul.mubr.msk.f32.gmra.mrb[30].mxu1 %vm6472_vm2, %v14343_v9 }
 0x9da   :  { %v13583_v22 = vpop.f32.mrb[24].mxu0 }
 0x9db   :  { %13711 = vst [vmem:[#allocation5] sm:$0xff] %v13583_v22  ;;  %v13585_v51 = vpop.f32.mrb[25].mxu0 }
 0x9dc   :  { %13712 = vst [vmem:[#allocation5 + $0x8] sm:$0xff] %v13585_v51  ;;  %v13672_v42 = vpop.f32.mrb[24].mxu1 }
 0x9dd   :  { %13713 = vst [vmem:[#allocation5 + $0x10] sm:$0xff] %v13672_v42  ;;  %v13674_v26 = vpop.f32.mrb[25].mxu1 }
 0x9de   :  { %13714 = vst [vmem:[#allocation5 + $0x18] sm:$0xff] %v13674_v26  ;;  %v13589_v15 = vpop.f32.mrb[26].mxu0 }
 0x9df   :  { %13715 = vst [vmem:[#allocation5 + $0x20] sm:$0xff] %v13589_v15  ;;  %v13591_v6 = vpop.f32.mrb[27].mxu0 }
 0x9e0   :  { %13716 = vst [vmem:[#allocation5 + $0x28] sm:$0xff] %v13591_v6  ;;  %v13678_v2 = vpop.f32.mrb[26].mxu1 }
 0x9e1   :  { %13717 = vst [vmem:[#allocation5 + $0x30] sm:$0xff] %v13678_v2  ;;  %v13680_v49 = vpop.f32.mrb[27].mxu1 }
 0x9e2   :  { %13718 = vst [vmem:[#allocation5 + $0x38] sm:$0xff] %v13680_v49  ;;  %v13595_v35 = vpop.f32.mrb[28].mxu0 }
 0x9e3   :  { %13719 = vst [vmem:[#allocation5 + $0x40] sm:$0xff] %v13595_v35  ;;  %v13597_v60 = vpop.f32.mrb[29].mxu0 }
 0x9e4   :  { %13720 = vst [vmem:[#allocation5 + $0x48] sm:$0xff] %v13597_v60  ;;  %v13684_v54 = vpop.f32.mrb[28].mxu1 }
 0x9e5   :  { %13721 = vst [vmem:[#allocation5 + $0x50] sm:$0xff] %v13684_v54  ;;  %v13686_v27 = vpop.f32.mrb[29].mxu1 }
 0x9e6   :  { %13722 = vst [vmem:[#allocation5 + $0x58] sm:$0xff] %v13686_v27  ;;  %v13601_v56 = vpop.f32.mrb[30].mxu0 }
 0x9e7   :  { %13723 = vst [vmem:[#allocation5 + $0x60] sm:$0xff] %v13601_v56  ;;  %v13603_v58 = vpop.f32.mrb[31].mxu0 }
 0x9e8   :  { %13724 = vst [vmem:[#allocation5 + $0x68] sm:$0xff] %v13603_v58  ;;  %v13690_v11 = vpop.f32.mrb[30].mxu1 }
 0x9e9   :  { %13725 = vst [vmem:[#allocation5 + $0x70] sm:$0xff] %v13690_v11  ;;  %v13692_v55 = vpop.f32.mrb[31].mxu1 }
 0x9ea   :  { %13726 = vst [vmem:[#allocation5 + $0x78] sm:$0xff] %v13692_v55 }
 0x9eb   :  { %15617 = shalt.err (!%p15614_p12)
}
 0x9ec   :  { %s15618_s22 = scalar_lea.hbm %s21262_s6, 2048 }
 0x9ed   :  { %p15619_p13 = scmp.ne.s32.totalorder %s21262_s6, %s15618_s22  ;;  %p15622_p0 = scmp.lt.u32.totalorder %s15618_s22, %s21262_s6 }
 0x9ef   :  { %p15624_p1 = pnand %p15622_p0, %p15619_p13 }
 0x9f1   :  { %15627 = shalt.err (!%p15624_p1)
}
 0x9f2   :  { %13738 = dma.vmem_to_hbm [thread:$0]  %s13733_s18, 2048, %s21262_s6, [#allocation4], %s15633_s7, %s15633_s7, %s15634_s8  }
 0x9f3   :  { %15630 = dma.done.wait [#allocation4], 2048  }
 0x9f4   :  { %15631 = vsyncadd [#allocation4], 4294965248 }
 0x9f5   :  { %13742 = vsyncpa [#allocation3], 1 }
 0x9f6   :  { %13743 = vsyncpa [#allocation4], 1 }

</bundles_post_ra>
